<compile_context>
chip_gen: v5e
topology: v5e:2x2
jax: 0.10.0
libtpu: 0.0.40
codegen_flags: <defaults>
</compile_context>

<pallas_src>
import jax
import jax.numpy as jnp
from jax.experimental import pallas as pl
from jax.experimental.pallas import tpu as pltpu

NEG_SLOPE = 0.01  # nn.LeakyReLU default negative_slope


# ---------------------------------------------------------------------------
# Kernels
# ---------------------------------------------------------------------------
def _miostone_resident_kernel(gate_ref, x_ref, xlin_ref, wmlp_ref, bmlp_ref,
                              wlin_ref, blin_ref, gated_ref, lin_out_ref):
    """Resident-weight path: weights live in VMEM for the whole grid."""
    g = gate_ref[0, 0]                                       # f32 scalar in SMEM
    h = jnp.dot(x_ref[...], wmlp_ref[...],
                preferred_element_type=jnp.float32) + bmlp_ref[...]
    x_mlp = jnp.where(h >= 0, h, NEG_SLOPE * h)              # LeakyReLU in f32
    x_lin = jnp.dot(xlin_ref[...], wlin_ref[...],
                    preferred_element_type=jnp.float32) + blin_ref[...]
    lin_out_ref[...] = x_lin.astype(lin_out_ref.dtype)
    # g*x_mlp + (1-g)*x_lin == x_lin + g*(x_mlp - x_lin)  (one fewer VALU mul)
    gated_ref[...] = (x_lin + g * (x_mlp - x_lin)).astype(gated_ref.dtype)


def _miostone_tiled_kernel(gate_ref, x_ref, xlin_ref, wmlp_ref, bmlp_ref,
                           wlin_ref, blin_ref, gated_ref, lin_out_ref,
                           acc_mlp_ref, acc_lin_ref):
    """Streaming path: grid = (B tiles, Fout tiles, Fin tiles); K axis last."""
    k = pl.program_id(2)

    @pl.when(k == 0)
    def _():
        acc_mlp_ref[...] = jnp.zeros_like(acc_mlp_ref)
        acc_lin_ref[...] = jnp.zeros_like(acc_lin_ref)

    acc_mlp_ref[...] += jnp.dot(x_ref[...], wmlp_ref[...],
                                preferred_element_type=jnp.float32)
    acc_lin_ref[...] += jnp.dot(xlin_ref[...], wlin_ref[...],
                                preferred_element_type=jnp.float32)

    @pl.when(k == pl.num_programs(2) - 1)
    def _():
        g = gate_ref[0, 0]
        h = acc_mlp_ref[...] + bmlp_ref[...]
        x_mlp = jnp.where(h >= 0, h, NEG_SLOPE * h)
        x_lin = acc_lin_ref[...] + blin_ref[...]
        lin_out_ref[...] = x_lin.astype(lin_out_ref.dtype)
        gated_ref[...] = (x_lin + g * (x_mlp - x_lin)).astype(gated_ref.dtype)


# ---------------------------------------------------------------------------
# Helpers
# ---------------------------------------------------------------------------
def _cdiv(a, b):
    return -(-a // b)


def _round_up(v, m):
    return _cdiv(v, m) * m


def _maybe_pad2(a, rows, cols):
    if a.shape == (rows, cols):
        return a
    return jnp.pad(a, ((0, rows - a.shape[0]), (0, cols - a.shape[1])))


def _pick_tile(dim_p, target):
    """Largest multiple of 128 <= target that divides dim_p (dim_p % 128 == 0)."""
    t = max(128, min((target // 128) * 128, dim_p))
    while dim_p % t:
        t -= 128
    return t


def _pick_batch_tile(batch, tb_target, sub):
    """Batch tile: dtype-aware sublane multiple; >=2 grid steps when possible
    so both v7x TensorCores get work (harmless extra step on v5e/v6e)."""
    tb_target = max(sub, _round_up(tb_target, sub))
    n_steps = _cdiv(batch, tb_target)
    if batch > sub:
        n_steps = max(2, n_steps)
    return _round_up(_cdiv(batch, n_steps), sub)


def _vmem_budget_bytes():
    """Generation-aware VMEM budget (leave headroom for Mosaic internal scratch)."""
    try:
        cap = int(pltpu.get_tpu_info().vmem_capacity_bytes)
    except Exception:
        cap = 64 << 20                         # conservative: assume v7x-sized VMEM
    if cap <= (64 << 20):                      # v7x: 64 MiB physical
        return max(32 << 20, cap - (12 << 20))
    return max(32 << 20, min(cap - (24 << 20), 104 << 20))   # v5e/v6e: 128 MiB


# ---------------------------------------------------------------------------
# One-time parameter preparation (transpose / pad / cast once, not per call)
# ---------------------------------------------------------------------------
def prepare_miostone_params(w_mlp, b_mlp, w_lin, b_lin, *, matmul_dtype=jnp.bfloat16):
    """w_*: [Fout, Fin] PyTorch layout with the pruning mask pre-applied.
    Returns parameters transposed to the native MXU layout [Fin_p, Fout_p],
    padded to lane multiples of 128 and cast to the matmul dtype."""
    Fout, Fin = w_mlp.shape
    Fin_p, Fout_p = _round_up(Fin, 128), _round_up(Fout, 128)

    def prep_w(w):
        w = jnp.asarray(w, jnp.float32).T                 # [Fin, Fout]
        return _maybe_pad2(w, Fin_p, Fout_p).astype(matmul_dtype)

    def prep_b(b):
        b = jnp.asarray(b, jnp.float32).reshape(1, -1)    # bias stays f32
        return _maybe_pad2(b, 1, Fout_p)

    return dict(w_mlp=prep_w(w_mlp), b_mlp=prep_b(b_mlp),
                w_lin=prep_w(w_lin), b_lin=prep_b(b_lin),
                Fin=Fin, Fout=Fout, Fin_p=Fin_p, Fout_p=Fout_p,
                matmul_dtype=jnp.dtype(matmul_dtype))


# ---------------------------------------------------------------------------
# Forward
# ---------------------------------------------------------------------------
def miostone_forward(x, x_linear, params, gate_param, *, tb=256,
                     force_tiled=False, tk=None, tn=None, out_dtype=jnp.float32):
    """x, x_linear: [B, Fin]; params: from prepare_miostone_params;
    gate_param: Python float / 0-d array (deterministic gate).
    Returns (x_gated, x_linear_out, l0_reg)."""
    w_mlp, b_mlp = params["w_mlp"], params["b_mlp"]
    w_lin, b_lin = params["w_lin"], params["b_lin"]
    Fin, Fout = params["Fin"], params["Fout"]
    Fin_p, Fout_p = params["Fin_p"], params["Fout_p"]
    mdt = params["matmul_dtype"]
    wbytes = jnp.dtype(mdt).itemsize
    obytes = jnp.dtype(out_dtype).itemsize

    B = x.shape[0]
    sub = max(8, 32 // wbytes)                 # f32 -> 8 sublanes, bf16 -> 16
    tb = _pick_batch_tile(B, tb, sub)
    B_p = _round_up(B, tb)

    xp = _maybe_pad2(jnp.asarray(x, mdt), B_p, Fin_p)
    xlp = _maybe_pad2(jnp.asarray(x_linear, mdt), B_p, Fin_p)
    gate = jnp.full((1, 1), gate_param, dtype=jnp.float32)

    budget = _vmem_budget_bytes()
    out_shape = (jax.ShapeDtypeStruct((B_p, Fout_p), out_dtype),
                 jax.ShapeDtypeStruct((B_p, Fout_p), out_dtype))
    operands = (gate, xp, xlp, w_mlp, b_mlp, w_lin, b_lin)

    # Resident estimate assumes single-copy (Buffered(1)) weights.
    resident_est = (2 * Fin_p * Fout_p * wbytes          # W_mlp + W_lin
                    + 2 * 2 * Fout_p * 4                 # biases (f32)
                    + 2 * 2 * tb * Fin_p * wbytes        # x, x_linear (dbl-buf)
                    + 2 * 2 * tb * Fout_p * obytes)      # two output tiles (dbl-buf)
    use_resident = (not force_tiled) and (resident_est + (6 << 20) <= budget)

    def _run_resident(weight_mode):
        wcopies = 1 if isinstance(weight_mode, pl.Buffered) else 2
        est = (wcopies * 2 * Fin_p * Fout_p * wbytes + 2 * 2 * Fout_p * 4
               + 2 * 2 * tb * Fin_p * wbytes + 2 * 2 * tb * Fout_p * obytes)
        vmem_limit = int(min(budget, max(est + (4 << 20), 32 << 20)))
        grid_spec = pltpu.PrefetchScalarGridSpec(
            num_scalar_prefetch=0,
            grid=(B_p // tb,),
            in_specs=[
                pl.BlockSpec(memory_space=pltpu.MemorySpace.SMEM),        # gate
                pl.BlockSpec((tb, Fin_p), lambda i: (i, 0)),              # x
                pl.BlockSpec((tb, Fin_p), lambda i: (i, 0)),              # x_linear
                pl.BlockSpec((Fin_p, Fout_p), lambda i: (0, 0),
                             pipeline_mode=weight_mode),                  # W_mlp
                pl.BlockSpec((1, Fout_p), lambda i: (0, 0),
                             pipeline_mode=weight_mode),                  # b_mlp
                pl.BlockSpec((Fin_p, Fout_p), lambda i: (0, 0),
                             pipeline_mode=weight_mode),                  # W_linear
                pl.BlockSpec((1, Fout_p), lambda i: (0, 0),
                             pipeline_mode=weight_mode),                  # b_linear
            ],
            out_specs=[
                pl.BlockSpec((tb, Fout_p), lambda i: (i, 0)),             # x_gated
                pl.BlockSpec((tb, Fout_p), lambda i: (i, 0)),             # x_linear out
            ],
        )
        return pl.pallas_call(
            _miostone_resident_kernel,
            out_shape=out_shape,
            grid_spec=grid_spec,
            compiler_params=pltpu.CompilerParams(
                dimension_semantics=("parallel",),
                vmem_limit_bytes=vmem_limit),
        )(*operands)

    def _run_tiled():
        tk_ = _pick_tile(Fin_p, tk or 512)
        tn_ = _pick_tile(Fout_p, tn or 512)
        est = (2 * 2 * tb * tk_ * wbytes + 2 * 2 * tk_ * tn_ * wbytes
               + 2 * 2 * tn_ * 4 + 2 * 2 * tb * tn_ * obytes
               + 2 * tb * tn_ * 4)
        vmem_limit = int(min(budget, max(est + (4 << 20), 32 << 20)))
        grid_spec = pltpu.PrefetchScalarGridSpec(
            num_scalar_prefetch=0,
            grid=(B_p // tb, Fout_p // tn_, Fin_p // tk_),
            in_specs=[
                pl.BlockSpec(memory_space=pltpu.MemorySpace.SMEM),        # gate
                pl.BlockSpec((tb, tk_), lambda i, j, k: (i, k)),          # x
                pl.BlockSpec((tb, tk_), lambda i, j, k: (i, k)),          # x_linear
                pl.BlockSpec((tk_, tn_), lambda i, j, k: (k, j)),         # W_mlp
                pl.BlockSpec((1, tn_), lambda i, j, k: (0, j)),           # b_mlp
                pl.BlockSpec((tk_, tn_), lambda i, j, k: (k, j)),         # W_linear
                pl.BlockSpec((1, tn_), lambda i, j, k: (0, j)),           # b_linear
            ],
            out_specs=[
                pl.BlockSpec((tb, tn_), lambda i, j, k: (i, j)),
                pl.BlockSpec((tb, tn_), lambda i, j, k: (i, j)),
            ],
            scratch_shapes=[pltpu.VMEM((tb, tn_), jnp.float32),
                            pltpu.VMEM((tb, tn_), jnp.float32)],
        )
        return pl.pallas_call(
            _miostone_tiled_kernel,
            out_shape=out_shape,
            grid_spec=grid_spec,
            compiler_params=pltpu.CompilerParams(
                dimension_semantics=("parallel", "parallel", "arbitrary"),
                vmem_limit_bytes=vmem_limit),
        )(*operands)

    gated = lin_out = None
    if use_resident:
        # Prefer single-buffered resident weights; fall back to default
        # double-buffering, then to the streamed/tiled path if lowering rejects.
        for weight_mode in (pl.Buffered(1), None):
            try:
                gated, lin_out = _run_resident(weight_mode)
                break
            except Exception:
                gated = None
    if gated is None:
        gated, lin_out = _run_tiled()

    if (B_p, Fout_p) != (B, Fout):
        gated = gated[:B, :Fout]
        lin_out = lin_out[:B, :Fout]

    l0_reg = jnp.asarray(0.0, dtype=jnp.float32)   # deterministic gate => 0.0
    return gated, lin_out, l0_reg


# ---------------------------------------------------------------------------
# Pure-JAX reference (mirrors the torch forward, f32)
# ---------------------------------------------------------------------------
def _ref_forward(x, x_linear, w_mlp, b_mlp, w_lin, b_lin, gate):
    h = x @ w_mlp.T + b_mlp
    x_mlp = jnp.where(h >= 0, h, NEG_SLOPE * h)
    x_lin = x_linear @ w_lin.T + b_lin
    return gate * x_mlp + (1.0 - gate) * x_lin, x_lin


if __name__ == "__main__":
    # Small taxonomy layer: 8 tree nodes, each maps a 32-wide input slice to a
    # 48-wide output slice (block-diagonal pruning mask), batch 256.
    B, Fin, Fout, n_groups = 256, 256, 384, 8
    gate_param = 0.3

    gin, gout = Fin // n_groups, Fout // n_groups
    connections = {
        f"node{g}": (list(range(g * gin, (g + 1) * gin)),
                     list(range(g * gout, (g + 1) * gout)))
        for g in range(n_groups)
    }

    # Pruning mask (out_features, in_features), same as _generate_pruning_mask.
    prune_mask = jnp.zeros((Fout, Fin), dtype=jnp.float32)
    for in_idx, out_idx in connections.values():
        prune_mask = prune_mask.at[
            jnp.ix_(jnp.array(out_idx), jnp.array(in_idx))].set(1.0)

    key = jax.random.PRNGKey(0)
    k_x, k_xl, k_wm, k_bm, k_wl, k_bl = jax.random.split(key, 6)
    x = jax.random.normal(k_x, (B, Fin), dtype=jnp.float32)
    x_linear = jax.random.normal(k_xl, (B, Fin), dtype=jnp.float32)

    bound = 1.0 / (Fin ** 0.5)  # nn.Linear default init range
    w_mlp = jax.random.uniform(k_wm, (Fout, Fin), minval=-bound, maxval=bound) * prune_mask
    b_mlp = jax.random.uniform(k_bm, (Fout,), minval=-bound, maxval=bound)
    w_lin = jax.random.uniform(k_wl, (Fout, Fin), minval=-bound, maxval=bound) * prune_mask
    b_lin = jax.random.uniform(k_bl, (Fout,), minval=-bound, maxval=bound)

    ref_gated, ref_lin = _ref_forward(x, x_linear, w_mlp, b_mlp, w_lin, b_lin, gate_param)

    # 1) Default path: bf16 MXU operands, resident single-copy weights.
    params_bf16 = prepare_miostone_params(w_mlp, b_mlp, w_lin, b_lin)
    gated, lin_out, l0_reg = miostone_forward(x, x_linear, params_bf16, gate_param)
    jax.block_until_ready((gated, lin_out, l0_reg))
    assert gated.shape == (B, Fout) and lin_out.shape == (B, Fout)
    assert jnp.allclose(gated, ref_gated, atol=3e-2, rtol=1e-2)
    assert jnp.allclose(lin_out, ref_lin, atol=3e-2, rtol=1e-2)
    assert float(l0_reg) == 0.0

    # 2) Forced streaming path with small tiles (exercises K accumulation / N tiling).
    gated_t, lin_t, _ = miostone_forward(x, x_linear, params_bf16, gate_param,
                                         force_tiled=True, tb=128, tk=128, tn=128)
    jax.block_until_ready((gated_t, lin_t))
    assert jnp.allclose(gated_t, ref_gated, atol=3e-2, rtol=1e-2)
    assert jnp.allclose(lin_t, ref_lin, atol=3e-2, rtol=1e-2)

    # 3) f32 matmul operands + ragged batch (exercises pad / output-slice path).
    params_f32 = prepare_miostone_params(w_mlp, b_mlp, w_lin, b_lin,
                                         matmul_dtype=jnp.float32)
    Bs = 250
    gated_f, lin_f, _ = miostone_forward(x[:Bs], x_linear[:Bs], params_f32, gate_param)
    jax.block_until_ready((gated_f, lin_f))
    assert gated_f.shape == (Bs, Fout)
    assert jnp.allclose(gated_f, ref_gated[:Bs], atol=1e-4, rtol=1e-4)
    assert jnp.allclose(lin_f, ref_lin[:Bs], atol=1e-4, rtol=1e-4)

    print("KERNEL_OK")
</pallas_src>

<mosaic_0001>
module attributes {stable_mosaic.version = 11 : i64} {
  func.func @_miostone_resident_kernel(%arg0: i32, %arg1: memref<1x1xf32, #tpu.memory_space<smem>>, %arg2: memref<128x256xbf16, #tpu.memory_space<vmem>>, %arg3: memref<128x256xbf16, #tpu.memory_space<vmem>>, %arg4: memref<256x384xbf16, #tpu.memory_space<vmem>>, %arg5: memref<1x384xf32, #tpu.memory_space<vmem>>, %arg6: memref<256x384xbf16, #tpu.memory_space<vmem>>, %arg7: memref<1x384xf32, #tpu.memory_space<vmem>>, %arg8: memref<128x384xf32, #tpu.memory_space<vmem>>, %arg9: memref<128x384xf32, #tpu.memory_space<vmem>>) attributes {dimension_semantics = [#tpu.dimension_semantics<parallel>], iteration_bounds = array<i64: 2>, scalar_prefetch = 0 : i64, scratch_operands = 0 : i64, tpu.core_type = #tpu.core_type<tc>, window_params = [{transform_indices = @transform_0, window_bounds = array<i64: 1, 1>}, {transform_indices = @transform_1, window_bounds = array<i64: 128, 256>}, {transform_indices = @transform_2, window_bounds = array<i64: 128, 256>}, {pipeline_mode = #tpu.pipeline_mode<synchronous>, transform_indices = @transform_3, window_bounds = array<i64: 256, 384>}, {pipeline_mode = #tpu.pipeline_mode<synchronous>, transform_indices = @transform_4, window_bounds = array<i64: 1, 384>}, {pipeline_mode = #tpu.pipeline_mode<synchronous>, transform_indices = @transform_5, window_bounds = array<i64: 256, 384>}, {pipeline_mode = #tpu.pipeline_mode<synchronous>, transform_indices = @transform_6, window_bounds = array<i64: 1, 384>}, {transform_indices = @transform_7, window_bounds = array<i64: 128, 384>}, {transform_indices = @transform_8, window_bounds = array<i64: 128, 384>}]} {
    %c0 = arith.constant 0 : index
    %c0_0 = arith.constant 0 : index
    %0 = memref.load %arg1[%c0, %c0_0] : memref<1x1xf32, #tpu.memory_space<smem>>
    %c0_1 = arith.constant 0 : index
    %c0_2 = arith.constant 0 : index
    %1 = vector.load %arg2[%c0_1, %c0_2] : memref<128x256xbf16, #tpu.memory_space<vmem>>, vector<128x256xbf16>
    %c0_3 = arith.constant 0 : index
    %c0_4 = arith.constant 0 : index
    %2 = vector.load %arg4[%c0_3, %c0_4] : memref<256x384xbf16, #tpu.memory_space<vmem>>, vector<256x384xbf16>
    %cst = arith.constant dense<0.000000e+00> : vector<128x384xf32>
    %3 = tpu.matmul %1, %2, %cst {dimension_numbers = #tpu.dot_dimension_numbers<[1], [0], [0], [1], [0, 0, 1, 1], [], []>} : vector<128x256xbf16>, vector<256x384xbf16>, vector<128x384xf32> -> vector<128x384xf32>
    %c0_5 = arith.constant 0 : index
    %c0_6 = arith.constant 0 : index
    %4 = vector.load %arg5[%c0_5, %c0_6] : memref<1x384xf32, #tpu.memory_space<vmem>>, vector<1x384xf32>
    %5 = vector.broadcast %4 : vector<1x384xf32> to vector<128x384xf32>
    %6 = arith.addf %3, %5 : vector<128x384xf32>
    %cst_7 = arith.constant 0.000000e+00 : f32
    %7 = vector.broadcast %cst_7 : f32 to vector<128x384xf32>
    %8 = arith.cmpf oge, %6, %7 : vector<128x384xf32>
    %cst_8 = arith.constant 0.00999999977 : f32
    %9 = vector.broadcast %cst_8 : f32 to vector<128x384xf32>
    %10 = arith.mulf %9, %6 : vector<128x384xf32>
    %11 = arith.select %8, %6, %10 : vector<128x384xi1>, vector<128x384xf32>
    %c0_9 = arith.constant 0 : index
    %c0_10 = arith.constant 0 : index
    %12 = vector.load %arg3[%c0_9, %c0_10] : memref<128x256xbf16, #tpu.memory_space<vmem>>, vector<128x256xbf16>
    %c0_11 = arith.constant 0 : index
    %c0_12 = arith.constant 0 : index
    %13 = vector.load %arg6[%c0_11, %c0_12] : memref<256x384xbf16, #tpu.memory_space<vmem>>, vector<256x384xbf16>
    %cst_13 = arith.constant dense<0.000000e+00> : vector<128x384xf32>
    %14 = tpu.matmul %12, %13, %cst_13 {dimension_numbers = #tpu.dot_dimension_numbers<[1], [0], [0], [1], [0, 0, 1, 1], [], []>} : vector<128x256xbf16>, vector<256x384xbf16>, vector<128x384xf32> -> vector<128x384xf32>
    %c0_14 = arith.constant 0 : index
    %c0_15 = arith.constant 0 : index
    %15 = vector.load %arg7[%c0_14, %c0_15] : memref<1x384xf32, #tpu.memory_space<vmem>>, vector<1x384xf32>
    %16 = vector.broadcast %15 : vector<1x384xf32> to vector<128x384xf32>
    %17 = arith.addf %14, %16 : vector<128x384xf32>
    %c0_16 = arith.constant 0 : index
    %c0_17 = arith.constant 0 : index
    %18 = vector.load %arg9[%c0_16, %c0_17] : memref<128x384xf32, #tpu.memory_space<vmem>>, vector<128x384xf32>
    tpu.vector_store %arg9[%c0_16, %c0_17], %17 {strides = array<i32>} : memref<128x384xf32, #tpu.memory_space<vmem>>, vector<128x384xf32>,
    %19 = arith.subf %11, %17 : vector<128x384xf32>
    %20 = vector.broadcast %0 : f32 to vector<128x384xf32>
    %21 = arith.mulf %20, %19 : vector<128x384xf32>
    %22 = arith.addf %17, %21 : vector<128x384xf32>
    %c0_18 = arith.constant 0 : index
    %c0_19 = arith.constant 0 : index
    %23 = vector.load %arg8[%c0_18, %c0_19] : memref<128x384xf32, #tpu.memory_space<vmem>>, vector<128x384xf32>
    tpu.vector_store %arg8[%c0_18, %c0_19], %22 {strides = array<i32>} : memref<128x384xf32, #tpu.memory_space<vmem>>, vector<128x384xf32>,
    return
  }
  func.func @transform_0(%arg0: i32) -> (i32, i32) {
    %c0_i32 = arith.constant 0 : i32
    %c0_i32_0 = arith.constant 0 : i32
    %c0_i32_1 = arith.constant 0 : i32
    return %c0_i32, %c0_i32_0 : i32, i32
  }
  func.func @transform_1(%arg0: i32) -> (i32, i32) {
    %c0_i32 = arith.constant 0 : i32
    %c0_i32_0 = arith.constant 0 : i32
    return %arg0, %c0_i32 : i32, i32
  }
  func.func @transform_2(%arg0: i32) -> (i32, i32) {
    %c0_i32 = arith.constant 0 : i32
    %c0_i32_0 = arith.constant 0 : i32
    return %arg0, %c0_i32 : i32, i32
  }
  func.func @transform_3(%arg0: i32) -> (i32, i32) {
    %c0_i32 = arith.constant 0 : i32
    %c0_i32_0 = arith.constant 0 : i32
    %c0_i32_1 = arith.constant 0 : i32
    return %c0_i32, %c0_i32_0 : i32, i32
  }
  func.func @transform_4(%arg0: i32) -> (i32, i32) {
    %c0_i32 = arith.constant 0 : i32
    %c0_i32_0 = arith.constant 0 : i32
    %c0_i32_1 = arith.constant 0 : i32
    return %c0_i32, %c0_i32_0 : i32, i32
  }
  func.func @transform_5(%arg0: i32) -> (i32, i32) {
    %c0_i32 = arith.constant 0 : i32
    %c0_i32_0 = arith.constant 0 : i32
    %c0_i32_1 = arith.constant 0 : i32
    return %c0_i32, %c0_i32_0 : i32, i32
  }
  func.func @transform_6(%arg0: i32) -> (i32, i32) {
    %c0_i32 = arith.constant 0 : i32
    %c0_i32_0 = arith.constant 0 : i32
    %c0_i32_1 = arith.constant 0 : i32
    return %c0_i32, %c0_i32_0 : i32, i32
  }
  func.func @transform_7(%arg0: i32) -> (i32, i32) {
    %c0_i32 = arith.constant 0 : i32
    %c0_i32_0 = arith.constant 0 : i32
    return %arg0, %c0_i32 : i32, i32
  }
  func.func @transform_8(%arg0: i32) -> (i32, i32) {
    %c0_i32 = arith.constant 0 : i32
    %c0_i32_0 = arith.constant 0 : i32
    return %arg0, %c0_i32 : i32, i32
  }
}

module attributes {stable_mosaic.version = 11 : i64} {
  func.func @_miostone_resident_kernel(%arg0: i32, %arg1: memref<1x1xf32, #tpu.memory_space<smem>>, %arg2: memref<128x256xbf16, #tpu.memory_space<vmem>>, %arg3: memref<128x256xbf16, #tpu.memory_space<vmem>>, %arg4: memref<256x384xbf16, #tpu.memory_space<vmem>>, %arg5: memref<1x384xf32, #tpu.memory_space<vmem>>, %arg6: memref<256x384xbf16, #tpu.memory_space<vmem>>, %arg7: memref<1x384xf32, #tpu.memory_space<vmem>>, %arg8: memref<128x384xf32, #tpu.memory_space<vmem>>, %arg9: memref<128x384xf32, #tpu.memory_space<vmem>>) attributes {dimension_semantics = [#tpu.dimension_semantics<parallel>], iteration_bounds = array<i64: 2>, scalar_prefetch = 0 : i64, scratch_operands = 0 : i64, tpu.core_type = #tpu.core_type<tc>, window_params = [{transform_indices = @transform_0, window_bounds = array<i64: 1, 1>}, {transform_indices = @transform_1, window_bounds = array<i64: 128, 256>}, {transform_indices = @transform_2, window_bounds = array<i64: 128, 256>}, {pipeline_mode = #tpu.pipeline_mode<synchronous>, transform_indices = @transform_3, window_bounds = array<i64: 256, 384>}, {pipeline_mode = #tpu.pipeline_mode<synchronous>, transform_indices = @transform_4, window_bounds = array<i64: 1, 384>}, {pipeline_mode = #tpu.pipeline_mode<synchronous>, transform_indices = @transform_5, window_bounds = array<i64: 256, 384>}, {pipeline_mode = #tpu.pipeline_mode<synchronous>, transform_indices = @transform_6, window_bounds = array<i64: 1, 384>}, {transform_indices = @transform_7, window_bounds = array<i64: 128, 384>}, {transform_indices = @transform_8, window_bounds = array<i64: 128, 384>}]} {
    %c0 = arith.constant 0 : index
    %c0_0 = arith.constant 0 : index
    %0 = memref.load %arg1[%c0, %c0_0] : memref<1x1xf32, #tpu.memory_space<smem>>
    %c0_1 = arith.constant 0 : index
    %c0_2 = arith.constant 0 : index
    %1 = vector.load %arg2[%c0_1, %c0_2] : memref<128x256xbf16, #tpu.memory_space<vmem>>, vector<128x256xbf16>
    %c0_3 = arith.constant 0 : index
    %c0_4 = arith.constant 0 : index
    %2 = vector.load %arg4[%c0_3, %c0_4] : memref<256x384xbf16, #tpu.memory_space<vmem>>, vector<256x384xbf16>
    %cst = arith.constant dense<0.000000e+00> : vector<128x384xf32>
    %3 = tpu.matmul %1, %2, %cst {dimension_numbers = #tpu.dot_dimension_numbers<[1], [0], [0], [1], [0, 0, 1, 1], [], []>} : vector<128x256xbf16>, vector<256x384xbf16>, vector<128x384xf32> -> vector<128x384xf32>
    %c0_5 = arith.constant 0 : index
    %c0_6 = arith.constant 0 : index
    %4 = vector.load %arg5[%c0_5, %c0_6] : memref<1x384xf32, #tpu.memory_space<vmem>>, vector<1x384xf32>
    %5 = vector.broadcast %4 : vector<1x384xf32> to vector<128x384xf32>
    %6 = arith.addf %3, %5 : vector<128x384xf32>
    %cst_7 = arith.constant 0.000000e+00 : f32
    %7 = vector.broadcast %cst_7 : f32 to vector<128x384xf32>
    %8 = arith.cmpf oge, %6, %7 : vector<128x384xf32>
    %cst_8 = arith.constant 0.00999999977 : f32
    %9 = vector.broadcast %cst_8 : f32 to vector<128x384xf32>
    %10 = arith.mulf %9, %6 : vector<128x384xf32>
    %11 = arith.select %8, %6, %10 : vector<128x384xi1>, vector<128x384xf32>
    %c0_9 = arith.constant 0 : index
    %c0_10 = arith.constant 0 : index
    %12 = vector.load %arg3[%c0_9, %c0_10] : memref<128x256xbf16, #tpu.memory_space<vmem>>, vector<128x256xbf16>
    %c0_11 = arith.constant 0 : index
    %c0_12 = arith.constant 0 : index
    %13 = vector.load %arg6[%c0_11, %c0_12] : memref<256x384xbf16, #tpu.memory_space<vmem>>, vector<256x384xbf16>
    %cst_13 = arith.constant dense<0.000000e+00> : vector<128x384xf32>
    %14 = tpu.matmul %12, %13, %cst_13 {dimension_numbers = #tpu.dot_dimension_numbers<[1], [0], [0], [1], [0, 0, 1, 1], [], []>} : vector<128x256xbf16>, vector<256x384xbf16>, vector<128x384xf32> -> vector<128x384xf32>
    %c0_14 = arith.constant 0 : index
    %c0_15 = arith.constant 0 : index
    %15 = vector.load %arg7[%c0_14, %c0_15] : memref<1x384xf32, #tpu.memory_space<vmem>>, vector<1x384xf32>
    %16 = vector.broadcast %15 : vector<1x384xf32> to vector<128x384xf32>
    %17 = arith.addf %14, %16 : vector<128x384xf32>
    %c0_16 = arith.constant 0 : index
    %c0_17 = arith.constant 0 : index
    %18 = vector.load %arg9[%c0_16, %c0_17] : memref<128x384xf32, #tpu.memory_space<vmem>>, vector<128x384xf32>
    tpu.vector_store %arg9[%c0_16, %c0_17], %17 {strides = array<i32>} : memref<128x384xf32, #tpu.memory_space<vmem>>, vector<128x384xf32>,
    %19 = arith.subf %11, %17 : vector<128x384xf32>
    %20 = vector.broadcast %0 : f32 to vector<128x384xf32>
    %21 = arith.mulf %20, %19 : vector<128x384xf32>
    %22 = arith.addf %17, %21 : vector<128x384xf32>
    %c0_18 = arith.constant 0 : index
    %c0_19 = arith.constant 0 : index
    %23 = vector.load %arg8[%c0_18, %c0_19] : memref<128x384xf32, #tpu.memory_space<vmem>>, vector<128x384xf32>
    tpu.vector_store %arg8[%c0_18, %c0_19], %22 {strides = array<i32>} : memref<128x384xf32, #tpu.memory_space<vmem>>, vector<128x384xf32>,
    return
  }
  func.func @transform_0(%arg0: i32) -> (i32, i32) {
    %c0_i32 = arith.constant 0 : i32
    %c0_i32_0 = arith.constant 0 : i32
    %c0_i32_1 = arith.constant 0 : i32
    return %c0_i32, %c0_i32_0 : i32, i32
  }
  func.func @transform_1(%arg0: i32) -> (i32, i32) {
    %c0_i32 = arith.constant 0 : i32
    %c0_i32_0 = arith.constant 0 : i32
    return %arg0, %c0_i32 : i32, i32
  }
  func.func @transform_2(%arg0: i32) -> (i32, i32) {
    %c0_i32 = arith.constant 0 : i32
    %c0_i32_0 = arith.constant 0 : i32
    return %arg0, %c0_i32 : i32, i32
  }
  func.func @transform_3(%arg0: i32) -> (i32, i32) {
    %c0_i32 = arith.constant 0 : i32
    %c0_i32_0 = arith.constant 0 : i32
    %c0_i32_1 = arith.constant 0 : i32
    return %c0_i32, %c0_i32_0 : i32, i32
  }
  func.func @transform_4(%arg0: i32) -> (i32, i32) {
    %c0_i32 = arith.constant 0 : i32
    %c0_i32_0 = arith.constant 0 : i32
    %c0_i32_1 = arith.constant 0 : i32
    return %c0_i32, %c0_i32_0 : i32, i32
  }
  func.func @transform_5(%arg0: i32) -> (i32, i32) {
    %c0_i32 = arith.constant 0 : i32
    %c0_i32_0 = arith.constant 0 : i32
    %c0_i32_1 = arith.constant 0 : i32
    return %c0_i32, %c0_i32_0 : i32, i32
  }
  func.func @transform_6(%arg0: i32) -> (i32, i32) {
    %c0_i32 = arith.constant 0 : i32
    %c0_i32_0 = arith.constant 0 : i32
    %c0_i32_1 = arith.constant 0 : i32
    return %c0_i32, %c0_i32_0 : i32, i32
  }
  func.func @transform_7(%arg0: i32) -> (i32, i32) {
    %c0_i32 = arith.constant 0 : i32
    %c0_i32_0 = arith.constant 0 : i32
    return %arg0, %c0_i32 : i32, i32
  }
  func.func @transform_8(%arg0: i32) -> (i32, i32) {
    %c0_i32 = arith.constant 0 : i32
    %c0_i32_0 = arith.constant 0 : i32
    return %arg0, %c0_i32 : i32, i32
  }
}

module attributes {stable_mosaic.version = 11 : i64} {
  func.func @_miostone_tiled_kernel(%arg0: i32, %arg1: i32, %arg2: i32, %arg3: memref<1x1xf32, #tpu.memory_space<smem>>, %arg4: memref<128x256xbf16, #tpu.memory_space<vmem>>, %arg5: memref<128x256xbf16, #tpu.memory_space<vmem>>, %arg6: memref<256x384xbf16, #tpu.memory_space<vmem>>, %arg7: memref<1x384xf32, #tpu.memory_space<vmem>>, %arg8: memref<256x384xbf16, #tpu.memory_space<vmem>>, %arg9: memref<1x384xf32, #tpu.memory_space<vmem>>, %arg10: memref<128x384xf32, #tpu.memory_space<vmem>>, %arg11: memref<128x384xf32, #tpu.memory_space<vmem>>, %arg12: memref<128x384xf32, #tpu.memory_space<vmem>>, %arg13: memref<128x384xf32, #tpu.memory_space<vmem>>) attributes {dimension_semantics = [#tpu.dimension_semantics<parallel>, #tpu.dimension_semantics<parallel>, #tpu.dimension_semantics<arbitrary>], iteration_bounds = array<i64: 2, 1, 1>, scalar_prefetch = 0 : i64, scratch_operands = 2 : i64, tpu.core_type = #tpu.core_type<tc>, window_params = [{transform_indices = @transform_0, window_bounds = array<i64: 1, 1>}, {transform_indices = @transform_1, window_bounds = array<i64: 128, 256>}, {transform_indices = @transform_2, window_bounds = array<i64: 128, 256>}, {transform_indices = @transform_3, window_bounds = array<i64: 256, 384>}, {transform_indices = @transform_4, window_bounds = array<i64: 1, 384>}, {transform_indices = @transform_5, window_bounds = array<i64: 256, 384>}, {transform_indices = @transform_6, window_bounds = array<i64: 1, 384>}, {transform_indices = @transform_7, window_bounds = array<i64: 128, 384>}, {transform_indices = @transform_8, window_bounds = array<i64: 128, 384>}]} {
    %c0_i32 = arith.constant 0 : i32
    %0 = arith.cmpi eq, %arg2, %c0_i32 : i32
    %1 = arith.extui %0 : i1 to i32
    %c0_i32_0 = arith.constant 0 : i32
    %2 = arith.cmpi ne, %1, %c0_i32_0 : i32
    scf.if %2 {
      %cst_19 = arith.constant 0.000000e+00 : f32
      %18 = vector.broadcast %cst_19 : f32 to vector<128x384xf32>
      %c0_20 = arith.constant 0 : index
      %c0_21 = arith.constant 0 : index
      %19 = vector.load %arg12[%c0_20, %c0_21] : memref<128x384xf32, #tpu.memory_space<vmem>>, vector<128x384xf32>
      tpu.vector_store %arg12[%c0_20, %c0_21], %18 {strides = array<i32>} : memref<128x384xf32, #tpu.memory_space<vmem>>, vector<128x384xf32>,
      %cst_22 = arith.constant 0.000000e+00 : f32
      %20 = vector.broadcast %cst_22 : f32 to vector<128x384xf32>
      %c0_23 = arith.constant 0 : index
      %c0_24 = arith.constant 0 : index
      %21 = vector.load %arg13[%c0_23, %c0_24] : memref<128x384xf32, #tpu.memory_space<vmem>>, vector<128x384xf32>
      tpu.vector_store %arg13[%c0_23, %c0_24], %20 {strides = array<i32>} : memref<128x384xf32, #tpu.memory_space<vmem>>, vector<128x384xf32>,
    } else {
    }
    %c0 = arith.constant 0 : index
    %c0_1 = arith.constant 0 : index
    %3 = vector.load %arg12[%c0, %c0_1] : memref<128x384xf32, #tpu.memory_space<vmem>>, vector<128x384xf32>
    %c0_2 = arith.constant 0 : index
    %c0_3 = arith.constant 0 : index
    %4 = vector.load %arg4[%c0_2, %c0_3] : memref<128x256xbf16, #tpu.memory_space<vmem>>, vector<128x256xbf16>
    %c0_4 = arith.constant 0 : index
    %c0_5 = arith.constant 0 : index
    %5 = vector.load %arg6[%c0_4, %c0_5] : memref<256x384xbf16, #tpu.memory_space<vmem>>, vector<256x384xbf16>
    %cst = arith.constant dense<0.000000e+00> : vector<128x384xf32>
    %6 = tpu.matmul %4, %5, %cst {dimension_numbers = #tpu.dot_dimension_numbers<[1], [0], [0], [1], [0, 0, 1, 1], [], []>} : vector<128x256xbf16>, vector<256x384xbf16>, vector<128x384xf32> -> vector<128x384xf32>
    %7 = arith.addf %3, %6 : vector<128x384xf32>
    %c0_6 = arith.constant 0 : index
    %c0_7 = arith.constant 0 : index
    %8 = vector.load %arg12[%c0_6, %c0_7] : memref<128x384xf32, #tpu.memory_space<vmem>>, vector<128x384xf32>
    tpu.vector_store %arg12[%c0_6, %c0_7], %7 {strides = array<i32>} : memref<128x384xf32, #tpu.memory_space<vmem>>, vector<128x384xf32>,
    %c0_8 = arith.constant 0 : index
    %c0_9 = arith.constant 0 : index
    %9 = vector.load %arg13[%c0_8, %c0_9] : memref<128x384xf32, #tpu.memory_space<vmem>>, vector<128x384xf32>
    %c0_10 = arith.constant 0 : index
    %c0_11 = arith.constant 0 : index
    %10 = vector.load %arg5[%c0_10, %c0_11] : memref<128x256xbf16, #tpu.memory_space<vmem>>, vector<128x256xbf16>
    %c0_12 = arith.constant 0 : index
    %c0_13 = arith.constant 0 : index
    %11 = vector.load %arg8[%c0_12, %c0_13] : memref<256x384xbf16, #tpu.memory_space<vmem>>, vector<256x384xbf16>
    %cst_14 = arith.constant dense<0.000000e+00> : vector<128x384xf32>
    %12 = tpu.matmul %10, %11, %cst_14 {dimension_numbers = #tpu.dot_dimension_numbers<[1], [0], [0], [1], [0, 0, 1, 1], [], []>} : vector<128x256xbf16>, vector<256x384xbf16>, vector<128x384xf32> -> vector<128x384xf32>
    %13 = arith.addf %9, %12 : vector<128x384xf32>
    %c0_15 = arith.constant 0 : index
    %c0_16 = arith.constant 0 : index
    %14 = vector.load %arg13[%c0_15, %c0_16] : memref<128x384xf32, #tpu.memory_space<vmem>>, vector<128x384xf32>
    tpu.vector_store %arg13[%c0_15, %c0_16], %13 {strides = array<i32>} : memref<128x384xf32, #tpu.memory_space<vmem>>, vector<128x384xf32>,
    %c0_i32_17 = arith.constant 0 : i32
    %15 = arith.cmpi eq, %arg2, %c0_i32_17 : i32
    %16 = arith.extui %15 : i1 to i32
    %c0_i32_18 = arith.constant 0 : i32
    %17 = arith.cmpi ne, %16, %c0_i32_18 : i32
    scf.if %17 {
      %c0_19 = arith.constant 0 : index
      %c0_20 = arith.constant 0 : index
      %18 = memref.load %arg3[%c0_19, %c0_20] : memref<1x1xf32, #tpu.memory_space<smem>>
      %c0_21 = arith.constant 0 : index
      %c0_22 = arith.constant 0 : index
      %19 = vector.load %arg12[%c0_21, %c0_22] : memref<128x384xf32, #tpu.memory_space<vmem>>, vector<128x384xf32>
      %c0_23 = arith.constant 0 : index
      %c0_24 = arith.constant 0 : index
      %20 = vector.load %arg7[%c0_23, %c0_24] : memref<1x384xf32, #tpu.memory_space<vmem>>, vector<1x384xf32>
      %21 = vector.broadcast %20 : vector<1x384xf32> to vector<128x384xf32>
      %22 = arith.addf %19, %21 : vector<128x384xf32>
      %cst_25 = arith.constant 0.000000e+00 : f32
      %23 = vector.broadcast %cst_25 : f32 to vector<128x384xf32>
      %24 = arith.cmpf oge, %22, %23 : vector<128x384xf32>
      %cst_26 = arith.constant 0.00999999977 : f32
      %25 = vector.broadcast %cst_26 : f32 to vector<128x384xf32>
      %26 = arith.mulf %25, %22 : vector<128x384xf32>
      %27 = arith.select %24, %22, %26 : vector<128x384xi1>, vector<128x384xf32>
      %c0_27 = arith.constant 0 : index
      %c0_28 = arith.constant 0 : index
      %28 = vector.load %arg13[%c0_27, %c0_28] : memref<128x384xf32, #tpu.memory_space<vmem>>, vector<128x384xf32>
      %c0_29 = arith.constant 0 : index
      %c0_30 = arith.constant 0 : index
      %29 = vector.load %arg9[%c0_29, %c0_30] : memref<1x384xf32, #tpu.memory_space<vmem>>, vector<1x384xf32>
      %30 = vector.broadcast %29 : vector<1x384xf32> to vector<128x384xf32>
      %31 = arith.addf %28, %30 : vector<128x384xf32>
      %c0_31 = arith.constant 0 : index
      %c0_32 = arith.constant 0 : index
      %32 = vector.load %arg11[%c0_31, %c0_32] : memref<128x384xf32, #tpu.memory_space<vmem>>, vector<128x384xf32>
      tpu.vector_store %arg11[%c0_31, %c0_32], %31 {strides = array<i32>} : memref<128x384xf32, #tpu.memory_space<vmem>>, vector<128x384xf32>,
      %33 = arith.subf %27, %31 : vector<128x384xf32>
      %34 = vector.broadcast %18 : f32 to vector<128x384xf32>
      %35 = arith.mulf %34, %33 : vector<128x384xf32>
      %36 = arith.addf %31, %35 : vector<128x384xf32>
      %c0_33 = arith.constant 0 : index
      %c0_34 = arith.constant 0 : index
      %37 = vector.load %arg10[%c0_33, %c0_34] : memref<128x384xf32, #tpu.memory_space<vmem>>, vector<128x384xf32>
      tpu.vector_store %arg10[%c0_33, %c0_34], %36 {strides = array<i32>} : memref<128x384xf32, #tpu.memory_space<vmem>>, vector<128x384xf32>,
    } else {
    }
    return
  }
  func.func @transform_0(%arg0: i32, %arg1: i32, %arg2: i32) -> (i32, i32) {
    %c0_i32 = arith.constant 0 : i32
    %c0_i32_0 = arith.constant 0 : i32
    %c0_i32_1 = arith.constant 0 : i32
    return %c0_i32, %c0_i32_0 : i32, i32
  }
  func.func @transform_1(%arg0: i32, %arg1: i32, %arg2: i32) -> (i32, i32) {
    %c0_i32 = arith.constant 0 : i32
    return %arg0, %arg2 : i32, i32
  }
  func.func @transform_2(%arg0: i32, %arg1: i32, %arg2: i32) -> (i32, i32) {
    %c0_i32 = arith.constant 0 : i32
    return %arg0, %arg2 : i32, i32
  }
  func.func @transform_3(%arg0: i32, %arg1: i32, %arg2: i32) -> (i32, i32) {
    %c0_i32 = arith.constant 0 : i32
    return %arg2, %arg1 : i32, i32
  }
  func.func @transform_4(%arg0: i32, %arg1: i32, %arg2: i32) -> (i32, i32) {
    %c0_i32 = arith.constant 0 : i32
    %c0_i32_0 = arith.constant 0 : i32
    return %c0_i32, %arg1 : i32, i32
  }
  func.func @transform_5(%arg0: i32, %arg1: i32, %arg2: i32) -> (i32, i32) {
    %c0_i32 = arith.constant 0 : i32
    return %arg2, %arg1 : i32, i32
  }
  func.func @transform_6(%arg0: i32, %arg1: i32, %arg2: i32) -> (i32, i32) {
    %c0_i32 = arith.constant 0 : i32
    %c0_i32_0 = arith.constant 0 : i32
    return %c0_i32, %arg1 : i32, i32
  }
  func.func @transform_7(%arg0: i32, %arg1: i32, %arg2: i32) -> (i32, i32) {
    %c0_i32 = arith.constant 0 : i32
    return %arg0, %arg1 : i32, i32
  }
  func.func @transform_8(%arg0: i32, %arg1: i32, %arg2: i32) -> (i32, i32) {
    %c0_i32 = arith.constant 0 : i32
    return %arg0, %arg1 : i32, i32
  }
}

</mosaic_0001>

<bundles_post_ra>
// kernel: tpu_custom_call.1
= control target key start
LH: loop header
LB: loop body
LE: loop exit
PB: predicated region body
PF: predicated region fallthrough
CT: control target
= control target key end

     0   :  { %s4411_s0 = inlined_call_operand.<no memory space> [shape: f32[1,1], index: 0, kind: input, shape index: {}]   ;;  %s4412_s1 = inlined_call_operand.hbm [shape: bf16[256,256], index: 1, kind: input, shape index: {}]   ;;  %s4413_s2 = inlined_call_operand.hbm [shape: bf16[256,256], index: 2, kind: input, shape index: {}]   ;;  %s4414_s3 = inlined_call_operand.hbm [shape: bf16[256,384], index: 3, kind: input, shape index: {}]   ;;  %s4415_s4 = inlined_call_operand.vmem [shape: f32[1,384], index: 4, kind: input, shape index: {}]   ;;  %s4416_s5 = inlined_call_operand.hbm [shape: bf16[256,384], index: 5, kind: input, shape index: {}]   ;;  %s4417_s6 = inlined_call_operand.vmem [shape: f32[1,384], index: 6, kind: input, shape index: {}]   ;;  %s4418_s7 = inlined_call_operand.hbm [shape: f32[256,384], index: 7, kind: output, shape index: {0}]   ;;  %s4419_s8 = inlined_call_operand.hbm [shape: f32[256,384], index: 8, kind: output, shape index: {1}]  }
   0x1   :  { %4425 = sst [smem:[#allocation24_spill]] %s4412_s1 }
   0x2   :  { %4426 = sst [smem:[#allocation25_spill]] %s4414_s3 }
   0x3   :  { %4427 = sst [smem:[#allocation26_spill]] %s4416_s5 }
   0x4   :  { %14 = sst [smem:[#allocation2]] %s4411_s0 }
   0x5   :  { %15 = vsyncpa [#allocation4], 0 }
   0x6   :  { %17 = vsyncpa [#allocation4 + $0x1], 0 }
   0x7   :  { %18 = vsyncpa [#allocation7], 0 }
   0x8   :  { %20 = vsyncpa [#allocation7 + $0x1], 0 }
   0x9   :  { %21 = vsyncpa [#allocation10], 0 }
   0xa   :  { %22 = vsyncpa [#allocation5], 0 }
   0xb   :  { %24 = vsyncpa [#allocation5 + $0x1], 0 }
   0xc   :  { %25 = vsyncpa [#allocation13], 0 }
   0xd   :  { %27 = vsyncpa [#allocation13 + $0x1], 0  ;;  %s3473_s29 = smov 0   ;;  %s3475_s30 = smov 0  }
   0xe   :  { %s3477_s9 = smov 0   ;;  %s3479_s10 = smov 0  }
   0xf LB: > { %4428 = sst [smem:[#allocation20_spill]] %s3411_s9  ;;  %s3494_s0 = sadd.s32 4294967295, %s3415_s10   ;;  %s3415_s10 = sphi %s3479_s10, %s4443_s10   ;;  %s3411_s9 = sphi %s3477_s9, %s4445_s9   ;;  %s3407_s30 = sphi %s3475_s30, %s4447_s30   ;;  %s3403_s29 = sphi %s3473_s29, %s4446_s29  }
  0x10   : > { %s2429_s11 = sadd.s32 4294967294, %s3415_s10   ;;  %p74_p0 = scmp.ne.s32.totalorder %s3407_s30, %s3403_s29 }
  0x11   : > { %p75_p1 = scmp.eq.s32.totalorder %s3494_s0, 0  ;;  %p208_p2 = scmp.eq.s32.totalorder %s3494_s0, 1 }
  0x12   : > { %p214_p3 = scmp.eq.s32.totalorder %s2429_s11, 1  ;;  %p2430_p5 = scmp.ge.s32.totalorder %s3415_s10, 1 }
  0x13   : > { %p3503_p4 = por %p75_p1, %p74_p0  ;;  %p247_p7 = scmp.lt.s32.totalorder %s3415_s10, 3 }
  0x14   : > { %p3508_p6 = por %p214_p3, %p74_p0  ;;  %s4431_s3 = sld [smem:[#allocation25_spill]] }
  0x15   : > { %p3516_p8 = pnand %p2430_p5, %p247_p7  ;;  %s3417_s18 = smov [#allocation8]  }
  0x16   : > { %s263_s19 = sshll.u32 %s3417_s18, 4  ;;  %s4433_s5 = sld [smem:[#allocation26_spill]]  ;;  %s264_s19 = int_to_ptr.vmem [resolvable:$true] %s263_s19 }
  0x17   : > { %p3118_p9 = pneg %p3516_p8  ;;  %s3418_s23 = smov 192  }
  0x18   : > { %s3419_s24 = smov 12   ;;  %s3420_s25 = smov [#allocation9]  }
  0x19   : > { %p3119_p10 = pnand %p3118_p9, %p75_p1  ;;  %s280_s26 = sshll.u32 %s3420_s25, 4  ;;  %s281_s26 = int_to_ptr.vmem [resolvable:$true] %s280_s26 }
  0x1a   : > { %s261_s16 = sshll.u32 %s4431_s3, 4  ;;  %s3529_s27 = sadd.s32 1, %s3415_s10   ;;  %s262_s16 = int_to_ptr.hbm [resolvable:$true] %s261_s16 }
  0x1b   : > { %3121 = dma.hbm_to_vmem [thread:$0]  (!%p3119_p10), %s262_s16, 6144, %s264_s19, [#allocation7], %s3418_s23, %s3418_s23, %s3419_s24  }
  0x1c   : > { %s278_s22 = sshll.u32 %s4433_s5, 4  ;;  %4434 = sst [smem:[#allocation21_spill]] %s3529_s27  ;;  %s279_s22 = int_to_ptr.hbm [resolvable:$true] %s278_s22 }
  0x1d   : > { %3124 = dma.hbm_to_vmem [thread:$0]  (!%p3119_p10), %s279_s22, 6144, %s281_s26, [#allocation10], %s3418_s23, %s3418_s23, %s3419_s24  }
  0x1e   : > { %s61_s28 = sadd.s32 1, %s3411_s9  ;;  %s58_s11 = ssub.s32 %s3415_s10, %s3529_s27 }
  0x1f   : > { %p68_p12 = scmp.ne.s32.totalorder %s3411_s9, %s3407_s30  ;;  %p59_p13 = scmp.eq.s32.totalorder %s58_s11, 0 }
  0x20   : > { %p69_p0 = scmp.eq.s32.totalorder %s3415_s10, 0  ;;  %p3141_p5 = scmp.lt.s32.totalorder %s3415_s10, 2 }
  0x21   : > { %p3539_p3 = por %p208_p2, %p68_p12  ;;  %s297_s16 = sand.u32 1, %s3411_s9  }
  0x22   : > { %s3545_s15 = scalar_select %p59_p13, %s3411_s9, %s61_s28  }
  0x23   : > { %p70_p7 = por %p69_p0, %p68_p12  ;;  %s3548_s18 = sshll.u32 %s297_s16, 7 }
  0x24   : > { %4436 = sst [smem:[#allocation22_spill]] %s3545_s15  ;;  %s4420_s19 = sshll.u32 %s3415_s10, 7 }
  0x25   : > { %s4437_s1 = sld [smem:[#allocation24_spill]]  ;;  %s301_s23 = scalar_lea.vmem [#allocation3], %s3548_s18 }
  0x26   : > { %s310_s24 = sshll.u32 %s301_s23, 4  ;;  %p3557_p2 = pnand %p3141_p5, %p70_p7  ;;  %s311_s24 = int_to_ptr.vmem [resolvable:$true] %s310_s24 }
  0x27   : > { %s298_s28 = scalar_lea.sflag [#allocation4], %s297_s16 }
  0x28   : > { %p3249_p10 = pneg %p3557_p2 }
  0x2b   : > { %s307_s22 = scalar_lea.hbm %s4437_s1, %s4420_s19 }
  0x2c   : > { %s308_s25 = sshll.u32 %s307_s22, 4  ;;  %s3252_s22 = scalar_lea.hbm %s4437_s1, 256  ;;  %s309_s25 = int_to_ptr.hbm [resolvable:$true] %s308_s25 }
  0x2d   : > { %s3245_s11 = sshra.s32 %s309_s25, 4  ;;  %s3246_s11 = int_to_ptr.hbm [resolvable:$true] %s3245_s11 }
  0x2e   : > { %s3247_s3 = scalar_lea.hbm %s3246_s11, 128  ;;  %p3253_p0 = scmp.lt.s32.totalorder %s3246_s11, %s4437_s1 }
  0x2f   : > { %p3248_p9 = scmp.ne.s32.totalorder %s3246_s11, %s3247_s3  ;;  %p3254_p5 = scmp.lt.s32.totalorder %s3252_s22, %s3247_s3 }
  0x31   : > { %p3250_p12 = pnand %p3249_p10, %p3248_p9  ;;  %p3255_p7 = por %p3254_p5, %p3253_p0 }
  0x33   : > { %p3251_p13 = pneg %p3250_p12 }
  0x35   : > { %p3256_p11 = pnand %p3255_p7, %p3251_p13 }
  0x37   : > { %3259 = shalt.err (!%p3256_p11)
}
  0x38   : > { %s3421_s16 = smov 128   ;;  %s3422_s5 = smov 8  }
  0x39   : > { %3128 = dma.hbm_to_vmem [thread:$0]  (!%p3557_p2), %s309_s25, 2048, %s311_s24, %s298_s28, %s3421_s16, %s3421_s16, %s3422_s5  }
  0x3a   : > { %s4439_s15 = sshll.u32 %s3415_s10, 7  ;;  %s324_s19 = scalar_lea.vmem [#allocation6], %s3548_s18 }
  0x3b   : > { %s330_s9 = scalar_lea.hbm %s4413_s2, %s4439_s15  ;;  %s333_s11 = sshll.u32 %s324_s19, 4  ;;  %s334_s11 = int_to_ptr.vmem [resolvable:$true] %s333_s11 }
  0x3c   : > { %s331_s3 = sshll.u32 %s330_s9, 4  ;;  %s320_s22 = sand.u32 1, %s3415_s10   ;;  %s332_s3 = int_to_ptr.hbm [resolvable:$true] %s331_s3 }
  0x3d   : > { %s321_s23 = scalar_lea.sflag [#allocation7], %s320_s22  ;;  %s3275_s1 = sshra.s32 %s332_s3, 4  ;;  %s3276_s1 = int_to_ptr.hbm [resolvable:$true] %s3275_s1 }
  0x3e   : > { %s3277_s27 = scalar_lea.hbm %s3276_s1, 128  ;;  %s3282_s28 = scalar_lea.hbm %s4413_s2, 256 }
  0x3f   : > { %p3278_p11 = scmp.ne.s32.totalorder %s3276_s1, %s3277_s27  ;;  %p3283_p13 = scmp.lt.s32.totalorder %s3276_s1, %s4413_s2 }
  0x40   : > { %p3284_p0 = scmp.lt.s32.totalorder %s3282_s28, %s3277_s27 }
  0x41   : > { %p3280_p9 = pnand %p3278_p11, %p3249_p10 }
  0x42   : > { %p3285_p5 = por %p3284_p0, %p3283_p13 }
  0x43   : > { %p3281_p12 = pneg %p3280_p9 }
  0x45   : > { %p3286_p7 = pnand %p3285_p5, %p3281_p12 }
  0x47   : > { %3289 = shalt.err (!%p3286_p7)
}
  0x48   : > { %3131 = dma.hbm_to_vmem [thread:$0]  (!%p3557_p2), %s332_s3, 2048, %s334_s11, %s321_s23, %s3421_s16, %s3421_s16, %s3422_s5  }
  0x49   : > { %345 = sbr.rel (%p3516_p8) target bundleno = 653 (0x28d), region = 48 }
  0x4e   : > { %s3595_s9 = sand.u32 1, %s3407_s30  }
  0x4f   : > { %s2443_s20 = sshll.u32 %s3595_s9, 7  ;;  %s348_s21 = scalar_lea.sflag [#allocation4], %s3595_s9 }
  0x50   : > { %s3599_s19 = scalar_lea.vmem [#allocation3], %s2443_s20 }
  0x51   : > { %3378 = dma.done.wait (%p3503_p4), %s348_s21, 2048  }
  0x52   : > { %3380 = vsyncadd (%p3503_p4), %s348_s21, 4294965248  ;;  %s357_s1 = sand.u32 1, %s3494_s0   ;;  %s3606_s17 = scalar_lea.vmem [#allocation6], %s2443_s20 }
  0x53   : > { %s358_s5 = scalar_lea.sflag [#allocation7], %s357_s1 }
  0x54   : > { %3382 = dma.done.wait (%p3503_p4), %s358_s5, 2048  }
  0x55   : > { %3384 = vsyncadd (%p3503_p4), %s358_s5, 4294965248 }
  0x56   : > { %3386 = dma.done.wait (%p75_p1), [#allocation7], 6144  }
  0x57   : > { %3388 = vsyncadd (%p75_p1), [#allocation7], 4294961152 }
  0x58   : > { %3390 = dma.done.wait (%p75_p1), [#allocation10], 6144  }
  0x59   : > { %3392 = vsyncadd (%p75_p1), [#allocation10], 4294961152  ;;  %v2597_v0 = vld [vmem:[#allocation8 + $0xa8] sm:$0xf]  ;;  %v3009_v1 = vld [vmem:[#allocation8 + $0xb0] sm:$0xf0] }
  0x5a   : > { %v2693_v2 = vld [vmem:[#allocation8 + $0x168] sm:$0xf]  ;;  %v2598_v3 = vor.u32 %v3009_v1, %v2597_v0  ;;  %v3033_v4 = vld [vmem:[#allocation8 + $0x170] sm:$0xf0]  ;;  %v3008_v5 = vld [vmem:[#allocation8 + $0xac] sm:$0xf] }
  0x5b   : > { %v2599_v6 = vld [vmem:[#allocation8 + $0xb4] sm:$0xf0]  ;;  %v2694_v7 = vor.u32 %v3033_v4, %v2693_v2  ;;  %v3032_v9 = vld [vmem:[#allocation8 + $0x16c] sm:$0xf]  ;;  %v2585_v11 = vld [vmem:[#allocation8 + $0x90] sm:$0xf] }
  0x5c   : > { %v2602_v8 = vor.u32 %v3008_v5, %v2599_v6  ;;  %v2695_v10 = vld [vmem:[#allocation8 + $0x174] sm:$0xf0]  ;;  %844 = vmatpush.bf16.msra.mxu0 %v2598_v3  ;;  %v3006_v13 = vld [vmem:[#allocation8 + $0x98] sm:$0xf0]  ;;  %v2681_v14 = vld [vmem:[#allocation8 + $0x150] sm:$0xf] }
  0x5d   : > { %v2698_v12 = vor.u32 %v3032_v9, %v2695_v10  ;;  %v3030_v15 = vld [vmem:[#allocation8 + $0x158] sm:$0xf0]  ;;  %893 = vmatpush.bf16.msra.mxu1 %v2694_v7  ;;  %v2586_v16 = vor.u32 %v3006_v13, %v2585_v11  ;;  %v3005_v18 = vld [vmem:[#allocation8 + $0x94] sm:$0xf]  ;;  %v2587_v19 = vld [vmem:[#allocation8 + $0x9c] sm:$0xf0] }
  0x5e   : > { %942 = vmatpush.bf16.msra.mxu2 %v2602_v8  ;;  %v2682_v17 = vor.u32 %v3030_v15, %v2681_v14  ;;  %v3029_v20 = vld [vmem:[#allocation8 + $0x154] sm:$0xf]  ;;  %v2590_v21 = vor.u32 %v3005_v18, %v2587_v19  ;;  %v2683_v22 = vld [vmem:[#allocation8 + $0x15c] sm:$0xf0]  ;;  %v2573_v23 = vld [vmem:[#allocation8 + $0x78] sm:$0xf] }
  0x5f   : > { %991 = vmatpush.bf16.msra.mxu3 %v2698_v12  ;;  %v3003_v24 = vld [vmem:[#allocation8 + $0x80] sm:$0xf0]  ;;  %v2686_v25 = vor.u32 %v3029_v20, %v2683_v22  ;;  %v2669_v26 = vld [vmem:[#allocation8 + $0x138] sm:$0xf]  ;;  %v3002_v28 = vld [vmem:[#allocation8 + $0x7c] sm:$0xf] }
  0x60   : > { %v3027_v27 = vld [vmem:[#allocation8 + $0x140] sm:$0xf0]  ;;  %845 = vmatpush.bf16.msra.mxu0 %v2586_v16  ;;  %v2574_v29 = vor.u32 %v3003_v24, %v2573_v23  ;;  %v2575_v30 = vld [vmem:[#allocation8 + $0x84] sm:$0xf0]  ;;  %v3026_v31 = vld [vmem:[#allocation8 + $0x13c] sm:$0xf] }
  0x61   : > { %v2671_v32 = vld [vmem:[#allocation8 + $0x144] sm:$0xf0]  ;;  %894 = vmatpush.bf16.msra.mxu1 %v2682_v17  ;;  %v2670_v33 = vor.u32 %v3027_v27, %v2669_v26  ;;  %v2578_v34 = vor.u32 %v3002_v28, %v2575_v30  ;;  %v2561_v35 = vld [vmem:[#allocation8 + $0x60] sm:$0xf]  ;;  %v3000_v36 = vld [vmem:[#allocation8 + $0x68] sm:$0xf0] }
  0x62   : > { %943 = vmatpush.bf16.msra.mxu2 %v2590_v21  ;;  %v2657_v37 = vld [vmem:[#allocation8 + $0x120] sm:$0xf]  ;;  %v2674_v38 = vor.u32 %v3026_v31, %v2671_v32  ;;  %v3024_v39 = vld [vmem:[#allocation8 + $0x128] sm:$0xf0]  ;;  %v2999_v40 = vld [vmem:[#allocation8 + $0x64] sm:$0xf]  ;;  %v2562_v44 = vor.u32 %v3000_v36, %v2561_v35 }
  0x63   : > { %992 = vmatpush.bf16.msra.mxu3 %v2686_v25  ;;  %v2563_v41 = vld [vmem:[#allocation8 + $0x6c] sm:$0xf0]  ;;  %v3023_v42 = vld [vmem:[#allocation8 + $0x124] sm:$0xf]  ;;  %v2658_v45 = vor.u32 %v3024_v39, %v2657_v37  ;;  %v2549_v47 = vld [vmem:[#allocation8 + $0x48] sm:$0xf] }
  0x64   : > { %v2659_v43 = vld [vmem:[#allocation8 + $0x12c] sm:$0xf0]  ;;  %846 = vmatpush.bf16.msra.mxu0 %v2574_v29  ;;  %v2566_v46 = vor.u32 %v2999_v40, %v2563_v41  ;;  %v2997_v48 = vld [vmem:[#allocation8 + $0x50] sm:$0xf0]  ;;  %v2645_v49 = vld [vmem:[#allocation8 + $0x108] sm:$0xf] }
  0x65   : > { %895 = vmatpush.bf16.msra.mxu1 %v2670_v33  ;;  %v2662_v50 = vor.u32 %v3023_v42, %v2659_v43  ;;  %v3021_v51 = vld [vmem:[#allocation8 + $0x110] sm:$0xf0]  ;;  %v2996_v52 = vld [vmem:[#allocation8 + $0x4c] sm:$0xf]  ;;  %v2551_v53 = vld [vmem:[#allocation8 + $0x54] sm:$0xf0]  ;;  %v2550_v56 = vor.u32 %v2997_v48, %v2549_v47 }
  0x66   : > { %944 = vmatpush.bf16.msra.mxu2 %v2578_v34  ;;  %v3020_v54 = vld [vmem:[#allocation8 + $0x10c] sm:$0xf]  ;;  %v2647_v55 = vld [vmem:[#allocation8 + $0x114] sm:$0xf0]  ;;  %v2646_v57 = vor.u32 %v3021_v51, %v2645_v49  ;;  %v2554_v58 = vor.u32 %v2996_v52, %v2551_v53  ;;  %v2537_v59 = vld [vmem:[#allocation8 + $0x30] sm:$0xf] }
  0x67   : > { %993 = vmatpush.bf16.msra.mxu3 %v2674_v38  ;;  %v2994_v60 = vld [vmem:[#allocation8 + $0x38] sm:$0xf0]  ;;  %v2633_v61 = vld [vmem:[#allocation8 + $0xf0] sm:$0xf]  ;;  %v2650_v62 = vor.u32 %v3020_v54, %v2647_v55  ;;  %v2993_v0 = vld [vmem:[#allocation8 + $0x34] sm:$0xf] }
  0x68   : > { %847 = vmatpush.bf16.msra.mxu0 %v2562_v44  ;;  %v3018_v63 = vld [vmem:[#allocation8 + $0xf8] sm:$0xf0]  ;;  %v2539_v1 = vld [vmem:[#allocation8 + $0x3c] sm:$0xf0]  ;;  %v3017_v2 = vld [vmem:[#allocation8 + $0xf4] sm:$0xf]  ;;  %v2538_v4 = vor.u32 %v2994_v60, %v2537_v59 }
  0x69   : > { %896 = vmatpush.bf16.msra.mxu1 %v2658_v45  ;;  %v2635_v3 = vld [vmem:[#allocation8 + $0xfc] sm:$0xf0]  ;;  %v2634_v5 = vor.u32 %v3018_v63, %v2633_v61  ;;  %v2542_v6 = vor.u32 %v2993_v0, %v2539_v1  ;;  %v2525_v7 = vld [vmem:[#allocation8 + $0x18] sm:$0xf]  ;;  %v2991_v8 = vld [vmem:[#allocation8 + $0x20] sm:$0xf0] }
  0x6a   : > { %945 = vmatpush.bf16.msra.mxu2 %v2566_v46  ;;  %v2621_v9 = vld [vmem:[#allocation8 + $0xd8] sm:$0xf]  ;;  %v2638_v10 = vor.u32 %v3017_v2, %v2635_v3  ;;  %v3015_v11 = vld [vmem:[#allocation8 + $0xe0] sm:$0xf0]  ;;  %v2990_v12 = vld [vmem:[#allocation8 + $0x1c] sm:$0xf]  ;;  %v2526_v16 = vor.u32 %v2991_v8, %v2525_v7 }
  0x6b   : > { %994 = vmatpush.bf16.msra.mxu3 %v2662_v50  ;;  %v2527_v13 = vld [vmem:[#allocation8 + $0x24] sm:$0xf0]  ;;  %v3014_v14 = vld [vmem:[#allocation8 + $0xdc] sm:$0xf]  ;;  %v2513_v17 = vld [vmem:[#allocation8] sm:$0xf]  ;;  %v2622_v19 = vor.u32 %v3015_v11, %v2621_v9 }
  0x6c   : > { %848 = vmatpush.bf16.msra.mxu0 %v2550_v56  ;;  %v2623_v15 = vld [vmem:[#allocation8 + $0xe4] sm:$0xf0]  ;;  %v2988_v18 = vld [vmem:[#allocation8 + $0x8] sm:$0xf0]  ;;  %v2530_v20 = vor.u32 %v2990_v12, %v2527_v13  ;;  %v2609_v21 = vld [vmem:[#allocation8 + $0xc0] sm:$0xf] }
  0x6d   : > { %897 = vmatpush.bf16.msra.mxu1 %v2646_v57  ;;  %v3012_v22 = vld [vmem:[#allocation8 + $0xc8] sm:$0xf0]  ;;  %v2987_v23 = vld [vmem:[#allocation8 + $0x4] sm:$0xf]  ;;  %v2626_v24 = vor.u32 %v3014_v14, %v2623_v15  ;;  %v2515_v25 = vld [vmem:[#allocation8 + $0xc] sm:$0xf0]  ;;  %v2514_v31 = vor.u32 %v2988_v18, %v2513_v17 }
  0x6e   : > { %946 = vmatpush.bf16.msra.mxu2 %v2554_v58  ;;  %v3011_v26 = vld [vmem:[#allocation8 + $0xc4] sm:$0xf]  ;;  %v2611_v27 = vld [vmem:[#allocation8 + $0xcc] sm:$0xf0]  ;;  %v2449_v28 = vld [vmem:[%s3599_s19] sm:$0xf]  ;;  %v2610_v35 = vor.u32 %v3012_v22, %v2609_v21  ;;  %v2518_v36 = vor.u32 %v2987_v23, %v2515_v25 }
  0x6f   : > { %995 = vmatpush.bf16.msra.mxu3 %v2650_v62  ;;  %v2853_v29 = vld [vmem:[#allocation9 + $0xa8] sm:$0xf]  ;;  %v3073_v30 = vld [vmem:[#allocation9 + $0xb0] sm:$0xf0]  ;;  %v2971_v37 = vld [vmem:[%s3599_s19 + $0x4] sm:$0xf]  ;;  %v2614_v39 = vor.u32 %v3011_v26, %v2611_v27 }
  0x70   : > { %849 = vmatpush.bf16.msra.mxu0 %v2538_v4  ;;  %v2972_v32 = vld [vmem:[%s3599_s19 + $0x4] sm:$0xf0]  ;;  %v3097_v34 = vld [vmem:[#allocation9 + $0x170] sm:$0xf0]  ;;  %v2451_v38 = vld [vmem:[%s3599_s19 + $0x8] sm:$0xf0]  ;;  %v2854_v40 = vor.u32 %v3073_v30, %v2853_v29 }
  0x71   : > { %898 = vmatpush.bf16.msra.mxu1 %v2634_v5  ;;  %v2949_v33 = vld [vmem:[#allocation9 + $0x168] sm:$0xf]  ;;  %v2605_v41 = vld [vmem:[#allocation8 + $0xb0] sm:$0xf]  ;;  %v3010_v42 = vld [vmem:[#allocation8 + $0xb8] sm:$0xf0]  ;;  %v3624_v44 = vor.u32 %v2972_v32, %v2449_v28  ;;  %v3626_v49 = vor.u32 %v2971_v37, %v2451_v38 }
  0x72   : > { %947 = vmatpush.bf16.msra.mxu2 %v2542_v6  ;;  %v2701_v43 = vld [vmem:[#allocation8 + $0x170] sm:$0xf]  ;;  %v2950_v45 = vor.u32 %v3097_v34, %v2949_v33  ;;  %v3034_v46 = vld [vmem:[#allocation8 + $0x178] sm:$0xf0]  ;;  %v2606_v52 = vor.u32 %v3010_v42, %v2605_v41  ;;  %v2593_v55 = vld [vmem:[#allocation8 + $0x98] sm:$0xf] }
  0x73   : > { %996 = vmatpush.bf16.msra.mxu3 %v2638_v10  ;;  %v2841_v47 = vld [vmem:[#allocation9 + $0x90] sm:$0xf]  ;;  %v3070_v48 = vld [vmem:[#allocation9 + $0x98] sm:$0xf0]  ;;  %v2702_v53 = vor.u32 %v3034_v46, %v2701_v43  ;;  %v3007_v56 = vld [vmem:[#allocation8 + $0xa0] sm:$0xf0] }
  0x74   : > { %850 = vmatpush.bf16.msra.mxu0 %v2526_v16  ;;  %v2937_v50 = vld [vmem:[#allocation9 + $0x150] sm:$0xf]  ;;  %v3094_v51 = vld [vmem:[#allocation9 + $0x158] sm:$0xf0]  ;;  %v2842_v54 = vor.u32 %v3070_v48, %v2841_v47  ;;  %v2689_v58 = vld [vmem:[#allocation8 + $0x158] sm:$0xf]  ;;  %v2594_v60 = vor.u32 %v3007_v56, %v2593_v55 }
  0x75   : > { %899 = vmatpush.bf16.msra.mxu1 %v2622_v19  ;;  %v2938_v57 = vor.u32 %v3094_v51, %v2937_v50  ;;  %v3031_v59 = vld [vmem:[#allocation8 + $0x160] sm:$0xf0]  ;;  %v2829_v61 = vld [vmem:[#allocation9 + $0x78] sm:$0xf]  ;;  %v2581_v3 = vld [vmem:[#allocation8 + $0x80] sm:$0xf] }
  0x76   : > { %948 = vmatpush.bf16.msra.mxu2 %v2530_v20  ;;  %v3067_v62 = vld [vmem:[#allocation9 + $0x80] sm:$0xf0]  ;;  %v2925_v63 = vld [vmem:[#allocation9 + $0x138] sm:$0xf]  ;;  %v2690_v0 = vor.u32 %v3031_v59, %v2689_v58  ;;  %v3004_v4 = vld [vmem:[#allocation8 + $0x88] sm:$0xf0] }
  0x77   : > { %997 = vmatpush.bf16.msra.mxu3 %v2626_v24  ;;  %v2830_v1 = vor.u32 %v3067_v62, %v2829_v61  ;;  %v3091_v2 = vld [vmem:[#allocation9 + $0x140] sm:$0xf0]  ;;  %v2677_v6 = vld [vmem:[#allocation8 + $0x140] sm:$0xf]  ;;  %v3028_v7 = vld [vmem:[#allocation8 + $0x148] sm:$0xf0]  ;;  %v2582_v8 = vor.u32 %v3004_v4, %v2581_v3 }
  0x78   : > { %851 = vmatpush.bf16.msra.mxu0 %v2514_v31  ;;  %v2926_v5 = vor.u32 %v3091_v2, %v2925_v63  ;;  %v2678_v9 = vor.u32 %v3028_v7, %v2677_v6  ;;  %v2457_v10 = vld [vmem:[%s3599_s19 + $0x10] sm:$0xf]  ;;  %v2974_v11 = vld [vmem:[%s3599_s19 + $0x14] sm:$0xf0]  ;;  %v2973_v12 = vld [vmem:[%s3599_s19 + $0x14] sm:$0xf] }
  0x79   : > { %900 = vmatpush.bf16.msra.mxu1 %v2610_v35  ;;  %v2459_v13 = vld [vmem:[%s3599_s19 + $0x18] sm:$0xf0]  ;;  %v3636_v14 = vor.u32 %v2974_v11, %v2457_v10  ;;  %v2817_v16 = vld [vmem:[#allocation9 + $0x60] sm:$0xf]  ;;  %v3064_v17 = vld [vmem:[#allocation9 + $0x68] sm:$0xf0] }
  0x7a   : > { %949 = vmatpush.bf16.msra.mxu2 %v2518_v36  ;;  %v3638_v15 = vor.u32 %v2973_v12, %v2459_v13  ;;  %v2913_v18 = vld [vmem:[#allocation9 + $0x120] sm:$0xf]  ;;  %v2818_v19 = vor.u32 %v3064_v17, %v2817_v16  ;;  %v3088_v20 = vld [vmem:[#allocation9 + $0x128] sm:$0xf0]  ;;  %v2569_v21 = vld [vmem:[#allocation8 + $0x68] sm:$0xf] }
  0x7b   : > { %998 = vmatpush.bf16.msra.mxu3 %v2614_v39  ;;  %852 = vmatmul.bf16.vlgmr.msra.gmra.mxu0 %v3624_v44  ;;  %v3001_v22 = vld [vmem:[#allocation8 + $0x70] sm:$0xf0]  ;;  %v2914_v23 = vor.u32 %v3088_v20, %v2913_v18  ;;  %v2665_v25 = vld [vmem:[#allocation8 + $0x128] sm:$0xf]  ;;  %v2465_v28 = vld [vmem:[%s3599_s19 + $0x20] sm:$0xf] }
  0x7c   : > { %901 = vmatmul.bf16.vlgmr.msra.gmra.mxu1 %v3626_v49  ;;  %1040 = vmatpush.bf16.msrb.mxu0 %v2606_v52  ;;  %v2570_v24 = vor.u32 %v3001_v22, %v2569_v21  ;;  %v3025_v26 = vld [vmem:[#allocation8 + $0x130] sm:$0xf0]  ;;  %v2976_v29 = vld [vmem:[%s3599_s19 + $0x24] sm:$0xf0]  ;;  %v2975_v30 = vld [vmem:[%s3599_s19 + $0x24] sm:$0xf] }
  0x7d   : > { %950 = vmatmul.bf16.vlgmr.msra.gmra.mxu2 %v3624_v44  ;;  %1089 = vmatpush.bf16.msrb.mxu1 %v2702_v53  ;;  %v2666_v27 = vor.u32 %v3025_v26, %v2665_v25  ;;  %v2467_v31 = vld [vmem:[%s3599_s19 + $0x28] sm:$0xf0]  ;;  %v3648_v32 = vor.u32 %v2976_v29, %v2465_v28  ;;  %v2805_v34 = vld [vmem:[#allocation9 + $0x48] sm:$0xf]  ;;  %v3061_v35 = vld [vmem:[#allocation9 + $0x50] sm:$0xf0] }
  0x7e   : > { %1706 = vmatpush.bf16.msrb.mxu2 %v2854_v40  ;;  %999 = vmatmul.bf16.vlgmr.msra.gmra.mxu3 %v3626_v49  ;;  %v3650_v33 = vor.u32 %v2975_v30, %v2467_v31  ;;  %v2901_v36 = vld [vmem:[#allocation9 + $0x108] sm:$0xf]  ;;  %v2806_v37 = vor.u32 %v3061_v35, %v2805_v34  ;;  %v3085_v38 = vld [vmem:[#allocation9 + $0x110] sm:$0xf0]  ;;  %v2557_v39 = vld [vmem:[#allocation8 + $0x50] sm:$0xf] }
  0x7f   : > { %1755 = vmatpush.bf16.msrb.mxu3 %v2950_v45  ;;  %v2998_v40 = vld [vmem:[#allocation8 + $0x58] sm:$0xf0]  ;;  %v2902_v41 = vor.u32 %v3085_v38, %v2901_v36  ;;  %v2653_v43 = vld [vmem:[#allocation8 + $0x110] sm:$0xf]  ;;  %v2978_v48 = vld [vmem:[%s3599_s19 + $0x34] sm:$0xf0] }
  0x80   : > { %1041 = vmatpush.bf16.msrb.mxu0 %v2594_v60  ;;  %v2558_v42 = vor.u32 %v2998_v40, %v2557_v39  ;;  %v3022_v45 = vld [vmem:[#allocation8 + $0x118] sm:$0xf0]  ;;  %v2473_v47 = vld [vmem:[%s3599_s19 + $0x30] sm:$0xf]  ;;  %v2977_v50 = vld [vmem:[%s3599_s19 + $0x34] sm:$0xf] }
  0x81   : > { %1090 = vmatpush.bf16.msrb.mxu1 %v2690_v0  ;;  %v2654_v46 = vor.u32 %v3022_v45, %v2653_v43  ;;  %v2475_v51 = vld [vmem:[%s3599_s19 + $0x38] sm:$0xf0]  ;;  %v3660_v52 = vor.u32 %v2978_v48, %v2473_v47  ;;  %v2889_v56 = vld [vmem:[#allocation9 + $0xf0] sm:$0xf]  ;;  %v2545_v59 = vld [vmem:[#allocation8 + $0x38] sm:$0xf] }
  0x82   : > { %1707 = vmatpush.bf16.msrb.mxu2 %v2842_v54  ;;  %v3662_v53 = vor.u32 %v2977_v50, %v2475_v51  ;;  %v2793_v54 = vld [vmem:[#allocation9 + $0x30] sm:$0xf]  ;;  %v3058_v55 = vld [vmem:[#allocation9 + $0x38] sm:$0xf0]  ;;  %v2995_v60 = vld [vmem:[#allocation8 + $0x40] sm:$0xf0] }
  0x83   : > { %1756 = vmatpush.bf16.msrb.mxu3 %v2938_v57  ;;  %v2794_v57 = vor.u32 %v3058_v55, %v2793_v54  ;;  %v3082_v58 = vld [vmem:[#allocation9 + $0xf8] sm:$0xf0]  ;;  %v2546_v62 = vor.u32 %v2995_v60, %v2545_v59  ;;  %v2641_v63 = vld [vmem:[#allocation8 + $0xf8] sm:$0xf]  ;;  %v3019_v0 = vld [vmem:[#allocation8 + $0x100] sm:$0xf0] }
  0x84   : > { %1042 = vmatpush.bf16.msrb.mxu0 %v2582_v8  ;;  %v2890_v61 = vor.u32 %v3082_v58, %v2889_v56  ;;  %v2481_v2 = vld [vmem:[%s3599_s19 + $0x40] sm:$0xf]  ;;  %v2980_v3 = vld [vmem:[%s3599_s19 + $0x44] sm:$0xf0]  ;;  %v2979_v4 = vld [vmem:[%s3599_s19 + $0x44] sm:$0xf] }
  0x85   : > { %1091 = vmatpush.bf16.msrb.mxu1 %v2678_v9  ;;  %v3672_v6 = vor.u32 %v2980_v3, %v2481_v2  ;;  %v2781_v8 = vld [vmem:[#allocation9 + $0x18] sm:$0xf]  ;;  %v3055_v9 = vld [vmem:[#allocation9 + $0x20] sm:$0xf0]  ;;  %v2533_v13 = vld [vmem:[#allocation8 + $0x20] sm:$0xf] }
  0x86   : > { %1708 = vmatpush.bf16.msrb.mxu2 %v2830_v1  ;;  %v2642_v1 = vor.u32 %v3019_v0, %v2641_v63  ;;  %v2877_v10 = vld [vmem:[#allocation9 + $0xd8] sm:$0xf]  ;;  %v2782_v11 = vor.u32 %v3055_v9, %v2781_v8  ;;  %v3079_v12 = vld [vmem:[#allocation9 + $0xe0] sm:$0xf0]  ;;  %v2992_v16 = vld [vmem:[#allocation8 + $0x28] sm:$0xf0] }
  0x87   : > { %1757 = vmatpush.bf16.msrb.mxu3 %v2926_v5  ;;  %v2483_v5 = vld [vmem:[%s3599_s19 + $0x48] sm:$0xf0]  ;;  %v2878_v17 = vor.u32 %v3079_v12, %v2877_v10  ;;  %v2534_v18 = vor.u32 %v2992_v16, %v2533_v13  ;;  %v2489_v22 = vld [vmem:[%s3599_s19 + $0x50] sm:$0xf]  ;;  %v2491_v25 = vld [vmem:[%s3599_s19 + $0x58] sm:$0xf0] }
  0x88   : > { %1043 = vmatpush.bf16.msrb.mxu0 %v2570_v24  ;;  %v3674_v7 = vor.u32 %v2979_v4, %v2483_v5  ;;  %v3016_v20 = vld [vmem:[#allocation8 + $0xe8] sm:$0xf0]  ;;  %v2981_v24 = vld [vmem:[%s3599_s19 + $0x54] sm:$0xf]  ;;  %v2769_v28 = vld [vmem:[#allocation9] sm:$0xf] }
  0x89   : > { %1092 = vmatpush.bf16.msrb.mxu1 %v2666_v27  ;;  %v3686_v27 = vor.u32 %v2981_v24, %v2491_v25  ;;  %v3052_v29 = vld [vmem:[#allocation9 + $0x8] sm:$0xf0]  ;;  %v2865_v30 = vld [vmem:[#allocation9 + $0xc0] sm:$0xf]  ;;  %v2521_v35 = vld [vmem:[#allocation8 + $0x8] sm:$0xf] }
  0x8a   : > { %1709 = vmatpush.bf16.msrb.mxu2 %v2818_v19  ;;  %v2629_v19 = vld [vmem:[#allocation8 + $0xe0] sm:$0xf]  ;;  %v2770_v31 = vor.u32 %v3052_v29, %v2769_v28  ;;  %v3076_v34 = vld [vmem:[#allocation9 + $0xc8] sm:$0xf0]  ;;  %v2989_v36 = vld [vmem:[#allocation8 + $0x10] sm:$0xf0] }
  0x8b   : > { %857 = vmatmul.bf16.gmra.mxu0 %v3636_v14  ;;  %1758 = vmatpush.bf16.msrb.mxu3 %v2914_v23  ;;  %v2630_v21 = vor.u32 %v3016_v20, %v2629_v19  ;;  %v2982_v23 = vld [vmem:[%s3599_s19 + $0x54] sm:$0xf0]  ;;  %v2522_v38 = vor.u32 %v2989_v36, %v2521_v35  ;;  %v2617_v39 = vld [vmem:[#allocation8 + $0xc8] sm:$0xf]  ;;  %v3013_v40 = vld [vmem:[#allocation8 + $0xd0] sm:$0xf0] }
  0x8c   : > { %906 = vmatmul.bf16.gmra.mxu1 %v3638_v15  ;;  %1044 = vmatpush.bf16.msrb.mxu0 %v2558_v42  ;;  %v3684_v26 = vor.u32 %v2982_v23, %v2489_v22  ;;  %v2497_v42 = vld [vmem:[%s3599_s19 + $0x60] sm:$0xf]  ;;  %v2984_v43 = vld [vmem:[%s3599_s19 + $0x64] sm:$0xf0]  ;;  %v2983_v45 = vld [vmem:[%s3599_s19 + $0x64] sm:$0xf] }
  0x8d   : > { %955 = vmatmul.bf16.gmra.mxu2 %v3636_v14  ;;  %1093 = vmatpush.bf16.msrb.mxu1 %v2654_v46  ;;  %v2499_v46 = vld [vmem:[%s3599_s19 + $0x68] sm:$0xf0]  ;;  %v3696_v47 = vor.u32 %v2984_v43, %v2497_v42  ;;  %v2861_v50 = vld [vmem:[#allocation9 + $0xb0] sm:$0xf]  ;;  %v3074_v51 = vld [vmem:[#allocation9 + $0xb8] sm:$0xf0] }
  0x8e   : > { %1004 = vmatmul.bf16.gmra.mxu3 %v3638_v15  ;;  %1710 = vmatpush.bf16.msrb.mxu2 %v2806_v37  ;;  %v2866_v37 = vor.u32 %v3076_v34, %v2865_v30  ;;  %v3698_v48 = vor.u32 %v2983_v45, %v2499_v46  ;;  %v2957_v54 = vld [vmem:[#allocation9 + $0x170] sm:$0xf]  ;;  %v2862_v55 = vor.u32 %v3074_v51, %v2861_v50  ;;  %v3098_v56 = vld [vmem:[#allocation9 + $0x178] sm:$0xf0]  ;;  %v2986_v59 = vld [vmem:[%s3599_s19 + $0x74] sm:$0xf0] }
  0x8f   : > { %1759 = vmatpush.bf16.msrb.mxu3 %v2902_v41  ;;  %v2618_v41 = vor.u32 %v3013_v40, %v2617_v39  ;;  %v2505_v58 = vld [vmem:[%s3599_s19 + $0x70] sm:$0xf]  ;;  %v2985_v60 = vld [vmem:[%s3599_s19 + $0x74] sm:$0xf]  ;;  %v3072_v63 = vld [vmem:[#allocation9 + $0xac] sm:$0xf] }
  0x90   : > { %1045 = vmatpush.bf16.msrb.mxu0 %v2546_v62  ;;  %v3708_v62 = vor.u32 %v2986_v59, %v2505_v58  ;;  %v2855_v0 = vld [vmem:[#allocation9 + $0xb4] sm:$0xf0]  ;;  %v3071_v9 = vld [vmem:[#allocation9 + $0xa0] sm:$0xf0]  ;;  %v3719_v16 = vld [vmem:[%s4415_s4] sm:$0x7] }
  0x91   : > { %1094 = vmatpush.bf16.msrb.mxu1 %v2642_v1  ;;  %v3096_v1 = vld [vmem:[#allocation9 + $0x16c] sm:$0xf]  ;;  %v2858_v3 = vor.u32 %v3072_v63, %v2855_v0  ;;  %v2951_v4 = vld [vmem:[#allocation9 + $0x174] sm:$0xf0]  ;;  %v3095_v12 = vld [vmem:[#allocation9 + $0x160] sm:$0xf0] }
  0x92   : > { %1711 = vmatpush.bf16.msrb.mxu2 %v2794_v57  ;;  %v2958_v57 = vor.u32 %v3098_v56, %v2957_v54  ;;  %v2954_v5 = vor.u32 %v3096_v1, %v2951_v4  ;;  %v2849_v8 = vld [vmem:[#allocation9 + $0x98] sm:$0xf]  ;;  %v3036_v19 = vld [vmem:[%s3606_s17 + $0x4] sm:$0xf0]  ;;  %v3035_v20 = vld [vmem:[%s3606_s17 + $0x4] sm:$0xf] }
  0x93   : > { %1760 = vmatpush.bf16.msrb.mxu3 %v2890_v61  ;;  %v2507_v61 = vld [vmem:[%s3599_s19 + $0x78] sm:$0xf0]  ;;  %v2945_v10 = vld [vmem:[#allocation9 + $0x158] sm:$0xf]  ;;  %v3069_v22 = vld [vmem:[#allocation9 + $0x94] sm:$0xf] }
  0x94   : > { %1046 = vmatpush.bf16.msrb.mxu0 %v2534_v18  ;;  %v3710_v2 = vor.u32 %v2985_v60, %v2507_v61  ;;  %v2946_v13 = vor.u32 %v3095_v12, %v2945_v10  ;;  %v2705_v18 = vld [vmem:[%s3606_s17] sm:$0xf]  ;;  %v3093_v24 = vld [vmem:[#allocation9 + $0x154] sm:$0xf]  ;;  %v3092_v46 = vld [vmem:[#allocation9 + $0x148] sm:$0xf0] }
  0x95   : > { %1095 = vmatpush.bf16.msrb.mxu1 %v2630_v21  ;;  %v2707_v21 = vld [vmem:[%s3606_s17 + $0x8] sm:$0xf0]  ;;  %v2843_v23 = vld [vmem:[#allocation9 + $0x9c] sm:$0xf0]  ;;  %v3728_v28 = vor.u32 %v3036_v19, %v2705_v18  ;;  %v3038_v58 = vld [vmem:[%s3606_s17 + $0x14] sm:$0xf0] }
  0x96   : > { %1712 = vmatpush.bf16.msrb.mxu2 %v2782_v11  ;;  %v2850_v11 = vor.u32 %v3071_v9, %v2849_v8  ;;  %v2846_v29 = vor.u32 %v3069_v22, %v2843_v23  ;;  %v2939_v30 = vld [vmem:[#allocation9 + $0x15c] sm:$0xf0]  ;;  %v3731_v35 = vor.u32 %v3035_v20, %v2707_v21  ;;  %v3037_v59 = vld [vmem:[%s3606_s17 + $0x14] sm:$0xf]  ;;  %v2715_v60 = vld [vmem:[%s3606_s17 + $0x18] sm:$0xf0] }
  0x97   : > { %1761 = vmatpush.bf16.msrb.mxu3 %v2878_v17  ;;  %v3722_v17 = vperm.slane %v3719_v16, 0  ;;  %v2942_v36 = vor.u32 %v3093_v24, %v2939_v30  ;;  %v2837_v40 = vld [vmem:[#allocation9 + $0x80] sm:$0xf]  ;;  %v3066_v63 = vld [vmem:[#allocation9 + $0x7c] sm:$0xf]  ;;  %s419_s11 = sld [smem:[#allocation2]] }
  0x98   : > { %1047 = vmatpush.bf16.msrb.mxu0 %v2522_v38  ;;  %v3739_v38 = vperm.slane %v3719_v16, 1  ;;  %v2933_v42 = vld [vmem:[#allocation9 + $0x140] sm:$0xf]  ;;  %v2831_v0 = vld [vmem:[#allocation9 + $0x84] sm:$0xf0]  ;;  %s3099_s3 = smul.u32 384, %s3595_s9 }
  0x99   : > { %1096 = vmatpush.bf16.msrb.mxu1 %v2618_v41  ;;  %v3068_v41 = vld [vmem:[#allocation9 + $0x88] sm:$0xf0]  ;;  %v2934_v54 = vor.u32 %v3092_v46, %v2933_v42  ;;  %v3090_v1 = vld [vmem:[#allocation9 + $0x13c] sm:$0xf]  ;;  %v2834_v9 = vor.u32 %v3066_v63, %v2831_v0  ;;  %v2927_v10 = vld [vmem:[#allocation9 + $0x144] sm:$0xf0] }
  0x9a   : > { %1713 = vmatpush.bf16.msrb.mxu2 %v2770_v31  ;;  %v2930_v18 = vor.u32 %v3090_v1, %v2927_v10  ;;  %v2825_v22 = vld [vmem:[#allocation9 + $0x68] sm:$0xf]  ;;  %v3065_v23 = vld [vmem:[#allocation9 + $0x70] sm:$0xf0]  ;;  %v2819_v46 = vld [vmem:[#allocation9 + $0x6c] sm:$0xf0] }
  0x9b   : > { %862 = vmatmul.bf16.gmra.mxu0 %v3648_v32  ;;  %1762 = vmatpush.bf16.msrb.mxu3 %v2866_v37  ;;  %v2921_v24 = vld [vmem:[#allocation9 + $0x128] sm:$0xf]  ;;  %v3062_v10 = vld [vmem:[#allocation9 + $0x58] sm:$0xf0]  ;;  %s3947_s22 = scalar_lea.vmem [#allocation12], %s3099_s3  ;;  %s3955_s23 = scalar_lea.vmem [#allocation11], %s3099_s3 }
  0x9c   : > { %911 = vmatmul.bf16.gmra.mxu1 %v3650_v33  ;;  %1804 = vmatpush.bf16.msra.mxu0 %v2858_v3  ;;  %v3040_v42 = vld [vmem:[%s3606_s17 + $0x24] sm:$0xf0]  ;;  %s3100_s24 = smul.u32 384, %s3494_s0  ;;  %s2278_s15 = sshll.u32 %s3947_s22, 4  ;;  %s2279_s15 = int_to_ptr.vmem [resolvable:$true] %s2278_s15 }
  0x9d   : > { %960 = vmatmul.bf16.gmra.mxu2 %v3648_v32  ;;  %1853 = vmatpush.bf16.msra.mxu1 %v2954_v5  ;;  %s2260_s1 = sshll.u32 %s3955_s23, 4  ;;  %s2261_s1 = int_to_ptr.vmem [resolvable:$true] %s2260_s1 }
  0x9e   : > { %1009 = vmatmul.bf16.gmra.mxu3 %v3650_v33  ;;  %1902 = vmatpush.bf16.msra.mxu2 %v2862_v55  ;;  %s2277_s0 = scalar_lea.hbm %s4419_s8, %s3100_s24  ;;  %s4361_s19 = scalar_lea.hbm %s4418_s7, %s3100_s24 }
  0x9f   : > { %1951 = vmatpush.bf16.msra.mxu3 %v2958_v57  ;;  %v2713_v57 = vld [vmem:[%s3606_s17 + $0x10] sm:$0xf]  ;;  %s2280_s18 = sshll.u32 %s2277_s0, 4  ;;  %s2262_s5 = sshll.u32 %s4361_s19, 4  ;;  %s2281_s18 = int_to_ptr.hbm [resolvable:$true] %s2280_s18  ;;  %s2263_s5 = int_to_ptr.hbm [resolvable:$true] %s2262_s5 }
  0xa0   : > { %1805 = vmatpush.bf16.msra.mxu0 %v2846_v29  ;;  %v3753_v8 = vor.u32 %v3038_v58, %v2713_v57  ;;  %s3319_s12 = sshra.s32 %s2281_s18, 4  ;;  %s3320_s12 = int_to_ptr.hbm [resolvable:$true] %s3319_s12 }
  0xa1   : > { %1854 = vmatpush.bf16.msra.mxu1 %v2942_v36  ;;  %s3321_s27 = scalar_lea.hbm %s3320_s12, 384  ;;  %p3326_p2 = scmp.lt.s32.totalorder %s3320_s12, %s4419_s8 }
  0xa2   : > { %1903 = vmatpush.bf16.msra.mxu2 %v2850_v11  ;;  %p3322_p1 = scmp.ne.s32.totalorder %s3320_s12, %s3321_s27 }
  0xa3   : > { %1952 = vmatpush.bf16.msra.mxu3 %v2946_v13  ;;  %v3756_v13 = vor.u32 %v3037_v59, %v2715_v60  ;;  %v2915_v60 = vld [vmem:[#allocation9 + $0x12c] sm:$0xf0] }
  0xa4   : > { %1806 = vmatpush.bf16.msra.mxu0 %v2834_v9  ;;  %v2813_v9 = vld [vmem:[#allocation9 + $0x50] sm:$0xf]  ;;  %p3323_p4 = pnand %p3322_p1, %p3539_p3 }
  0xa5   : > { %1855 = vmatpush.bf16.msra.mxu1 %v2930_v18 }
  0xa6   : > { %p3324_p8 = pneg %p3323_p4 }
  0xa7   : > { %1953 = vmatpush.bf16.msra.mxu3 %v2934_v54 }
  0xab   : > { %867 = vmatmul.bf16.gmra.mxu0 %v3660_v52 }
  0xac   : > { %916 = vmatmul.bf16.gmra.mxu1 %v3662_v53 }
  0xad   : > { %965 = vmatmul.bf16.gmra.mxu2 %v3660_v52 }
  0xae   : > { %1014 = vmatmul.bf16.gmra.mxu3 %v3662_v53 }
  0xbb   : > { %872 = vmatmul.bf16.gmra.mxu0 %v3672_v6 }
  0xbc   : > { %921 = vmatmul.bf16.gmra.mxu1 %v3674_v7 }
  0xbd   : > { %970 = vmatmul.bf16.gmra.mxu2 %v3672_v6 }
  0xbe   : > { %1019 = vmatmul.bf16.gmra.mxu3 %v3674_v7 }
  0xcb   : > { %877 = vmatmul.bf16.gmra.mxu0 %v3684_v26 }
  0xcc   : > { %926 = vmatmul.bf16.gmra.mxu1 %v3686_v27 }
  0xcd   : > { %975 = vmatmul.bf16.gmra.mxu2 %v3684_v26 }
  0xce   : > { %1024 = vmatmul.bf16.gmra.mxu3 %v3686_v27 }
  0xdb   : > { %882 = vmatmul.bf16.gmra.mxu0 %v3696_v47 }
  0xdc   : > { %931 = vmatmul.bf16.gmra.mxu1 %v3698_v48 }
  0xdd   : > { %980 = vmatmul.bf16.gmra.mxu2 %v3696_v47 }
  0xde   : > { %1029 = vmatmul.bf16.gmra.mxu3 %v3698_v48 }
  0xeb   : > { %887 = vmatmul.bf16.gmra.mxu0 %v3708_v62 }
  0xec   : > { %936 = vmatmul.bf16.gmra.mxu1 %v3710_v2 }
  0xed   : > { %985 = vmatmul.bf16.gmra.mxu2 %v3708_v62 }
  0xee   : > { %1034 = vmatmul.bf16.gmra.mxu3 %v3710_v2 }
  0xf8   : > { %v853_v25 = vpop.f32.mrf.mxu0 }
  0xf9   : > { %v854_v31 = vadd.f32 %v853_v25, %v3722_v17  ;;  %v902_v34 = vpop.f32.mrf.mxu1 }
  0xfb   : > { %v3733_v37 = vadd.f32 %v902_v34, %v854_v31  ;;  %1048 = vmatmul.bf16.vlgmr.msrb.gmra.mxu0 %v3624_v44  ;;  %v3089_v31 = vld [vmem:[#allocation9 + $0x130] sm:$0xf0] }
  0xfc   : > { %1097 = vmatmul.bf16.vlgmr.msrb.gmra.mxu1 %v3626_v49  ;;  %v2838_v49 = vor.u32 %v3068_v41, %v2837_v40  ;;  %v2922_v36 = vor.u32 %v3089_v31, %v2921_v24  ;;  %v2721_v41 = vld [vmem:[%s3606_s17 + $0x20] sm:$0xf]  ;;  %v3041_v31 = vld [vmem:[%s3606_s17 + $0x34] sm:$0xf] }
  0xfd   : > { %1714 = vmatmul.bf16.vlgmr.msrb.gmra.mxu2 %v3728_v28  ;;  %v3777_v58 = vor.u32 %v3040_v42, %v2721_v41  ;;  %v3084_v41 = vld [vmem:[#allocation9 + $0x10c] sm:$0xf]  ;;  %vm1138_vm0 = vcmp.ge.f32.partialorder %v3733_v37, 0.0 }
  0xfe   : > { %1763 = vmatmul.bf16.vlgmr.msrb.gmra.mxu3 %v3731_v35  ;;  %1904 = vmatpush.bf16.msra.mxu2 %v2838_v49  ;;  %v3063_v49 = vld [vmem:[#allocation9 + $0x64] sm:$0xf] }
  0xff   : > { %1954 = vmatpush.bf16.msra.mxu3 %v2922_v36  ;;  %v2822_v59 = vor.u32 %v3063_v49, %v2819_v46  ;;  %v2807_v36 = vld [vmem:[#allocation9 + $0x54] sm:$0xf0] }
 0x100   : > { %v951_v39 = vpop.f32.mrf.mxu2  ;;  %v855_v45 = vpop.f32.mrf.mxu0 }
 0x101   : > { %v952_v44 = vadd.f32 %v951_v39, %v3739_v38  ;;  %v1000_v43 = vpop.f32.mrf.mxu3  ;;  %v856_v50 = vadd.f32 %v855_v45, %v3722_v17  ;;  %v904_v51 = vpop.f32.mrf.mxu1  ;;  %1807 = vmatpush.bf16.msra.mxu0 %v2822_v59 }
 0x103   : > { %v3744_v55 = vadd.f32 %v1000_v43, %v952_v44  ;;  %v3746_v56 = vadd.f32 %v904_v51, %v856_v50  ;;  %v3039_v44 = vld [vmem:[%s3606_s17 + $0x24] sm:$0xf]  ;;  %v2723_v43 = vld [vmem:[%s3606_s17 + $0x28] sm:$0xf0] }
 0x104   : > { %v3087_v50 = vld [vmem:[#allocation9 + $0x124] sm:$0xf]  ;;  %v3780_v0 = vor.u32 %v3039_v44, %v2723_v43  ;;  %v2903_v43 = vld [vmem:[#allocation9 + $0x114] sm:$0xf0] }
 0x105   : > { %v2918_v1 = vor.u32 %v3087_v50, %v2915_v60  ;;  %vm1141_vm1 = vcmp.ge.f32.partialorder %v3746_v56, 0.0 }
 0x107   : > { %1856 = vmatpush.bf16.msra.mxu1 %v2918_v1  ;;  %v2801_v1 = vld [vmem:[#allocation9 + $0x38] sm:$0xf] }
 0x108   : > { %v953_v61 = vpop.f32.mrf.mxu2  ;;  %v858_v5 = vpop.f32.mrf.mxu0 }
 0x109   : > { %v954_v3 = vadd.f32 %v953_v61, %v3739_v38  ;;  %v1002_v4 = vpop.f32.mrf.mxu3  ;;  %v859_v11 = vadd.f32 %v858_v5, %v3722_v17  ;;  %v907_v12 = vpop.f32.mrf.mxu1 }
 0x10b   : > { %v3758_v19 = vadd.f32 %v1002_v4, %v954_v3  ;;  %v3760_v20 = vadd.f32 %v907_v12, %v859_v11  ;;  %1053 = vmatmul.bf16.gmra.mxu0 %v3636_v14  ;;  %v2826_v14 = vor.u32 %v3065_v23, %v2825_v22  ;;  %v2909_v11 = vld [vmem:[#allocation9 + $0x110] sm:$0xf]  ;;  %v3086_v22 = vld [vmem:[#allocation9 + $0x118] sm:$0xf0] }
 0x10c   : > { %1102 = vmatmul.bf16.gmra.mxu1 %v3638_v15  ;;  %v2910_v24 = vor.u32 %v3086_v22, %v2909_v11 }
 0x10d   : > { %1719 = vmatmul.bf16.gmra.mxu2 %v3753_v8  ;;  %vm1144_vm2 = vcmp.ge.f32.partialorder %v3760_v20, 0.0 }
 0x10e   : > { %1768 = vmatmul.bf16.gmra.mxu3 %v3756_v13  ;;  %1905 = vmatpush.bf16.msra.mxu2 %v2826_v14  ;;  %v3042_v14 = vld [vmem:[%s3606_s17 + $0x34] sm:$0xf0] }
 0x10f   : > { %1955 = vmatpush.bf16.msra.mxu3 %v2910_v24  ;;  %v3044_v24 = vld [vmem:[%s3606_s17 + $0x44] sm:$0xf0] }
 0x110   : > { %v956_v21 = vpop.f32.mrf.mxu2  ;;  %v860_v30 = vpop.f32.mrf.mxu0 }
 0x111   : > { %v957_v25 = vadd.f32 %v956_v21, %v3739_v38  ;;  %v1005_v29 = vpop.f32.mrf.mxu3  ;;  %v861_v15 = vadd.f32 %v860_v30, %v3722_v17  ;;  %v909_v34 = vpop.f32.mrf.mxu1  ;;  %v2729_v30 = vld [vmem:[%s3606_s17 + $0x30] sm:$0xf] }
 0x112   : > { %v3801_v50 = vor.u32 %v3042_v14, %v2729_v30  ;;  %v3043_v30 = vld [vmem:[%s3606_s17 + $0x44] sm:$0xf]  ;;  %v2739_v14 = vld [vmem:[%s3606_s17 + $0x48] sm:$0xf0] }
 0x113   : > { %v3768_v39 = vadd.f32 %v1005_v29, %v957_v25  ;;  %v3770_v40 = vadd.f32 %v909_v34, %v861_v15  ;;  %v2731_v15 = vld [vmem:[%s3606_s17 + $0x38] sm:$0xf0]  ;;  %v3060_v34 = vld [vmem:[#allocation9 + $0x4c] sm:$0xf] }
 0x114   : > { %v2810_v44 = vor.u32 %v3060_v34, %v2807_v36  ;;  %v3804_v59 = vor.u32 %v3041_v31, %v2731_v15  ;;  %v3057_v31 = vld [vmem:[#allocation9 + $0x34] sm:$0xf]  ;;  %v2795_v15 = vld [vmem:[#allocation9 + $0x3c] sm:$0xf0] }
 0x115   : > { %v3081_v34 = vld [vmem:[#allocation9 + $0xf4] sm:$0xf]  ;;  %vm1147_vm3 = vcmp.ge.f32.partialorder %v3770_v40, 0.0 }
 0x116   : > { %1808 = vmatpush.bf16.msra.mxu0 %v2810_v44 }
 0x118   : > { %v958_v45 = vpop.f32.mrf.mxu2  ;;  %v863_v57 = vpop.f32.mrf.mxu0 }
 0x119   : > { %v959_v51 = vadd.f32 %v958_v45, %v3739_v38  ;;  %v1007_v54 = vpop.f32.mrf.mxu3  ;;  %v864_v61 = vadd.f32 %v863_v57, %v3722_v17  ;;  %v912_v63 = vpop.f32.mrf.mxu1 }
 0x11b   : > { %v3782_v3 = vadd.f32 %v1007_v54, %v959_v51  ;;  %v3784_v4 = vadd.f32 %v912_v63, %v864_v61  ;;  %1058 = vmatmul.bf16.gmra.mxu0 %v3648_v32  ;;  %v2814_v32 = vor.u32 %v3062_v10, %v2813_v9  ;;  %v2906_v51 = vor.u32 %v3084_v41, %v2903_v43  ;;  %v2897_v9 = vld [vmem:[#allocation9 + $0xf8] sm:$0xf] }
 0x11c   : > { %1107 = vmatmul.bf16.gmra.mxu1 %v3650_v33  ;;  %v2798_v41 = vor.u32 %v3057_v31, %v2795_v15  ;;  %v3045_v31 = vld [vmem:[%s3606_s17 + $0x54] sm:$0xf]  ;;  %v2747_v15 = vld [vmem:[%s3606_s17 + $0x58] sm:$0xf0] }
 0x11d   : > { %1724 = vmatmul.bf16.gmra.mxu2 %v3777_v58  ;;  %1857 = vmatpush.bf16.msra.mxu1 %v2906_v51  ;;  %vm1150_vm4 = vcmp.ge.f32.partialorder %v3784_v4, 0.0 }
 0x11e   : > { %1773 = vmatmul.bf16.gmra.mxu3 %v3780_v0  ;;  %1906 = vmatpush.bf16.msra.mxu2 %v2814_v32 }
 0x11f   : > { %1809 = vmatpush.bf16.msra.mxu0 %v2798_v41  ;;  %v3078_v41 = vld [vmem:[#allocation9 + $0xdc] sm:$0xf] }
 0x120   : > { %v961_v5 = vpop.f32.mrf.mxu2  ;;  %v865_v21 = vpop.f32.mrf.mxu0 }
 0x121   : > { %v962_v12 = vadd.f32 %v961_v5, %v3739_v38  ;;  %v1010_v18 = vpop.f32.mrf.mxu3  ;;  %v866_v33 = vadd.f32 %v865_v21, %v3722_v17  ;;  %v914_v23 = vpop.f32.mrf.mxu1  ;;  %v3059_v5 = vld [vmem:[#allocation9 + $0x40] sm:$0xf0] }
 0x123   : > { %v3792_v25 = vadd.f32 %v1010_v18, %v962_v12  ;;  %v3794_v29 = vadd.f32 %v914_v23, %v866_v33  ;;  %v2802_v18 = vor.u32 %v3059_v5, %v2801_v1  ;;  %v2737_v23 = vld [vmem:[%s3606_s17 + $0x40] sm:$0xf] }
 0x125   : > { %1907 = vmatpush.bf16.msra.mxu2 %v2802_v18  ;;  %vm1153_vm5 = vcmp.ge.f32.partialorder %v3794_v29, 0.0 }
 0x128   : > { %v963_v42 = vpop.f32.mrf.mxu2  ;;  %v868_v46 = vpop.f32.mrf.mxu0 }
 0x129   : > { %v964_v45 = vadd.f32 %v963_v42, %v3739_v38  ;;  %v1012_v49 = vpop.f32.mrf.mxu3  ;;  %v869_v54 = vadd.f32 %v868_v46, %v3722_v17  ;;  %v917_v57 = vpop.f32.mrf.mxu1  ;;  %v2891_v42 = vld [vmem:[#allocation9 + $0xfc] sm:$0xf0] }
 0x12a   : > { %v2894_v46 = vor.u32 %v3081_v34, %v2891_v42  ;;  %v3054_v34 = vld [vmem:[#allocation9 + $0x1c] sm:$0xf] }
 0x12b   : > { %v3806_v60 = vadd.f32 %v1012_v49, %v964_v45  ;;  %v3808_v61 = vadd.f32 %v917_v57, %v869_v54  ;;  %1063 = vmatmul.bf16.gmra.mxu0 %v3660_v52  ;;  %v3083_v52 = vld [vmem:[#allocation9 + $0x100] sm:$0xf0]  ;;  %v3825_v49 = vor.u32 %v3044_v24, %v2737_v23  ;;  %v3828_v57 = vor.u32 %v3043_v30, %v2739_v14  ;;  %v2745_v30 = vld [vmem:[%s3606_s17 + $0x50] sm:$0xf]  ;;  %v3046_v14 = vld [vmem:[%s3606_s17 + $0x54] sm:$0xf0] }
 0x12c   : > { %1112 = vmatmul.bf16.gmra.mxu1 %v3662_v53  ;;  %v2898_v32 = vor.u32 %v3083_v52, %v2897_v9  ;;  %v2789_v9 = vld [vmem:[#allocation9 + $0x20] sm:$0xf] }
 0x12d   : > { %1729 = vmatmul.bf16.gmra.mxu2 %v3801_v50  ;;  %1858 = vmatpush.bf16.msra.mxu1 %v2894_v46  ;;  %vm1156_vm6 = vcmp.ge.f32.partialorder %v3808_v61, 0.0 }
 0x12e   : > { %1778 = vmatmul.bf16.gmra.mxu3 %v3804_v59 }
 0x12f   : > { %1956 = vmatpush.bf16.msra.mxu3 %v2898_v32 }
 0x130   : > { %v966_v63 = vpop.f32.mrf.mxu2  ;;  %v870_v12 = vpop.f32.mrf.mxu0 }
 0x131   : > { %v967_v10 = vadd.f32 %v966_v63, %v3739_v38  ;;  %v1015_v11 = vpop.f32.mrf.mxu3  ;;  %v871_v53 = vadd.f32 %v870_v12, %v3722_v17  ;;  %v919_v21 = vpop.f32.mrf.mxu1 }
 0x133   : > { %v3816_v22 = vadd.f32 %v1015_v11, %v967_v10  ;;  %v3818_v33 = vadd.f32 %v919_v21, %v871_v53  ;;  %v3056_v10 = vld [vmem:[#allocation9 + $0x28] sm:$0xf0]  ;;  %v2885_v11 = vld [vmem:[#allocation9 + $0xe0] sm:$0xf] }
 0x134   : > { %v2790_v53 = vor.u32 %v3056_v10, %v2789_v9 }
 0x135   : > { %vm1159_vm7 = vcmp.ge.f32.partialorder %v3818_v33, 0.0 }
 0x136   : > { %1908 = vmatpush.bf16.msra.mxu2 %v2790_v53  ;;  %v2777_v53 = vld [vmem:[#allocation9 + $0x8] sm:$0xf] }
 0x138   : > { %v968_v36 = vpop.f32.mrf.mxu2  ;;  %v873_v45 = vpop.f32.mrf.mxu0 }
 0x139   : > { %v969_v44 = vadd.f32 %v968_v36, %v3739_v38  ;;  %v1017_v43 = vpop.f32.mrf.mxu3  ;;  %v874_v51 = vadd.f32 %v873_v45, %v3722_v17  ;;  %v922_v54 = vpop.f32.mrf.mxu1  ;;  %v2783_v36 = vld [vmem:[#allocation9 + $0x24] sm:$0xf0] }
 0x13b   : > { %v3830_v63 = vadd.f32 %v1017_v43, %v969_v44  ;;  %v3832_v1 = vadd.f32 %v922_v54, %v874_v51  ;;  %1068 = vmatmul.bf16.gmra.mxu0 %v3672_v6  ;;  %v3080_v6 = vld [vmem:[#allocation9 + $0xe8] sm:$0xf0]  ;;  %v2786_v44 = vor.u32 %v3054_v34, %v2783_v36  ;;  %v2879_v43 = vld [vmem:[#allocation9 + $0xe4] sm:$0xf0]  ;;  %v3849_v54 = vor.u32 %v3046_v14, %v2745_v30 }
 0x13c   : > { %1117 = vmatmul.bf16.gmra.mxu1 %v3674_v7  ;;  %v2886_v32 = vor.u32 %v3080_v6, %v2885_v11  ;;  %v3852_v11 = vor.u32 %v3045_v31, %v2747_v15  ;;  %v3053_v6 = vld [vmem:[#allocation9 + $0x10] sm:$0xf0] }
 0x13d   : > { %1734 = vmatmul.bf16.gmra.mxu2 %v3825_v49  ;;  %1810 = vmatpush.bf16.msra.mxu0 %v2786_v44  ;;  %v2778_v14 = vor.u32 %v3053_v6, %v2777_v53  ;;  %v3047_v44 = vld [vmem:[%s3606_s17 + $0x64] sm:$0xf]  ;;  %vm1162_vm8 = vcmp.ge.f32.partialorder %v3832_v1, 0.0 }
 0x13e   : > { %1783 = vmatmul.bf16.gmra.mxu3 %v3828_v57 }
 0x13f   : > { %1957 = vmatpush.bf16.msra.mxu3 %v2886_v32  ;;  %1909 = vmatpush.bf16.msra.mxu2 %v2778_v14 }
 0x140   : > { %v971_v5 = vpop.f32.mrf.mxu2  ;;  %v875_v52 = vpop.f32.mrf.mxu0 }
 0x141   : > { %v972_v12 = vadd.f32 %v971_v5, %v3739_v38  ;;  %v1020_v18 = vpop.f32.mrf.mxu3  ;;  %v876_v7 = vadd.f32 %v875_v52, %v3722_v17  ;;  %v924_v21 = vpop.f32.mrf.mxu1  ;;  %v2882_v5 = vor.u32 %v3078_v41, %v2879_v43  ;;  %v2753_v41 = vld [vmem:[%s3606_s17 + $0x60] sm:$0xf]  ;;  %v2755_v43 = vld [vmem:[%s3606_s17 + $0x68] sm:$0xf0] }
 0x142   : > { %v3876_v14 = vor.u32 %v3047_v44, %v2755_v43 }
 0x143   : > { %v3840_v23 = vadd.f32 %v1020_v18, %v972_v12  ;;  %v3842_v24 = vadd.f32 %v924_v21, %v876_v7  ;;  %1859 = vmatpush.bf16.msra.mxu1 %v2882_v5  ;;  %v2873_v7 = vld [vmem:[#allocation9 + $0xc8] sm:$0xf] }
 0x145   : > { %vm1165_vm9 = vcmp.ge.f32.partialorder %v3842_v24, 0.0 }
 0x148   : > { %v973_v42 = vpop.f32.mrf.mxu2  ;;  %v878_v51 = vpop.f32.mrf.mxu0 }
 0x149   : > { %v974_v45 = vadd.f32 %v973_v42, %v3739_v38  ;;  %v1022_v46 = vpop.f32.mrf.mxu3  ;;  %v879_v9 = vadd.f32 %v878_v51, %v3722_v17  ;;  %v927_v10 = vpop.f32.mrf.mxu1  ;;  %v3048_v42 = vld [vmem:[%s3606_s17 + $0x64] sm:$0xf0]  ;;  %v3075_v51 = vld [vmem:[#allocation9 + $0xc4] sm:$0xf] }
 0x14b   : > { %v3854_v12 = vadd.f32 %v1022_v46, %v974_v45  ;;  %v3856_v18 = vadd.f32 %v927_v10, %v879_v9  ;;  %1073 = vmatmul.bf16.gmra.mxu0 %v3684_v26  ;;  %v3077_v26 = vld [vmem:[#allocation9 + $0xd0] sm:$0xf0]  ;;  %v3051_v45 = vld [vmem:[#allocation9 + $0x4] sm:$0xf]  ;;  %v2771_v46 = vld [vmem:[#allocation9 + $0xc] sm:$0xf0] }
 0x14c   : > { %1122 = vmatmul.bf16.gmra.mxu1 %v3686_v27  ;;  %v2874_v15 = vor.u32 %v3077_v26, %v2873_v7  ;;  %v2774_v9 = vor.u32 %v3051_v45, %v2771_v46  ;;  %v2867_v10 = vld [vmem:[#allocation9 + $0xcc] sm:$0xf0]  ;;  %v3873_v7 = vor.u32 %v3048_v42, %v2753_v41 }
 0x14d   : > { %1739 = vmatmul.bf16.gmra.mxu2 %v3849_v54  ;;  %vm1168_vm10 = vcmp.ge.f32.partialorder %v3856_v18, 0.0 }
 0x14e   : > { %1788 = vmatmul.bf16.gmra.mxu3 %v3852_v11  ;;  %1811 = vmatpush.bf16.msra.mxu0 %v2774_v9 }
 0x14f   : > { %1958 = vmatpush.bf16.msra.mxu3 %v2874_v15 }
 0x150   : > { %v976_v52 = vpop.f32.mrf.mxu2  ;;  %v880_v30 = vpop.f32.mrf.mxu0 }
 0x151   : > { %v977_v21 = vadd.f32 %v976_v52, %v3739_v38  ;;  %v1025_v32 = vpop.f32.mrf.mxu3  ;;  %v881_v27 = vadd.f32 %v880_v30, %v3722_v17  ;;  %v929_v31 = vpop.f32.mrf.mxu1 }
 0x153   : > { %v3864_v34 = vadd.f32 %v1025_v32, %v977_v21  ;;  %v3866_v36 = vadd.f32 %v929_v31, %v881_v27  ;;  %v2870_v21 = vor.u32 %v3075_v51, %v2867_v10  ;;  %v2761_v51 = vld [vmem:[%s3606_s17 + $0x70] sm:$0xf] }
 0x155   : > { %1860 = vmatpush.bf16.msra.mxu1 %v2870_v21  ;;  %vm1171_vm11 = vcmp.ge.f32.partialorder %v3866_v36, 0.0 }
 0x158   : > { %v978_v5 = vpop.f32.mrf.mxu2  ;;  %v883_v6 = vpop.f32.mrf.mxu0 }
 0x159   : > { %v979_v52 = vadd.f32 %v978_v5, %v3739_v38  ;;  %v1027_v53 = vpop.f32.mrf.mxu3  ;;  %v884_v32 = vadd.f32 %v883_v6, %v3722_v17  ;;  %v932_v30 = vpop.f32.mrf.mxu1  ;;  %v3049_v5 = vld [vmem:[%s3606_s17 + $0x74] sm:$0xf] }
 0x15b   : > { %v3878_v26 = vadd.f32 %v1027_v53, %v979_v52  ;;  %v3880_v27 = vadd.f32 %v932_v30, %v884_v32  ;;  %1078 = vmatmul.bf16.gmra.mxu0 %v3696_v47  ;;  %v3050_v47 = vld [vmem:[%s3606_s17 + $0x74] sm:$0xf0] }
 0x15c   : > { %1127 = vmatmul.bf16.gmra.mxu1 %v3698_v48  ;;  %v2763_v48 = vld [vmem:[%s3606_s17 + $0x78] sm:$0xf0]  ;;  %v3897_v6 = vor.u32 %v3050_v47, %v2761_v51  ;;  %s2247_s17 = scalar_lea.sflag [#allocation13], %s3595_s9 }
 0x15d   : > { %1744 = vmatmul.bf16.gmra.mxu2 %v3873_v7  ;;  %v3900_v30 = vor.u32 %v3049_v5, %v2763_v48  ;;  %vm1174_vm12 = vcmp.ge.f32.partialorder %v3880_v27, 0.0 }
 0x15e   : > { %1793 = vmatmul.bf16.gmra.mxu3 %v3876_v14 }
 0x160   : > { %v981_v31 = vpop.f32.mrf.mxu2  ;;  %v885_v42 = vpop.f32.mrf.mxu0 }
 0x161   : > { %v982_v15 = vadd.f32 %v981_v31, %v3739_v38  ;;  %v1030_v41 = vpop.f32.mrf.mxu3  ;;  %v886_v44 = vadd.f32 %v885_v42, %v3722_v17  ;;  %v934_v43 = vpop.f32.mrf.mxu1 }
 0x163   : > { %v3888_v45 = vadd.f32 %v1030_v41, %v982_v15  ;;  %v3890_v46 = vadd.f32 %v934_v43, %v886_v44 }
 0x165   : > { %vm1177_vm13 = vcmp.ge.f32.partialorder %v3890_v46, 0.0 }
 0x168   : > { %v983_v9 = vpop.f32.mrf.mxu2  ;;  %v888_v53 = vpop.f32.mrf.mxu0 }
 0x169   : > { %v984_v10 = vadd.f32 %v983_v9, %v3739_v38  ;;  %v1032_v52 = vpop.f32.mrf.mxu3  ;;  %v889_v21 = vadd.f32 %v888_v53, %v3722_v17  ;;  %v937_v32 = vpop.f32.mrf.mxu1 }
 0x16b   : > { %v3902_v31 = vadd.f32 %v1032_v52, %v984_v10  ;;  %v3904_v15 = vadd.f32 %v937_v32, %v889_v21  ;;  %1083 = vmatmul.bf16.gmra.mxu0 %v3708_v62  ;;  %v3917_v62 = vperm.slane %v3719_v16, 2 }
 0x16c   : > { %1132 = vmatmul.bf16.gmra.mxu1 %v3710_v2 }
 0x16d   : > { %1749 = vmatmul.bf16.gmra.mxu2 %v3897_v6  ;;  %vm1180_vm14 = vcmp.ge.f32.partialorder %v3904_v15, 0.0 }
 0x16e   : > { %1798 = vmatmul.bf16.gmra.mxu3 %v3900_v30 }
 0x170   : > { %v986_v41 = vpop.f32.mrf.mxu2  ;;  %v890_v43 = vpop.f32.mrf.mxu0 }
 0x171   : > { %v987_v42 = vadd.f32 %v986_v41, %v3739_v38  ;;  %v1035_v44 = vpop.f32.mrf.mxu3  ;;  %v891_v51 = vadd.f32 %v890_v43, %v3722_v17  ;;  %v939_v47 = vpop.f32.mrf.mxu1  ;;  %v3924_v17 = vld [vmem:[%s4417_s6] sm:$0x7] }
 0x172   : > { %v3934_v16 = vperm.slane %v3924_v17, 0 }
 0x173   : > { %v3912_v5 = vadd.f32 %v1035_v44, %v987_v42  ;;  %v3914_v48 = vadd.f32 %v939_v47, %v891_v51 }
 0x175   : > { %vm1183_vm15 = vcmp.ge.f32.partialorder %v3914_v48, 0.0 }
 0x178   : > { %v988_v2 = vpop.f32.mrf.mxu2  ;;  %v1049_v52 = vpop.f32.mrf.mxu0 }
 0x179   : > { %v989_v9 = vadd.f32 %v988_v2, %v3739_v38  ;;  %v1037_v10 = vpop.f32.mrf.mxu3  ;;  %v1050_v53 = vadd.f32 %v1049_v52, %v3917_v62  ;;  %v1098_v21 = vpop.f32.mrf.mxu1  ;;  %v1186_v38 = vmul.f32 0.01, %v3733_v37 }
 0x17b   : > { %v3926_v32 = vadd.f32 %v1037_v10, %v989_v9  ;;  %v3928_v41 = vadd.f32 %v1098_v21, %v1050_v53  ;;  %1812 = vmatmul.bf16.vlgmr.msra.gmra.mxu0 %v3728_v28  ;;  %v3943_v10 = vstv %s419_s11  ;;  %v1189_v21 = vmul.f32 0.01, %v3746_v56  ;;  %s3325_s11 = scalar_lea.hbm %s4419_s8, 768 }
 0x17c   : > { %1861 = vmatmul.bf16.vlgmr.msra.gmra.mxu1 %v3731_v35  ;;  %p3327_p10 = scmp.lt.s32.totalorder %s3325_s11, %s3321_s27 }
 0x17d   : > { %4440 = vst [vmem:[#allocation23_spill] sm:$0xff] %v3926_v32  ;;  %1910 = vmatmul.bf16.vlgmr.msra.gmra.mxu2 %v3728_v28  ;;  %v1234_v28 = vsel %vm1138_vm0, %v3733_v37, %v1186_v38  ;;  %vm1139_vm0 = vcmp.ge.f32.partialorder %v3744_v55, 0.0 }
 0x17e   : > { %1959 = vmatmul.bf16.vlgmr.msra.gmra.mxu3 %v3731_v35  ;;  %p3328_p11 = por %p3327_p10, %p3326_p2 }
 0x180   : > { %v1715_v42 = vpop.f32.mrf.mxu2  ;;  %v1051_v51 = vpop.f32.mrf.mxu0  ;;  %p3329_p9 = pnand %p3328_p11, %p3324_p8 }
 0x181   : > { %v1716_v44 = vadd.f32 %v1715_v42, %v3934_v16  ;;  %v1764_v43 = vpop.f32.mrf.mxu3  ;;  %v1052_v47 = vadd.f32 %v1051_v51, %v3917_v62  ;;  %v1100_v2 = vpop.f32.mrf.mxu1 }
 0x183   : > { %v1765_v9 = vadd.f32 %v1764_v43, %v1716_v44  ;;  %v3945_v52 = vadd.f32 %v1100_v2, %v1052_v47 }
 0x185   : > { %2000 = vst [vmem:[%s3947_s22] sm:$0xff] %v1765_v9  ;;  %v2048_v35 = vsub.f32 %v1234_v28, %v1765_v9  ;;  %v1237_v28 = vsel %vm1141_vm1, %v3746_v56, %v1189_v21  ;;  %vm1140_vm1 = vcmp.ge.f32.partialorder %v3928_v41, 0.0 }
 0x187   : > { %v2097_v53 = vmul.f32 %v3943_v10, %v2048_v35 }
 0x188   : > { %v1717_v42 = vpop.f32.mrf.mxu2  ;;  %v1054_v43 = vpop.f32.mrf.mxu0 }
 0x189   : > { %v2145_v44 = vadd.f32 %v2097_v53, %v1765_v9  ;;  %v1718_v37 = vadd.f32 %v1717_v42, %v3934_v16  ;;  %v1766_v38 = vpop.f32.mrf.mxu3  ;;  %v1055_v51 = vadd.f32 %v1054_v43, %v3917_v62  ;;  %v1103_v47 = vpop.f32.mrf.mxu1  ;;  %v1192_v42 = vmul.f32 0.01, %v3760_v20 }
 0x18b   : > { %2193 = vst [vmem:[%s3955_s23] sm:$0xff] %v2145_v44  ;;  %v1767_v2 = vadd.f32 %v1766_v38, %v1718_v37  ;;  %v3959_v35 = vadd.f32 %v1103_v47, %v1055_v51  ;;  %1817 = vmatmul.bf16.gmra.mxu0 %v3753_v8 }
 0x18c   : > { %1866 = vmatmul.bf16.gmra.mxu1 %v3756_v13 }
 0x18d   : > { %2003 = vst [vmem:[%s3947_s22 + $0x18] sm:$0xff] %v1767_v2  ;;  %v2051_v9 = vsub.f32 %v1237_v28, %v1767_v2  ;;  %1915 = vmatmul.bf16.gmra.mxu2 %v3753_v8 }
 0x18e   : > { %1964 = vmatmul.bf16.gmra.mxu3 %v3756_v13  ;;  %v1240_v13 = vsel %vm1144_vm2, %v3760_v20, %v1192_v42  ;;  %vm1142_vm2 = vcmp.ge.f32.partialorder %v3758_v19, 0.0 }
 0x18f   : > { %v2100_v53 = vmul.f32 %v3943_v10, %v2051_v9 }
 0x190   : > { %v1720_v44 = vpop.f32.mrf.mxu2  ;;  %v1056_v38 = vpop.f32.mrf.mxu0 }
 0x191   : > { %v2148_v56 = vadd.f32 %v2100_v53, %v1767_v2  ;;  %v1721_v21 = vadd.f32 %v1720_v44, %v3934_v16  ;;  %v1769_v37 = vpop.f32.mrf.mxu3  ;;  %v1057_v43 = vadd.f32 %v1056_v38, %v3917_v62  ;;  %v1105_v51 = vpop.f32.mrf.mxu1  ;;  %v1195_v2 = vmul.f32 0.01, %v3770_v40 }
 0x193   : > { %2196 = vst [vmem:[%s3955_s23 + $0x18] sm:$0xff] %v2148_v56  ;;  %v1770_v8 = vadd.f32 %v1769_v37, %v1721_v21  ;;  %v3973_v47 = vadd.f32 %v1105_v51, %v1057_v43  ;;  %v1243_v37 = vsel %vm1147_vm3, %v3770_v40, %v1195_v2  ;;  %vm1143_vm3 = vcmp.ge.f32.partialorder %v3945_v52, 0.0 }
 0x195   : > { %2006 = vst [vmem:[%s3947_s22 + $0x30] sm:$0xff] %v1770_v8  ;;  %v2054_v28 = vsub.f32 %v1240_v13, %v1770_v8 }
 0x197   : > { %v2103_v9 = vmul.f32 %v3943_v10, %v2054_v28 }
 0x198   : > { %v1722_v53 = vpop.f32.mrf.mxu2  ;;  %v1059_v32 = vpop.f32.mrf.mxu0 }
 0x199   : > { %v2151_v44 = vadd.f32 %v2103_v9, %v1770_v8  ;;  %v1723_v38 = vadd.f32 %v1722_v53, %v3934_v16  ;;  %v1771_v56 = vpop.f32.mrf.mxu3  ;;  %v1060_v21 = vadd.f32 %v1059_v32, %v3917_v62  ;;  %v1108_v20 = vpop.f32.mrf.mxu1  ;;  %v1198_v8 = vmul.f32 0.01, %v3784_v4 }
 0x19b   : > { %2199 = vst [vmem:[%s3955_s23 + $0x30] sm:$0xff] %v2151_v44  ;;  %v1772_v42 = vadd.f32 %v1771_v56, %v1723_v38  ;;  %v3983_v43 = vadd.f32 %v1108_v20, %v1060_v21  ;;  %1822 = vmatmul.bf16.gmra.mxu0 %v3777_v58  ;;  %v1201_v20 = vmul.f32 0.01, %v3794_v29 }
 0x19c   : > { %1871 = vmatmul.bf16.gmra.mxu1 %v3780_v0 }
 0x19d   : > { %2009 = vst [vmem:[%s3947_s22 + $0x48] sm:$0xff] %v1772_v42  ;;  %v2057_v51 = vsub.f32 %v1243_v37, %v1772_v42  ;;  %1920 = vmatmul.bf16.gmra.mxu2 %v3777_v58 }
 0x19e   : > { %1969 = vmatmul.bf16.gmra.mxu3 %v3780_v0  ;;  %v1246_v0 = vsel %vm1150_vm4, %v3784_v4, %v1198_v8  ;;  %vm1145_vm4 = vcmp.ge.f32.partialorder %v3768_v39, 0.0 }
 0x19f   : > { %v2106_v32 = vmul.f32 %v3943_v10, %v2057_v51 }
 0x1a0   : > { %v1725_v13 = vpop.f32.mrf.mxu2  ;;  %v1061_v2 = vpop.f32.mrf.mxu0 }
 0x1a1   : > { %v2154_v40 = vadd.f32 %v2106_v32, %v1772_v42  ;;  %v1726_v28 = vadd.f32 %v1725_v13, %v3934_v16  ;;  %v1774_v9 = vpop.f32.mrf.mxu3  ;;  %v1062_v53 = vadd.f32 %v1061_v2, %v3917_v62  ;;  %v1110_v44 = vpop.f32.mrf.mxu1 }
 0x1a3   : > { %2202 = vst [vmem:[%s3955_s23 + $0x48] sm:$0xff] %v2154_v40  ;;  %v1775_v58 = vadd.f32 %v1774_v9, %v1726_v28  ;;  %v3997_v38 = vadd.f32 %v1110_v44, %v1062_v53  ;;  %v1249_v28 = vsel %vm1153_vm5, %v3794_v29, %v1201_v20  ;;  %v1204_v44 = vmul.f32 0.01, %v3808_v61 }
 0x1a4   : > { %vm1146_vm5 = vcmp.ge.f32.partialorder %v3959_v35, 0.0 }
 0x1a5   : > { %2012 = vst [vmem:[%s3947_s22 + $0x60] sm:$0xff] %v1775_v58  ;;  %v2060_v56 = vsub.f32 %v1246_v0, %v1775_v58 }
 0x1a7   : > { %v2109_v21 = vmul.f32 %v3943_v10, %v2060_v56 }
 0x1a8   : > { %v1727_v42 = vpop.f32.mrf.mxu2  ;;  %v1064_v13 = vpop.f32.mrf.mxu0 }
 0x1a9   : > { %v2157_v37 = vadd.f32 %v2109_v21, %v1775_v58  ;;  %v1728_v51 = vadd.f32 %v1727_v42, %v3934_v16  ;;  %v1776_v32 = vpop.f32.mrf.mxu3  ;;  %v1065_v40 = vadd.f32 %v1064_v13, %v3917_v62  ;;  %v1113_v4 = vpop.f32.mrf.mxu1  ;;  %v1207_v13 = vmul.f32 0.01, %v3818_v33 }
 0x1ab   : > { %2205 = vst [vmem:[%s3955_s23 + $0x60] sm:$0xff] %v2157_v37  ;;  %v1777_v8 = vadd.f32 %v1776_v32, %v1728_v51  ;;  %v4007_v9 = vadd.f32 %v1113_v4, %v1065_v40  ;;  %1827 = vmatmul.bf16.gmra.mxu0 %v3801_v50 }
 0x1ac   : > { %1876 = vmatmul.bf16.gmra.mxu1 %v3804_v59 }
 0x1ad   : > { %2015 = vst [vmem:[%s3947_s22 + $0x78] sm:$0xff] %v1777_v8  ;;  %v2063_v2 = vsub.f32 %v1249_v28, %v1777_v8  ;;  %1925 = vmatmul.bf16.gmra.mxu2 %v3801_v50 }
 0x1ae   : > { %1974 = vmatmul.bf16.gmra.mxu3 %v3804_v59  ;;  %v1252_v59 = vsel %vm1156_vm6, %v3808_v61, %v1204_v44  ;;  %vm1148_vm6 = vcmp.ge.f32.partialorder %v3782_v3, 0.0 }
 0x1af   : > { %v2112_v53 = vmul.f32 %v3943_v10, %v2063_v2 }
 0x1b0   : > { %v1730_v58 = vpop.f32.mrf.mxu2  ;;  %v1066_v21 = vpop.f32.mrf.mxu0 }
 0x1b1   : > { %v2160_v29 = vadd.f32 %v2112_v53, %v1777_v8  ;;  %v1731_v0 = vadd.f32 %v1730_v58, %v3934_v16  ;;  %v1779_v56 = vpop.f32.mrf.mxu3  ;;  %v1067_v20 = vadd.f32 %v1066_v21, %v3917_v62  ;;  %v1115_v42 = vpop.f32.mrf.mxu1  ;;  %v1255_v58 = vsel %vm1159_vm7, %v3818_v33, %v1207_v13 }
 0x1b2   : > { %v1210_v21 = vmul.f32 0.01, %v3832_v1  ;;  %vm1149_vm7 = vcmp.ge.f32.partialorder %v3973_v47, 0.0 }
 0x1b3   : > { %2208 = vst [vmem:[%s3955_s23 + $0x78] sm:$0xff] %v2160_v29  ;;  %v1780_v50 = vadd.f32 %v1779_v56, %v1731_v0  ;;  %v4021_v37 = vadd.f32 %v1115_v42, %v1067_v20 }
 0x1b5   : > { %2018 = vst [vmem:[%s3947_s22 + $0x90] sm:$0xff] %v1780_v50  ;;  %v2066_v51 = vsub.f32 %v1252_v59, %v1780_v50 }
 0x1b7   : > { %v2115_v32 = vmul.f32 %v3943_v10, %v2066_v51 }
 0x1b8   : > { %v1732_v40 = vpop.f32.mrf.mxu2  ;;  %v1069_v2 = vpop.f32.mrf.mxu0 }
 0x1b9   : > { %v2163_v4 = vadd.f32 %v2115_v32, %v1780_v50  ;;  %v1733_v8 = vadd.f32 %v1732_v40, %v3934_v16  ;;  %v1781_v28 = vpop.f32.mrf.mxu3  ;;  %v1070_v53 = vadd.f32 %v1069_v2, %v3917_v62  ;;  %v1118_v61 = vpop.f32.mrf.mxu1 }
 0x1bb   : > { %2211 = vst [vmem:[%s3955_s23 + $0x90] sm:$0xff] %v2163_v4  ;;  %v1782_v44 = vadd.f32 %v1781_v28, %v1733_v8  ;;  %v4031_v29 = vadd.f32 %v1118_v61, %v1070_v53  ;;  %1832 = vmatmul.bf16.gmra.mxu0 %v3825_v49  ;;  %v1213_v8 = vmul.f32 0.01, %v3842_v24 }
 0x1bc   : > { %1881 = vmatmul.bf16.gmra.mxu1 %v3828_v57 }
 0x1bd   : > { %2021 = vst [vmem:[%s3947_s22 + $0xa8] sm:$0xff] %v1782_v44  ;;  %v2069_v0 = vsub.f32 %v1255_v58, %v1782_v44  ;;  %1930 = vmatmul.bf16.gmra.mxu2 %v3825_v49 }
 0x1be   : > { %1979 = vmatmul.bf16.gmra.mxu3 %v3828_v57  ;;  %v1258_v57 = vsel %vm1162_vm8, %v3832_v1, %v1210_v21  ;;  %vm1151_vm8 = vcmp.ge.f32.partialorder %v3792_v25, 0.0 }
 0x1bf   : > { %v2118_v56 = vmul.f32 %v3943_v10, %v2069_v0 }
 0x1c0   : > { %v1735_v20 = vpop.f32.mrf.mxu2  ;;  %v1071_v59 = vpop.f32.mrf.mxu0 }
 0x1c1   : > { %v2166_v33 = vadd.f32 %v2118_v56, %v1782_v44  ;;  %v1736_v42 = vadd.f32 %v1735_v20, %v3934_v16  ;;  %v1784_v50 = vpop.f32.mrf.mxu3  ;;  %v1072_v51 = vadd.f32 %v1071_v59, %v3917_v62  ;;  %v1120_v32 = vpop.f32.mrf.mxu1  ;;  %v1261_v56 = vsel %vm1165_vm9, %v3842_v24, %v1213_v8 }
 0x1c2   : > { %vm1152_vm9 = vcmp.ge.f32.partialorder %v3983_v43, 0.0 }
 0x1c3   : > { %2214 = vst [vmem:[%s3955_s23 + $0xa8] sm:$0xff] %v2166_v33  ;;  %v1785_v49 = vadd.f32 %v1784_v50, %v1736_v42  ;;  %v4045_v13 = vadd.f32 %v1120_v32, %v1072_v51  ;;  %v1216_v42 = vmul.f32 0.01, %v3856_v18 }
 0x1c5   : > { %2024 = vst [vmem:[%s3947_s22 + $0xc0] sm:$0xff] %v1785_v49  ;;  %v2072_v40 = vsub.f32 %v1258_v57, %v1785_v49 }
 0x1c7   : > { %v2121_v4 = vmul.f32 %v3943_v10, %v2072_v40 }
 0x1c8   : > { %v1737_v28 = vpop.f32.mrf.mxu2  ;;  %v1074_v44 = vpop.f32.mrf.mxu0 }
 0x1c9   : > { %v2169_v2 = vadd.f32 %v2121_v4, %v1785_v49  ;;  %v1738_v53 = vadd.f32 %v1737_v28, %v3934_v16  ;;  %v1786_v61 = vpop.f32.mrf.mxu3  ;;  %v1075_v58 = vadd.f32 %v1074_v44, %v3917_v62  ;;  %v1123_v1 = vpop.f32.mrf.mxu1  ;;  %v1219_v28 = vmul.f32 0.01, %v3866_v36 }
 0x1cb   : > { %2217 = vst [vmem:[%s3955_s23 + $0xc0] sm:$0xff] %v2169_v2  ;;  %v1787_v0 = vadd.f32 %v1786_v61, %v1738_v53  ;;  %v4055_v21 = vadd.f32 %v1123_v1, %v1075_v58  ;;  %1837 = vmatmul.bf16.gmra.mxu0 %v3849_v54 }
 0x1cc   : > { %1886 = vmatmul.bf16.gmra.mxu1 %v3852_v11 }
 0x1cd   : > { %2027 = vst [vmem:[%s3947_s22 + $0xd8] sm:$0xff] %v1787_v0  ;;  %v2075_v20 = vsub.f32 %v1261_v56, %v1787_v0  ;;  %1935 = vmatmul.bf16.gmra.mxu2 %v3849_v54  ;;  %v1267_v56 = vsel %vm1171_vm11, %v3866_v36, %v1219_v28  ;;  %vm1155_vm11 = vcmp.ge.f32.partialorder %v3997_v38, 0.0 }
 0x1ce   : > { %1984 = vmatmul.bf16.gmra.mxu3 %v3852_v11  ;;  %v1264_v11 = vsel %vm1168_vm10, %v3856_v18, %v1216_v42  ;;  %vm1154_vm10 = vcmp.ge.f32.partialorder %v3806_v60, 0.0 }
 0x1cf   : > { %v2124_v33 = vmul.f32 %v3943_v10, %v2075_v20 }
 0x1d0   : > { %v1740_v50 = vpop.f32.mrf.mxu2  ;;  %v1076_v32 = vpop.f32.mrf.mxu0 }
 0x1d1   : > { %v2172_v24 = vadd.f32 %v2124_v33, %v1787_v0  ;;  %v1741_v59 = vadd.f32 %v1740_v50, %v3934_v16  ;;  %v1789_v51 = vpop.f32.mrf.mxu3  ;;  %v1077_v49 = vadd.f32 %v1076_v32, %v3917_v62  ;;  %v1125_v57 = vpop.f32.mrf.mxu1  ;;  %v1222_v50 = vmul.f32 0.01, %v3880_v27 }
 0x1d3   : > { %2220 = vst [vmem:[%s3955_s23 + $0xd8] sm:$0xff] %v2172_v24  ;;  %v1790_v54 = vadd.f32 %v1789_v51, %v1741_v59  ;;  %v4069_v40 = vadd.f32 %v1125_v57, %v1077_v49 }
 0x1d5   : > { %2030 = vst [vmem:[%s3947_s22 + $0xf0] sm:$0xff] %v1790_v54  ;;  %v2078_v4 = vsub.f32 %v1264_v11, %v1790_v54 }
 0x1d7   : > { %v2127_v8 = vmul.f32 %v3943_v10, %v2078_v4 }
 0x1d8   : > { %v1742_v2 = vpop.f32.mrf.mxu2  ;;  %v1079_v58 = vpop.f32.mrf.mxu0 }
 0x1d9   : > { %v2175_v53 = vadd.f32 %v2127_v8, %v1790_v54  ;;  %v1743_v61 = vadd.f32 %v1742_v2, %v3934_v16  ;;  %v1791_v44 = vpop.f32.mrf.mxu3  ;;  %v1080_v1 = vadd.f32 %v1079_v58, %v3917_v62  ;;  %v1128_v18 = vpop.f32.mrf.mxu1  ;;  %v1225_v8 = vmul.f32 0.01, %v3890_v46 }
 0x1db   : > { %2223 = vst [vmem:[%s3955_s23 + $0xf0] sm:$0xff] %v2175_v53  ;;  %v1792_v0 = vadd.f32 %v1791_v44, %v1743_v61  ;;  %v4079_v20 = vadd.f32 %v1128_v18, %v1080_v1  ;;  %1842 = vmatmul.bf16.gmra.mxu0 %v3873_v7  ;;  %v1273_v18 = vsel %vm1177_vm13, %v3890_v46, %v1225_v8  ;;  %vm1158_vm13 = vcmp.ge.f32.partialorder %v4007_v9, 0.0 }
 0x1dc   : > { %1891 = vmatmul.bf16.gmra.mxu1 %v3876_v14 }
 0x1dd   : > { %2033 = vst [vmem:[%s3947_s22 + $0x108] sm:$0xff] %v1792_v0  ;;  %v2081_v33 = vsub.f32 %v1267_v56, %v1792_v0  ;;  %1940 = vmatmul.bf16.gmra.mxu2 %v3873_v7 }
 0x1de   : > { %1989 = vmatmul.bf16.gmra.mxu3 %v3876_v14  ;;  %v1270_v14 = vsel %vm1174_vm12, %v3880_v27, %v1222_v50  ;;  %vm1157_vm12 = vcmp.ge.f32.partialorder %v3816_v22, 0.0 }
 0x1df   : > { %v2130_v42 = vmul.f32 %v3943_v10, %v2081_v33 }
 0x1e0   : > { %v1745_v24 = vpop.f32.mrf.mxu2  ;;  %v1081_v32 = vpop.f32.mrf.mxu0 }
 0x1e1   : > { %v2178_v36 = vadd.f32 %v2130_v42, %v1792_v0  ;;  %v1746_v59 = vadd.f32 %v1745_v24, %v3934_v16  ;;  %v1794_v51 = vpop.f32.mrf.mxu3  ;;  %v1082_v49 = vadd.f32 %v1081_v32, %v3917_v62  ;;  %v1130_v57 = vpop.f32.mrf.mxu1  ;;  %v1228_v42 = vmul.f32 0.01, %v3904_v15 }
 0x1e3   : > { %2226 = vst [vmem:[%s3955_s23 + $0x108] sm:$0xff] %v2178_v36  ;;  %v1795_v7 = vadd.f32 %v1794_v51, %v1746_v59  ;;  %v4093_v54 = vadd.f32 %v1130_v57, %v1082_v49  ;;  %v1276_v49 = vsel %vm1180_vm14, %v3904_v15, %v1228_v42  ;;  %v1188_v42 = vmul.f32 0.01, %v3928_v41 }
 0x1e4   : > { %vm1160_vm14 = vcmp.ge.f32.partialorder %v3830_v63, 0.0 }
 0x1e5   : > { %2036 = vst [vmem:[%s3947_s22 + $0x120] sm:$0xff] %v1795_v7  ;;  %v2084_v11 = vsub.f32 %v1270_v14, %v1795_v7 }
 0x1e7   : > { %v2133_v4 = vmul.f32 %v3943_v10, %v2084_v11  ;;  %v1231_v11 = vmul.f32 0.01, %v3914_v48 }
 0x1e8   : > { %v1747_v28 = vpop.f32.mrf.mxu2  ;;  %v1084_v44 = vpop.f32.mrf.mxu0 }
 0x1e9   : > { %v2181_v2 = vadd.f32 %v2133_v4, %v1795_v7  ;;  %v1748_v53 = vadd.f32 %v1747_v28, %v3934_v16  ;;  %v1796_v61 = vpop.f32.mrf.mxu3  ;;  %v1085_v58 = vadd.f32 %v1084_v44, %v3917_v62  ;;  %v1133_v27 = vpop.f32.mrf.mxu1  ;;  %v4121_v7 = vperm.slane %v3924_v17, 1 }
 0x1eb   : > { %2229 = vst [vmem:[%s3955_s23 + $0x120] sm:$0xff] %v2181_v2  ;;  %v1797_v1 = vadd.f32 %v1796_v61, %v1748_v53  ;;  %v4103_v0 = vadd.f32 %v1133_v27, %v1085_v58  ;;  %1847 = vmatmul.bf16.gmra.mxu0 %v3897_v6  ;;  %v1279_v58 = vsel %vm1183_vm15, %v3914_v48, %v1231_v11  ;;  %v1190_v48 = vmul.f32 0.01, %v3758_v19 }
 0x1ec   : > { %1896 = vmatmul.bf16.gmra.mxu1 %v3900_v30  ;;  %vm1161_vm15 = vcmp.ge.f32.partialorder %v4021_v37, 0.0 }
 0x1ed   : > { %2039 = vst [vmem:[%s3947_s22 + $0x138] sm:$0xff] %v1797_v1  ;;  %v2087_v56 = vsub.f32 %v1273_v18, %v1797_v1  ;;  %1945 = vmatmul.bf16.gmra.mxu2 %v3897_v6  ;;  %v1238_v11 = vsel %vm1142_vm2, %v3758_v19, %v1190_v48  ;;  %v1194_v48 = vmul.f32 0.01, %v3959_v35  ;;  %vm1166_vm2 = vcmp.ge.f32.partialorder %v3854_v12, 0.0 }
 0x1ee   : > { %1994 = vmatmul.bf16.gmra.mxu3 %v3900_v30 }
 0x1ef   : > { %v2136_v33 = vmul.f32 %v3943_v10, %v2087_v56  ;;  %v4135_v56 = vperm.slane %v3924_v17, 2 }
 0x1f0   : > { %v1750_v50 = vpop.f32.mrf.mxu2  ;;  %v1086_v59 = vpop.f32.mrf.mxu0 }
 0x1f1   : > { %v2184_v46 = vadd.f32 %v2136_v33, %v1797_v1  ;;  %v1751_v24 = vadd.f32 %v1750_v50, %v3934_v16  ;;  %v1799_v36 = vpop.f32.mrf.mxu3  ;;  %v1087_v51 = vadd.f32 %v1086_v59, %v3917_v62  ;;  %v1135_v32 = vpop.f32.mrf.mxu1  ;;  %v1187_v62 = vmul.f32 0.01, %v3744_v55 }
 0x1f3   : > { %2232 = vst [vmem:[%s3955_s23 + $0x138] sm:$0xff] %v2184_v46  ;;  %v1800_v6 = vadd.f32 %v1799_v36, %v1751_v24  ;;  %v4117_v30 = vadd.f32 %v1135_v32, %v1087_v51  ;;  %v1235_v1 = vsel %vm1139_vm0, %v3744_v55, %v1187_v62  ;;  %vm1163_vm0 = vcmp.ge.f32.partialorder %v3840_v23, 0.0 }
 0x1f5   : > { %2042 = vst [vmem:[%s3947_s22 + $0x150] sm:$0xff] %v1800_v6  ;;  %v2090_v57 = vsub.f32 %v1276_v49, %v1800_v6  ;;  %v1236_v49 = vsel %vm1140_vm1, %v3928_v41, %v1188_v42  ;;  %vm1164_vm1 = vcmp.ge.f32.partialorder %v4031_v29, 0.0 }
 0x1f7   : > { %v2139_v14 = vmul.f32 %v3943_v10, %v2090_v57 }
 0x1f8   : > { %v1752_v4 = vpop.f32.mrf.mxu2  ;;  %v1813_v2 = vpop.f32.mrf.mxu0 }
 0x1f9   : > { %v2187_v15 = vadd.f32 %v2139_v14, %v1800_v6  ;;  %v1753_v8 = vadd.f32 %v1752_v4, %v3934_v16  ;;  %v1801_v28 = vpop.f32.mrf.mxu3  ;;  %v1814_v53 = vadd.f32 %v1813_v2, %v4121_v7  ;;  %v1862_v61 = vpop.f32.mrf.mxu1  ;;  %v1193_v2 = vmul.f32 0.01, %v3768_v39 }
 0x1fb   : > { %2235 = vst [vmem:[%s3955_s23 + $0x150] sm:$0xff] %v2187_v15  ;;  %v1802_v44 = vadd.f32 %v1801_v28, %v1753_v8  ;;  %v1863_v27 = vadd.f32 %v1862_v61, %v1814_v53  ;;  %v1191_v15 = vmul.f32 0.01, %v3945_v52 }
 0x1fd   : > { %2045 = vst [vmem:[%s3947_s22 + $0x168] sm:$0xff] %v1802_v44  ;;  %v2093_v18 = vsub.f32 %v1279_v58, %v1802_v44  ;;  %v2049_v16 = vsub.f32 %v1235_v1, %v1863_v27 }
 0x1fe   : > { %2001 = vst [vmem:[%s3947_s22 + $0x8] sm:$0xff] %v1863_v27 }
 0x1ff   : > { %v2142_v33 = vmul.f32 %v3943_v10, %v2093_v18  ;;  %v2098_v50 = vmul.f32 %v3943_v10, %v2049_v16  ;;  %v1239_v18 = vsel %vm1143_vm3, %v3945_v52, %v1191_v15  ;;  %vm1167_vm3 = vcmp.ge.f32.partialorder %v4045_v13, 0.0 }
 0x200   : > { %v1911_v46 = vpop.f32.mrf.mxu2  ;;  %v1815_v36 = vpop.f32.mrf.mxu0 }
 0x201   : > { %v2190_v55 = vadd.f32 %v2142_v33, %v1802_v44  ;;  %v1912_v17 = vadd.f32 %v1911_v46, %v4135_v56  ;;  %v1960_v24 = vpop.f32.mrf.mxu3  ;;  %v2146_v59 = vadd.f32 %v2098_v50, %v1863_v27  ;;  %v1816_v51 = vadd.f32 %v1815_v36, %v4121_v7  ;;  %v1864_v32 = vpop.f32.mrf.mxu1 }
 0x202   : > { %v1241_v33 = vsel %vm1145_vm4, %v3768_v39, %v1193_v2  ;;  %vm1169_vm4 = vcmp.ge.f32.partialorder %v3864_v34, 0.0 }
 0x203   : > { %2238 = vst [vmem:[%s3955_s23 + $0x168] sm:$0xff] %v2190_v55  ;;  %v1961_v6 = vadd.f32 %v1960_v24, %v1912_v17  ;;  %v1865_v57 = vadd.f32 %v1864_v32, %v1816_v51  ;;  %v1196_v24 = vmul.f32 0.01, %v3782_v3 }
 0x204   : > { %2194 = vst [vmem:[%s3955_s23 + $0x8] sm:$0xff] %v2146_v59 }
 0x205   : > { %2002 = vst [vmem:[%s3947_s22 + $0x10] sm:$0xff] %v1961_v6  ;;  %v2050_v14 = vsub.f32 %v1236_v49, %v1961_v6  ;;  %v2052_v4 = vsub.f32 %v1238_v11, %v1865_v57 }
 0x206   : > { %2004 = vst [vmem:[%s3947_s22 + $0x20] sm:$0xff] %v1865_v57 }
 0x207   : > { %v2099_v62 = vmul.f32 %v3943_v10, %v2050_v14  ;;  %v2101_v8 = vmul.f32 %v3943_v10, %v2052_v4  ;;  %v1244_v4 = vsel %vm1148_vm6, %v3782_v3, %v1196_v24  ;;  %vm1172_vm6 = vcmp.ge.f32.partialorder %v3878_v26, 0.0 }
 0x208   : > { %v1913_v28 = vpop.f32.mrf.mxu2  ;;  %v1818_v61 = vpop.f32.mrf.mxu0 }
 0x209   : > { %v2147_v41 = vadd.f32 %v2099_v62, %v1961_v6  ;;  %v1914_v19 = vadd.f32 %v1913_v28, %v4135_v56  ;;  %v1962_v53 = vpop.f32.mrf.mxu3  ;;  %v2149_v44 = vadd.f32 %v2101_v8, %v1865_v57  ;;  %v1819_v58 = vadd.f32 %v1818_v61, %v4121_v7  ;;  %v1867_v27 = vpop.f32.mrf.mxu1 }
 0x20a   : > { %v1242_v57 = vsel %vm1146_vm5, %v3959_v35, %v1194_v48  ;;  %v1197_v8 = vmul.f32 0.01, %v3973_v47  ;;  %vm1170_vm5 = vcmp.ge.f32.partialorder %v4055_v21, 0.0 }
 0x20b   : > { %2195 = vst [vmem:[%s3955_s23 + $0x10] sm:$0xff] %v2147_v41  ;;  %v1963_v1 = vadd.f32 %v1962_v53, %v1914_v19  ;;  %v1868_v16 = vadd.f32 %v1867_v27, %v1819_v58  ;;  %v1199_v41 = vmul.f32 0.01, %v3792_v25 }
 0x20c   : > { %2197 = vst [vmem:[%s3955_s23 + $0x20] sm:$0xff] %v2149_v44 }
 0x20d   : > { %2005 = vst [vmem:[%s3947_s22 + $0x28] sm:$0xff] %v1963_v1  ;;  %v2053_v42 = vsub.f32 %v1239_v18, %v1963_v1  ;;  %v2055_v50 = vsub.f32 %v1241_v33, %v1868_v16 }
 0x20e   : > { %2007 = vst [vmem:[%s3947_s22 + $0x38] sm:$0xff] %v1868_v16 }
 0x20f   : > { %v2102_v46 = vmul.f32 %v3943_v10, %v2053_v42  ;;  %v2104_v55 = vmul.f32 %v3943_v10, %v2055_v50 }
 0x210   : > { %v1916_v17 = vpop.f32.mrf.mxu2  ;;  %v1820_v59 = vpop.f32.mrf.mxu0 }
 0x211   : > { %v2150_v52 = vadd.f32 %v2102_v46, %v1963_v1  ;;  %v1917_v39 = vadd.f32 %v1916_v17, %v4135_v56  ;;  %v1965_v36 = vpop.f32.mrf.mxu3  ;;  %v2152_v51 = vadd.f32 %v2104_v55, %v1868_v16  ;;  %v1821_v32 = vadd.f32 %v1820_v59, %v4121_v7  ;;  %v1869_v6 = vpop.f32.mrf.mxu1 }
 0x212   : > { %v1245_v1 = vsel %vm1149_vm7, %v3973_v47, %v1197_v8  ;;  %v1247_v16 = vsel %vm1151_vm8, %v3792_v25, %v1199_v41  ;;  %v1200_v46 = vmul.f32 0.01, %v3983_v43  ;;  %v1202_v17 = vmul.f32 0.01, %v3806_v60 }
 0x213   : > { %2198 = vst [vmem:[%s3955_s23 + $0x28] sm:$0xff] %v2150_v52  ;;  %v1966_v49 = vadd.f32 %v1965_v36, %v1917_v39  ;;  %v1870_v14 = vadd.f32 %v1869_v6, %v1821_v32  ;;  %v1205_v8 = vmul.f32 0.01, %v3816_v22  ;;  %vm1173_vm7 = vcmp.ge.f32.partialorder %v4069_v40, 0.0 }
 0x214   : > { %2200 = vst [vmem:[%s3955_s23 + $0x38] sm:$0xff] %v2152_v51  ;;  %v1248_v32 = vsel %vm1152_vm9, %v3983_v43, %v1200_v46  ;;  %vm1175_vm8 = vcmp.ge.f32.partialorder %v3888_v45, 0.0  ;;  %vm1176_vm9 = vcmp.ge.f32.partialorder %v4079_v20, 0.0 }
 0x215   : > { %2008 = vst [vmem:[%s3947_s22 + $0x40] sm:$0xff] %v1966_v49  ;;  %v2056_v11 = vsub.f32 %v1242_v57, %v1966_v49  ;;  %v2058_v62 = vsub.f32 %v1244_v4, %v1870_v14  ;;  %v1250_v57 = vsel %vm1154_vm10, %v3806_v60, %v1202_v17  ;;  %v1203_v4 = vmul.f32 0.01, %v3997_v38 }
 0x216   : > { %2010 = vst [vmem:[%s3947_s22 + $0x50] sm:$0xff] %v1870_v14  ;;  %vm1178_vm10 = vcmp.ge.f32.partialorder %v3902_v31, 0.0 }
 0x217   : > { %v2105_v15 = vmul.f32 %v3943_v10, %v2056_v11  ;;  %v2107_v28 = vmul.f32 %v3943_v10, %v2058_v62 }
 0x218   : > { %v1918_v2 = vpop.f32.mrf.mxu2  ;;  %v1823_v53 = vpop.f32.mrf.mxu0 }
 0x219   : > { %v2153_v35 = vadd.f32 %v2105_v15, %v1966_v49  ;;  %v1919_v3 = vadd.f32 %v1918_v2, %v4135_v56  ;;  %v1967_v19 = vpop.f32.mrf.mxu3  ;;  %v2155_v61 = vadd.f32 %v2107_v28, %v1870_v14  ;;  %v1824_v44 = vadd.f32 %v1823_v53, %v4121_v7  ;;  %v1872_v58 = vpop.f32.mrf.mxu1 }
 0x21a   : > { %v1251_v53 = vsel %vm1155_vm11, %v3997_v38, %v1203_v4  ;;  %vm1179_vm11 = vcmp.ge.f32.partialorder %v4093_v54, 0.0 }
 0x21b   : > { %2201 = vst [vmem:[%s3955_s23 + $0x40] sm:$0xff] %v2153_v35  ;;  %v1968_v27 = vadd.f32 %v1967_v19, %v1919_v3  ;;  %v1873_v18 = vadd.f32 %v1872_v58, %v1824_v44  ;;  %v1253_v44 = vsel %vm1157_vm12, %v3816_v22, %v1205_v8  ;;  %vm1181_vm12 = vcmp.ge.f32.partialorder %v3912_v5, 0.0 }
 0x21c   : > { %2203 = vst [vmem:[%s3955_s23 + $0x50] sm:$0xff] %v2155_v61 }
 0x21d   : > { %2011 = vst [vmem:[%s3947_s22 + $0x58] sm:$0xff] %v1968_v27  ;;  %v2059_v33 = vsub.f32 %v1245_v1, %v1968_v27  ;;  %v2061_v42 = vsub.f32 %v1247_v16, %v1873_v18 }
 0x21e   : > { %2013 = vst [vmem:[%s3947_s22 + $0x68] sm:$0xff] %v1873_v18 }
 0x21f   : > { %v2108_v50 = vmul.f32 %v3943_v10, %v2059_v33  ;;  %v2110_v48 = vmul.f32 %v3943_v10, %v2061_v42  ;;  %v1208_v42 = vmul.f32 0.01, %v3830_v63 }
 0x220   : > { %v1921_v55 = vpop.f32.mrf.mxu2  ;;  %v1825_v52 = vpop.f32.mrf.mxu0 }
 0x221   : > { %v2156_v47 = vadd.f32 %v2108_v50, %v1968_v27  ;;  %v1922_v25 = vadd.f32 %v1921_v55, %v4135_v56  ;;  %v1970_v24 = vpop.f32.mrf.mxu3  ;;  %v2158_v39 = vadd.f32 %v2110_v48, %v1873_v18  ;;  %v1826_v36 = vadd.f32 %v1825_v52, %v4121_v7  ;;  %v1874_v59 = vpop.f32.mrf.mxu1 }
 0x222   : > { %v1206_v18 = vmul.f32 0.01, %v4007_v9 }
 0x223   : > { %2204 = vst [vmem:[%s3955_s23 + $0x58] sm:$0xff] %v2156_v47  ;;  %v1971_v51 = vadd.f32 %v1970_v24, %v1922_v25  ;;  %v1875_v6 = vadd.f32 %v1874_v59, %v1826_v36 }
 0x224   : > { %2206 = vst [vmem:[%s3955_s23 + $0x68] sm:$0xff] %v2158_v39  ;;  %v1254_v25 = vsel %vm1158_vm13, %v4007_v9, %v1206_v18  ;;  %v1256_v39 = vsel %vm1160_vm14, %v3830_v63, %v1208_v42  ;;  %vm1182_vm13 = vcmp.ge.f32.partialorder %v4103_v0, 0.0 }
 0x225   : > { %2014 = vst [vmem:[%s3947_s22 + $0x70] sm:$0xff] %v1971_v51  ;;  %v2062_v49 = vsub.f32 %v1248_v32, %v1971_v51  ;;  %v2064_v14 = vsub.f32 %v1250_v57, %v1875_v6 }
 0x226   : > { %2016 = vst [vmem:[%s3947_s22 + $0x80] sm:$0xff] %v1875_v6 }
 0x227   : > { %v2111_v11 = vmul.f32 %v3943_v10, %v2062_v49  ;;  %v2113_v62 = vmul.f32 %v3943_v10, %v2064_v14  ;;  %v1211_v49 = vmul.f32 0.01, %v3840_v23 }
 0x228   : > { %v1923_v15 = vpop.f32.mrf.mxu2  ;;  %v1828_v2 = vpop.f32.mrf.mxu0 }
 0x229   : > { %v2159_v43 = vadd.f32 %v2111_v11, %v1971_v51  ;;  %v1924_v60 = vadd.f32 %v1923_v15, %v4135_v56  ;;  %v1972_v28 = vpop.f32.mrf.mxu3  ;;  %v2161_v41 = vadd.f32 %v2113_v62, %v1875_v6  ;;  %v1829_v35 = vadd.f32 %v1828_v2, %v4121_v7  ;;  %v1877_v3 = vpop.f32.mrf.mxu1 }
 0x22a   : > { %v1209_v51 = vmul.f32 0.01, %v4021_v37 }
 0x22b   : > { %2207 = vst [vmem:[%s3955_s23 + $0x70] sm:$0xff] %v2159_v43  ;;  %v1973_v19 = vadd.f32 %v1972_v28, %v1924_v60  ;;  %v1878_v61 = vadd.f32 %v1877_v3, %v1829_v35  ;;  %v1259_v60 = vsel %vm1163_vm0, %v3840_v23, %v1211_v49  ;;  %v1212_v35 = vmul.f32 0.01, %v4031_v29 }
 0x22c   : > { %2209 = vst [vmem:[%s3955_s23 + $0x80] sm:$0xff] %v2161_v41  ;;  %v1257_v8 = vsel %vm1161_vm15, %v4021_v37, %v1209_v51  ;;  %vm1185_vm15 = vcmp.ge.f32.partialorder %v4117_v30, 0.0 }
 0x22d   : > { %2017 = vst [vmem:[%s3947_s22 + $0x88] sm:$0xff] %v1973_v19  ;;  %v2065_v58 = vsub.f32 %v1251_v53, %v1973_v19  ;;  %v2067_v27 = vsub.f32 %v1253_v44, %v1878_v61  ;;  %v1214_v53 = vmul.f32 0.01, %v3854_v12 }
 0x22e   : > { %2019 = vst [vmem:[%s3947_s22 + $0x98] sm:$0xff] %v1878_v61 }
 0x22f   : > { %v2114_v1 = vmul.f32 %v3943_v10, %v2065_v58  ;;  %v2116_v16 = vmul.f32 %v3943_v10, %v2067_v27 }
 0x230   : > { %v1926_v33 = vpop.f32.mrf.mxu2  ;;  %v1830_v46 = vpop.f32.mrf.mxu0 }
 0x231   : > { %v2162_v38 = vadd.f32 %v2114_v1, %v1973_v19  ;;  %v1927_v22 = vadd.f32 %v1926_v33, %v4135_v56  ;;  %v1975_v50 = vpop.f32.mrf.mxu3  ;;  %v2164_v48 = vadd.f32 %v2116_v16, %v1878_v61  ;;  %v1831_v55 = vadd.f32 %v1830_v46, %v4121_v7  ;;  %v1879_v17 = vpop.f32.mrf.mxu1 }
 0x232   : > { %v1260_v16 = vsel %vm1164_vm1, %v4031_v29, %v1212_v35  ;;  %v1215_v46 = vmul.f32 0.01, %v4045_v13 }
 0x233   : > { %2210 = vst [vmem:[%s3955_s23 + $0x88] sm:$0xff] %v2162_v38  ;;  %v1976_v47 = vadd.f32 %v1975_v50, %v1927_v22  ;;  %v1880_v24 = vadd.f32 %v1879_v17, %v1831_v55  ;;  %v1262_v38 = vsel %vm1166_vm2, %v3854_v12, %v1214_v53  ;;  %v1217_v17 = vmul.f32 0.01, %v3864_v34 }
 0x234   : > { %2212 = vst [vmem:[%s3955_s23 + $0x98] sm:$0xff] %v2164_v48  ;;  %v1221_v53 = vmul.f32 0.01, %v4069_v40 }
 0x235   : > { %2020 = vst [vmem:[%s3947_s22 + $0xa0] sm:$0xff] %v1976_v47  ;;  %v2068_v52 = vsub.f32 %v1254_v25, %v1976_v47  ;;  %v2070_v36 = vsub.f32 %v1256_v39, %v1880_v24 }
 0x236   : > { %2022 = vst [vmem:[%s3947_s22 + $0xb0] sm:$0xff] %v1880_v24 }
 0x237   : > { %v2117_v59 = vmul.f32 %v3943_v10, %v2068_v52  ;;  %v2119_v32 = vmul.f32 %v3943_v10, %v2070_v36 }
 0x238   : > { %v1928_v6 = vpop.f32.mrf.mxu2  ;;  %v1833_v14 = vpop.f32.mrf.mxu0 }
 0x239   : > { %v2165_v9 = vadd.f32 %v2117_v59, %v1976_v47  ;;  %v1929_v63 = vadd.f32 %v1928_v6, %v4135_v56  ;;  %v1977_v57 = vpop.f32.mrf.mxu3  ;;  %v2167_v11 = vadd.f32 %v2119_v32, %v1880_v24  ;;  %v1834_v4 = vadd.f32 %v1833_v14, %v4121_v7  ;;  %v1882_v62 = vpop.f32.mrf.mxu1 }
 0x23a   : > { %v1263_v59 = vsel %vm1167_vm3, %v4045_v13, %v1215_v46  ;;  %v1265_v32 = vsel %vm1169_vm4, %v3864_v34, %v1217_v17  ;;  %v1220_v13 = vmul.f32 0.01, %v3878_v26 }
 0x23b   : > { %2213 = vst [vmem:[%s3955_s23 + $0xa0] sm:$0xff] %v2165_v9  ;;  %v1978_v15 = vadd.f32 %v1977_v57, %v1929_v63  ;;  %v1883_v43 = vadd.f32 %v1882_v62, %v1834_v4  ;;  %v1218_v63 = vmul.f32 0.01, %v4055_v21 }
 0x23c   : > { %2215 = vst [vmem:[%s3955_s23 + $0xb0] sm:$0xff] %v2167_v11  ;;  %v1268_v35 = vsel %vm1172_vm6, %v3878_v26, %v1220_v13 }
 0x23d   : > { %2023 = vst [vmem:[%s3947_s22 + $0xb8] sm:$0xff] %v1978_v15  ;;  %v2071_v28 = vsub.f32 %v1257_v8, %v1978_v15  ;;  %v2073_v2 = vsub.f32 %v1259_v60, %v1883_v43 }
 0x23e   : > { %2025 = vst [vmem:[%s3947_s22 + $0xc8] sm:$0xff] %v1883_v43 }
 0x23f   : > { %v2120_v41 = vmul.f32 %v3943_v10, %v2071_v28  ;;  %v2122_v3 = vmul.f32 %v3943_v10, %v2073_v2  ;;  %v1266_v28 = vsel %vm1170_vm5, %v4055_v21, %v1218_v63 }
 0x240   : > { %v1931_v19 = vpop.f32.mrf.mxu2  ;;  %v1835_v44 = vpop.f32.mrf.mxu0 }
 0x241   : > { %v2168_v37 = vadd.f32 %v2120_v41, %v1978_v15  ;;  %v1932_v23 = vadd.f32 %v1931_v19, %v4135_v56  ;;  %v1980_v61 = vpop.f32.mrf.mxu3  ;;  %v2170_v58 = vadd.f32 %v2122_v3, %v1883_v43  ;;  %v1836_v27 = vadd.f32 %v1835_v44, %v4121_v7  ;;  %v1884_v1 = vpop.f32.mrf.mxu1 }
 0x243   : > { %2216 = vst [vmem:[%s3955_s23 + $0xb8] sm:$0xff] %v2168_v37  ;;  %v1981_v18 = vadd.f32 %v1980_v61, %v1932_v23  ;;  %v1885_v33 = vadd.f32 %v1884_v1, %v1836_v27  ;;  %v1223_v61 = vmul.f32 0.01, %v3888_v45 }
 0x244   : > { %2218 = vst [vmem:[%s3955_s23 + $0xc8] sm:$0xff] %v2170_v58 }
 0x245   : > { %2026 = vst [vmem:[%s3947_s22 + $0xd0] sm:$0xff] %v1981_v18  ;;  %v2074_v42 = vsub.f32 %v1260_v16, %v1981_v18  ;;  %v2076_v22 = vsub.f32 %v1262_v38, %v1885_v33  ;;  %v1271_v38 = vsel %vm1175_vm8, %v3888_v45, %v1223_v61 }
 0x246   : > { %2028 = vst [vmem:[%s3947_s22 + $0xe0] sm:$0xff] %v1885_v33 }
 0x247   : > { %v2123_v50 = vmul.f32 %v3943_v10, %v2074_v42  ;;  %v2125_v48 = vmul.f32 %v3943_v10, %v2076_v22 }
 0x248   : > { %v1933_v55 = vpop.f32.mrf.mxu2  ;;  %v1838_v25 = vpop.f32.mrf.mxu0 }
 0x249   : > { %v2171_v29 = vadd.f32 %v2123_v50, %v1981_v18  ;;  %v1934_v12 = vadd.f32 %v1933_v55, %v4135_v56  ;;  %v1982_v47 = vpop.f32.mrf.mxu3  ;;  %v2173_v24 = vadd.f32 %v2125_v48, %v1885_v33  ;;  %v1839_v52 = vadd.f32 %v1838_v25, %v4121_v7  ;;  %v1887_v39 = vpop.f32.mrf.mxu1 }
 0x24a   : > { %v1269_v33 = vsel %vm1173_vm7, %v4069_v40, %v1221_v53  ;;  %v1224_v48 = vmul.f32 0.01, %v4079_v20  ;;  %v1226_v40 = vmul.f32 0.01, %v3902_v31  ;;  %v4441_v53 = vld [vmem:[#allocation23_spill] sm:$0xff] }
 0x24b   : > { %2219 = vst [vmem:[%s3955_s23 + $0xd0] sm:$0xff] %v2171_v29  ;;  %v1983_v36 = vadd.f32 %v1982_v47, %v1934_v12  ;;  %v1888_v51 = vadd.f32 %v1887_v39, %v1839_v52  ;;  %vm1184_vm14 = vcmp.ge.f32.partialorder %v4441_v53, 0.0 }
 0x24c   : > { %2221 = vst [vmem:[%s3955_s23 + $0xe0] sm:$0xff] %v2173_v24 }
 0x24d   : > { %2029 = vst [vmem:[%s3947_s22 + $0xe8] sm:$0xff] %v1983_v36  ;;  %v2077_v6 = vsub.f32 %v1263_v59, %v1983_v36  ;;  %v2079_v49 = vsub.f32 %v1265_v32, %v1888_v51  ;;  %v1274_v32 = vsel %vm1178_vm10, %v3902_v31, %v1226_v40 }
 0x24e   : > { %2031 = vst [vmem:[%s3947_s22 + $0xf8] sm:$0xff] %v1888_v51 }
 0x24f   : > { %v2126_v9 = vmul.f32 %v3943_v10, %v2077_v6  ;;  %v2128_v57 = vmul.f32 %v3943_v10, %v2079_v49 }
 0x250   : > { %v1936_v14 = vpop.f32.mrf.mxu2  ;;  %v1840_v62 = vpop.f32.mrf.mxu0 }
 0x251   : > { %v2174_v11 = vadd.f32 %v2126_v9, %v1983_v36  ;;  %v1937_v34 = vadd.f32 %v1936_v14, %v4135_v56  ;;  %v1985_v4 = vpop.f32.mrf.mxu3  ;;  %v2176_v15 = vadd.f32 %v2128_v57, %v1888_v51  ;;  %v1841_v8 = vadd.f32 %v1840_v62, %v4121_v7  ;;  %v1889_v43 = vpop.f32.mrf.mxu1 }
 0x252   : > { %v1272_v36 = vsel %vm1176_vm9, %v4079_v20, %v1224_v48  ;;  %v1227_v9 = vmul.f32 0.01, %v4093_v54  ;;  %v1229_v14 = vmul.f32 0.01, %v3912_v5 }
 0x253   : > { %2222 = vst [vmem:[%s3955_s23 + $0xe8] sm:$0xff] %v2174_v11  ;;  %v1986_v60 = vadd.f32 %v1985_v4, %v1937_v34  ;;  %v1890_v2 = vadd.f32 %v1889_v43, %v1841_v8 }
 0x254   : > { %2224 = vst [vmem:[%s3955_s23 + $0xf8] sm:$0xff] %v2176_v15  ;;  %v1275_v8 = vsel %vm1179_vm11, %v4093_v54, %v1227_v9  ;;  %v1232_v54 = vmul.f32 0.01, %v4441_v53 }
 0x255   : > { %2032 = vst [vmem:[%s3947_s22 + $0x100] sm:$0xff] %v1986_v60  ;;  %v2080_v41 = vsub.f32 %v1266_v28, %v1986_v60  ;;  %v2082_v3 = vsub.f32 %v1268_v35, %v1890_v2  ;;  %v1230_v35 = vmul.f32 0.01, %v4103_v0 }
 0x256   : > { %2034 = vst [vmem:[%s3947_s22 + $0x110] sm:$0xff] %v1890_v2 }
 0x257   : > { %v2129_v19 = vmul.f32 %v3943_v10, %v2080_v41  ;;  %v2131_v37 = vmul.f32 %v3943_v10, %v2082_v3 }
 0x258   : > { %v1938_v23 = vpop.f32.mrf.mxu2  ;;  %v1843_v58 = vpop.f32.mrf.mxu0 }
 0x259   : > { %v2177_v21 = vadd.f32 %v2129_v19, %v1986_v60  ;;  %v1939_v26 = vadd.f32 %v1938_v23, %v4135_v56  ;;  %v1987_v44 = vpop.f32.mrf.mxu3  ;;  %v2179_v27 = vadd.f32 %v2131_v37, %v1890_v2  ;;  %v1844_v1 = vadd.f32 %v1843_v58, %v4121_v7  ;;  %v1892_v18 = vpop.f32.mrf.mxu1 }
 0x25a   : > { %v1277_v60 = vsel %vm1181_vm12, %v3912_v5, %v1229_v14 }
 0x25b   : > { %2225 = vst [vmem:[%s3955_s23 + $0x100] sm:$0xff] %v2177_v21  ;;  %v1988_v16 = vadd.f32 %v1987_v44, %v1939_v26  ;;  %v1893_v42 = vadd.f32 %v1892_v18, %v1844_v1 }
 0x25c   : > { %2227 = vst [vmem:[%s3955_s23 + $0x110] sm:$0xff] %v2179_v27  ;;  %v1278_v27 = vsel %vm1182_vm13, %v4103_v0, %v1230_v35 }
 0x25d   : > { %2035 = vst [vmem:[%s3947_s22 + $0x118] sm:$0xff] %v1988_v16  ;;  %v2083_v22 = vsub.f32 %v1269_v33, %v1988_v16  ;;  %v2085_v50 = vsub.f32 %v1271_v38, %v1893_v42 }
 0x25e   : > { %2037 = vst [vmem:[%s3947_s22 + $0x128] sm:$0xff] %v1893_v42 }
 0x25f   : > { %v2132_v46 = vmul.f32 %v3943_v10, %v2083_v22  ;;  %v2134_v55 = vmul.f32 %v3943_v10, %v2085_v50 }
 0x260   : > { %v1941_v17 = vpop.f32.mrf.mxu2  ;;  %v1845_v47 = vpop.f32.mrf.mxu0 }
 0x261   : > { %v2180_v29 = vadd.f32 %v2132_v46, %v1988_v16  ;;  %v1942_v45 = vadd.f32 %v1941_v17, %v4135_v56  ;;  %v1990_v12 = vpop.f32.mrf.mxu3  ;;  %v2182_v25 = vadd.f32 %v2134_v55, %v1893_v42  ;;  %v1846_v24 = vadd.f32 %v1845_v47, %v4121_v7  ;;  %v1894_v52 = vpop.f32.mrf.mxu1 }
 0x262   : > { %v1280_v16 = vsel %vm1184_vm14, %v4441_v53, %v1232_v54  ;;  %v1233_v42 = vmul.f32 0.01, %v4117_v30 }
 0x263   : > { %2228 = vst [vmem:[%s3955_s23 + $0x118] sm:$0xff] %v2180_v29  ;;  %v1991_v39 = vadd.f32 %v1990_v12, %v1942_v45  ;;  %v1895_v59 = vadd.f32 %v1894_v52, %v1846_v24 }
 0x264   : > { %2230 = vst [vmem:[%s3955_s23 + $0x128] sm:$0xff] %v2182_v25  ;;  %v1281_v17 = vsel %vm1185_vm15, %v4117_v30, %v1233_v42 }
 0x265   : > { %2038 = vst [vmem:[%s3947_s22 + $0x130] sm:$0xff] %v1991_v39  ;;  %v2086_v51 = vsub.f32 %v1272_v36, %v1991_v39  ;;  %v2088_v6 = vsub.f32 %v1274_v32, %v1895_v59 }
 0x266   : > { %2040 = vst [vmem:[%s3947_s22 + $0x140] sm:$0xff] %v1895_v59 }
 0x267   : > { %v2135_v49 = vmul.f32 %v3943_v10, %v2086_v51  ;;  %v2137_v63 = vmul.f32 %v3943_v10, %v2088_v6 }
 0x268   : > { %v1943_v57 = vpop.f32.mrf.mxu2  ;;  %v1848_v11 = vpop.f32.mrf.mxu0 }
 0x269   : > { %v2183_v20 = vadd.f32 %v2135_v49, %v1991_v39  ;;  %v1944_v31 = vadd.f32 %v1943_v57, %v4135_v56  ;;  %v1992_v13 = vpop.f32.mrf.mxu3  ;;  %v2185_v34 = vadd.f32 %v2137_v63, %v1895_v59  ;;  %v1849_v4 = vadd.f32 %v1848_v11, %v4121_v7  ;;  %v1897_v62 = vpop.f32.mrf.mxu1 }
 0x26b   : > { %2231 = vst [vmem:[%s3955_s23 + $0x130] sm:$0xff] %v2183_v20  ;;  %v1993_v15 = vadd.f32 %v1992_v13, %v1944_v31  ;;  %v1898_v43 = vadd.f32 %v1897_v62, %v1849_v4 }
 0x26c   : > { %2233 = vst [vmem:[%s3955_s23 + $0x140] sm:$0xff] %v2185_v34 }
 0x26d   : > { %2041 = vst [vmem:[%s3947_s22 + $0x148] sm:$0xff] %v1993_v15  ;;  %v2089_v28 = vsub.f32 %v1275_v8, %v1993_v15  ;;  %v2091_v2 = vsub.f32 %v1277_v60, %v1898_v43 }
 0x26e   : > { %2043 = vst [vmem:[%s3947_s22 + $0x158] sm:$0xff] %v1898_v43 }
 0x26f   : > { %v2138_v41 = vmul.f32 %v3943_v10, %v2089_v28  ;;  %v2140_v3 = vmul.f32 %v3943_v10, %v2091_v2 }
 0x270   : > { %v1946_v19 = vpop.f32.mrf.mxu2  ;;  %v1850_v61 = vpop.f32.mrf.mxu0 }
 0x271   : > { %v2186_v37 = vadd.f32 %v2138_v41, %v1993_v15  ;;  %v1947_v5 = vadd.f32 %v1946_v19, %v4135_v56  ;;  %v1995_v23 = vpop.f32.mrf.mxu3  ;;  %v2188_v21 = vadd.f32 %v2140_v3, %v1898_v43  ;;  %v1851_v26 = vadd.f32 %v1850_v61, %v4121_v7  ;;  %v1899_v58 = vpop.f32.mrf.mxu1 }
 0x273   : > { %2234 = vst [vmem:[%s3955_s23 + $0x148] sm:$0xff] %v2186_v37  ;;  %v1996_v44 = vadd.f32 %v1995_v23, %v1947_v5  ;;  %v1900_v1 = vadd.f32 %v1899_v58, %v1851_v26 }
 0x274   : > { %2236 = vst [vmem:[%s3955_s23 + $0x158] sm:$0xff] %v2188_v21 }
 0x275   : > { %2044 = vst [vmem:[%s3947_s22 + $0x160] sm:$0xff] %v1996_v44  ;;  %v2092_v18 = vsub.f32 %v1278_v27, %v1996_v44  ;;  %v2094_v33 = vsub.f32 %v1280_v16, %v1900_v1 }
 0x276   : > { %2046 = vst [vmem:[%s3947_s22 + $0x170] sm:$0xff] %v1900_v1 }
 0x277   : > { %v2141_v7 = vmul.f32 %v3943_v10, %v2092_v18  ;;  %v2143_v0 = vmul.f32 %v3943_v10, %v2094_v33 }
 0x278   : > { %v1948_v38 = vpop.f32.mrf.mxu2 }
 0x279   : > { %v2189_v22 = vadd.f32 %v2141_v7, %v1996_v44  ;;  %v1949_v50 = vadd.f32 %v1948_v38, %v4135_v56  ;;  %v2191_v46 = vadd.f32 %v2143_v0, %v1900_v1  ;;  %v1997_v48 = vpop.f32.mrf.mxu3 }
 0x27b   : > { %2237 = vst [vmem:[%s3955_s23 + $0x160] sm:$0xff] %v2189_v22  ;;  %v1998_v55 = vadd.f32 %v1997_v48, %v1949_v50 }
 0x27c   : > { %2239 = vst [vmem:[%s3955_s23 + $0x170] sm:$0xff] %v2191_v46 }
 0x27d   : > { %2047 = vst [vmem:[%s3947_s22 + $0x178] sm:$0xff] %v1998_v55  ;;  %v2095_v40 = vsub.f32 %v1281_v17, %v1998_v55 }
 0x27e   : > { %3332 = shalt.err (!%p3329_p9)
}
 0x27f   : > { %s3423_s22 = smov 384   ;;  %s3424_s25 = smov 24   ;;  %v2144_v30 = vmul.f32 %v3943_v10, %v2095_v40 }
 0x280   : > { %3115 = dma.vmem_to_hbm [thread:$0]  (%p3539_p3), %s2279_s15, 6144, %s2281_s18, %s2247_s17, %s3423_s22, %s3423_s22, %s3424_s25  }
 0x281   : > { %v2192_v56 = vadd.f32 %v2144_v30, %v1998_v55  ;;  %s2242_s28 = scalar_lea.sflag [#allocation5], %s3595_s9  ;;  %s3347_s0 = sshra.s32 %s2263_s5, 4  ;;  %s3348_s0 = int_to_ptr.hbm [resolvable:$true] %s3347_s0 }
 0x282   : > { %s3349_s20 = scalar_lea.hbm %s3348_s0, 384  ;;  %s3353_s12 = scalar_lea.hbm %s4418_s7, 768 }
 0x283   : > { %2240 = vst [vmem:[%s3955_s23 + $0x178] sm:$0xff] %v2192_v56  ;;  %p3350_p12 = scmp.ne.s32.totalorder %s3348_s0, %s3349_s20  ;;  %p3354_p5 = scmp.lt.s32.totalorder %s3348_s0, %s4418_s7 }
 0x284   : > { %p3355_p7 = scmp.lt.s32.totalorder %s3353_s12, %s3349_s20 }
 0x285   : > { %p3351_p13 = pnand %p3350_p12, %p3539_p3 }
 0x286   : > { %p3356_p1 = por %p3355_p7, %p3354_p5 }
 0x287   : > { %p3352_p0 = pneg %p3351_p13 }
 0x289   : > { %p3357_p4 = pnand %p3356_p1, %p3352_p0 }
 0x28b   : > { %3360 = shalt.err (!%p3357_p4)
}
 0x28c   : > { %3114 = dma.vmem_to_hbm [thread:$0]  (%p3539_p3), %s2261_s1, 6144, %s2263_s5, %s2242_s28, %s3423_s22, %s3423_s22, %s3424_s25  }
 0x28d PF: > { %s2295_s9 = sand.u32 1, %s3403_s29   ;;  %p4442_p8 = scmp.ge.s32.totalorder %s3415_s10, 2 }
 0x28e   : > { %s2296_s23 = scalar_lea.sflag [#allocation5], %s2295_s9 }
 0x28f   : > { %p3133_p2 = pnand %p4442_p8, %p3508_p6 }
 0x291   : > { %p3134_p10 = pneg %p3133_p2 }
 0x293   : > { %3394 = dma.done.wait (%p3134_p10), %s2296_s23, 6144  }
 0x294   : > { %3396 = vsyncadd (%p3134_p10), %s2296_s23, 4294961152  ;;  %s2306_s18 = scalar_lea.sflag [#allocation13], %s2295_s9 }
 0x295   : > { %3398 = dma.done.wait (%p3134_p10), %s2306_s18, 6144  }
 0x296   : > { %3400 = vsyncadd (%p3134_p10), %s2306_s18, 4294961152  ;;  %s4443_s10 = sld [smem:[#allocation21_spill]]  ;;  %s4446_s29 = smov %s3407_s30 }
 0x297   : > { %s4444_s17 = sld [smem:[#allocation20_spill]] }
 0x298   : > { %s4445_s9 = sld [smem:[#allocation22_spill]] }
 0x29c   : > { %p30_p3 = scmp.ge.s32.totalorder %s4443_s10, 4  }
 0x29d   : > { %s4447_s30 = smov %s4444_s17 }
 0x29e   :  { %32 = sbr.rel (!%p30_p3) target bundleno = 15 (0xf), region = 131 }
 0x2a3   :  { %2312 = vsyncpa [#allocation4], 1 }
 0x2a4   :  { %2314 = vsyncpa [#allocation4 + $0x1], 1 }
 0x2a5   :  { %2315 = vsyncpa [#allocation7], 1 }
 0x2a6   :  { %2317 = vsyncpa [#allocation7 + $0x1], 1 }
 0x2a7   :  { %2318 = vsyncpa [#allocation10], 1 }
 0x2a8   :  { %2319 = vsyncpa [#allocation5], 1 }
 0x2a9   :  { %2321 = vsyncpa [#allocation5 + $0x1], 1 }
 0x2aa   :  { %2322 = vsyncpa [#allocation13], 1 }
 0x2ab   :  { %2324 = vsyncpa [#allocation13 + $0x1], 1 }

// kernel: tpu_custom_call.1
= control target key start
LH: loop header
LB: loop body
LE: loop exit
PB: predicated region body
PF: predicated region fallthrough
CT: control target
= control target key end

     0   :  { %s4411_s0 = inlined_call_operand.<no memory space> [shape: f32[1,1], index: 0, kind: input, shape index: {}]   ;;  %s4412_s1 = inlined_call_operand.hbm [shape: bf16[256,256], index: 1, kind: input, shape index: {}]   ;;  %s4413_s2 = inlined_call_operand.hbm [shape: bf16[256,256], index: 2, kind: input, shape index: {}]   ;;  %s4414_s3 = inlined_call_operand.hbm [shape: bf16[256,384], index: 3, kind: input, shape index: {}]   ;;  %s4415_s4 = inlined_call_operand.vmem [shape: f32[1,384], index: 4, kind: input, shape index: {}]   ;;  %s4416_s5 = inlined_call_operand.hbm [shape: bf16[256,384], index: 5, kind: input, shape index: {}]   ;;  %s4417_s6 = inlined_call_operand.vmem [shape: f32[1,384], index: 6, kind: input, shape index: {}]   ;;  %s4418_s7 = inlined_call_operand.hbm [shape: f32[256,384], index: 7, kind: output, shape index: {0}]   ;;  %s4419_s8 = inlined_call_operand.hbm [shape: f32[256,384], index: 8, kind: output, shape index: {1}]  }
   0x1   :  { %4425 = sst [smem:[#allocation24_spill]] %s4412_s1 }
   0x2   :  { %4426 = sst [smem:[#allocation25_spill]] %s4414_s3 }
   0x3   :  { %4427 = sst [smem:[#allocation26_spill]] %s4416_s5 }
   0x4   :  { %14 = sst [smem:[#allocation2]] %s4411_s0 }
   0x5   :  { %15 = vsyncpa [#allocation4], 0 }
   0x6   :  { %17 = vsyncpa [#allocation4 + $0x1], 0 }
   0x7   :  { %18 = vsyncpa [#allocation7], 0 }
   0x8   :  { %20 = vsyncpa [#allocation7 + $0x1], 0 }
   0x9   :  { %21 = vsyncpa [#allocation10], 0 }
   0xa   :  { %22 = vsyncpa [#allocation5], 0 }
   0xb   :  { %24 = vsyncpa [#allocation5 + $0x1], 0 }
   0xc   :  { %25 = vsyncpa [#allocation13], 0 }
   0xd   :  { %27 = vsyncpa [#allocation13 + $0x1], 0  ;;  %s3473_s29 = smov 0   ;;  %s3475_s30 = smov 0  }
   0xe   :  { %s3477_s9 = smov 0   ;;  %s3479_s10 = smov 0  }
   0xf LB: > { %4428 = sst [smem:[#allocation20_spill]] %s3411_s9  ;;  %s3494_s0 = sadd.s32 4294967295, %s3415_s10   ;;  %s3415_s10 = sphi %s3479_s10, %s4443_s10   ;;  %s3411_s9 = sphi %s3477_s9, %s4445_s9   ;;  %s3407_s30 = sphi %s3475_s30, %s4447_s30   ;;  %s3403_s29 = sphi %s3473_s29, %s4446_s29  }
  0x10   : > { %s2429_s11 = sadd.s32 4294967294, %s3415_s10   ;;  %p74_p0 = scmp.ne.s32.totalorder %s3407_s30, %s3403_s29 }
  0x11   : > { %p75_p1 = scmp.eq.s32.totalorder %s3494_s0, 0  ;;  %p208_p2 = scmp.eq.s32.totalorder %s3494_s0, 1 }
  0x12   : > { %p214_p3 = scmp.eq.s32.totalorder %s2429_s11, 1  ;;  %p2430_p5 = scmp.ge.s32.totalorder %s3415_s10, 1 }
  0x13   : > { %p3503_p4 = por %p75_p1, %p74_p0  ;;  %p247_p7 = scmp.lt.s32.totalorder %s3415_s10, 3 }
  0x14   : > { %p3508_p6 = por %p214_p3, %p74_p0  ;;  %s4431_s3 = sld [smem:[#allocation25_spill]] }
  0x15   : > { %p3516_p8 = pnand %p2430_p5, %p247_p7  ;;  %s3417_s18 = smov [#allocation8]  }
  0x16   : > { %s263_s19 = sshll.u32 %s3417_s18, 4  ;;  %s4433_s5 = sld [smem:[#allocation26_spill]]  ;;  %s264_s19 = int_to_ptr.vmem [resolvable:$true] %s263_s19 }
  0x17   : > { %p3118_p9 = pneg %p3516_p8  ;;  %s3418_s23 = smov 192  }
  0x18   : > { %s3419_s24 = smov 12   ;;  %s3420_s25 = smov [#allocation9]  }
  0x19   : > { %p3119_p10 = pnand %p3118_p9, %p75_p1  ;;  %s280_s26 = sshll.u32 %s3420_s25, 4  ;;  %s281_s26 = int_to_ptr.vmem [resolvable:$true] %s280_s26 }
  0x1a   : > { %s261_s16 = sshll.u32 %s4431_s3, 4  ;;  %s3529_s27 = sadd.s32 1, %s3415_s10   ;;  %s262_s16 = int_to_ptr.hbm [resolvable:$true] %s261_s16 }
  0x1b   : > { %3121 = dma.hbm_to_vmem [thread:$0]  (!%p3119_p10), %s262_s16, 6144, %s264_s19, [#allocation7], %s3418_s23, %s3418_s23, %s3419_s24  }
  0x1c   : > { %s278_s22 = sshll.u32 %s4433_s5, 4  ;;  %4434 = sst [smem:[#allocation21_spill]] %s3529_s27  ;;  %s279_s22 = int_to_ptr.hbm [resolvable:$true] %s278_s22 }
  0x1d   : > { %3124 = dma.hbm_to_vmem [thread:$0]  (!%p3119_p10), %s279_s22, 6144, %s281_s26, [#allocation10], %s3418_s23, %s3418_s23, %s3419_s24  }
  0x1e   : > { %s61_s28 = sadd.s32 1, %s3411_s9  ;;  %s58_s11 = ssub.s32 %s3415_s10, %s3529_s27 }
  0x1f   : > { %p68_p12 = scmp.ne.s32.totalorder %s3411_s9, %s3407_s30  ;;  %p59_p13 = scmp.eq.s32.totalorder %s58_s11, 0 }
  0x20   : > { %p69_p0 = scmp.eq.s32.totalorder %s3415_s10, 0  ;;  %p3141_p5 = scmp.lt.s32.totalorder %s3415_s10, 2 }
  0x21   : > { %p3539_p3 = por %p208_p2, %p68_p12  ;;  %s297_s16 = sand.u32 1, %s3411_s9  }
  0x22   : > { %s3545_s15 = scalar_select %p59_p13, %s3411_s9, %s61_s28  }
  0x23   : > { %p70_p7 = por %p69_p0, %p68_p12  ;;  %s3548_s18 = sshll.u32 %s297_s16, 7 }
  0x24   : > { %4436 = sst [smem:[#allocation22_spill]] %s3545_s15  ;;  %s4420_s19 = sshll.u32 %s3415_s10, 7 }
  0x25   : > { %s4437_s1 = sld [smem:[#allocation24_spill]]  ;;  %s301_s23 = scalar_lea.vmem [#allocation3], %s3548_s18 }
  0x26   : > { %s310_s24 = sshll.u32 %s301_s23, 4  ;;  %p3557_p2 = pnand %p3141_p5, %p70_p7  ;;  %s311_s24 = int_to_ptr.vmem [resolvable:$true] %s310_s24 }
  0x27   : > { %s298_s28 = scalar_lea.sflag [#allocation4], %s297_s16 }
  0x28   : > { %p3249_p10 = pneg %p3557_p2 }
  0x2b   : > { %s307_s22 = scalar_lea.hbm %s4437_s1, %s4420_s19 }
  0x2c   : > { %s308_s25 = sshll.u32 %s307_s22, 4  ;;  %s3252_s22 = scalar_lea.hbm %s4437_s1, 256  ;;  %s309_s25 = int_to_ptr.hbm [resolvable:$true] %s308_s25 }
  0x2d   : > { %s3245_s11 = sshra.s32 %s309_s25, 4  ;;  %s3246_s11 = int_to_ptr.hbm [resolvable:$true] %s3245_s11 }
  0x2e   : > { %s3247_s3 = scalar_lea.hbm %s3246_s11, 128  ;;  %p3253_p0 = scmp.lt.s32.totalorder %s3246_s11, %s4437_s1 }
  0x2f   : > { %p3248_p9 = scmp.ne.s32.totalorder %s3246_s11, %s3247_s3  ;;  %p3254_p5 = scmp.lt.s32.totalorder %s3252_s22, %s3247_s3 }
  0x31   : > { %p3250_p12 = pnand %p3249_p10, %p3248_p9  ;;  %p3255_p7 = por %p3254_p5, %p3253_p0 }
  0x33   : > { %p3251_p13 = pneg %p3250_p12 }
  0x35   : > { %p3256_p11 = pnand %p3255_p7, %p3251_p13 }
  0x37   : > { %3259 = shalt.err (!%p3256_p11)
}
  0x38   : > { %s3421_s16 = smov 128   ;;  %s3422_s5 = smov 8  }
  0x39   : > { %3128 = dma.hbm_to_vmem [thread:$0]  (!%p3557_p2), %s309_s25, 2048, %s311_s24, %s298_s28, %s3421_s16, %s3421_s16, %s3422_s5  }
  0x3a   : > { %s4439_s15 = sshll.u32 %s3415_s10, 7  ;;  %s324_s19 = scalar_lea.vmem [#allocation6], %s3548_s18 }
  0x3b   : > { %s330_s9 = scalar_lea.hbm %s4413_s2, %s4439_s15  ;;  %s333_s11 = sshll.u32 %s324_s19, 4  ;;  %s334_s11 = int_to_ptr.vmem [resolvable:$true] %s333_s11 }
  0x3c   : > { %s331_s3 = sshll.u32 %s330_s9, 4  ;;  %s320_s22 = sand.u32 1, %s3415_s10   ;;  %s332_s3 = int_to_ptr.hbm [resolvable:$true] %s331_s3 }
  0x3d   : > { %s321_s23 = scalar_lea.sflag [#allocation7], %s320_s22  ;;  %s3275_s1 = sshra.s32 %s332_s3, 4  ;;  %s3276_s1 = int_to_ptr.hbm [resolvable:$true] %s3275_s1 }
  0x3e   : > { %s3277_s27 = scalar_lea.hbm %s3276_s1, 128  ;;  %s3282_s28 = scalar_lea.hbm %s4413_s2, 256 }
  0x3f   : > { %p3278_p11 = scmp.ne.s32.totalorder %s3276_s1, %s3277_s27  ;;  %p3283_p13 = scmp.lt.s32.totalorder %s3276_s1, %s4413_s2 }
  0x40   : > { %p3284_p0 = scmp.lt.s32.totalorder %s3282_s28, %s3277_s27 }
  0x41   : > { %p3280_p9 = pnand %p3278_p11, %p3249_p10 }
  0x42   : > { %p3285_p5 = por %p3284_p0, %p3283_p13 }
  0x43   : > { %p3281_p12 = pneg %p3280_p9 }
  0x45   : > { %p3286_p7 = pnand %p3285_p5, %p3281_p12 }
  0x47   : > { %3289 = shalt.err (!%p3286_p7)
}
  0x48   : > { %3131 = dma.hbm_to_vmem [thread:$0]  (!%p3557_p2), %s332_s3, 2048, %s334_s11, %s321_s23, %s3421_s16, %s3421_s16, %s3422_s5  }
  0x49   : > { %345 = sbr.rel (%p3516_p8) target bundleno = 653 (0x28d), region = 48 }
  0x4e   : > { %s3595_s9 = sand.u32 1, %s3407_s30  }
  0x4f   : > { %s2443_s20 = sshll.u32 %s3595_s9, 7  ;;  %s348_s21 = scalar_lea.sflag [#allocation4], %s3595_s9 }
  0x50   : > { %s3599_s19 = scalar_lea.vmem [#allocation3], %s2443_s20 }
  0x51   : > { %3378 = dma.done.wait (%p3503_p4), %s348_s21, 2048  }
  0x52   : > { %3380 = vsyncadd (%p3503_p4), %s348_s21, 4294965248  ;;  %s357_s1 = sand.u32 1, %s3494_s0   ;;  %s3606_s17 = scalar_lea.vmem [#allocation6], %s2443_s20 }
  0x53   : > { %s358_s5 = scalar_lea.sflag [#allocation7], %s357_s1 }
  0x54   : > { %3382 = dma.done.wait (%p3503_p4), %s358_s5, 2048  }
  0x55   : > { %3384 = vsyncadd (%p3503_p4), %s358_s5, 4294965248 }
  0x56   : > { %3386 = dma.done.wait (%p75_p1), [#allocation7], 6144  }
  0x57   : > { %3388 = vsyncadd (%p75_p1), [#allocation7], 4294961152 }
  0x58   : > { %3390 = dma.done.wait (%p75_p1), [#allocation10], 6144  }
  0x59   : > { %3392 = vsyncadd (%p75_p1), [#allocation10], 4294961152  ;;  %v2597_v0 = vld [vmem:[#allocation8 + $0xa8] sm:$0xf]  ;;  %v3009_v1 = vld [vmem:[#allocation8 + $0xb0] sm:$0xf0] }
  0x5a   : > { %v2693_v2 = vld [vmem:[#allocation8 + $0x168] sm:$0xf]  ;;  %v2598_v3 = vor.u32 %v3009_v1, %v2597_v0  ;;  %v3033_v4 = vld [vmem:[#allocation8 + $0x170] sm:$0xf0]  ;;  %v3008_v5 = vld [vmem:[#allocation8 + $0xac] sm:$0xf] }
  0x5b   : > { %v2599_v6 = vld [vmem:[#allocation8 + $0xb4] sm:$0xf0]  ;;  %v2694_v7 = vor.u32 %v3033_v4, %v2693_v2  ;;  %v3032_v9 = vld [vmem:[#allocation8 + $0x16c] sm:$0xf]  ;;  %v2585_v11 = vld [vmem:[#allocation8 + $0x90] sm:$0xf] }
  0x5c   : > { %v2602_v8 = vor.u32 %v3008_v5, %v2599_v6  ;;  %v2695_v10 = vld [vmem:[#allocation8 + $0x174] sm:$0xf0]  ;;  %844 = vmatpush.bf16.msra.mxu0 %v2598_v3  ;;  %v3006_v13 = vld [vmem:[#allocation8 + $0x98] sm:$0xf0]  ;;  %v2681_v14 = vld [vmem:[#allocation8 + $0x150] sm:$0xf] }
  0x5d   : > { %v2698_v12 = vor.u32 %v3032_v9, %v2695_v10  ;;  %v3030_v15 = vld [vmem:[#allocation8 + $0x158] sm:$0xf0]  ;;  %893 = vmatpush.bf16.msra.mxu1 %v2694_v7  ;;  %v2586_v16 = vor.u32 %v3006_v13, %v2585_v11  ;;  %v3005_v18 = vld [vmem:[#allocation8 + $0x94] sm:$0xf]  ;;  %v2587_v19 = vld [vmem:[#allocation8 + $0x9c] sm:$0xf0] }
  0x5e   : > { %942 = vmatpush.bf16.msra.mxu2 %v2602_v8  ;;  %v2682_v17 = vor.u32 %v3030_v15, %v2681_v14  ;;  %v3029_v20 = vld [vmem:[#allocation8 + $0x154] sm:$0xf]  ;;  %v2590_v21 = vor.u32 %v3005_v18, %v2587_v19  ;;  %v2683_v22 = vld [vmem:[#allocation8 + $0x15c] sm:$0xf0]  ;;  %v2573_v23 = vld [vmem:[#allocation8 + $0x78] sm:$0xf] }
  0x5f   : > { %991 = vmatpush.bf16.msra.mxu3 %v2698_v12  ;;  %v3003_v24 = vld [vmem:[#allocation8 + $0x80] sm:$0xf0]  ;;  %v2686_v25 = vor.u32 %v3029_v20, %v2683_v22  ;;  %v2669_v26 = vld [vmem:[#allocation8 + $0x138] sm:$0xf]  ;;  %v3002_v28 = vld [vmem:[#allocation8 + $0x7c] sm:$0xf] }
  0x60   : > { %v3027_v27 = vld [vmem:[#allocation8 + $0x140] sm:$0xf0]  ;;  %845 = vmatpush.bf16.msra.mxu0 %v2586_v16  ;;  %v2574_v29 = vor.u32 %v3003_v24, %v2573_v23  ;;  %v2575_v30 = vld [vmem:[#allocation8 + $0x84] sm:$0xf0]  ;;  %v3026_v31 = vld [vmem:[#allocation8 + $0x13c] sm:$0xf] }
  0x61   : > { %v2671_v32 = vld [vmem:[#allocation8 + $0x144] sm:$0xf0]  ;;  %894 = vmatpush.bf16.msra.mxu1 %v2682_v17  ;;  %v2670_v33 = vor.u32 %v3027_v27, %v2669_v26  ;;  %v2578_v34 = vor.u32 %v3002_v28, %v2575_v30  ;;  %v2561_v35 = vld [vmem:[#allocation8 + $0x60] sm:$0xf]  ;;  %v3000_v36 = vld [vmem:[#allocation8 + $0x68] sm:$0xf0] }
  0x62   : > { %943 = vmatpush.bf16.msra.mxu2 %v2590_v21  ;;  %v2657_v37 = vld [vmem:[#allocation8 + $0x120] sm:$0xf]  ;;  %v2674_v38 = vor.u32 %v3026_v31, %v2671_v32  ;;  %v3024_v39 = vld [vmem:[#allocation8 + $0x128] sm:$0xf0]  ;;  %v2999_v40 = vld [vmem:[#allocation8 + $0x64] sm:$0xf]  ;;  %v2562_v44 = vor.u32 %v3000_v36, %v2561_v35 }
  0x63   : > { %992 = vmatpush.bf16.msra.mxu3 %v2686_v25  ;;  %v2563_v41 = vld [vmem:[#allocation8 + $0x6c] sm:$0xf0]  ;;  %v3023_v42 = vld [vmem:[#allocation8 + $0x124] sm:$0xf]  ;;  %v2658_v45 = vor.u32 %v3024_v39, %v2657_v37  ;;  %v2549_v47 = vld [vmem:[#allocation8 + $0x48] sm:$0xf] }
  0x64   : > { %v2659_v43 = vld [vmem:[#allocation8 + $0x12c] sm:$0xf0]  ;;  %846 = vmatpush.bf16.msra.mxu0 %v2574_v29  ;;  %v2566_v46 = vor.u32 %v2999_v40, %v2563_v41  ;;  %v2997_v48 = vld [vmem:[#allocation8 + $0x50] sm:$0xf0]  ;;  %v2645_v49 = vld [vmem:[#allocation8 + $0x108] sm:$0xf] }
  0x65   : > { %895 = vmatpush.bf16.msra.mxu1 %v2670_v33  ;;  %v2662_v50 = vor.u32 %v3023_v42, %v2659_v43  ;;  %v3021_v51 = vld [vmem:[#allocation8 + $0x110] sm:$0xf0]  ;;  %v2996_v52 = vld [vmem:[#allocation8 + $0x4c] sm:$0xf]  ;;  %v2551_v53 = vld [vmem:[#allocation8 + $0x54] sm:$0xf0]  ;;  %v2550_v56 = vor.u32 %v2997_v48, %v2549_v47 }
  0x66   : > { %944 = vmatpush.bf16.msra.mxu2 %v2578_v34  ;;  %v3020_v54 = vld [vmem:[#allocation8 + $0x10c] sm:$0xf]  ;;  %v2647_v55 = vld [vmem:[#allocation8 + $0x114] sm:$0xf0]  ;;  %v2646_v57 = vor.u32 %v3021_v51, %v2645_v49  ;;  %v2554_v58 = vor.u32 %v2996_v52, %v2551_v53  ;;  %v2537_v59 = vld [vmem:[#allocation8 + $0x30] sm:$0xf] }
  0x67   : > { %993 = vmatpush.bf16.msra.mxu3 %v2674_v38  ;;  %v2994_v60 = vld [vmem:[#allocation8 + $0x38] sm:$0xf0]  ;;  %v2633_v61 = vld [vmem:[#allocation8 + $0xf0] sm:$0xf]  ;;  %v2650_v62 = vor.u32 %v3020_v54, %v2647_v55  ;;  %v2993_v0 = vld [vmem:[#allocation8 + $0x34] sm:$0xf] }
  0x68   : > { %847 = vmatpush.bf16.msra.mxu0 %v2562_v44  ;;  %v3018_v63 = vld [vmem:[#allocation8 + $0xf8] sm:$0xf0]  ;;  %v2539_v1 = vld [vmem:[#allocation8 + $0x3c] sm:$0xf0]  ;;  %v3017_v2 = vld [vmem:[#allocation8 + $0xf4] sm:$0xf]  ;;  %v2538_v4 = vor.u32 %v2994_v60, %v2537_v59 }
  0x69   : > { %896 = vmatpush.bf16.msra.mxu1 %v2658_v45  ;;  %v2635_v3 = vld [vmem:[#allocation8 + $0xfc] sm:$0xf0]  ;;  %v2634_v5 = vor.u32 %v3018_v63, %v2633_v61  ;;  %v2542_v6 = vor.u32 %v2993_v0, %v2539_v1  ;;  %v2525_v7 = vld [vmem:[#allocation8 + $0x18] sm:$0xf]  ;;  %v2991_v8 = vld [vmem:[#allocation8 + $0x20] sm:$0xf0] }
  0x6a   : > { %945 = vmatpush.bf16.msra.mxu2 %v2566_v46  ;;  %v2621_v9 = vld [vmem:[#allocation8 + $0xd8] sm:$0xf]  ;;  %v2638_v10 = vor.u32 %v3017_v2, %v2635_v3  ;;  %v3015_v11 = vld [vmem:[#allocation8 + $0xe0] sm:$0xf0]  ;;  %v2990_v12 = vld [vmem:[#allocation8 + $0x1c] sm:$0xf]  ;;  %v2526_v16 = vor.u32 %v2991_v8, %v2525_v7 }
  0x6b   : > { %994 = vmatpush.bf16.msra.mxu3 %v2662_v50  ;;  %v2527_v13 = vld [vmem:[#allocation8 + $0x24] sm:$0xf0]  ;;  %v3014_v14 = vld [vmem:[#allocation8 + $0xdc] sm:$0xf]  ;;  %v2513_v17 = vld [vmem:[#allocation8] sm:$0xf]  ;;  %v2622_v19 = vor.u32 %v3015_v11, %v2621_v9 }
  0x6c   : > { %848 = vmatpush.bf16.msra.mxu0 %v2550_v56  ;;  %v2623_v15 = vld [vmem:[#allocation8 + $0xe4] sm:$0xf0]  ;;  %v2988_v18 = vld [vmem:[#allocation8 + $0x8] sm:$0xf0]  ;;  %v2530_v20 = vor.u32 %v2990_v12, %v2527_v13  ;;  %v2609_v21 = vld [vmem:[#allocation8 + $0xc0] sm:$0xf] }
  0x6d   : > { %897 = vmatpush.bf16.msra.mxu1 %v2646_v57  ;;  %v3012_v22 = vld [vmem:[#allocation8 + $0xc8] sm:$0xf0]  ;;  %v2987_v23 = vld [vmem:[#allocation8 + $0x4] sm:$0xf]  ;;  %v2626_v24 = vor.u32 %v3014_v14, %v2623_v15  ;;  %v2515_v25 = vld [vmem:[#allocation8 + $0xc] sm:$0xf0]  ;;  %v2514_v31 = vor.u32 %v2988_v18, %v2513_v17 }
  0x6e   : > { %946 = vmatpush.bf16.msra.mxu2 %v2554_v58  ;;  %v3011_v26 = vld [vmem:[#allocation8 + $0xc4] sm:$0xf]  ;;  %v2611_v27 = vld [vmem:[#allocation8 + $0xcc] sm:$0xf0]  ;;  %v2449_v28 = vld [vmem:[%s3599_s19] sm:$0xf]  ;;  %v2610_v35 = vor.u32 %v3012_v22, %v2609_v21  ;;  %v2518_v36 = vor.u32 %v2987_v23, %v2515_v25 }
  0x6f   : > { %995 = vmatpush.bf16.msra.mxu3 %v2650_v62  ;;  %v2853_v29 = vld [vmem:[#allocation9 + $0xa8] sm:$0xf]  ;;  %v3073_v30 = vld [vmem:[#allocation9 + $0xb0] sm:$0xf0]  ;;  %v2971_v37 = vld [vmem:[%s3599_s19 + $0x4] sm:$0xf]  ;;  %v2614_v39 = vor.u32 %v3011_v26, %v2611_v27 }
  0x70   : > { %849 = vmatpush.bf16.msra.mxu0 %v2538_v4  ;;  %v2972_v32 = vld [vmem:[%s3599_s19 + $0x4] sm:$0xf0]  ;;  %v3097_v34 = vld [vmem:[#allocation9 + $0x170] sm:$0xf0]  ;;  %v2451_v38 = vld [vmem:[%s3599_s19 + $0x8] sm:$0xf0]  ;;  %v2854_v40 = vor.u32 %v3073_v30, %v2853_v29 }
  0x71   : > { %898 = vmatpush.bf16.msra.mxu1 %v2634_v5  ;;  %v2949_v33 = vld [vmem:[#allocation9 + $0x168] sm:$0xf]  ;;  %v2605_v41 = vld [vmem:[#allocation8 + $0xb0] sm:$0xf]  ;;  %v3010_v42 = vld [vmem:[#allocation8 + $0xb8] sm:$0xf0]  ;;  %v3624_v44 = vor.u32 %v2972_v32, %v2449_v28  ;;  %v3626_v49 = vor.u32 %v2971_v37, %v2451_v38 }
  0x72   : > { %947 = vmatpush.bf16.msra.mxu2 %v2542_v6  ;;  %v2701_v43 = vld [vmem:[#allocation8 + $0x170] sm:$0xf]  ;;  %v2950_v45 = vor.u32 %v3097_v34, %v2949_v33  ;;  %v3034_v46 = vld [vmem:[#allocation8 + $0x178] sm:$0xf0]  ;;  %v2606_v52 = vor.u32 %v3010_v42, %v2605_v41  ;;  %v2593_v55 = vld [vmem:[#allocation8 + $0x98] sm:$0xf] }
  0x73   : > { %996 = vmatpush.bf16.msra.mxu3 %v2638_v10  ;;  %v2841_v47 = vld [vmem:[#allocation9 + $0x90] sm:$0xf]  ;;  %v3070_v48 = vld [vmem:[#allocation9 + $0x98] sm:$0xf0]  ;;  %v2702_v53 = vor.u32 %v3034_v46, %v2701_v43  ;;  %v3007_v56 = vld [vmem:[#allocation8 + $0xa0] sm:$0xf0] }
  0x74   : > { %850 = vmatpush.bf16.msra.mxu0 %v2526_v16  ;;  %v2937_v50 = vld [vmem:[#allocation9 + $0x150] sm:$0xf]  ;;  %v3094_v51 = vld [vmem:[#allocation9 + $0x158] sm:$0xf0]  ;;  %v2842_v54 = vor.u32 %v3070_v48, %v2841_v47  ;;  %v2689_v58 = vld [vmem:[#allocation8 + $0x158] sm:$0xf]  ;;  %v2594_v60 = vor.u32 %v3007_v56, %v2593_v55 }
  0x75   : > { %899 = vmatpush.bf16.msra.mxu1 %v2622_v19  ;;  %v2938_v57 = vor.u32 %v3094_v51, %v2937_v50  ;;  %v3031_v59 = vld [vmem:[#allocation8 + $0x160] sm:$0xf0]  ;;  %v2829_v61 = vld [vmem:[#allocation9 + $0x78] sm:$0xf]  ;;  %v2581_v3 = vld [vmem:[#allocation8 + $0x80] sm:$0xf] }
  0x76   : > { %948 = vmatpush.bf16.msra.mxu2 %v2530_v20  ;;  %v3067_v62 = vld [vmem:[#allocation9 + $0x80] sm:$0xf0]  ;;  %v2925_v63 = vld [vmem:[#allocation9 + $0x138] sm:$0xf]  ;;  %v2690_v0 = vor.u32 %v3031_v59, %v2689_v58  ;;  %v3004_v4 = vld [vmem:[#allocation8 + $0x88] sm:$0xf0] }
  0x77   : > { %997 = vmatpush.bf16.msra.mxu3 %v2626_v24  ;;  %v2830_v1 = vor.u32 %v3067_v62, %v2829_v61  ;;  %v3091_v2 = vld [vmem:[#allocation9 + $0x140] sm:$0xf0]  ;;  %v2677_v6 = vld [vmem:[#allocation8 + $0x140] sm:$0xf]  ;;  %v3028_v7 = vld [vmem:[#allocation8 + $0x148] sm:$0xf0]  ;;  %v2582_v8 = vor.u32 %v3004_v4, %v2581_v3 }
  0x78   : > { %851 = vmatpush.bf16.msra.mxu0 %v2514_v31  ;;  %v2926_v5 = vor.u32 %v3091_v2, %v2925_v63  ;;  %v2678_v9 = vor.u32 %v3028_v7, %v2677_v6  ;;  %v2457_v10 = vld [vmem:[%s3599_s19 + $0x10] sm:$0xf]  ;;  %v2974_v11 = vld [vmem:[%s3599_s19 + $0x14] sm:$0xf0]  ;;  %v2973_v12 = vld [vmem:[%s3599_s19 + $0x14] sm:$0xf] }
  0x79   : > { %900 = vmatpush.bf16.msra.mxu1 %v2610_v35  ;;  %v2459_v13 = vld [vmem:[%s3599_s19 + $0x18] sm:$0xf0]  ;;  %v3636_v14 = vor.u32 %v2974_v11, %v2457_v10  ;;  %v2817_v16 = vld [vmem:[#allocation9 + $0x60] sm:$0xf]  ;;  %v3064_v17 = vld [vmem:[#allocation9 + $0x68] sm:$0xf0] }
  0x7a   : > { %949 = vmatpush.bf16.msra.mxu2 %v2518_v36  ;;  %v3638_v15 = vor.u32 %v2973_v12, %v2459_v13  ;;  %v2913_v18 = vld [vmem:[#allocation9 + $0x120] sm:$0xf]  ;;  %v2818_v19 = vor.u32 %v3064_v17, %v2817_v16  ;;  %v3088_v20 = vld [vmem:[#allocation9 + $0x128] sm:$0xf0]  ;;  %v2569_v21 = vld [vmem:[#allocation8 + $0x68] sm:$0xf] }
  0x7b   : > { %998 = vmatpush.bf16.msra.mxu3 %v2614_v39  ;;  %852 = vmatmul.bf16.vlgmr.msra.gmra.mxu0 %v3624_v44  ;;  %v3001_v22 = vld [vmem:[#allocation8 + $0x70] sm:$0xf0]  ;;  %v2914_v23 = vor.u32 %v3088_v20, %v2913_v18  ;;  %v2665_v25 = vld [vmem:[#allocation8 + $0x128] sm:$0xf]  ;;  %v2465_v28 = vld [vmem:[%s3599_s19 + $0x20] sm:$0xf] }
  0x7c   : > { %901 = vmatmul.bf16.vlgmr.msra.gmra.mxu1 %v3626_v49  ;;  %1040 = vmatpush.bf16.msrb.mxu0 %v2606_v52  ;;  %v2570_v24 = vor.u32 %v3001_v22, %v2569_v21  ;;  %v3025_v26 = vld [vmem:[#allocation8 + $0x130] sm:$0xf0]  ;;  %v2976_v29 = vld [vmem:[%s3599_s19 + $0x24] sm:$0xf0]  ;;  %v2975_v30 = vld [vmem:[%s3599_s19 + $0x24] sm:$0xf] }
  0x7d   : > { %950 = vmatmul.bf16.vlgmr.msra.gmra.mxu2 %v3624_v44  ;;  %1089 = vmatpush.bf16.msrb.mxu1 %v2702_v53  ;;  %v2666_v27 = vor.u32 %v3025_v26, %v2665_v25  ;;  %v2467_v31 = vld [vmem:[%s3599_s19 + $0x28] sm:$0xf0]  ;;  %v3648_v32 = vor.u32 %v2976_v29, %v2465_v28  ;;  %v2805_v34 = vld [vmem:[#allocation9 + $0x48] sm:$0xf]  ;;  %v3061_v35 = vld [vmem:[#allocation9 + $0x50] sm:$0xf0] }
  0x7e   : > { %1706 = vmatpush.bf16.msrb.mxu2 %v2854_v40  ;;  %999 = vmatmul.bf16.vlgmr.msra.gmra.mxu3 %v3626_v49  ;;  %v3650_v33 = vor.u32 %v2975_v30, %v2467_v31  ;;  %v2901_v36 = vld [vmem:[#allocation9 + $0x108] sm:$0xf]  ;;  %v2806_v37 = vor.u32 %v3061_v35, %v2805_v34  ;;  %v3085_v38 = vld [vmem:[#allocation9 + $0x110] sm:$0xf0]  ;;  %v2557_v39 = vld [vmem:[#allocation8 + $0x50] sm:$0xf] }
  0x7f   : > { %1755 = vmatpush.bf16.msrb.mxu3 %v2950_v45  ;;  %v2998_v40 = vld [vmem:[#allocation8 + $0x58] sm:$0xf0]  ;;  %v2902_v41 = vor.u32 %v3085_v38, %v2901_v36  ;;  %v2653_v43 = vld [vmem:[#allocation8 + $0x110] sm:$0xf]  ;;  %v2978_v48 = vld [vmem:[%s3599_s19 + $0x34] sm:$0xf0] }
  0x80   : > { %1041 = vmatpush.bf16.msrb.mxu0 %v2594_v60  ;;  %v2558_v42 = vor.u32 %v2998_v40, %v2557_v39  ;;  %v3022_v45 = vld [vmem:[#allocation8 + $0x118] sm:$0xf0]  ;;  %v2473_v47 = vld [vmem:[%s3599_s19 + $0x30] sm:$0xf]  ;;  %v2977_v50 = vld [vmem:[%s3599_s19 + $0x34] sm:$0xf] }
  0x81   : > { %1090 = vmatpush.bf16.msrb.mxu1 %v2690_v0  ;;  %v2654_v46 = vor.u32 %v3022_v45, %v2653_v43  ;;  %v2475_v51 = vld [vmem:[%s3599_s19 + $0x38] sm:$0xf0]  ;;  %v3660_v52 = vor.u32 %v2978_v48, %v2473_v47  ;;  %v2889_v56 = vld [vmem:[#allocation9 + $0xf0] sm:$0xf]  ;;  %v2545_v59 = vld [vmem:[#allocation8 + $0x38] sm:$0xf] }
  0x82   : > { %1707 = vmatpush.bf16.msrb.mxu2 %v2842_v54  ;;  %v3662_v53 = vor.u32 %v2977_v50, %v2475_v51  ;;  %v2793_v54 = vld [vmem:[#allocation9 + $0x30] sm:$0xf]  ;;  %v3058_v55 = vld [vmem:[#allocation9 + $0x38] sm:$0xf0]  ;;  %v2995_v60 = vld [vmem:[#allocation8 + $0x40] sm:$0xf0] }
  0x83   : > { %1756 = vmatpush.bf16.msrb.mxu3 %v2938_v57  ;;  %v2794_v57 = vor.u32 %v3058_v55, %v2793_v54  ;;  %v3082_v58 = vld [vmem:[#allocation9 + $0xf8] sm:$0xf0]  ;;  %v2546_v62 = vor.u32 %v2995_v60, %v2545_v59  ;;  %v2641_v63 = vld [vmem:[#allocation8 + $0xf8] sm:$0xf]  ;;  %v3019_v0 = vld [vmem:[#allocation8 + $0x100] sm:$0xf0] }
  0x84   : > { %1042 = vmatpush.bf16.msrb.mxu0 %v2582_v8  ;;  %v2890_v61 = vor.u32 %v3082_v58, %v2889_v56  ;;  %v2481_v2 = vld [vmem:[%s3599_s19 + $0x40] sm:$0xf]  ;;  %v2980_v3 = vld [vmem:[%s3599_s19 + $0x44] sm:$0xf0]  ;;  %v2979_v4 = vld [vmem:[%s3599_s19 + $0x44] sm:$0xf] }
  0x85   : > { %1091 = vmatpush.bf16.msrb.mxu1 %v2678_v9  ;;  %v3672_v6 = vor.u32 %v2980_v3, %v2481_v2  ;;  %v2781_v8 = vld [vmem:[#allocation9 + $0x18] sm:$0xf]  ;;  %v3055_v9 = vld [vmem:[#allocation9 + $0x20] sm:$0xf0]  ;;  %v2533_v13 = vld [vmem:[#allocation8 + $0x20] sm:$0xf] }
  0x86   : > { %1708 = vmatpush.bf16.msrb.mxu2 %v2830_v1  ;;  %v2642_v1 = vor.u32 %v3019_v0, %v2641_v63  ;;  %v2877_v10 = vld [vmem:[#allocation9 + $0xd8] sm:$0xf]  ;;  %v2782_v11 = vor.u32 %v3055_v9, %v2781_v8  ;;  %v3079_v12 = vld [vmem:[#allocation9 + $0xe0] sm:$0xf0]  ;;  %v2992_v16 = vld [vmem:[#allocation8 + $0x28] sm:$0xf0] }
  0x87   : > { %1757 = vmatpush.bf16.msrb.mxu3 %v2926_v5  ;;  %v2483_v5 = vld [vmem:[%s3599_s19 + $0x48] sm:$0xf0]  ;;  %v2878_v17 = vor.u32 %v3079_v12, %v2877_v10  ;;  %v2534_v18 = vor.u32 %v2992_v16, %v2533_v13  ;;  %v2489_v22 = vld [vmem:[%s3599_s19 + $0x50] sm:$0xf]  ;;  %v2491_v25 = vld [vmem:[%s3599_s19 + $0x58] sm:$0xf0] }
  0x88   : > { %1043 = vmatpush.bf16.msrb.mxu0 %v2570_v24  ;;  %v3674_v7 = vor.u32 %v2979_v4, %v2483_v5  ;;  %v3016_v20 = vld [vmem:[#allocation8 + $0xe8] sm:$0xf0]  ;;  %v2981_v24 = vld [vmem:[%s3599_s19 + $0x54] sm:$0xf]  ;;  %v2769_v28 = vld [vmem:[#allocation9] sm:$0xf] }
  0x89   : > { %1092 = vmatpush.bf16.msrb.mxu1 %v2666_v27  ;;  %v3686_v27 = vor.u32 %v2981_v24, %v2491_v25  ;;  %v3052_v29 = vld [vmem:[#allocation9 + $0x8] sm:$0xf0]  ;;  %v2865_v30 = vld [vmem:[#allocation9 + $0xc0] sm:$0xf]  ;;  %v2521_v35 = vld [vmem:[#allocation8 + $0x8] sm:$0xf] }
  0x8a   : > { %1709 = vmatpush.bf16.msrb.mxu2 %v2818_v19  ;;  %v2629_v19 = vld [vmem:[#allocation8 + $0xe0] sm:$0xf]  ;;  %v2770_v31 = vor.u32 %v3052_v29, %v2769_v28  ;;  %v3076_v34 = vld [vmem:[#allocation9 + $0xc8] sm:$0xf0]  ;;  %v2989_v36 = vld [vmem:[#allocation8 + $0x10] sm:$0xf0] }
  0x8b   : > { %857 = vmatmul.bf16.gmra.mxu0 %v3636_v14  ;;  %1758 = vmatpush.bf16.msrb.mxu3 %v2914_v23  ;;  %v2630_v21 = vor.u32 %v3016_v20, %v2629_v19  ;;  %v2982_v23 = vld [vmem:[%s3599_s19 + $0x54] sm:$0xf0]  ;;  %v2522_v38 = vor.u32 %v2989_v36, %v2521_v35  ;;  %v2617_v39 = vld [vmem:[#allocation8 + $0xc8] sm:$0xf]  ;;  %v3013_v40 = vld [vmem:[#allocation8 + $0xd0] sm:$0xf0] }
  0x8c   : > { %906 = vmatmul.bf16.gmra.mxu1 %v3638_v15  ;;  %1044 = vmatpush.bf16.msrb.mxu0 %v2558_v42  ;;  %v3684_v26 = vor.u32 %v2982_v23, %v2489_v22  ;;  %v2497_v42 = vld [vmem:[%s3599_s19 + $0x60] sm:$0xf]  ;;  %v2984_v43 = vld [vmem:[%s3599_s19 + $0x64] sm:$0xf0]  ;;  %v2983_v45 = vld [vmem:[%s3599_s19 + $0x64] sm:$0xf] }
  0x8d   : > { %955 = vmatmul.bf16.gmra.mxu2 %v3636_v14  ;;  %1093 = vmatpush.bf16.msrb.mxu1 %v2654_v46  ;;  %v2499_v46 = vld [vmem:[%s3599_s19 + $0x68] sm:$0xf0]  ;;  %v3696_v47 = vor.u32 %v2984_v43, %v2497_v42  ;;  %v2861_v50 = vld [vmem:[#allocation9 + $0xb0] sm:$0xf]  ;;  %v3074_v51 = vld [vmem:[#allocation9 + $0xb8] sm:$0xf0] }
  0x8e   : > { %1004 = vmatmul.bf16.gmra.mxu3 %v3638_v15  ;;  %1710 = vmatpush.bf16.msrb.mxu2 %v2806_v37  ;;  %v2866_v37 = vor.u32 %v3076_v34, %v2865_v30  ;;  %v3698_v48 = vor.u32 %v2983_v45, %v2499_v46  ;;  %v2957_v54 = vld [vmem:[#allocation9 + $0x170] sm:$0xf]  ;;  %v2862_v55 = vor.u32 %v3074_v51, %v2861_v50  ;;  %v3098_v56 = vld [vmem:[#allocation9 + $0x178] sm:$0xf0]  ;;  %v2986_v59 = vld [vmem:[%s3599_s19 + $0x74] sm:$0xf0] }
  0x8f   : > { %1759 = vmatpush.bf16.msrb.mxu3 %v2902_v41  ;;  %v2618_v41 = vor.u32 %v3013_v40, %v2617_v39  ;;  %v2505_v58 = vld [vmem:[%s3599_s19 + $0x70] sm:$0xf]  ;;  %v2985_v60 = vld [vmem:[%s3599_s19 + $0x74] sm:$0xf]  ;;  %v3072_v63 = vld [vmem:[#allocation9 + $0xac] sm:$0xf] }
  0x90   : > { %1045 = vmatpush.bf16.msrb.mxu0 %v2546_v62  ;;  %v3708_v62 = vor.u32 %v2986_v59, %v2505_v58  ;;  %v2855_v0 = vld [vmem:[#allocation9 + $0xb4] sm:$0xf0]  ;;  %v3071_v9 = vld [vmem:[#allocation9 + $0xa0] sm:$0xf0]  ;;  %v3719_v16 = vld [vmem:[%s4415_s4] sm:$0x7] }
  0x91   : > { %1094 = vmatpush.bf16.msrb.mxu1 %v2642_v1  ;;  %v3096_v1 = vld [vmem:[#allocation9 + $0x16c] sm:$0xf]  ;;  %v2858_v3 = vor.u32 %v3072_v63, %v2855_v0  ;;  %v2951_v4 = vld [vmem:[#allocation9 + $0x174] sm:$0xf0]  ;;  %v3095_v12 = vld [vmem:[#allocation9 + $0x160] sm:$0xf0] }
  0x92   : > { %1711 = vmatpush.bf16.msrb.mxu2 %v2794_v57  ;;  %v2958_v57 = vor.u32 %v3098_v56, %v2957_v54  ;;  %v2954_v5 = vor.u32 %v3096_v1, %v2951_v4  ;;  %v2849_v8 = vld [vmem:[#allocation9 + $0x98] sm:$0xf]  ;;  %v3036_v19 = vld [vmem:[%s3606_s17 + $0x4] sm:$0xf0]  ;;  %v3035_v20 = vld [vmem:[%s3606_s17 + $0x4] sm:$0xf] }
  0x93   : > { %1760 = vmatpush.bf16.msrb.mxu3 %v2890_v61  ;;  %v2507_v61 = vld [vmem:[%s3599_s19 + $0x78] sm:$0xf0]  ;;  %v2945_v10 = vld [vmem:[#allocation9 + $0x158] sm:$0xf]  ;;  %v3069_v22 = vld [vmem:[#allocation9 + $0x94] sm:$0xf] }
  0x94   : > { %1046 = vmatpush.bf16.msrb.mxu0 %v2534_v18  ;;  %v3710_v2 = vor.u32 %v2985_v60, %v2507_v61  ;;  %v2946_v13 = vor.u32 %v3095_v12, %v2945_v10  ;;  %v2705_v18 = vld [vmem:[%s3606_s17] sm:$0xf]  ;;  %v3093_v24 = vld [vmem:[#allocation9 + $0x154] sm:$0xf]  ;;  %v3092_v46 = vld [vmem:[#allocation9 + $0x148] sm:$0xf0] }
  0x95   : > { %1095 = vmatpush.bf16.msrb.mxu1 %v2630_v21  ;;  %v2707_v21 = vld [vmem:[%s3606_s17 + $0x8] sm:$0xf0]  ;;  %v2843_v23 = vld [vmem:[#allocation9 + $0x9c] sm:$0xf0]  ;;  %v3728_v28 = vor.u32 %v3036_v19, %v2705_v18  ;;  %v3038_v58 = vld [vmem:[%s3606_s17 + $0x14] sm:$0xf0] }
  0x96   : > { %1712 = vmatpush.bf16.msrb.mxu2 %v2782_v11  ;;  %v2850_v11 = vor.u32 %v3071_v9, %v2849_v8  ;;  %v2846_v29 = vor.u32 %v3069_v22, %v2843_v23  ;;  %v2939_v30 = vld [vmem:[#allocation9 + $0x15c] sm:$0xf0]  ;;  %v3731_v35 = vor.u32 %v3035_v20, %v2707_v21  ;;  %v3037_v59 = vld [vmem:[%s3606_s17 + $0x14] sm:$0xf]  ;;  %v2715_v60 = vld [vmem:[%s3606_s17 + $0x18] sm:$0xf0] }
  0x97   : > { %1761 = vmatpush.bf16.msrb.mxu3 %v2878_v17  ;;  %v3722_v17 = vperm.slane %v3719_v16, 0  ;;  %v2942_v36 = vor.u32 %v3093_v24, %v2939_v30  ;;  %v2837_v40 = vld [vmem:[#allocation9 + $0x80] sm:$0xf]  ;;  %v3066_v63 = vld [vmem:[#allocation9 + $0x7c] sm:$0xf]  ;;  %s419_s11 = sld [smem:[#allocation2]] }
  0x98   : > { %1047 = vmatpush.bf16.msrb.mxu0 %v2522_v38  ;;  %v3739_v38 = vperm.slane %v3719_v16, 1  ;;  %v2933_v42 = vld [vmem:[#allocation9 + $0x140] sm:$0xf]  ;;  %v2831_v0 = vld [vmem:[#allocation9 + $0x84] sm:$0xf0]  ;;  %s3099_s3 = smul.u32 384, %s3595_s9 }
  0x99   : > { %1096 = vmatpush.bf16.msrb.mxu1 %v2618_v41  ;;  %v3068_v41 = vld [vmem:[#allocation9 + $0x88] sm:$0xf0]  ;;  %v2934_v54 = vor.u32 %v3092_v46, %v2933_v42  ;;  %v3090_v1 = vld [vmem:[#allocation9 + $0x13c] sm:$0xf]  ;;  %v2834_v9 = vor.u32 %v3066_v63, %v2831_v0  ;;  %v2927_v10 = vld [vmem:[#allocation9 + $0x144] sm:$0xf0] }
  0x9a   : > { %1713 = vmatpush.bf16.msrb.mxu2 %v2770_v31  ;;  %v2930_v18 = vor.u32 %v3090_v1, %v2927_v10  ;;  %v2825_v22 = vld [vmem:[#allocation9 + $0x68] sm:$0xf]  ;;  %v3065_v23 = vld [vmem:[#allocation9 + $0x70] sm:$0xf0]  ;;  %v2819_v46 = vld [vmem:[#allocation9 + $0x6c] sm:$0xf0] }
  0x9b   : > { %862 = vmatmul.bf16.gmra.mxu0 %v3648_v32  ;;  %1762 = vmatpush.bf16.msrb.mxu3 %v2866_v37  ;;  %v2921_v24 = vld [vmem:[#allocation9 + $0x128] sm:$0xf]  ;;  %v3062_v10 = vld [vmem:[#allocation9 + $0x58] sm:$0xf0]  ;;  %s3947_s22 = scalar_lea.vmem [#allocation12], %s3099_s3  ;;  %s3955_s23 = scalar_lea.vmem [#allocation11], %s3099_s3 }
  0x9c   : > { %911 = vmatmul.bf16.gmra.mxu1 %v3650_v33  ;;  %1804 = vmatpush.bf16.msra.mxu0 %v2858_v3  ;;  %v3040_v42 = vld [vmem:[%s3606_s17 + $0x24] sm:$0xf0]  ;;  %s3100_s24 = smul.u32 384, %s3494_s0  ;;  %s2278_s15 = sshll.u32 %s3947_s22, 4  ;;  %s2279_s15 = int_to_ptr.vmem [resolvable:$true] %s2278_s15 }
  0x9d   : > { %960 = vmatmul.bf16.gmra.mxu2 %v3648_v32  ;;  %1853 = vmatpush.bf16.msra.mxu1 %v2954_v5  ;;  %s2260_s1 = sshll.u32 %s3955_s23, 4  ;;  %s2261_s1 = int_to_ptr.vmem [resolvable:$true] %s2260_s1 }
  0x9e   : > { %1009 = vmatmul.bf16.gmra.mxu3 %v3650_v33  ;;  %1902 = vmatpush.bf16.msra.mxu2 %v2862_v55  ;;  %s2277_s0 = scalar_lea.hbm %s4419_s8, %s3100_s24  ;;  %s4361_s19 = scalar_lea.hbm %s4418_s7, %s3100_s24 }
  0x9f   : > { %1951 = vmatpush.bf16.msra.mxu3 %v2958_v57  ;;  %v2713_v57 = vld [vmem:[%s3606_s17 + $0x10] sm:$0xf]  ;;  %s2280_s18 = sshll.u32 %s2277_s0, 4  ;;  %s2262_s5 = sshll.u32 %s4361_s19, 4  ;;  %s2281_s18 = int_to_ptr.hbm [resolvable:$true] %s2280_s18  ;;  %s2263_s5 = int_to_ptr.hbm [resolvable:$true] %s2262_s5 }
  0xa0   : > { %1805 = vmatpush.bf16.msra.mxu0 %v2846_v29  ;;  %v3753_v8 = vor.u32 %v3038_v58, %v2713_v57  ;;  %s3319_s12 = sshra.s32 %s2281_s18, 4  ;;  %s3320_s12 = int_to_ptr.hbm [resolvable:$true] %s3319_s12 }
  0xa1   : > { %1854 = vmatpush.bf16.msra.mxu1 %v2942_v36  ;;  %s3321_s27 = scalar_lea.hbm %s3320_s12, 384  ;;  %p3326_p2 = scmp.lt.s32.totalorder %s3320_s12, %s4419_s8 }
  0xa2   : > { %1903 = vmatpush.bf16.msra.mxu2 %v2850_v11  ;;  %p3322_p1 = scmp.ne.s32.totalorder %s3320_s12, %s3321_s27 }
  0xa3   : > { %1952 = vmatpush.bf16.msra.mxu3 %v2946_v13  ;;  %v3756_v13 = vor.u32 %v3037_v59, %v2715_v60  ;;  %v2915_v60 = vld [vmem:[#allocation9 + $0x12c] sm:$0xf0] }
  0xa4   : > { %1806 = vmatpush.bf16.msra.mxu0 %v2834_v9  ;;  %v2813_v9 = vld [vmem:[#allocation9 + $0x50] sm:$0xf]  ;;  %p3323_p4 = pnand %p3322_p1, %p3539_p3 }
  0xa5   : > { %1855 = vmatpush.bf16.msra.mxu1 %v2930_v18 }
  0xa6   : > { %p3324_p8 = pneg %p3323_p4 }
  0xa7   : > { %1953 = vmatpush.bf16.msra.mxu3 %v2934_v54 }
  0xab   : > { %867 = vmatmul.bf16.gmra.mxu0 %v3660_v52 }
  0xac   : > { %916 = vmatmul.bf16.gmra.mxu1 %v3662_v53 }
  0xad   : > { %965 = vmatmul.bf16.gmra.mxu2 %v3660_v52 }
  0xae   : > { %1014 = vmatmul.bf16.gmra.mxu3 %v3662_v53 }
  0xbb   : > { %872 = vmatmul.bf16.gmra.mxu0 %v3672_v6 }
  0xbc   : > { %921 = vmatmul.bf16.gmra.mxu1 %v3674_v7 }
  0xbd   : > { %970 = vmatmul.bf16.gmra.mxu2 %v3672_v6 }
  0xbe   : > { %1019 = vmatmul.bf16.gmra.mxu3 %v3674_v7 }
  0xcb   : > { %877 = vmatmul.bf16.gmra.mxu0 %v3684_v26 }
  0xcc   : > { %926 = vmatmul.bf16.gmra.mxu1 %v3686_v27 }
  0xcd   : > { %975 = vmatmul.bf16.gmra.mxu2 %v3684_v26 }
  0xce   : > { %1024 = vmatmul.bf16.gmra.mxu3 %v3686_v27 }
  0xdb   : > { %882 = vmatmul.bf16.gmra.mxu0 %v3696_v47 }
  0xdc   : > { %931 = vmatmul.bf16.gmra.mxu1 %v3698_v48 }
  0xdd   : > { %980 = vmatmul.bf16.gmra.mxu2 %v3696_v47 }
  0xde   : > { %1029 = vmatmul.bf16.gmra.mxu3 %v3698_v48 }
  0xeb   : > { %887 = vmatmul.bf16.gmra.mxu0 %v3708_v62 }
  0xec   : > { %936 = vmatmul.bf16.gmra.mxu1 %v3710_v2 }
  0xed   : > { %985 = vmatmul.bf16.gmra.mxu2 %v3708_v62 }
  0xee   : > { %1034 = vmatmul.bf16.gmra.mxu3 %v3710_v2 }
  0xf8   : > { %v853_v25 = vpop.f32.mrf.mxu0 }
  0xf9   : > { %v854_v31 = vadd.f32 %v853_v25, %v3722_v17  ;;  %v902_v34 = vpop.f32.mrf.mxu1 }
  0xfb   : > { %v3733_v37 = vadd.f32 %v902_v34, %v854_v31  ;;  %1048 = vmatmul.bf16.vlgmr.msrb.gmra.mxu0 %v3624_v44  ;;  %v3089_v31 = vld [vmem:[#allocation9 + $0x130] sm:$0xf0] }
  0xfc   : > { %1097 = vmatmul.bf16.vlgmr.msrb.gmra.mxu1 %v3626_v49  ;;  %v2838_v49 = vor.u32 %v3068_v41, %v2837_v40  ;;  %v2922_v36 = vor.u32 %v3089_v31, %v2921_v24  ;;  %v2721_v41 = vld [vmem:[%s3606_s17 + $0x20] sm:$0xf]  ;;  %v3041_v31 = vld [vmem:[%s3606_s17 + $0x34] sm:$0xf] }
  0xfd   : > { %1714 = vmatmul.bf16.vlgmr.msrb.gmra.mxu2 %v3728_v28  ;;  %v3777_v58 = vor.u32 %v3040_v42, %v2721_v41  ;;  %v3084_v41 = vld [vmem:[#allocation9 + $0x10c] sm:$0xf]  ;;  %vm1138_vm0 = vcmp.ge.f32.partialorder %v3733_v37, 0.0 }
  0xfe   : > { %1763 = vmatmul.bf16.vlgmr.msrb.gmra.mxu3 %v3731_v35  ;;  %1904 = vmatpush.bf16.msra.mxu2 %v2838_v49  ;;  %v3063_v49 = vld [vmem:[#allocation9 + $0x64] sm:$0xf] }
  0xff   : > { %1954 = vmatpush.bf16.msra.mxu3 %v2922_v36  ;;  %v2822_v59 = vor.u32 %v3063_v49, %v2819_v46  ;;  %v2807_v36 = vld [vmem:[#allocation9 + $0x54] sm:$0xf0] }
 0x100   : > { %v951_v39 = vpop.f32.mrf.mxu2  ;;  %v855_v45 = vpop.f32.mrf.mxu0 }
 0x101   : > { %v952_v44 = vadd.f32 %v951_v39, %v3739_v38  ;;  %v1000_v43 = vpop.f32.mrf.mxu3  ;;  %v856_v50 = vadd.f32 %v855_v45, %v3722_v17  ;;  %v904_v51 = vpop.f32.mrf.mxu1  ;;  %1807 = vmatpush.bf16.msra.mxu0 %v2822_v59 }
 0x103   : > { %v3744_v55 = vadd.f32 %v1000_v43, %v952_v44  ;;  %v3746_v56 = vadd.f32 %v904_v51, %v856_v50  ;;  %v3039_v44 = vld [vmem:[%s3606_s17 + $0x24] sm:$0xf]  ;;  %v2723_v43 = vld [vmem:[%s3606_s17 + $0x28] sm:$0xf0] }
 0x104   : > { %v3087_v50 = vld [vmem:[#allocation9 + $0x124] sm:$0xf]  ;;  %v3780_v0 = vor.u32 %v3039_v44, %v2723_v43  ;;  %v2903_v43 = vld [vmem:[#allocation9 + $0x114] sm:$0xf0] }
 0x105   : > { %v2918_v1 = vor.u32 %v3087_v50, %v2915_v60  ;;  %vm1141_vm1 = vcmp.ge.f32.partialorder %v3746_v56, 0.0 }
 0x107   : > { %1856 = vmatpush.bf16.msra.mxu1 %v2918_v1  ;;  %v2801_v1 = vld [vmem:[#allocation9 + $0x38] sm:$0xf] }
 0x108   : > { %v953_v61 = vpop.f32.mrf.mxu2  ;;  %v858_v5 = vpop.f32.mrf.mxu0 }
 0x109   : > { %v954_v3 = vadd.f32 %v953_v61, %v3739_v38  ;;  %v1002_v4 = vpop.f32.mrf.mxu3  ;;  %v859_v11 = vadd.f32 %v858_v5, %v3722_v17  ;;  %v907_v12 = vpop.f32.mrf.mxu1 }
 0x10b   : > { %v3758_v19 = vadd.f32 %v1002_v4, %v954_v3  ;;  %v3760_v20 = vadd.f32 %v907_v12, %v859_v11  ;;  %1053 = vmatmul.bf16.gmra.mxu0 %v3636_v14  ;;  %v2826_v14 = vor.u32 %v3065_v23, %v2825_v22  ;;  %v2909_v11 = vld [vmem:[#allocation9 + $0x110] sm:$0xf]  ;;  %v3086_v22 = vld [vmem:[#allocation9 + $0x118] sm:$0xf0] }
 0x10c   : > { %1102 = vmatmul.bf16.gmra.mxu1 %v3638_v15  ;;  %v2910_v24 = vor.u32 %v3086_v22, %v2909_v11 }
 0x10d   : > { %1719 = vmatmul.bf16.gmra.mxu2 %v3753_v8  ;;  %vm1144_vm2 = vcmp.ge.f32.partialorder %v3760_v20, 0.0 }
 0x10e   : > { %1768 = vmatmul.bf16.gmra.mxu3 %v3756_v13  ;;  %1905 = vmatpush.bf16.msra.mxu2 %v2826_v14  ;;  %v3042_v14 = vld [vmem:[%s3606_s17 + $0x34] sm:$0xf0] }
 0x10f   : > { %1955 = vmatpush.bf16.msra.mxu3 %v2910_v24  ;;  %v3044_v24 = vld [vmem:[%s3606_s17 + $0x44] sm:$0xf0] }
 0x110   : > { %v956_v21 = vpop.f32.mrf.mxu2  ;;  %v860_v30 = vpop.f32.mrf.mxu0 }
 0x111   : > { %v957_v25 = vadd.f32 %v956_v21, %v3739_v38  ;;  %v1005_v29 = vpop.f32.mrf.mxu3  ;;  %v861_v15 = vadd.f32 %v860_v30, %v3722_v17  ;;  %v909_v34 = vpop.f32.mrf.mxu1  ;;  %v2729_v30 = vld [vmem:[%s3606_s17 + $0x30] sm:$0xf] }
 0x112   : > { %v3801_v50 = vor.u32 %v3042_v14, %v2729_v30  ;;  %v3043_v30 = vld [vmem:[%s3606_s17 + $0x44] sm:$0xf]  ;;  %v2739_v14 = vld [vmem:[%s3606_s17 + $0x48] sm:$0xf0] }
 0x113   : > { %v3768_v39 = vadd.f32 %v1005_v29, %v957_v25  ;;  %v3770_v40 = vadd.f32 %v909_v34, %v861_v15  ;;  %v2731_v15 = vld [vmem:[%s3606_s17 + $0x38] sm:$0xf0]  ;;  %v3060_v34 = vld [vmem:[#allocation9 + $0x4c] sm:$0xf] }
 0x114   : > { %v2810_v44 = vor.u32 %v3060_v34, %v2807_v36  ;;  %v3804_v59 = vor.u32 %v3041_v31, %v2731_v15  ;;  %v3057_v31 = vld [vmem:[#allocation9 + $0x34] sm:$0xf]  ;;  %v2795_v15 = vld [vmem:[#allocation9 + $0x3c] sm:$0xf0] }
 0x115   : > { %v3081_v34 = vld [vmem:[#allocation9 + $0xf4] sm:$0xf]  ;;  %vm1147_vm3 = vcmp.ge.f32.partialorder %v3770_v40, 0.0 }
 0x116   : > { %1808 = vmatpush.bf16.msra.mxu0 %v2810_v44 }
 0x118   : > { %v958_v45 = vpop.f32.mrf.mxu2  ;;  %v863_v57 = vpop.f32.mrf.mxu0 }
 0x119   : > { %v959_v51 = vadd.f32 %v958_v45, %v3739_v38  ;;  %v1007_v54 = vpop.f32.mrf.mxu3  ;;  %v864_v61 = vadd.f32 %v863_v57, %v3722_v17  ;;  %v912_v63 = vpop.f32.mrf.mxu1 }
 0x11b   : > { %v3782_v3 = vadd.f32 %v1007_v54, %v959_v51  ;;  %v3784_v4 = vadd.f32 %v912_v63, %v864_v61  ;;  %1058 = vmatmul.bf16.gmra.mxu0 %v3648_v32  ;;  %v2814_v32 = vor.u32 %v3062_v10, %v2813_v9  ;;  %v2906_v51 = vor.u32 %v3084_v41, %v2903_v43  ;;  %v2897_v9 = vld [vmem:[#allocation9 + $0xf8] sm:$0xf] }
 0x11c   : > { %1107 = vmatmul.bf16.gmra.mxu1 %v3650_v33  ;;  %v2798_v41 = vor.u32 %v3057_v31, %v2795_v15  ;;  %v3045_v31 = vld [vmem:[%s3606_s17 + $0x54] sm:$0xf]  ;;  %v2747_v15 = vld [vmem:[%s3606_s17 + $0x58] sm:$0xf0] }
 0x11d   : > { %1724 = vmatmul.bf16.gmra.mxu2 %v3777_v58  ;;  %1857 = vmatpush.bf16.msra.mxu1 %v2906_v51  ;;  %vm1150_vm4 = vcmp.ge.f32.partialorder %v3784_v4, 0.0 }
 0x11e   : > { %1773 = vmatmul.bf16.gmra.mxu3 %v3780_v0  ;;  %1906 = vmatpush.bf16.msra.mxu2 %v2814_v32 }
 0x11f   : > { %1809 = vmatpush.bf16.msra.mxu0 %v2798_v41  ;;  %v3078_v41 = vld [vmem:[#allocation9 + $0xdc] sm:$0xf] }
 0x120   : > { %v961_v5 = vpop.f32.mrf.mxu2  ;;  %v865_v21 = vpop.f32.mrf.mxu0 }
 0x121   : > { %v962_v12 = vadd.f32 %v961_v5, %v3739_v38  ;;  %v1010_v18 = vpop.f32.mrf.mxu3  ;;  %v866_v33 = vadd.f32 %v865_v21, %v3722_v17  ;;  %v914_v23 = vpop.f32.mrf.mxu1  ;;  %v3059_v5 = vld [vmem:[#allocation9 + $0x40] sm:$0xf0] }
 0x123   : > { %v3792_v25 = vadd.f32 %v1010_v18, %v962_v12  ;;  %v3794_v29 = vadd.f32 %v914_v23, %v866_v33  ;;  %v2802_v18 = vor.u32 %v3059_v5, %v2801_v1  ;;  %v2737_v23 = vld [vmem:[%s3606_s17 + $0x40] sm:$0xf] }
 0x125   : > { %1907 = vmatpush.bf16.msra.mxu2 %v2802_v18  ;;  %vm1153_vm5 = vcmp.ge.f32.partialorder %v3794_v29, 0.0 }
 0x128   : > { %v963_v42 = vpop.f32.mrf.mxu2  ;;  %v868_v46 = vpop.f32.mrf.mxu0 }
 0x129   : > { %v964_v45 = vadd.f32 %v963_v42, %v3739_v38  ;;  %v1012_v49 = vpop.f32.mrf.mxu3  ;;  %v869_v54 = vadd.f32 %v868_v46, %v3722_v17  ;;  %v917_v57 = vpop.f32.mrf.mxu1  ;;  %v2891_v42 = vld [vmem:[#allocation9 + $0xfc] sm:$0xf0] }
 0x12a   : > { %v2894_v46 = vor.u32 %v3081_v34, %v2891_v42  ;;  %v3054_v34 = vld [vmem:[#allocation9 + $0x1c] sm:$0xf] }
 0x12b   : > { %v3806_v60 = vadd.f32 %v1012_v49, %v964_v45  ;;  %v3808_v61 = vadd.f32 %v917_v57, %v869_v54  ;;  %1063 = vmatmul.bf16.gmra.mxu0 %v3660_v52  ;;  %v3083_v52 = vld [vmem:[#allocation9 + $0x100] sm:$0xf0]  ;;  %v3825_v49 = vor.u32 %v3044_v24, %v2737_v23  ;;  %v3828_v57 = vor.u32 %v3043_v30, %v2739_v14  ;;  %v2745_v30 = vld [vmem:[%s3606_s17 + $0x50] sm:$0xf]  ;;  %v3046_v14 = vld [vmem:[%s3606_s17 + $0x54] sm:$0xf0] }
 0x12c   : > { %1112 = vmatmul.bf16.gmra.mxu1 %v3662_v53  ;;  %v2898_v32 = vor.u32 %v3083_v52, %v2897_v9  ;;  %v2789_v9 = vld [vmem:[#allocation9 + $0x20] sm:$0xf] }
 0x12d   : > { %1729 = vmatmul.bf16.gmra.mxu2 %v3801_v50  ;;  %1858 = vmatpush.bf16.msra.mxu1 %v2894_v46  ;;  %vm1156_vm6 = vcmp.ge.f32.partialorder %v3808_v61, 0.0 }
 0x12e   : > { %1778 = vmatmul.bf16.gmra.mxu3 %v3804_v59 }
 0x12f   : > { %1956 = vmatpush.bf16.msra.mxu3 %v2898_v32 }
 0x130   : > { %v966_v63 = vpop.f32.mrf.mxu2  ;;  %v870_v12 = vpop.f32.mrf.mxu0 }
 0x131   : > { %v967_v10 = vadd.f32 %v966_v63, %v3739_v38  ;;  %v1015_v11 = vpop.f32.mrf.mxu3  ;;  %v871_v53 = vadd.f32 %v870_v12, %v3722_v17  ;;  %v919_v21 = vpop.f32.mrf.mxu1 }
 0x133   : > { %v3816_v22 = vadd.f32 %v1015_v11, %v967_v10  ;;  %v3818_v33 = vadd.f32 %v919_v21, %v871_v53  ;;  %v3056_v10 = vld [vmem:[#allocation9 + $0x28] sm:$0xf0]  ;;  %v2885_v11 = vld [vmem:[#allocation9 + $0xe0] sm:$0xf] }
 0x134   : > { %v2790_v53 = vor.u32 %v3056_v10, %v2789_v9 }
 0x135   : > { %vm1159_vm7 = vcmp.ge.f32.partialorder %v3818_v33, 0.0 }
 0x136   : > { %1908 = vmatpush.bf16.msra.mxu2 %v2790_v53  ;;  %v2777_v53 = vld [vmem:[#allocation9 + $0x8] sm:$0xf] }
 0x138   : > { %v968_v36 = vpop.f32.mrf.mxu2  ;;  %v873_v45 = vpop.f32.mrf.mxu0 }
 0x139   : > { %v969_v44 = vadd.f32 %v968_v36, %v3739_v38  ;;  %v1017_v43 = vpop.f32.mrf.mxu3  ;;  %v874_v51 = vadd.f32 %v873_v45, %v3722_v17  ;;  %v922_v54 = vpop.f32.mrf.mxu1  ;;  %v2783_v36 = vld [vmem:[#allocation9 + $0x24] sm:$0xf0] }
 0x13b   : > { %v3830_v63 = vadd.f32 %v1017_v43, %v969_v44  ;;  %v3832_v1 = vadd.f32 %v922_v54, %v874_v51  ;;  %1068 = vmatmul.bf16.gmra.mxu0 %v3672_v6  ;;  %v3080_v6 = vld [vmem:[#allocation9 + $0xe8] sm:$0xf0]  ;;  %v2786_v44 = vor.u32 %v3054_v34, %v2783_v36  ;;  %v2879_v43 = vld [vmem:[#allocation9 + $0xe4] sm:$0xf0]  ;;  %v3849_v54 = vor.u32 %v3046_v14, %v2745_v30 }
 0x13c   : > { %1117 = vmatmul.bf16.gmra.mxu1 %v3674_v7  ;;  %v2886_v32 = vor.u32 %v3080_v6, %v2885_v11  ;;  %v3852_v11 = vor.u32 %v3045_v31, %v2747_v15  ;;  %v3053_v6 = vld [vmem:[#allocation9 + $0x10] sm:$0xf0] }
 0x13d   : > { %1734 = vmatmul.bf16.gmra.mxu2 %v3825_v49  ;;  %1810 = vmatpush.bf16.msra.mxu0 %v2786_v44  ;;  %v2778_v14 = vor.u32 %v3053_v6, %v2777_v53  ;;  %v3047_v44 = vld [vmem:[%s3606_s17 + $0x64] sm:$0xf]  ;;  %vm1162_vm8 = vcmp.ge.f32.partialorder %v3832_v1, 0.0 }
 0x13e   : > { %1783 = vmatmul.bf16.gmra.mxu3 %v3828_v57 }
 0x13f   : > { %1957 = vmatpush.bf16.msra.mxu3 %v2886_v32  ;;  %1909 = vmatpush.bf16.msra.mxu2 %v2778_v14 }
 0x140   : > { %v971_v5 = vpop.f32.mrf.mxu2  ;;  %v875_v52 = vpop.f32.mrf.mxu0 }
 0x141   : > { %v972_v12 = vadd.f32 %v971_v5, %v3739_v38  ;;  %v1020_v18 = vpop.f32.mrf.mxu3  ;;  %v876_v7 = vadd.f32 %v875_v52, %v3722_v17  ;;  %v924_v21 = vpop.f32.mrf.mxu1  ;;  %v2882_v5 = vor.u32 %v3078_v41, %v2879_v43  ;;  %v2753_v41 = vld [vmem:[%s3606_s17 + $0x60] sm:$0xf]  ;;  %v2755_v43 = vld [vmem:[%s3606_s17 + $0x68] sm:$0xf0] }
 0x142   : > { %v3876_v14 = vor.u32 %v3047_v44, %v2755_v43 }
 0x143   : > { %v3840_v23 = vadd.f32 %v1020_v18, %v972_v12  ;;  %v3842_v24 = vadd.f32 %v924_v21, %v876_v7  ;;  %1859 = vmatpush.bf16.msra.mxu1 %v2882_v5  ;;  %v2873_v7 = vld [vmem:[#allocation9 + $0xc8] sm:$0xf] }
 0x145   : > { %vm1165_vm9 = vcmp.ge.f32.partialorder %v3842_v24, 0.0 }
 0x148   : > { %v973_v42 = vpop.f32.mrf.mxu2  ;;  %v878_v51 = vpop.f32.mrf.mxu0 }
 0x149   : > { %v974_v45 = vadd.f32 %v973_v42, %v3739_v38  ;;  %v1022_v46 = vpop.f32.mrf.mxu3  ;;  %v879_v9 = vadd.f32 %v878_v51, %v3722_v17  ;;  %v927_v10 = vpop.f32.mrf.mxu1  ;;  %v3048_v42 = vld [vmem:[%s3606_s17 + $0x64] sm:$0xf0]  ;;  %v3075_v51 = vld [vmem:[#allocation9 + $0xc4] sm:$0xf] }
 0x14b   : > { %v3854_v12 = vadd.f32 %v1022_v46, %v974_v45  ;;  %v3856_v18 = vadd.f32 %v927_v10, %v879_v9  ;;  %1073 = vmatmul.bf16.gmra.mxu0 %v3684_v26  ;;  %v3077_v26 = vld [vmem:[#allocation9 + $0xd0] sm:$0xf0]  ;;  %v3051_v45 = vld [vmem:[#allocation9 + $0x4] sm:$0xf]  ;;  %v2771_v46 = vld [vmem:[#allocation9 + $0xc] sm:$0xf0] }
 0x14c   : > { %1122 = vmatmul.bf16.gmra.mxu1 %v3686_v27  ;;  %v2874_v15 = vor.u32 %v3077_v26, %v2873_v7  ;;  %v2774_v9 = vor.u32 %v3051_v45, %v2771_v46  ;;  %v2867_v10 = vld [vmem:[#allocation9 + $0xcc] sm:$0xf0]  ;;  %v3873_v7 = vor.u32 %v3048_v42, %v2753_v41 }
 0x14d   : > { %1739 = vmatmul.bf16.gmra.mxu2 %v3849_v54  ;;  %vm1168_vm10 = vcmp.ge.f32.partialorder %v3856_v18, 0.0 }
 0x14e   : > { %1788 = vmatmul.bf16.gmra.mxu3 %v3852_v11  ;;  %1811 = vmatpush.bf16.msra.mxu0 %v2774_v9 }
 0x14f   : > { %1958 = vmatpush.bf16.msra.mxu3 %v2874_v15 }
 0x150   : > { %v976_v52 = vpop.f32.mrf.mxu2  ;;  %v880_v30 = vpop.f32.mrf.mxu0 }
 0x151   : > { %v977_v21 = vadd.f32 %v976_v52, %v3739_v38  ;;  %v1025_v32 = vpop.f32.mrf.mxu3  ;;  %v881_v27 = vadd.f32 %v880_v30, %v3722_v17  ;;  %v929_v31 = vpop.f32.mrf.mxu1 }
 0x153   : > { %v3864_v34 = vadd.f32 %v1025_v32, %v977_v21  ;;  %v3866_v36 = vadd.f32 %v929_v31, %v881_v27  ;;  %v2870_v21 = vor.u32 %v3075_v51, %v2867_v10  ;;  %v2761_v51 = vld [vmem:[%s3606_s17 + $0x70] sm:$0xf] }
 0x155   : > { %1860 = vmatpush.bf16.msra.mxu1 %v2870_v21  ;;  %vm1171_vm11 = vcmp.ge.f32.partialorder %v3866_v36, 0.0 }
 0x158   : > { %v978_v5 = vpop.f32.mrf.mxu2  ;;  %v883_v6 = vpop.f32.mrf.mxu0 }
 0x159   : > { %v979_v52 = vadd.f32 %v978_v5, %v3739_v38  ;;  %v1027_v53 = vpop.f32.mrf.mxu3  ;;  %v884_v32 = vadd.f32 %v883_v6, %v3722_v17  ;;  %v932_v30 = vpop.f32.mrf.mxu1  ;;  %v3049_v5 = vld [vmem:[%s3606_s17 + $0x74] sm:$0xf] }
 0x15b   : > { %v3878_v26 = vadd.f32 %v1027_v53, %v979_v52  ;;  %v3880_v27 = vadd.f32 %v932_v30, %v884_v32  ;;  %1078 = vmatmul.bf16.gmra.mxu0 %v3696_v47  ;;  %v3050_v47 = vld [vmem:[%s3606_s17 + $0x74] sm:$0xf0] }
 0x15c   : > { %1127 = vmatmul.bf16.gmra.mxu1 %v3698_v48  ;;  %v2763_v48 = vld [vmem:[%s3606_s17 + $0x78] sm:$0xf0]  ;;  %v3897_v6 = vor.u32 %v3050_v47, %v2761_v51  ;;  %s2247_s17 = scalar_lea.sflag [#allocation13], %s3595_s9 }
 0x15d   : > { %1744 = vmatmul.bf16.gmra.mxu2 %v3873_v7  ;;  %v3900_v30 = vor.u32 %v3049_v5, %v2763_v48  ;;  %vm1174_vm12 = vcmp.ge.f32.partialorder %v3880_v27, 0.0 }
 0x15e   : > { %1793 = vmatmul.bf16.gmra.mxu3 %v3876_v14 }
 0x160   : > { %v981_v31 = vpop.f32.mrf.mxu2  ;;  %v885_v42 = vpop.f32.mrf.mxu0 }
 0x161   : > { %v982_v15 = vadd.f32 %v981_v31, %v3739_v38  ;;  %v1030_v41 = vpop.f32.mrf.mxu3  ;;  %v886_v44 = vadd.f32 %v885_v42, %v3722_v17  ;;  %v934_v43 = vpop.f32.mrf.mxu1 }
 0x163   : > { %v3888_v45 = vadd.f32 %v1030_v41, %v982_v15  ;;  %v3890_v46 = vadd.f32 %v934_v43, %v886_v44 }
 0x165   : > { %vm1177_vm13 = vcmp.ge.f32.partialorder %v3890_v46, 0.0 }
 0x168   : > { %v983_v9 = vpop.f32.mrf.mxu2  ;;  %v888_v53 = vpop.f32.mrf.mxu0 }
 0x169   : > { %v984_v10 = vadd.f32 %v983_v9, %v3739_v38  ;;  %v1032_v52 = vpop.f32.mrf.mxu3  ;;  %v889_v21 = vadd.f32 %v888_v53, %v3722_v17  ;;  %v937_v32 = vpop.f32.mrf.mxu1 }
 0x16b   : > { %v3902_v31 = vadd.f32 %v1032_v52, %v984_v10  ;;  %v3904_v15 = vadd.f32 %v937_v32, %v889_v21  ;;  %1083 = vmatmul.bf16.gmra.mxu0 %v3708_v62  ;;  %v3917_v62 = vperm.slane %v3719_v16, 2 }
 0x16c   : > { %1132 = vmatmul.bf16.gmra.mxu1 %v3710_v2 }
 0x16d   : > { %1749 = vmatmul.bf16.gmra.mxu2 %v3897_v6  ;;  %vm1180_vm14 = vcmp.ge.f32.partialorder %v3904_v15, 0.0 }
 0x16e   : > { %1798 = vmatmul.bf16.gmra.mxu3 %v3900_v30 }
 0x170   : > { %v986_v41 = vpop.f32.mrf.mxu2  ;;  %v890_v43 = vpop.f32.mrf.mxu0 }
 0x171   : > { %v987_v42 = vadd.f32 %v986_v41, %v3739_v38  ;;  %v1035_v44 = vpop.f32.mrf.mxu3  ;;  %v891_v51 = vadd.f32 %v890_v43, %v3722_v17  ;;  %v939_v47 = vpop.f32.mrf.mxu1  ;;  %v3924_v17 = vld [vmem:[%s4417_s6] sm:$0x7] }
 0x172   : > { %v3934_v16 = vperm.slane %v3924_v17, 0 }
 0x173   : > { %v3912_v5 = vadd.f32 %v1035_v44, %v987_v42  ;;  %v3914_v48 = vadd.f32 %v939_v47, %v891_v51 }
 0x175   : > { %vm1183_vm15 = vcmp.ge.f32.partialorder %v3914_v48, 0.0 }
 0x178   : > { %v988_v2 = vpop.f32.mrf.mxu2  ;;  %v1049_v52 = vpop.f32.mrf.mxu0 }
 0x179   : > { %v989_v9 = vadd.f32 %v988_v2, %v3739_v38  ;;  %v1037_v10 = vpop.f32.mrf.mxu3  ;;  %v1050_v53 = vadd.f32 %v1049_v52, %v3917_v62  ;;  %v1098_v21 = vpop.f32.mrf.mxu1  ;;  %v1186_v38 = vmul.f32 0.01, %v3733_v37 }
 0x17b   : > { %v3926_v32 = vadd.f32 %v1037_v10, %v989_v9  ;;  %v3928_v41 = vadd.f32 %v1098_v21, %v1050_v53  ;;  %1812 = vmatmul.bf16.vlgmr.msra.gmra.mxu0 %v3728_v28  ;;  %v3943_v10 = vstv %s419_s11  ;;  %v1189_v21 = vmul.f32 0.01, %v3746_v56  ;;  %s3325_s11 = scalar_lea.hbm %s4419_s8, 768 }
 0x17c   : > { %1861 = vmatmul.bf16.vlgmr.msra.gmra.mxu1 %v3731_v35  ;;  %p3327_p10 = scmp.lt.s32.totalorder %s3325_s11, %s3321_s27 }
 0x17d   : > { %4440 = vst [vmem:[#allocation23_spill] sm:$0xff] %v3926_v32  ;;  %1910 = vmatmul.bf16.vlgmr.msra.gmra.mxu2 %v3728_v28  ;;  %v1234_v28 = vsel %vm1138_vm0, %v3733_v37, %v1186_v38  ;;  %vm1139_vm0 = vcmp.ge.f32.partialorder %v3744_v55, 0.0 }
 0x17e   : > { %1959 = vmatmul.bf16.vlgmr.msra.gmra.mxu3 %v3731_v35  ;;  %p3328_p11 = por %p3327_p10, %p3326_p2 }
 0x180   : > { %v1715_v42 = vpop.f32.mrf.mxu2  ;;  %v1051_v51 = vpop.f32.mrf.mxu0  ;;  %p3329_p9 = pnand %p3328_p11, %p3324_p8 }
 0x181   : > { %v1716_v44 = vadd.f32 %v1715_v42, %v3934_v16  ;;  %v1764_v43 = vpop.f32.mrf.mxu3  ;;  %v1052_v47 = vadd.f32 %v1051_v51, %v3917_v62  ;;  %v1100_v2 = vpop.f32.mrf.mxu1 }
 0x183   : > { %v1765_v9 = vadd.f32 %v1764_v43, %v1716_v44  ;;  %v3945_v52 = vadd.f32 %v1100_v2, %v1052_v47 }
 0x185   : > { %2000 = vst [vmem:[%s3947_s22] sm:$0xff] %v1765_v9  ;;  %v2048_v35 = vsub.f32 %v1234_v28, %v1765_v9  ;;  %v1237_v28 = vsel %vm1141_vm1, %v3746_v56, %v1189_v21  ;;  %vm1140_vm1 = vcmp.ge.f32.partialorder %v3928_v41, 0.0 }
 0x187   : > { %v2097_v53 = vmul.f32 %v3943_v10, %v2048_v35 }
 0x188   : > { %v1717_v42 = vpop.f32.mrf.mxu2  ;;  %v1054_v43 = vpop.f32.mrf.mxu0 }
 0x189   : > { %v2145_v44 = vadd.f32 %v2097_v53, %v1765_v9  ;;  %v1718_v37 = vadd.f32 %v1717_v42, %v3934_v16  ;;  %v1766_v38 = vpop.f32.mrf.mxu3  ;;  %v1055_v51 = vadd.f32 %v1054_v43, %v3917_v62  ;;  %v1103_v47 = vpop.f32.mrf.mxu1  ;;  %v1192_v42 = vmul.f32 0.01, %v3760_v20 }
 0x18b   : > { %2193 = vst [vmem:[%s3955_s23] sm:$0xff] %v2145_v44  ;;  %v1767_v2 = vadd.f32 %v1766_v38, %v1718_v37  ;;  %v3959_v35 = vadd.f32 %v1103_v47, %v1055_v51  ;;  %1817 = vmatmul.bf16.gmra.mxu0 %v3753_v8 }
 0x18c   : > { %1866 = vmatmul.bf16.gmra.mxu1 %v3756_v13 }
 0x18d   : > { %2003 = vst [vmem:[%s3947_s22 + $0x18] sm:$0xff] %v1767_v2  ;;  %v2051_v9 = vsub.f32 %v1237_v28, %v1767_v2  ;;  %1915 = vmatmul.bf16.gmra.mxu2 %v3753_v8 }
 0x18e   : > { %1964 = vmatmul.bf16.gmra.mxu3 %v3756_v13  ;;  %v1240_v13 = vsel %vm1144_vm2, %v3760_v20, %v1192_v42  ;;  %vm1142_vm2 = vcmp.ge.f32.partialorder %v3758_v19, 0.0 }
 0x18f   : > { %v2100_v53 = vmul.f32 %v3943_v10, %v2051_v9 }
 0x190   : > { %v1720_v44 = vpop.f32.mrf.mxu2  ;;  %v1056_v38 = vpop.f32.mrf.mxu0 }
 0x191   : > { %v2148_v56 = vadd.f32 %v2100_v53, %v1767_v2  ;;  %v1721_v21 = vadd.f32 %v1720_v44, %v3934_v16  ;;  %v1769_v37 = vpop.f32.mrf.mxu3  ;;  %v1057_v43 = vadd.f32 %v1056_v38, %v3917_v62  ;;  %v1105_v51 = vpop.f32.mrf.mxu1  ;;  %v1195_v2 = vmul.f32 0.01, %v3770_v40 }
 0x193   : > { %2196 = vst [vmem:[%s3955_s23 + $0x18] sm:$0xff] %v2148_v56  ;;  %v1770_v8 = vadd.f32 %v1769_v37, %v1721_v21  ;;  %v3973_v47 = vadd.f32 %v1105_v51, %v1057_v43  ;;  %v1243_v37 = vsel %vm1147_vm3, %v3770_v40, %v1195_v2  ;;  %vm1143_vm3 = vcmp.ge.f32.partialorder %v3945_v52, 0.0 }
 0x195   : > { %2006 = vst [vmem:[%s3947_s22 + $0x30] sm:$0xff] %v1770_v8  ;;  %v2054_v28 = vsub.f32 %v1240_v13, %v1770_v8 }
 0x197   : > { %v2103_v9 = vmul.f32 %v3943_v10, %v2054_v28 }
 0x198   : > { %v1722_v53 = vpop.f32.mrf.mxu2  ;;  %v1059_v32 = vpop.f32.mrf.mxu0 }
 0x199   : > { %v2151_v44 = vadd.f32 %v2103_v9, %v1770_v8  ;;  %v1723_v38 = vadd.f32 %v1722_v53, %v3934_v16  ;;  %v1771_v56 = vpop.f32.mrf.mxu3  ;;  %v1060_v21 = vadd.f32 %v1059_v32, %v3917_v62  ;;  %v1108_v20 = vpop.f32.mrf.mxu1  ;;  %v1198_v8 = vmul.f32 0.01, %v3784_v4 }
 0x19b   : > { %2199 = vst [vmem:[%s3955_s23 + $0x30] sm:$0xff] %v2151_v44  ;;  %v1772_v42 = vadd.f32 %v1771_v56, %v1723_v38  ;;  %v3983_v43 = vadd.f32 %v1108_v20, %v1060_v21  ;;  %1822 = vmatmul.bf16.gmra.mxu0 %v3777_v58  ;;  %v1201_v20 = vmul.f32 0.01, %v3794_v29 }
 0x19c   : > { %1871 = vmatmul.bf16.gmra.mxu1 %v3780_v0 }
 0x19d   : > { %2009 = vst [vmem:[%s3947_s22 + $0x48] sm:$0xff] %v1772_v42  ;;  %v2057_v51 = vsub.f32 %v1243_v37, %v1772_v42  ;;  %1920 = vmatmul.bf16.gmra.mxu2 %v3777_v58 }
 0x19e   : > { %1969 = vmatmul.bf16.gmra.mxu3 %v3780_v0  ;;  %v1246_v0 = vsel %vm1150_vm4, %v3784_v4, %v1198_v8  ;;  %vm1145_vm4 = vcmp.ge.f32.partialorder %v3768_v39, 0.0 }
 0x19f   : > { %v2106_v32 = vmul.f32 %v3943_v10, %v2057_v51 }
 0x1a0   : > { %v1725_v13 = vpop.f32.mrf.mxu2  ;;  %v1061_v2 = vpop.f32.mrf.mxu0 }
 0x1a1   : > { %v2154_v40 = vadd.f32 %v2106_v32, %v1772_v42  ;;  %v1726_v28 = vadd.f32 %v1725_v13, %v3934_v16  ;;  %v1774_v9 = vpop.f32.mrf.mxu3  ;;  %v1062_v53 = vadd.f32 %v1061_v2, %v3917_v62  ;;  %v1110_v44 = vpop.f32.mrf.mxu1 }
 0x1a3   : > { %2202 = vst [vmem:[%s3955_s23 + $0x48] sm:$0xff] %v2154_v40  ;;  %v1775_v58 = vadd.f32 %v1774_v9, %v1726_v28  ;;  %v3997_v38 = vadd.f32 %v1110_v44, %v1062_v53  ;;  %v1249_v28 = vsel %vm1153_vm5, %v3794_v29, %v1201_v20  ;;  %v1204_v44 = vmul.f32 0.01, %v3808_v61 }
 0x1a4   : > { %vm1146_vm5 = vcmp.ge.f32.partialorder %v3959_v35, 0.0 }
 0x1a5   : > { %2012 = vst [vmem:[%s3947_s22 + $0x60] sm:$0xff] %v1775_v58  ;;  %v2060_v56 = vsub.f32 %v1246_v0, %v1775_v58 }
 0x1a7   : > { %v2109_v21 = vmul.f32 %v3943_v10, %v2060_v56 }
 0x1a8   : > { %v1727_v42 = vpop.f32.mrf.mxu2  ;;  %v1064_v13 = vpop.f32.mrf.mxu0 }
 0x1a9   : > { %v2157_v37 = vadd.f32 %v2109_v21, %v1775_v58  ;;  %v1728_v51 = vadd.f32 %v1727_v42, %v3934_v16  ;;  %v1776_v32 = vpop.f32.mrf.mxu3  ;;  %v1065_v40 = vadd.f32 %v1064_v13, %v3917_v62  ;;  %v1113_v4 = vpop.f32.mrf.mxu1  ;;  %v1207_v13 = vmul.f32 0.01, %v3818_v33 }
 0x1ab   : > { %2205 = vst [vmem:[%s3955_s23 + $0x60] sm:$0xff] %v2157_v37  ;;  %v1777_v8 = vadd.f32 %v1776_v32, %v1728_v51  ;;  %v4007_v9 = vadd.f32 %v1113_v4, %v1065_v40  ;;  %1827 = vmatmul.bf16.gmra.mxu0 %v3801_v50 }
 0x1ac   : > { %1876 = vmatmul.bf16.gmra.mxu1 %v3804_v59 }
 0x1ad   : > { %2015 = vst [vmem:[%s3947_s22 + $0x78] sm:$0xff] %v1777_v8  ;;  %v2063_v2 = vsub.f32 %v1249_v28, %v1777_v8  ;;  %1925 = vmatmul.bf16.gmra.mxu2 %v3801_v50 }
 0x1ae   : > { %1974 = vmatmul.bf16.gmra.mxu3 %v3804_v59  ;;  %v1252_v59 = vsel %vm1156_vm6, %v3808_v61, %v1204_v44  ;;  %vm1148_vm6 = vcmp.ge.f32.partialorder %v3782_v3, 0.0 }
 0x1af   : > { %v2112_v53 = vmul.f32 %v3943_v10, %v2063_v2 }
 0x1b0   : > { %v1730_v58 = vpop.f32.mrf.mxu2  ;;  %v1066_v21 = vpop.f32.mrf.mxu0 }
 0x1b1   : > { %v2160_v29 = vadd.f32 %v2112_v53, %v1777_v8  ;;  %v1731_v0 = vadd.f32 %v1730_v58, %v3934_v16  ;;  %v1779_v56 = vpop.f32.mrf.mxu3  ;;  %v1067_v20 = vadd.f32 %v1066_v21, %v3917_v62  ;;  %v1115_v42 = vpop.f32.mrf.mxu1  ;;  %v1255_v58 = vsel %vm1159_vm7, %v3818_v33, %v1207_v13 }
 0x1b2   : > { %v1210_v21 = vmul.f32 0.01, %v3832_v1  ;;  %vm1149_vm7 = vcmp.ge.f32.partialorder %v3973_v47, 0.0 }
 0x1b3   : > { %2208 = vst [vmem:[%s3955_s23 + $0x78] sm:$0xff] %v2160_v29  ;;  %v1780_v50 = vadd.f32 %v1779_v56, %v1731_v0  ;;  %v4021_v37 = vadd.f32 %v1115_v42, %v1067_v20 }
 0x1b5   : > { %2018 = vst [vmem:[%s3947_s22 + $0x90] sm:$0xff] %v1780_v50  ;;  %v2066_v51 = vsub.f32 %v1252_v59, %v1780_v50 }
 0x1b7   : > { %v2115_v32 = vmul.f32 %v3943_v10, %v2066_v51 }
 0x1b8   : > { %v1732_v40 = vpop.f32.mrf.mxu2  ;;  %v1069_v2 = vpop.f32.mrf.mxu0 }
 0x1b9   : > { %v2163_v4 = vadd.f32 %v2115_v32, %v1780_v50  ;;  %v1733_v8 = vadd.f32 %v1732_v40, %v3934_v16  ;;  %v1781_v28 = vpop.f32.mrf.mxu3  ;;  %v1070_v53 = vadd.f32 %v1069_v2, %v3917_v62  ;;  %v1118_v61 = vpop.f32.mrf.mxu1 }
 0x1bb   : > { %2211 = vst [vmem:[%s3955_s23 + $0x90] sm:$0xff] %v2163_v4  ;;  %v1782_v44 = vadd.f32 %v1781_v28, %v1733_v8  ;;  %v4031_v29 = vadd.f32 %v1118_v61, %v1070_v53  ;;  %1832 = vmatmul.bf16.gmra.mxu0 %v3825_v49  ;;  %v1213_v8 = vmul.f32 0.01, %v3842_v24 }
 0x1bc   : > { %1881 = vmatmul.bf16.gmra.mxu1 %v3828_v57 }
 0x1bd   : > { %2021 = vst [vmem:[%s3947_s22 + $0xa8] sm:$0xff] %v1782_v44  ;;  %v2069_v0 = vsub.f32 %v1255_v58, %v1782_v44  ;;  %1930 = vmatmul.bf16.gmra.mxu2 %v3825_v49 }
 0x1be   : > { %1979 = vmatmul.bf16.gmra.mxu3 %v3828_v57  ;;  %v1258_v57 = vsel %vm1162_vm8, %v3832_v1, %v1210_v21  ;;  %vm1151_vm8 = vcmp.ge.f32.partialorder %v3792_v25, 0.0 }
 0x1bf   : > { %v2118_v56 = vmul.f32 %v3943_v10, %v2069_v0 }
 0x1c0   : > { %v1735_v20 = vpop.f32.mrf.mxu2  ;;  %v1071_v59 = vpop.f32.mrf.mxu0 }
 0x1c1   : > { %v2166_v33 = vadd.f32 %v2118_v56, %v1782_v44  ;;  %v1736_v42 = vadd.f32 %v1735_v20, %v3934_v16  ;;  %v1784_v50 = vpop.f32.mrf.mxu3  ;;  %v1072_v51 = vadd.f32 %v1071_v59, %v3917_v62  ;;  %v1120_v32 = vpop.f32.mrf.mxu1  ;;  %v1261_v56 = vsel %vm1165_vm9, %v3842_v24, %v1213_v8 }
 0x1c2   : > { %vm1152_vm9 = vcmp.ge.f32.partialorder %v3983_v43, 0.0 }
 0x1c3   : > { %2214 = vst [vmem:[%s3955_s23 + $0xa8] sm:$0xff] %v2166_v33  ;;  %v1785_v49 = vadd.f32 %v1784_v50, %v1736_v42  ;;  %v4045_v13 = vadd.f32 %v1120_v32, %v1072_v51  ;;  %v1216_v42 = vmul.f32 0.01, %v3856_v18 }
 0x1c5   : > { %2024 = vst [vmem:[%s3947_s22 + $0xc0] sm:$0xff] %v1785_v49  ;;  %v2072_v40 = vsub.f32 %v1258_v57, %v1785_v49 }
 0x1c7   : > { %v2121_v4 = vmul.f32 %v3943_v10, %v2072_v40 }
 0x1c8   : > { %v1737_v28 = vpop.f32.mrf.mxu2  ;;  %v1074_v44 = vpop.f32.mrf.mxu0 }
 0x1c9   : > { %v2169_v2 = vadd.f32 %v2121_v4, %v1785_v49  ;;  %v1738_v53 = vadd.f32 %v1737_v28, %v3934_v16  ;;  %v1786_v61 = vpop.f32.mrf.mxu3  ;;  %v1075_v58 = vadd.f32 %v1074_v44, %v3917_v62  ;;  %v1123_v1 = vpop.f32.mrf.mxu1  ;;  %v1219_v28 = vmul.f32 0.01, %v3866_v36 }
 0x1cb   : > { %2217 = vst [vmem:[%s3955_s23 + $0xc0] sm:$0xff] %v2169_v2  ;;  %v1787_v0 = vadd.f32 %v1786_v61, %v1738_v53  ;;  %v4055_v21 = vadd.f32 %v1123_v1, %v1075_v58  ;;  %1837 = vmatmul.bf16.gmra.mxu0 %v3849_v54 }
 0x1cc   : > { %1886 = vmatmul.bf16.gmra.mxu1 %v3852_v11 }
 0x1cd   : > { %2027 = vst [vmem:[%s3947_s22 + $0xd8] sm:$0xff] %v1787_v0  ;;  %v2075_v20 = vsub.f32 %v1261_v56, %v1787_v0  ;;  %1935 = vmatmul.bf16.gmra.mxu2 %v3849_v54  ;;  %v1267_v56 = vsel %vm1171_vm11, %v3866_v36, %v1219_v28  ;;  %vm1155_vm11 = vcmp.ge.f32.partialorder %v3997_v38, 0.0 }
 0x1ce   : > { %1984 = vmatmul.bf16.gmra.mxu3 %v3852_v11  ;;  %v1264_v11 = vsel %vm1168_vm10, %v3856_v18, %v1216_v42  ;;  %vm1154_vm10 = vcmp.ge.f32.partialorder %v3806_v60, 0.0 }
 0x1cf   : > { %v2124_v33 = vmul.f32 %v3943_v10, %v2075_v20 }
 0x1d0   : > { %v1740_v50 = vpop.f32.mrf.mxu2  ;;  %v1076_v32 = vpop.f32.mrf.mxu0 }
 0x1d1   : > { %v2172_v24 = vadd.f32 %v2124_v33, %v1787_v0  ;;  %v1741_v59 = vadd.f32 %v1740_v50, %v3934_v16  ;;  %v1789_v51 = vpop.f32.mrf.mxu3  ;;  %v1077_v49 = vadd.f32 %v1076_v32, %v3917_v62  ;;  %v1125_v57 = vpop.f32.mrf.mxu1  ;;  %v1222_v50 = vmul.f32 0.01, %v3880_v27 }
 0x1d3   : > { %2220 = vst [vmem:[%s3955_s23 + $0xd8] sm:$0xff] %v2172_v24  ;;  %v1790_v54 = vadd.f32 %v1789_v51, %v1741_v59  ;;  %v4069_v40 = vadd.f32 %v1125_v57, %v1077_v49 }
 0x1d5   : > { %2030 = vst [vmem:[%s3947_s22 + $0xf0] sm:$0xff] %v1790_v54  ;;  %v2078_v4 = vsub.f32 %v1264_v11, %v1790_v54 }
 0x1d7   : > { %v2127_v8 = vmul.f32 %v3943_v10, %v2078_v4 }
 0x1d8   : > { %v1742_v2 = vpop.f32.mrf.mxu2  ;;  %v1079_v58 = vpop.f32.mrf.mxu0 }
 0x1d9   : > { %v2175_v53 = vadd.f32 %v2127_v8, %v1790_v54  ;;  %v1743_v61 = vadd.f32 %v1742_v2, %v3934_v16  ;;  %v1791_v44 = vpop.f32.mrf.mxu3  ;;  %v1080_v1 = vadd.f32 %v1079_v58, %v3917_v62  ;;  %v1128_v18 = vpop.f32.mrf.mxu1  ;;  %v1225_v8 = vmul.f32 0.01, %v3890_v46 }
 0x1db   : > { %2223 = vst [vmem:[%s3955_s23 + $0xf0] sm:$0xff] %v2175_v53  ;;  %v1792_v0 = vadd.f32 %v1791_v44, %v1743_v61  ;;  %v4079_v20 = vadd.f32 %v1128_v18, %v1080_v1  ;;  %1842 = vmatmul.bf16.gmra.mxu0 %v3873_v7  ;;  %v1273_v18 = vsel %vm1177_vm13, %v3890_v46, %v1225_v8  ;;  %vm1158_vm13 = vcmp.ge.f32.partialorder %v4007_v9, 0.0 }
 0x1dc   : > { %1891 = vmatmul.bf16.gmra.mxu1 %v3876_v14 }
 0x1dd   : > { %2033 = vst [vmem:[%s3947_s22 + $0x108] sm:$0xff] %v1792_v0  ;;  %v2081_v33 = vsub.f32 %v1267_v56, %v1792_v0  ;;  %1940 = vmatmul.bf16.gmra.mxu2 %v3873_v7 }
 0x1de   : > { %1989 = vmatmul.bf16.gmra.mxu3 %v3876_v14  ;;  %v1270_v14 = vsel %vm1174_vm12, %v3880_v27, %v1222_v50  ;;  %vm1157_vm12 = vcmp.ge.f32.partialorder %v3816_v22, 0.0 }
 0x1df   : > { %v2130_v42 = vmul.f32 %v3943_v10, %v2081_v33 }
 0x1e0   : > { %v1745_v24 = vpop.f32.mrf.mxu2  ;;  %v1081_v32 = vpop.f32.mrf.mxu0 }
 0x1e1   : > { %v2178_v36 = vadd.f32 %v2130_v42, %v1792_v0  ;;  %v1746_v59 = vadd.f32 %v1745_v24, %v3934_v16  ;;  %v1794_v51 = vpop.f32.mrf.mxu3  ;;  %v1082_v49 = vadd.f32 %v1081_v32, %v3917_v62  ;;  %v1130_v57 = vpop.f32.mrf.mxu1  ;;  %v1228_v42 = vmul.f32 0.01, %v3904_v15 }
 0x1e3   : > { %2226 = vst [vmem:[%s3955_s23 + $0x108] sm:$0xff] %v2178_v36  ;;  %v1795_v7 = vadd.f32 %v1794_v51, %v1746_v59  ;;  %v4093_v54 = vadd.f32 %v1130_v57, %v1082_v49  ;;  %v1276_v49 = vsel %vm1180_vm14, %v3904_v15, %v1228_v42  ;;  %v1188_v42 = vmul.f32 0.01, %v3928_v41 }
 0x1e4   : > { %vm1160_vm14 = vcmp.ge.f32.partialorder %v3830_v63, 0.0 }
 0x1e5   : > { %2036 = vst [vmem:[%s3947_s22 + $0x120] sm:$0xff] %v1795_v7  ;;  %v2084_v11 = vsub.f32 %v1270_v14, %v1795_v7 }
 0x1e7   : > { %v2133_v4 = vmul.f32 %v3943_v10, %v2084_v11  ;;  %v1231_v11 = vmul.f32 0.01, %v3914_v48 }
 0x1e8   : > { %v1747_v28 = vpop.f32.mrf.mxu2  ;;  %v1084_v44 = vpop.f32.mrf.mxu0 }
 0x1e9   : > { %v2181_v2 = vadd.f32 %v2133_v4, %v1795_v7  ;;  %v1748_v53 = vadd.f32 %v1747_v28, %v3934_v16  ;;  %v1796_v61 = vpop.f32.mrf.mxu3  ;;  %v1085_v58 = vadd.f32 %v1084_v44, %v3917_v62  ;;  %v1133_v27 = vpop.f32.mrf.mxu1  ;;  %v4121_v7 = vperm.slane %v3924_v17, 1 }
 0x1eb   : > { %2229 = vst [vmem:[%s3955_s23 + $0x120] sm:$0xff] %v2181_v2  ;;  %v1797_v1 = vadd.f32 %v1796_v61, %v1748_v53  ;;  %v4103_v0 = vadd.f32 %v1133_v27, %v1085_v58  ;;  %1847 = vmatmul.bf16.gmra.mxu0 %v3897_v6  ;;  %v1279_v58 = vsel %vm1183_vm15, %v3914_v48, %v1231_v11  ;;  %v1190_v48 = vmul.f32 0.01, %v3758_v19 }
 0x1ec   : > { %1896 = vmatmul.bf16.gmra.mxu1 %v3900_v30  ;;  %vm1161_vm15 = vcmp.ge.f32.partialorder %v4021_v37, 0.0 }
 0x1ed   : > { %2039 = vst [vmem:[%s3947_s22 + $0x138] sm:$0xff] %v1797_v1  ;;  %v2087_v56 = vsub.f32 %v1273_v18, %v1797_v1  ;;  %1945 = vmatmul.bf16.gmra.mxu2 %v3897_v6  ;;  %v1238_v11 = vsel %vm1142_vm2, %v3758_v19, %v1190_v48  ;;  %v1194_v48 = vmul.f32 0.01, %v3959_v35  ;;  %vm1166_vm2 = vcmp.ge.f32.partialorder %v3854_v12, 0.0 }
 0x1ee   : > { %1994 = vmatmul.bf16.gmra.mxu3 %v3900_v30 }
 0x1ef   : > { %v2136_v33 = vmul.f32 %v3943_v10, %v2087_v56  ;;  %v4135_v56 = vperm.slane %v3924_v17, 2 }
 0x1f0   : > { %v1750_v50 = vpop.f32.mrf.mxu2  ;;  %v1086_v59 = vpop.f32.mrf.mxu0 }
 0x1f1   : > { %v2184_v46 = vadd.f32 %v2136_v33, %v1797_v1  ;;  %v1751_v24 = vadd.f32 %v1750_v50, %v3934_v16  ;;  %v1799_v36 = vpop.f32.mrf.mxu3  ;;  %v1087_v51 = vadd.f32 %v1086_v59, %v3917_v62  ;;  %v1135_v32 = vpop.f32.mrf.mxu1  ;;  %v1187_v62 = vmul.f32 0.01, %v3744_v55 }
 0x1f3   : > { %2232 = vst [vmem:[%s3955_s23 + $0x138] sm:$0xff] %v2184_v46  ;;  %v1800_v6 = vadd.f32 %v1799_v36, %v1751_v24  ;;  %v4117_v30 = vadd.f32 %v1135_v32, %v1087_v51  ;;  %v1235_v1 = vsel %vm1139_vm0, %v3744_v55, %v1187_v62  ;;  %vm1163_vm0 = vcmp.ge.f32.partialorder %v3840_v23, 0.0 }
 0x1f5   : > { %2042 = vst [vmem:[%s3947_s22 + $0x150] sm:$0xff] %v1800_v6  ;;  %v2090_v57 = vsub.f32 %v1276_v49, %v1800_v6  ;;  %v1236_v49 = vsel %vm1140_vm1, %v3928_v41, %v1188_v42  ;;  %vm1164_vm1 = vcmp.ge.f32.partialorder %v4031_v29, 0.0 }
 0x1f7   : > { %v2139_v14 = vmul.f32 %v3943_v10, %v2090_v57 }
 0x1f8   : > { %v1752_v4 = vpop.f32.mrf.mxu2  ;;  %v1813_v2 = vpop.f32.mrf.mxu0 }
 0x1f9   : > { %v2187_v15 = vadd.f32 %v2139_v14, %v1800_v6  ;;  %v1753_v8 = vadd.f32 %v1752_v4, %v3934_v16  ;;  %v1801_v28 = vpop.f32.mrf.mxu3  ;;  %v1814_v53 = vadd.f32 %v1813_v2, %v4121_v7  ;;  %v1862_v61 = vpop.f32.mrf.mxu1  ;;  %v1193_v2 = vmul.f32 0.01, %v3768_v39 }
 0x1fb   : > { %2235 = vst [vmem:[%s3955_s23 + $0x150] sm:$0xff] %v2187_v15  ;;  %v1802_v44 = vadd.f32 %v1801_v28, %v1753_v8  ;;  %v1863_v27 = vadd.f32 %v1862_v61, %v1814_v53  ;;  %v1191_v15 = vmul.f32 0.01, %v3945_v52 }
 0x1fd   : > { %2045 = vst [vmem:[%s3947_s22 + $0x168] sm:$0xff] %v1802_v44  ;;  %v2093_v18 = vsub.f32 %v1279_v58, %v1802_v44  ;;  %v2049_v16 = vsub.f32 %v1235_v1, %v1863_v27 }
 0x1fe   : > { %2001 = vst [vmem:[%s3947_s22 + $0x8] sm:$0xff] %v1863_v27 }
 0x1ff   : > { %v2142_v33 = vmul.f32 %v3943_v10, %v2093_v18  ;;  %v2098_v50 = vmul.f32 %v3943_v10, %v2049_v16  ;;  %v1239_v18 = vsel %vm1143_vm3, %v3945_v52, %v1191_v15  ;;  %vm1167_vm3 = vcmp.ge.f32.partialorder %v4045_v13, 0.0 }
 0x200   : > { %v1911_v46 = vpop.f32.mrf.mxu2  ;;  %v1815_v36 = vpop.f32.mrf.mxu0 }
 0x201   : > { %v2190_v55 = vadd.f32 %v2142_v33, %v1802_v44  ;;  %v1912_v17 = vadd.f32 %v1911_v46, %v4135_v56  ;;  %v1960_v24 = vpop.f32.mrf.mxu3  ;;  %v2146_v59 = vadd.f32 %v2098_v50, %v1863_v27  ;;  %v1816_v51 = vadd.f32 %v1815_v36, %v4121_v7  ;;  %v1864_v32 = vpop.f32.mrf.mxu1 }
 0x202   : > { %v1241_v33 = vsel %vm1145_vm4, %v3768_v39, %v1193_v2  ;;  %vm1169_vm4 = vcmp.ge.f32.partialorder %v3864_v34, 0.0 }
 0x203   : > { %2238 = vst [vmem:[%s3955_s23 + $0x168] sm:$0xff] %v2190_v55  ;;  %v1961_v6 = vadd.f32 %v1960_v24, %v1912_v17  ;;  %v1865_v57 = vadd.f32 %v1864_v32, %v1816_v51  ;;  %v1196_v24 = vmul.f32 0.01, %v3782_v3 }
 0x204   : > { %2194 = vst [vmem:[%s3955_s23 + $0x8] sm:$0xff] %v2146_v59 }
 0x205   : > { %2002 = vst [vmem:[%s3947_s22 + $0x10] sm:$0xff] %v1961_v6  ;;  %v2050_v14 = vsub.f32 %v1236_v49, %v1961_v6  ;;  %v2052_v4 = vsub.f32 %v1238_v11, %v1865_v57 }
 0x206   : > { %2004 = vst [vmem:[%s3947_s22 + $0x20] sm:$0xff] %v1865_v57 }
 0x207   : > { %v2099_v62 = vmul.f32 %v3943_v10, %v2050_v14  ;;  %v2101_v8 = vmul.f32 %v3943_v10, %v2052_v4  ;;  %v1244_v4 = vsel %vm1148_vm6, %v3782_v3, %v1196_v24  ;;  %vm1172_vm6 = vcmp.ge.f32.partialorder %v3878_v26, 0.0 }
 0x208   : > { %v1913_v28 = vpop.f32.mrf.mxu2  ;;  %v1818_v61 = vpop.f32.mrf.mxu0 }
 0x209   : > { %v2147_v41 = vadd.f32 %v2099_v62, %v1961_v6  ;;  %v1914_v19 = vadd.f32 %v1913_v28, %v4135_v56  ;;  %v1962_v53 = vpop.f32.mrf.mxu3  ;;  %v2149_v44 = vadd.f32 %v2101_v8, %v1865_v57  ;;  %v1819_v58 = vadd.f32 %v1818_v61, %v4121_v7  ;;  %v1867_v27 = vpop.f32.mrf.mxu1 }
 0x20a   : > { %v1242_v57 = vsel %vm1146_vm5, %v3959_v35, %v1194_v48  ;;  %v1197_v8 = vmul.f32 0.01, %v3973_v47  ;;  %vm1170_vm5 = vcmp.ge.f32.partialorder %v4055_v21, 0.0 }
 0x20b   : > { %2195 = vst [vmem:[%s3955_s23 + $0x10] sm:$0xff] %v2147_v41  ;;  %v1963_v1 = vadd.f32 %v1962_v53, %v1914_v19  ;;  %v1868_v16 = vadd.f32 %v1867_v27, %v1819_v58  ;;  %v1199_v41 = vmul.f32 0.01, %v3792_v25 }
 0x20c   : > { %2197 = vst [vmem:[%s3955_s23 + $0x20] sm:$0xff] %v2149_v44 }
 0x20d   : > { %2005 = vst [vmem:[%s3947_s22 + $0x28] sm:$0xff] %v1963_v1  ;;  %v2053_v42 = vsub.f32 %v1239_v18, %v1963_v1  ;;  %v2055_v50 = vsub.f32 %v1241_v33, %v1868_v16 }
 0x20e   : > { %2007 = vst [vmem:[%s3947_s22 + $0x38] sm:$0xff] %v1868_v16 }
 0x20f   : > { %v2102_v46 = vmul.f32 %v3943_v10, %v2053_v42  ;;  %v2104_v55 = vmul.f32 %v3943_v10, %v2055_v50 }
 0x210   : > { %v1916_v17 = vpop.f32.mrf.mxu2  ;;  %v1820_v59 = vpop.f32.mrf.mxu0 }
 0x211   : > { %v2150_v52 = vadd.f32 %v2102_v46, %v1963_v1  ;;  %v1917_v39 = vadd.f32 %v1916_v17, %v4135_v56  ;;  %v1965_v36 = vpop.f32.mrf.mxu3  ;;  %v2152_v51 = vadd.f32 %v2104_v55, %v1868_v16  ;;  %v1821_v32 = vadd.f32 %v1820_v59, %v4121_v7  ;;  %v1869_v6 = vpop.f32.mrf.mxu1 }
 0x212   : > { %v1245_v1 = vsel %vm1149_vm7, %v3973_v47, %v1197_v8  ;;  %v1247_v16 = vsel %vm1151_vm8, %v3792_v25, %v1199_v41  ;;  %v1200_v46 = vmul.f32 0.01, %v3983_v43  ;;  %v1202_v17 = vmul.f32 0.01, %v3806_v60 }
 0x213   : > { %2198 = vst [vmem:[%s3955_s23 + $0x28] sm:$0xff] %v2150_v52  ;;  %v1966_v49 = vadd.f32 %v1965_v36, %v1917_v39  ;;  %v1870_v14 = vadd.f32 %v1869_v6, %v1821_v32  ;;  %v1205_v8 = vmul.f32 0.01, %v3816_v22  ;;  %vm1173_vm7 = vcmp.ge.f32.partialorder %v4069_v40, 0.0 }
 0x214   : > { %2200 = vst [vmem:[%s3955_s23 + $0x38] sm:$0xff] %v2152_v51  ;;  %v1248_v32 = vsel %vm1152_vm9, %v3983_v43, %v1200_v46  ;;  %vm1175_vm8 = vcmp.ge.f32.partialorder %v3888_v45, 0.0  ;;  %vm1176_vm9 = vcmp.ge.f32.partialorder %v4079_v20, 0.0 }
 0x215   : > { %2008 = vst [vmem:[%s3947_s22 + $0x40] sm:$0xff] %v1966_v49  ;;  %v2056_v11 = vsub.f32 %v1242_v57, %v1966_v49  ;;  %v2058_v62 = vsub.f32 %v1244_v4, %v1870_v14  ;;  %v1250_v57 = vsel %vm1154_vm10, %v3806_v60, %v1202_v17  ;;  %v1203_v4 = vmul.f32 0.01, %v3997_v38 }
 0x216   : > { %2010 = vst [vmem:[%s3947_s22 + $0x50] sm:$0xff] %v1870_v14  ;;  %vm1178_vm10 = vcmp.ge.f32.partialorder %v3902_v31, 0.0 }
 0x217   : > { %v2105_v15 = vmul.f32 %v3943_v10, %v2056_v11  ;;  %v2107_v28 = vmul.f32 %v3943_v10, %v2058_v62 }
 0x218   : > { %v1918_v2 = vpop.f32.mrf.mxu2  ;;  %v1823_v53 = vpop.f32.mrf.mxu0 }
 0x219   : > { %v2153_v35 = vadd.f32 %v2105_v15, %v1966_v49  ;;  %v1919_v3 = vadd.f32 %v1918_v2, %v4135_v56  ;;  %v1967_v19 = vpop.f32.mrf.mxu3  ;;  %v2155_v61 = vadd.f32 %v2107_v28, %v1870_v14  ;;  %v1824_v44 = vadd.f32 %v1823_v53, %v4121_v7  ;;  %v1872_v58 = vpop.f32.mrf.mxu1 }
 0x21a   : > { %v1251_v53 = vsel %vm1155_vm11, %v3997_v38, %v1203_v4  ;;  %vm1179_vm11 = vcmp.ge.f32.partialorder %v4093_v54, 0.0 }
 0x21b   : > { %2201 = vst [vmem:[%s3955_s23 + $0x40] sm:$0xff] %v2153_v35  ;;  %v1968_v27 = vadd.f32 %v1967_v19, %v1919_v3  ;;  %v1873_v18 = vadd.f32 %v1872_v58, %v1824_v44  ;;  %v1253_v44 = vsel %vm1157_vm12, %v3816_v22, %v1205_v8  ;;  %vm1181_vm12 = vcmp.ge.f32.partialorder %v3912_v5, 0.0 }
 0x21c   : > { %2203 = vst [vmem:[%s3955_s23 + $0x50] sm:$0xff] %v2155_v61 }
 0x21d   : > { %2011 = vst [vmem:[%s3947_s22 + $0x58] sm:$0xff] %v1968_v27  ;;  %v2059_v33 = vsub.f32 %v1245_v1, %v1968_v27  ;;  %v2061_v42 = vsub.f32 %v1247_v16, %v1873_v18 }
 0x21e   : > { %2013 = vst [vmem:[%s3947_s22 + $0x68] sm:$0xff] %v1873_v18 }
 0x21f   : > { %v2108_v50 = vmul.f32 %v3943_v10, %v2059_v33  ;;  %v2110_v48 = vmul.f32 %v3943_v10, %v2061_v42  ;;  %v1208_v42 = vmul.f32 0.01, %v3830_v63 }
 0x220   : > { %v1921_v55 = vpop.f32.mrf.mxu2  ;;  %v1825_v52 = vpop.f32.mrf.mxu0 }
 0x221   : > { %v2156_v47 = vadd.f32 %v2108_v50, %v1968_v27  ;;  %v1922_v25 = vadd.f32 %v1921_v55, %v4135_v56  ;;  %v1970_v24 = vpop.f32.mrf.mxu3  ;;  %v2158_v39 = vadd.f32 %v2110_v48, %v1873_v18  ;;  %v1826_v36 = vadd.f32 %v1825_v52, %v4121_v7  ;;  %v1874_v59 = vpop.f32.mrf.mxu1 }
 0x222   : > { %v1206_v18 = vmul.f32 0.01, %v4007_v9 }
 0x223   : > { %2204 = vst [vmem:[%s3955_s23 + $0x58] sm:$0xff] %v2156_v47  ;;  %v1971_v51 = vadd.f32 %v1970_v24, %v1922_v25  ;;  %v1875_v6 = vadd.f32 %v1874_v59, %v1826_v36 }
 0x224   : > { %2206 = vst [vmem:[%s3955_s23 + $0x68] sm:$0xff] %v2158_v39  ;;  %v1254_v25 = vsel %vm1158_vm13, %v4007_v9, %v1206_v18  ;;  %v1256_v39 = vsel %vm1160_vm14, %v3830_v63, %v1208_v42  ;;  %vm1182_vm13 = vcmp.ge.f32.partialorder %v4103_v0, 0.0 }
 0x225   : > { %2014 = vst [vmem:[%s3947_s22 + $0x70] sm:$0xff] %v1971_v51  ;;  %v2062_v49 = vsub.f32 %v1248_v32, %v1971_v51  ;;  %v2064_v14 = vsub.f32 %v1250_v57, %v1875_v6 }
 0x226   : > { %2016 = vst [vmem:[%s3947_s22 + $0x80] sm:$0xff] %v1875_v6 }
 0x227   : > { %v2111_v11 = vmul.f32 %v3943_v10, %v2062_v49  ;;  %v2113_v62 = vmul.f32 %v3943_v10, %v2064_v14  ;;  %v1211_v49 = vmul.f32 0.01, %v3840_v23 }
 0x228   : > { %v1923_v15 = vpop.f32.mrf.mxu2  ;;  %v1828_v2 = vpop.f32.mrf.mxu0 }
 0x229   : > { %v2159_v43 = vadd.f32 %v2111_v11, %v1971_v51  ;;  %v1924_v60 = vadd.f32 %v1923_v15, %v4135_v56  ;;  %v1972_v28 = vpop.f32.mrf.mxu3  ;;  %v2161_v41 = vadd.f32 %v2113_v62, %v1875_v6  ;;  %v1829_v35 = vadd.f32 %v1828_v2, %v4121_v7  ;;  %v1877_v3 = vpop.f32.mrf.mxu1 }
 0x22a   : > { %v1209_v51 = vmul.f32 0.01, %v4021_v37 }
 0x22b   : > { %2207 = vst [vmem:[%s3955_s23 + $0x70] sm:$0xff] %v2159_v43  ;;  %v1973_v19 = vadd.f32 %v1972_v28, %v1924_v60  ;;  %v1878_v61 = vadd.f32 %v1877_v3, %v1829_v35  ;;  %v1259_v60 = vsel %vm1163_vm0, %v3840_v23, %v1211_v49  ;;  %v1212_v35 = vmul.f32 0.01, %v4031_v29 }
 0x22c   : > { %2209 = vst [vmem:[%s3955_s23 + $0x80] sm:$0xff] %v2161_v41  ;;  %v1257_v8 = vsel %vm1161_vm15, %v4021_v37, %v1209_v51  ;;  %vm1185_vm15 = vcmp.ge.f32.partialorder %v4117_v30, 0.0 }
 0x22d   : > { %2017 = vst [vmem:[%s3947_s22 + $0x88] sm:$0xff] %v1973_v19  ;;  %v2065_v58 = vsub.f32 %v1251_v53, %v1973_v19  ;;  %v2067_v27 = vsub.f32 %v1253_v44, %v1878_v61  ;;  %v1214_v53 = vmul.f32 0.01, %v3854_v12 }
 0x22e   : > { %2019 = vst [vmem:[%s3947_s22 + $0x98] sm:$0xff] %v1878_v61 }
 0x22f   : > { %v2114_v1 = vmul.f32 %v3943_v10, %v2065_v58  ;;  %v2116_v16 = vmul.f32 %v3943_v10, %v2067_v27 }
 0x230   : > { %v1926_v33 = vpop.f32.mrf.mxu2  ;;  %v1830_v46 = vpop.f32.mrf.mxu0 }
 0x231   : > { %v2162_v38 = vadd.f32 %v2114_v1, %v1973_v19  ;;  %v1927_v22 = vadd.f32 %v1926_v33, %v4135_v56  ;;  %v1975_v50 = vpop.f32.mrf.mxu3  ;;  %v2164_v48 = vadd.f32 %v2116_v16, %v1878_v61  ;;  %v1831_v55 = vadd.f32 %v1830_v46, %v4121_v7  ;;  %v1879_v17 = vpop.f32.mrf.mxu1 }
 0x232   : > { %v1260_v16 = vsel %vm1164_vm1, %v4031_v29, %v1212_v35  ;;  %v1215_v46 = vmul.f32 0.01, %v4045_v13 }
 0x233   : > { %2210 = vst [vmem:[%s3955_s23 + $0x88] sm:$0xff] %v2162_v38  ;;  %v1976_v47 = vadd.f32 %v1975_v50, %v1927_v22  ;;  %v1880_v24 = vadd.f32 %v1879_v17, %v1831_v55  ;;  %v1262_v38 = vsel %vm1166_vm2, %v3854_v12, %v1214_v53  ;;  %v1217_v17 = vmul.f32 0.01, %v3864_v34 }
 0x234   : > { %2212 = vst [vmem:[%s3955_s23 + $0x98] sm:$0xff] %v2164_v48  ;;  %v1221_v53 = vmul.f32 0.01, %v4069_v40 }
 0x235   : > { %2020 = vst [vmem:[%s3947_s22 + $0xa0] sm:$0xff] %v1976_v47  ;;  %v2068_v52 = vsub.f32 %v1254_v25, %v1976_v47  ;;  %v2070_v36 = vsub.f32 %v1256_v39, %v1880_v24 }
 0x236   : > { %2022 = vst [vmem:[%s3947_s22 + $0xb0] sm:$0xff] %v1880_v24 }
 0x237   : > { %v2117_v59 = vmul.f32 %v3943_v10, %v2068_v52  ;;  %v2119_v32 = vmul.f32 %v3943_v10, %v2070_v36 }
 0x238   : > { %v1928_v6 = vpop.f32.mrf.mxu2  ;;  %v1833_v14 = vpop.f32.mrf.mxu0 }
 0x239   : > { %v2165_v9 = vadd.f32 %v2117_v59, %v1976_v47  ;;  %v1929_v63 = vadd.f32 %v1928_v6, %v4135_v56  ;;  %v1977_v57 = vpop.f32.mrf.mxu3  ;;  %v2167_v11 = vadd.f32 %v2119_v32, %v1880_v24  ;;  %v1834_v4 = vadd.f32 %v1833_v14, %v4121_v7  ;;  %v1882_v62 = vpop.f32.mrf.mxu1 }
 0x23a   : > { %v1263_v59 = vsel %vm1167_vm3, %v4045_v13, %v1215_v46  ;;  %v1265_v32 = vsel %vm1169_vm4, %v3864_v34, %v1217_v17  ;;  %v1220_v13 = vmul.f32 0.01, %v3878_v26 }
 0x23b   : > { %2213 = vst [vmem:[%s3955_s23 + $0xa0] sm:$0xff] %v2165_v9  ;;  %v1978_v15 = vadd.f32 %v1977_v57, %v1929_v63  ;;  %v1883_v43 = vadd.f32 %v1882_v62, %v1834_v4  ;;  %v1218_v63 = vmul.f32 0.01, %v4055_v21 }
 0x23c   : > { %2215 = vst [vmem:[%s3955_s23 + $0xb0] sm:$0xff] %v2167_v11  ;;  %v1268_v35 = vsel %vm1172_vm6, %v3878_v26, %v1220_v13 }
 0x23d   : > { %2023 = vst [vmem:[%s3947_s22 + $0xb8] sm:$0xff] %v1978_v15  ;;  %v2071_v28 = vsub.f32 %v1257_v8, %v1978_v15  ;;  %v2073_v2 = vsub.f32 %v1259_v60, %v1883_v43 }
 0x23e   : > { %2025 = vst [vmem:[%s3947_s22 + $0xc8] sm:$0xff] %v1883_v43 }
 0x23f   : > { %v2120_v41 = vmul.f32 %v3943_v10, %v2071_v28  ;;  %v2122_v3 = vmul.f32 %v3943_v10, %v2073_v2  ;;  %v1266_v28 = vsel %vm1170_vm5, %v4055_v21, %v1218_v63 }
 0x240   : > { %v1931_v19 = vpop.f32.mrf.mxu2  ;;  %v1835_v44 = vpop.f32.mrf.mxu0 }
 0x241   : > { %v2168_v37 = vadd.f32 %v2120_v41, %v1978_v15  ;;  %v1932_v23 = vadd.f32 %v1931_v19, %v4135_v56  ;;  %v1980_v61 = vpop.f32.mrf.mxu3  ;;  %v2170_v58 = vadd.f32 %v2122_v3, %v1883_v43  ;;  %v1836_v27 = vadd.f32 %v1835_v44, %v4121_v7  ;;  %v1884_v1 = vpop.f32.mrf.mxu1 }
 0x243   : > { %2216 = vst [vmem:[%s3955_s23 + $0xb8] sm:$0xff] %v2168_v37  ;;  %v1981_v18 = vadd.f32 %v1980_v61, %v1932_v23  ;;  %v1885_v33 = vadd.f32 %v1884_v1, %v1836_v27  ;;  %v1223_v61 = vmul.f32 0.01, %v3888_v45 }
 0x244   : > { %2218 = vst [vmem:[%s3955_s23 + $0xc8] sm:$0xff] %v2170_v58 }
 0x245   : > { %2026 = vst [vmem:[%s3947_s22 + $0xd0] sm:$0xff] %v1981_v18  ;;  %v2074_v42 = vsub.f32 %v1260_v16, %v1981_v18  ;;  %v2076_v22 = vsub.f32 %v1262_v38, %v1885_v33  ;;  %v1271_v38 = vsel %vm1175_vm8, %v3888_v45, %v1223_v61 }
 0x246   : > { %2028 = vst [vmem:[%s3947_s22 + $0xe0] sm:$0xff] %v1885_v33 }
 0x247   : > { %v2123_v50 = vmul.f32 %v3943_v10, %v2074_v42  ;;  %v2125_v48 = vmul.f32 %v3943_v10, %v2076_v22 }
 0x248   : > { %v1933_v55 = vpop.f32.mrf.mxu2  ;;  %v1838_v25 = vpop.f32.mrf.mxu0 }
 0x249   : > { %v2171_v29 = vadd.f32 %v2123_v50, %v1981_v18  ;;  %v1934_v12 = vadd.f32 %v1933_v55, %v4135_v56  ;;  %v1982_v47 = vpop.f32.mrf.mxu3  ;;  %v2173_v24 = vadd.f32 %v2125_v48, %v1885_v33  ;;  %v1839_v52 = vadd.f32 %v1838_v25, %v4121_v7  ;;  %v1887_v39 = vpop.f32.mrf.mxu1 }
 0x24a   : > { %v1269_v33 = vsel %vm1173_vm7, %v4069_v40, %v1221_v53  ;;  %v1224_v48 = vmul.f32 0.01, %v4079_v20  ;;  %v1226_v40 = vmul.f32 0.01, %v3902_v31  ;;  %v4441_v53 = vld [vmem:[#allocation23_spill] sm:$0xff] }
 0x24b   : > { %2219 = vst [vmem:[%s3955_s23 + $0xd0] sm:$0xff] %v2171_v29  ;;  %v1983_v36 = vadd.f32 %v1982_v47, %v1934_v12  ;;  %v1888_v51 = vadd.f32 %v1887_v39, %v1839_v52  ;;  %vm1184_vm14 = vcmp.ge.f32.partialorder %v4441_v53, 0.0 }
 0x24c   : > { %2221 = vst [vmem:[%s3955_s23 + $0xe0] sm:$0xff] %v2173_v24 }
 0x24d   : > { %2029 = vst [vmem:[%s3947_s22 + $0xe8] sm:$0xff] %v1983_v36  ;;  %v2077_v6 = vsub.f32 %v1263_v59, %v1983_v36  ;;  %v2079_v49 = vsub.f32 %v1265_v32, %v1888_v51  ;;  %v1274_v32 = vsel %vm1178_vm10, %v3902_v31, %v1226_v40 }
 0x24e   : > { %2031 = vst [vmem:[%s3947_s22 + $0xf8] sm:$0xff] %v1888_v51 }
 0x24f   : > { %v2126_v9 = vmul.f32 %v3943_v10, %v2077_v6  ;;  %v2128_v57 = vmul.f32 %v3943_v10, %v2079_v49 }
 0x250   : > { %v1936_v14 = vpop.f32.mrf.mxu2  ;;  %v1840_v62 = vpop.f32.mrf.mxu0 }
 0x251   : > { %v2174_v11 = vadd.f32 %v2126_v9, %v1983_v36  ;;  %v1937_v34 = vadd.f32 %v1936_v14, %v4135_v56  ;;  %v1985_v4 = vpop.f32.mrf.mxu3  ;;  %v2176_v15 = vadd.f32 %v2128_v57, %v1888_v51  ;;  %v1841_v8 = vadd.f32 %v1840_v62, %v4121_v7  ;;  %v1889_v43 = vpop.f32.mrf.mxu1 }
 0x252   : > { %v1272_v36 = vsel %vm1176_vm9, %v4079_v20, %v1224_v48  ;;  %v1227_v9 = vmul.f32 0.01, %v4093_v54  ;;  %v1229_v14 = vmul.f32 0.01, %v3912_v5 }
 0x253   : > { %2222 = vst [vmem:[%s3955_s23 + $0xe8] sm:$0xff] %v2174_v11  ;;  %v1986_v60 = vadd.f32 %v1985_v4, %v1937_v34  ;;  %v1890_v2 = vadd.f32 %v1889_v43, %v1841_v8 }
 0x254   : > { %2224 = vst [vmem:[%s3955_s23 + $0xf8] sm:$0xff] %v2176_v15  ;;  %v1275_v8 = vsel %vm1179_vm11, %v4093_v54, %v1227_v9  ;;  %v1232_v54 = vmul.f32 0.01, %v4441_v53 }
 0x255   : > { %2032 = vst [vmem:[%s3947_s22 + $0x100] sm:$0xff] %v1986_v60  ;;  %v2080_v41 = vsub.f32 %v1266_v28, %v1986_v60  ;;  %v2082_v3 = vsub.f32 %v1268_v35, %v1890_v2  ;;  %v1230_v35 = vmul.f32 0.01, %v4103_v0 }
 0x256   : > { %2034 = vst [vmem:[%s3947_s22 + $0x110] sm:$0xff] %v1890_v2 }
 0x257   : > { %v2129_v19 = vmul.f32 %v3943_v10, %v2080_v41  ;;  %v2131_v37 = vmul.f32 %v3943_v10, %v2082_v3 }
 0x258   : > { %v1938_v23 = vpop.f32.mrf.mxu2  ;;  %v1843_v58 = vpop.f32.mrf.mxu0 }
 0x259   : > { %v2177_v21 = vadd.f32 %v2129_v19, %v1986_v60  ;;  %v1939_v26 = vadd.f32 %v1938_v23, %v4135_v56  ;;  %v1987_v44 = vpop.f32.mrf.mxu3  ;;  %v2179_v27 = vadd.f32 %v2131_v37, %v1890_v2  ;;  %v1844_v1 = vadd.f32 %v1843_v58, %v4121_v7  ;;  %v1892_v18 = vpop.f32.mrf.mxu1 }
 0x25a   : > { %v1277_v60 = vsel %vm1181_vm12, %v3912_v5, %v1229_v14 }
 0x25b   : > { %2225 = vst [vmem:[%s3955_s23 + $0x100] sm:$0xff] %v2177_v21  ;;  %v1988_v16 = vadd.f32 %v1987_v44, %v1939_v26  ;;  %v1893_v42 = vadd.f32 %v1892_v18, %v1844_v1 }
 0x25c   : > { %2227 = vst [vmem:[%s3955_s23 + $0x110] sm:$0xff] %v2179_v27  ;;  %v1278_v27 = vsel %vm1182_vm13, %v4103_v0, %v1230_v35 }
 0x25d   : > { %2035 = vst [vmem:[%s3947_s22 + $0x118] sm:$0xff] %v1988_v16  ;;  %v2083_v22 = vsub.f32 %v1269_v33, %v1988_v16  ;;  %v2085_v50 = vsub.f32 %v1271_v38, %v1893_v42 }
 0x25e   : > { %2037 = vst [vmem:[%s3947_s22 + $0x128] sm:$0xff] %v1893_v42 }
 0x25f   : > { %v2132_v46 = vmul.f32 %v3943_v10, %v2083_v22  ;;  %v2134_v55 = vmul.f32 %v3943_v10, %v2085_v50 }
 0x260   : > { %v1941_v17 = vpop.f32.mrf.mxu2  ;;  %v1845_v47 = vpop.f32.mrf.mxu0 }
 0x261   : > { %v2180_v29 = vadd.f32 %v2132_v46, %v1988_v16  ;;  %v1942_v45 = vadd.f32 %v1941_v17, %v4135_v56  ;;  %v1990_v12 = vpop.f32.mrf.mxu3  ;;  %v2182_v25 = vadd.f32 %v2134_v55, %v1893_v42  ;;  %v1846_v24 = vadd.f32 %v1845_v47, %v4121_v7  ;;  %v1894_v52 = vpop.f32.mrf.mxu1 }
 0x262   : > { %v1280_v16 = vsel %vm1184_vm14, %v4441_v53, %v1232_v54  ;;  %v1233_v42 = vmul.f32 0.01, %v4117_v30 }
 0x263   : > { %2228 = vst [vmem:[%s3955_s23 + $0x118] sm:$0xff] %v2180_v29  ;;  %v1991_v39 = vadd.f32 %v1990_v12, %v1942_v45  ;;  %v1895_v59 = vadd.f32 %v1894_v52, %v1846_v24 }
 0x264   : > { %2230 = vst [vmem:[%s3955_s23 + $0x128] sm:$0xff] %v2182_v25  ;;  %v1281_v17 = vsel %vm1185_vm15, %v4117_v30, %v1233_v42 }
 0x265   : > { %2038 = vst [vmem:[%s3947_s22 + $0x130] sm:$0xff] %v1991_v39  ;;  %v2086_v51 = vsub.f32 %v1272_v36, %v1991_v39  ;;  %v2088_v6 = vsub.f32 %v1274_v32, %v1895_v59 }
 0x266   : > { %2040 = vst [vmem:[%s3947_s22 + $0x140] sm:$0xff] %v1895_v59 }
 0x267   : > { %v2135_v49 = vmul.f32 %v3943_v10, %v2086_v51  ;;  %v2137_v63 = vmul.f32 %v3943_v10, %v2088_v6 }
 0x268   : > { %v1943_v57 = vpop.f32.mrf.mxu2  ;;  %v1848_v11 = vpop.f32.mrf.mxu0 }
 0x269   : > { %v2183_v20 = vadd.f32 %v2135_v49, %v1991_v39  ;;  %v1944_v31 = vadd.f32 %v1943_v57, %v4135_v56  ;;  %v1992_v13 = vpop.f32.mrf.mxu3  ;;  %v2185_v34 = vadd.f32 %v2137_v63, %v1895_v59  ;;  %v1849_v4 = vadd.f32 %v1848_v11, %v4121_v7  ;;  %v1897_v62 = vpop.f32.mrf.mxu1 }
 0x26b   : > { %2231 = vst [vmem:[%s3955_s23 + $0x130] sm:$0xff] %v2183_v20  ;;  %v1993_v15 = vadd.f32 %v1992_v13, %v1944_v31  ;;  %v1898_v43 = vadd.f32 %v1897_v62, %v1849_v4 }
 0x26c   : > { %2233 = vst [vmem:[%s3955_s23 + $0x140] sm:$0xff] %v2185_v34 }
 0x26d   : > { %2041 = vst [vmem:[%s3947_s22 + $0x148] sm:$0xff] %v1993_v15  ;;  %v2089_v28 = vsub.f32 %v1275_v8, %v1993_v15  ;;  %v2091_v2 = vsub.f32 %v1277_v60, %v1898_v43 }
 0x26e   : > { %2043 = vst [vmem:[%s3947_s22 + $0x158] sm:$0xff] %v1898_v43 }
 0x26f   : > { %v2138_v41 = vmul.f32 %v3943_v10, %v2089_v28  ;;  %v2140_v3 = vmul.f32 %v3943_v10, %v2091_v2 }
 0x270   : > { %v1946_v19 = vpop.f32.mrf.mxu2  ;;  %v1850_v61 = vpop.f32.mrf.mxu0 }
 0x271   : > { %v2186_v37 = vadd.f32 %v2138_v41, %v1993_v15  ;;  %v1947_v5 = vadd.f32 %v1946_v19, %v4135_v56  ;;  %v1995_v23 = vpop.f32.mrf.mxu3  ;;  %v2188_v21 = vadd.f32 %v2140_v3, %v1898_v43  ;;  %v1851_v26 = vadd.f32 %v1850_v61, %v4121_v7  ;;  %v1899_v58 = vpop.f32.mrf.mxu1 }
 0x273   : > { %2234 = vst [vmem:[%s3955_s23 + $0x148] sm:$0xff] %v2186_v37  ;;  %v1996_v44 = vadd.f32 %v1995_v23, %v1947_v5  ;;  %v1900_v1 = vadd.f32 %v1899_v58, %v1851_v26 }
 0x274   : > { %2236 = vst [vmem:[%s3955_s23 + $0x158] sm:$0xff] %v2188_v21 }
 0x275   : > { %2044 = vst [vmem:[%s3947_s22 + $0x160] sm:$0xff] %v1996_v44  ;;  %v2092_v18 = vsub.f32 %v1278_v27, %v1996_v44  ;;  %v2094_v33 = vsub.f32 %v1280_v16, %v1900_v1 }
 0x276   : > { %2046 = vst [vmem:[%s3947_s22 + $0x170] sm:$0xff] %v1900_v1 }
 0x277   : > { %v2141_v7 = vmul.f32 %v3943_v10, %v2092_v18  ;;  %v2143_v0 = vmul.f32 %v3943_v10, %v2094_v33 }
 0x278   : > { %v1948_v38 = vpop.f32.mrf.mxu2 }
 0x279   : > { %v2189_v22 = vadd.f32 %v2141_v7, %v1996_v44  ;;  %v1949_v50 = vadd.f32 %v1948_v38, %v4135_v56  ;;  %v2191_v46 = vadd.f32 %v2143_v0, %v1900_v1  ;;  %v1997_v48 = vpop.f32.mrf.mxu3 }
 0x27b   : > { %2237 = vst [vmem:[%s3955_s23 + $0x160] sm:$0xff] %v2189_v22  ;;  %v1998_v55 = vadd.f32 %v1997_v48, %v1949_v50 }
 0x27c   : > { %2239 = vst [vmem:[%s3955_s23 + $0x170] sm:$0xff] %v2191_v46 }
 0x27d   : > { %2047 = vst [vmem:[%s3947_s22 + $0x178] sm:$0xff] %v1998_v55  ;;  %v2095_v40 = vsub.f32 %v1281_v17, %v1998_v55 }
 0x27e   : > { %3332 = shalt.err (!%p3329_p9)
}
 0x27f   : > { %s3423_s22 = smov 384   ;;  %s3424_s25 = smov 24   ;;  %v2144_v30 = vmul.f32 %v3943_v10, %v2095_v40 }
 0x280   : > { %3115 = dma.vmem_to_hbm [thread:$0]  (%p3539_p3), %s2279_s15, 6144, %s2281_s18, %s2247_s17, %s3423_s22, %s3423_s22, %s3424_s25  }
 0x281   : > { %v2192_v56 = vadd.f32 %v2144_v30, %v1998_v55  ;;  %s2242_s28 = scalar_lea.sflag [#allocation5], %s3595_s9  ;;  %s3347_s0 = sshra.s32 %s2263_s5, 4  ;;  %s3348_s0 = int_to_ptr.hbm [resolvable:$true] %s3347_s0 }
 0x282   : > { %s3349_s20 = scalar_lea.hbm %s3348_s0, 384  ;;  %s3353_s12 = scalar_lea.hbm %s4418_s7, 768 }
 0x283   : > { %2240 = vst [vmem:[%s3955_s23 + $0x178] sm:$0xff] %v2192_v56  ;;  %p3350_p12 = scmp.ne.s32.totalorder %s3348_s0, %s3349_s20  ;;  %p3354_p5 = scmp.lt.s32.totalorder %s3348_s0, %s4418_s7 }
 0x284   : > { %p3355_p7 = scmp.lt.s32.totalorder %s3353_s12, %s3349_s20 }
 0x285   : > { %p3351_p13 = pnand %p3350_p12, %p3539_p3 }
 0x286   : > { %p3356_p1 = por %p3355_p7, %p3354_p5 }
 0x287   : > { %p3352_p0 = pneg %p3351_p13 }
 0x289   : > { %p3357_p4 = pnand %p3356_p1, %p3352_p0 }
 0x28b   : > { %3360 = shalt.err (!%p3357_p4)
}
 0x28c   : > { %3114 = dma.vmem_to_hbm [thread:$0]  (%p3539_p3), %s2261_s1, 6144, %s2263_s5, %s2242_s28, %s3423_s22, %s3423_s22, %s3424_s25  }
 0x28d PF: > { %s2295_s9 = sand.u32 1, %s3403_s29   ;;  %p4442_p8 = scmp.ge.s32.totalorder %s3415_s10, 2 }
 0x28e   : > { %s2296_s23 = scalar_lea.sflag [#allocation5], %s2295_s9 }
 0x28f   : > { %p3133_p2 = pnand %p4442_p8, %p3508_p6 }
 0x291   : > { %p3134_p10 = pneg %p3133_p2 }
 0x293   : > { %3394 = dma.done.wait (%p3134_p10), %s2296_s23, 6144  }
 0x294   : > { %3396 = vsyncadd (%p3134_p10), %s2296_s23, 4294961152  ;;  %s2306_s18 = scalar_lea.sflag [#allocation13], %s2295_s9 }
 0x295   : > { %3398 = dma.done.wait (%p3134_p10), %s2306_s18, 6144  }
 0x296   : > { %3400 = vsyncadd (%p3134_p10), %s2306_s18, 4294961152  ;;  %s4443_s10 = sld [smem:[#allocation21_spill]]  ;;  %s4446_s29 = smov %s3407_s30 }
 0x297   : > { %s4444_s17 = sld [smem:[#allocation20_spill]] }
 0x298   : > { %s4445_s9 = sld [smem:[#allocation22_spill]] }
 0x29c   : > { %p30_p3 = scmp.ge.s32.totalorder %s4443_s10, 4  }
 0x29d   : > { %s4447_s30 = smov %s4444_s17 }
 0x29e   :  { %32 = sbr.rel (!%p30_p3) target bundleno = 15 (0xf), region = 131 }
 0x2a3   :  { %2312 = vsyncpa [#allocation4], 1 }
 0x2a4   :  { %2314 = vsyncpa [#allocation4 + $0x1], 1 }
 0x2a5   :  { %2315 = vsyncpa [#allocation7], 1 }
 0x2a6   :  { %2317 = vsyncpa [#allocation7 + $0x1], 1 }
 0x2a7   :  { %2318 = vsyncpa [#allocation10], 1 }
 0x2a8   :  { %2319 = vsyncpa [#allocation5], 1 }
 0x2a9   :  { %2321 = vsyncpa [#allocation5 + $0x1], 1 }
 0x2aa   :  { %2322 = vsyncpa [#allocation13], 1 }
 0x2ab   :  { %2324 = vsyncpa [#allocation13 + $0x1], 1 }

// kernel: tpu_custom_call.1
= control target key start
LH: loop header
LB: loop body
LE: loop exit
PB: predicated region body
PF: predicated region fallthrough
CT: control target
= control target key end

     0   :  { %s5084_s0 = inlined_call_operand.<no memory space> [shape: f32[1,1], index: 0, kind: input, shape index: {}]   ;;  %s5085_s1 = inlined_call_operand.hbm [shape: bf16[256,256], index: 1, kind: input, shape index: {}]   ;;  %s5086_s2 = inlined_call_operand.hbm [shape: bf16[256,256], index: 2, kind: input, shape index: {}]   ;;  %s5087_s3 = inlined_call_operand.hbm [shape: bf16[256,384], index: 3, kind: input, shape index: {}]   ;;  %s5088_s4 = inlined_call_operand.vmem [shape: f32[1,384], index: 4, kind: input, shape index: {}]   ;;  %s5089_s5 = inlined_call_operand.hbm [shape: bf16[256,384], index: 5, kind: input, shape index: {}]   ;;  %s5090_s6 = inlined_call_operand.vmem [shape: f32[1,384], index: 6, kind: input, shape index: {}]   ;;  %s5091_s7 = inlined_call_operand.hbm [shape: f32[256,384], index: 7, kind: output, shape index: {0}]   ;;  %s5092_s8 = inlined_call_operand.hbm [shape: f32[256,384], index: 8, kind: output, shape index: {1}]  }
   0x1   :  { %5097 = sst [smem:[#allocation30_spill]] %s5087_s3 }
   0x2   :  { %5098 = sst [smem:[#allocation31_spill]] %s5089_s5 }
   0x3   :  { %14 = sst [smem:[#allocation4]] %s5084_s0 }
   0x4   :  { %15 = vsyncpa [#allocation6], 0 }
   0x5   :  { %17 = vsyncpa [#allocation6 + $0x1], 0 }
   0x6   :  { %18 = vsyncpa [#allocation9], 0 }
   0x7   :  { %20 = vsyncpa [#allocation9 + $0x1], 0 }
   0x8   :  { %21 = vsyncpa [#allocation12], 0 }
   0x9   :  { %22 = vsyncpa [#allocation7], 0 }
   0xa   :  { %24 = vsyncpa [#allocation7 + $0x1], 0 }
   0xb   :  { %25 = vsyncpa [#allocation15], 0 }
   0xc   :  { %27 = vsyncpa [#allocation15 + $0x1], 0  ;;  %s4255_s29 = smov 0   ;;  %s4257_s30 = smov 0  }
   0xd   :  { %s4259_s9 = smov 0   ;;  %s4261_s10 = smov 0  }
   0xe   :  { %s4263_s11 = smov 0   ;;  %s4265_s0 = smov 0  }
   0xf LB: > { %5099 = sst [smem:[#allocation22_spill]] %s4185_s9  ;;  %s4286_s12 = sadd.s32 4294967295, %s4197_s0   ;;  %s4197_s0 = sphi %s4265_s0, %s33_s0   ;;  %s4193_s11 = sphi %s4263_s11, %s5121_s11   ;;  %s4189_s10 = sphi %s4261_s10, %s5120_s10   ;;  %s4185_s9 = sphi %s4259_s9, %s5119_s9   ;;  %s4181_s30 = sphi %s4257_s30, %s5123_s30   ;;  %s4177_s29 = sphi %s4255_s29, %s5122_s29  }
  0x10   : > { %5100 = sst [smem:[#allocation23_spill]] %s4193_s11  ;;  %s3177_s13 = sadd.s32 4294967294, %s4197_s0  }
  0x11   : > { %p95_p0 = scmp.ne.s32.totalorder %s4181_s30, %s4177_s29  ;;  %p96_p1 = scmp.eq.s32.totalorder %s4286_s12, 0 }
  0x12   : > { %p257_p2 = scmp.eq.s32.totalorder %s4286_s12, 1  ;;  %p263_p3 = scmp.eq.s32.totalorder %s3177_s13, 1 }
  0x13   : > { %p4295_p4 = por %p96_p1, %p95_p0  ;;  %p3178_p5 = scmp.ge.s32.totalorder %s4197_s0, 1 }
  0x14   : > { %p4300_p6 = por %p263_p3, %p95_p0  ;;  %p298_p7 = scmp.lt.s32.totalorder %s4197_s0, 3 }
  0x15   : > { %s5104_s3 = sld [smem:[#allocation30_spill]]  ;;  %s4199_s20 = smov [#allocation10]  }
  0x16   : > { %s5102_s15 = scalar_select %p4300_p6, 1, 0 }
  0x17   : > { %p4308_p8 = pnand %p3178_p5, %p298_p7  ;;  %s320_s21 = sshll.u32 %s4199_s20, 4  ;;  %s321_s21 = int_to_ptr.vmem [resolvable:$true] %s320_s21 }
  0x18   : > { %5103 = sst [smem:[#allocation24_spill]] %s5102_s15  ;;  %p3183_p11 = scmp.ge.s32.totalorder %s4197_s0, 2 }
  0x19   : > { %p3868_p9 = pneg %p4308_p8  ;;  %s5106_s5 = sld [smem:[#allocation31_spill]] }
  0x1a   : > { %s4200_s25 = smov 192   ;;  %s4201_s26 = smov 12  }
  0x1b   : > { %s318_s18 = sshll.u32 %s5104_s3, 4  ;;  %p3869_p10 = pnand %p3868_p9, %p96_p1  ;;  %s319_s18 = int_to_ptr.hbm [resolvable:$true] %s318_s18 }
  0x1c   : > { %s4202_s27 = smov [#allocation11]   ;;  %s52_s13 = sadd.s32 1, %s4193_s11 }
  0x1d   : > { %3871 = dma.hbm_to_vmem [thread:$0]  (!%p3869_p10), %s319_s18, 6144, %s321_s21, [#allocation9], %s4200_s25, %s4200_s25, %s4201_s26  }
  0x1e   : > { %s348_s28 = sshll.u32 %s4202_s27, 4  ;;  %s82_s16 = sadd.s32 1, %s4185_s9  ;;  %s349_s28 = int_to_ptr.vmem [resolvable:$true] %s348_s28 }
  0x1f   : > { %s346_s24 = sshll.u32 %s5106_s5, 4  ;;  %p54_p12 = scmp.ge.s32.totalorder %s52_s13, 2  ;;  %s347_s24 = int_to_ptr.hbm [resolvable:$true] %s346_s24 }
  0x20   : > { %3874 = dma.hbm_to_vmem [thread:$0]  (!%p3869_p10), %s347_s24, 6144, %s349_s28, [#allocation12], %s4200_s25, %s4200_s25, %s4201_s26  }
  0x21   : > { %p89_p13 = scmp.ne.s32.totalorder %s4185_s9, %s4181_s30  ;;  %p90_p0 = scmp.eq.s32.totalorder %s4197_s0, 0 }
  0x22   : > { %p3891_p3 = scmp.lt.s32.totalorder %s4197_s0, 2  ;;  %s5125_s13 = smov (%p54_p12, %s52_s13), 0 }
  0x23   : > { %5107 = sst [smem:[#allocation25_spill]] %s5125_s13  ;;  %p4328_p5 = por %p90_p0, %p89_p13 }
  0x24   : > { %p4334_p7 = por %p257_p2, %p89_p13  ;;  %s77_s20 = ssub.s32 %s4193_s11, %s5125_s13 }
  0x25   : > { %s370_s21 = sand.u32 1, %s4185_s9   ;;  %p80_p9 = scmp.eq.s32.totalorder %s77_s20, 0 }
  0x26   : > { %s3184_s22 = sshll.u32 %s370_s21, 7  ;;  %s3718_s23 = sshll.u32 %s4193_s11, 7 }
  0x27   : > { %s4343_s24 = scalar_select %p80_p9, %s4185_s9, %s82_s16  }
  0x28   : > { %s382_s27 = scalar_lea.hbm %s5085_s1, %s3718_s23  ;;  %s374_s3 = scalar_lea.vmem [#allocation5], %s3184_s22 }
  0x29   : > { %5110 = sst [smem:[#allocation26_spill]] %s4343_s24  ;;  %s383_s28 = sshll.u32 %s382_s27, 4  ;;  %s384_s28 = int_to_ptr.hbm [resolvable:$true] %s383_s28 }
  0x2a   : > { %s385_s5 = sshll.u32 %s374_s3, 4  ;;  %p3876_p2 = pnand %p3891_p3, %p4328_p5  ;;  %s386_s5 = int_to_ptr.vmem [resolvable:$true] %s385_s5 }
  0x2b   : > { %s407_s20 = scalar_lea.hbm %s5086_s2, %s3718_s23  ;;  %s371_s11 = scalar_lea.sflag [#allocation6], %s370_s21 }
  0x2c   : > { %s4203_s16 = smov 128   ;;  %s4204_s24 = smov 8  }
  0x2d   : > { %3878 = dma.hbm_to_vmem [thread:$0]  (!%p3876_p2), %s384_s28, 2048, %s386_s5, %s371_s11, %s4203_s16, %s4203_s16, %s4204_s24  }
  0x2e   : > { %s408_s9 = sshll.u32 %s407_s20, 4  ;;  %s399_s25 = scalar_lea.vmem [#allocation8], %s3184_s22  ;;  %s409_s9 = int_to_ptr.hbm [resolvable:$true] %s408_s9 }
  0x2f   : > { %s410_s26 = sshll.u32 %s399_s25, 4  ;;  %s395_s27 = sand.u32 1, %s4197_s0   ;;  %s411_s26 = int_to_ptr.vmem [resolvable:$true] %s410_s26 }
  0x30   : > { %s396_s3 = scalar_lea.sflag [#allocation9], %s395_s27  ;;  %422 = sbr.rel (%p4308_p8) target bundleno = 629 (0x275), region = 48 }
  0x31   : > { %3881 = dma.hbm_to_vmem [thread:$0]  (!%p3876_p2), %s409_s9, 2048, %s411_s26, %s396_s3, %s4203_s16, %s4203_s16, %s4204_s24  }
  0x35   : > { %s4359_s17 = sand.u32 1, %s4181_s30  }
  0x36   : > { %s3193_s15 = sshll.u32 %s4359_s17, 7  ;;  %s425_s13 = scalar_lea.sflag [#allocation6], %s4359_s17 }
  0x37   : > { %s4363_s5 = scalar_lea.vmem [#allocation5], %s3193_s15 }
  0x38   : > { %4152 = dma.done.wait (%p4295_p4), %s425_s13, 2048  }
  0x39   : > { %4154 = vsyncadd (%p4295_p4), %s425_s13, 4294965248  ;;  %s434_s9 = sand.u32 1, %s4286_s12   ;;  %s4370_s19 = scalar_lea.vmem [#allocation8], %s3193_s15 }
  0x3a   : > { %s435_s11 = scalar_lea.sflag [#allocation9], %s434_s9 }
  0x3b   : > { %4156 = dma.done.wait (%p4295_p4), %s435_s11, 2048  }
  0x3c   : > { %4158 = vsyncadd (%p4295_p4), %s435_s11, 4294965248 }
  0x3d   : > { %4160 = dma.done.wait (%p96_p1), [#allocation9], 6144  }
  0x3e   : > { %4162 = vsyncadd (%p96_p1), [#allocation9], 4294961152 }
  0x3f   : > { %4164 = dma.done.wait (%p96_p1), [#allocation12], 6144  }
  0x40   : > { %4166 = vsyncadd (%p96_p1), [#allocation12], 4294961152  ;;  %v3347_v0 = vld [vmem:[#allocation10 + $0xa8] sm:$0xf]  ;;  %v3759_v1 = vld [vmem:[#allocation10 + $0xb0] sm:$0xf0] }
  0x41   : > { %v3443_v2 = vld [vmem:[#allocation10 + $0x168] sm:$0xf]  ;;  %v3348_v3 = vor.u32 %v3759_v1, %v3347_v0  ;;  %v3783_v4 = vld [vmem:[#allocation10 + $0x170] sm:$0xf0]  ;;  %v3758_v5 = vld [vmem:[#allocation10 + $0xac] sm:$0xf] }
  0x42   : > { %v3349_v6 = vld [vmem:[#allocation10 + $0xb4] sm:$0xf0]  ;;  %v3444_v7 = vor.u32 %v3783_v4, %v3443_v2  ;;  %v3782_v9 = vld [vmem:[#allocation10 + $0x16c] sm:$0xf]  ;;  %v3335_v11 = vld [vmem:[#allocation10 + $0x90] sm:$0xf] }
  0x43   : > { %v3352_v8 = vor.u32 %v3758_v5, %v3349_v6  ;;  %v3445_v10 = vld [vmem:[#allocation10 + $0x174] sm:$0xf0]  ;;  %1086 = vmatpush.bf16.msra.mxu0 %v3348_v3  ;;  %v3756_v13 = vld [vmem:[#allocation10 + $0x98] sm:$0xf0]  ;;  %v3431_v14 = vld [vmem:[#allocation10 + $0x150] sm:$0xf] }
  0x44   : > { %v3448_v12 = vor.u32 %v3782_v9, %v3445_v10  ;;  %v3780_v15 = vld [vmem:[#allocation10 + $0x158] sm:$0xf0]  ;;  %1135 = vmatpush.bf16.msra.mxu1 %v3444_v7  ;;  %v3336_v16 = vor.u32 %v3756_v13, %v3335_v11  ;;  %v3755_v18 = vld [vmem:[#allocation10 + $0x94] sm:$0xf]  ;;  %v3337_v19 = vld [vmem:[#allocation10 + $0x9c] sm:$0xf0] }
  0x45   : > { %1184 = vmatpush.bf16.msra.mxu2 %v3352_v8  ;;  %v3432_v17 = vor.u32 %v3780_v15, %v3431_v14  ;;  %v3779_v20 = vld [vmem:[#allocation10 + $0x154] sm:$0xf]  ;;  %v3340_v21 = vor.u32 %v3755_v18, %v3337_v19  ;;  %v3433_v22 = vld [vmem:[#allocation10 + $0x15c] sm:$0xf0]  ;;  %v3323_v23 = vld [vmem:[#allocation10 + $0x78] sm:$0xf] }
  0x46   : > { %1233 = vmatpush.bf16.msra.mxu3 %v3448_v12  ;;  %v3753_v24 = vld [vmem:[#allocation10 + $0x80] sm:$0xf0]  ;;  %v3436_v25 = vor.u32 %v3779_v20, %v3433_v22  ;;  %v3419_v26 = vld [vmem:[#allocation10 + $0x138] sm:$0xf]  ;;  %v3752_v28 = vld [vmem:[#allocation10 + $0x7c] sm:$0xf] }
  0x47   : > { %v3777_v27 = vld [vmem:[#allocation10 + $0x140] sm:$0xf0]  ;;  %1087 = vmatpush.bf16.msra.mxu0 %v3336_v16  ;;  %v3324_v29 = vor.u32 %v3753_v24, %v3323_v23  ;;  %v3325_v30 = vld [vmem:[#allocation10 + $0x84] sm:$0xf0]  ;;  %v3776_v31 = vld [vmem:[#allocation10 + $0x13c] sm:$0xf] }
  0x48   : > { %v3421_v32 = vld [vmem:[#allocation10 + $0x144] sm:$0xf0]  ;;  %1136 = vmatpush.bf16.msra.mxu1 %v3432_v17  ;;  %v3420_v33 = vor.u32 %v3777_v27, %v3419_v26  ;;  %v3328_v34 = vor.u32 %v3752_v28, %v3325_v30  ;;  %v3311_v35 = vld [vmem:[#allocation10 + $0x60] sm:$0xf]  ;;  %v3750_v36 = vld [vmem:[#allocation10 + $0x68] sm:$0xf0] }
  0x49   : > { %1185 = vmatpush.bf16.msra.mxu2 %v3340_v21  ;;  %v3407_v37 = vld [vmem:[#allocation10 + $0x120] sm:$0xf]  ;;  %v3424_v38 = vor.u32 %v3776_v31, %v3421_v32  ;;  %v3774_v39 = vld [vmem:[#allocation10 + $0x128] sm:$0xf0]  ;;  %v3749_v40 = vld [vmem:[#allocation10 + $0x64] sm:$0xf]  ;;  %v3312_v44 = vor.u32 %v3750_v36, %v3311_v35 }
  0x4a   : > { %1234 = vmatpush.bf16.msra.mxu3 %v3436_v25  ;;  %v3313_v41 = vld [vmem:[#allocation10 + $0x6c] sm:$0xf0]  ;;  %v3773_v42 = vld [vmem:[#allocation10 + $0x124] sm:$0xf]  ;;  %v3408_v45 = vor.u32 %v3774_v39, %v3407_v37  ;;  %v3299_v47 = vld [vmem:[#allocation10 + $0x48] sm:$0xf] }
  0x4b   : > { %v3409_v43 = vld [vmem:[#allocation10 + $0x12c] sm:$0xf0]  ;;  %1088 = vmatpush.bf16.msra.mxu0 %v3324_v29  ;;  %v3316_v46 = vor.u32 %v3749_v40, %v3313_v41  ;;  %v3747_v48 = vld [vmem:[#allocation10 + $0x50] sm:$0xf0]  ;;  %v3395_v49 = vld [vmem:[#allocation10 + $0x108] sm:$0xf] }
  0x4c   : > { %1137 = vmatpush.bf16.msra.mxu1 %v3420_v33  ;;  %v3412_v50 = vor.u32 %v3773_v42, %v3409_v43  ;;  %v3771_v51 = vld [vmem:[#allocation10 + $0x110] sm:$0xf0]  ;;  %v3746_v52 = vld [vmem:[#allocation10 + $0x4c] sm:$0xf]  ;;  %v3301_v53 = vld [vmem:[#allocation10 + $0x54] sm:$0xf0]  ;;  %v3300_v56 = vor.u32 %v3747_v48, %v3299_v47 }
  0x4d   : > { %1186 = vmatpush.bf16.msra.mxu2 %v3328_v34  ;;  %v3770_v54 = vld [vmem:[#allocation10 + $0x10c] sm:$0xf]  ;;  %v3397_v55 = vld [vmem:[#allocation10 + $0x114] sm:$0xf0]  ;;  %v3396_v57 = vor.u32 %v3771_v51, %v3395_v49  ;;  %v3304_v58 = vor.u32 %v3746_v52, %v3301_v53  ;;  %v3287_v59 = vld [vmem:[#allocation10 + $0x30] sm:$0xf] }
  0x4e   : > { %1235 = vmatpush.bf16.msra.mxu3 %v3424_v38  ;;  %v3744_v60 = vld [vmem:[#allocation10 + $0x38] sm:$0xf0]  ;;  %v3383_v61 = vld [vmem:[#allocation10 + $0xf0] sm:$0xf]  ;;  %v3400_v62 = vor.u32 %v3770_v54, %v3397_v55  ;;  %v3743_v0 = vld [vmem:[#allocation10 + $0x34] sm:$0xf] }
  0x4f   : > { %1089 = vmatpush.bf16.msra.mxu0 %v3312_v44  ;;  %v3768_v63 = vld [vmem:[#allocation10 + $0xf8] sm:$0xf0]  ;;  %v3289_v1 = vld [vmem:[#allocation10 + $0x3c] sm:$0xf0]  ;;  %v3767_v2 = vld [vmem:[#allocation10 + $0xf4] sm:$0xf]  ;;  %v3288_v4 = vor.u32 %v3744_v60, %v3287_v59 }
  0x50   : > { %1138 = vmatpush.bf16.msra.mxu1 %v3408_v45  ;;  %v3385_v3 = vld [vmem:[#allocation10 + $0xfc] sm:$0xf0]  ;;  %v3384_v5 = vor.u32 %v3768_v63, %v3383_v61  ;;  %v3292_v6 = vor.u32 %v3743_v0, %v3289_v1  ;;  %v3275_v7 = vld [vmem:[#allocation10 + $0x18] sm:$0xf]  ;;  %v3741_v8 = vld [vmem:[#allocation10 + $0x20] sm:$0xf0] }
  0x51   : > { %1187 = vmatpush.bf16.msra.mxu2 %v3316_v46  ;;  %v3371_v9 = vld [vmem:[#allocation10 + $0xd8] sm:$0xf]  ;;  %v3388_v10 = vor.u32 %v3767_v2, %v3385_v3  ;;  %v3765_v11 = vld [vmem:[#allocation10 + $0xe0] sm:$0xf0]  ;;  %v3740_v12 = vld [vmem:[#allocation10 + $0x1c] sm:$0xf]  ;;  %v3276_v16 = vor.u32 %v3741_v8, %v3275_v7 }
  0x52   : > { %1236 = vmatpush.bf16.msra.mxu3 %v3412_v50  ;;  %v3277_v13 = vld [vmem:[#allocation10 + $0x24] sm:$0xf0]  ;;  %v3764_v14 = vld [vmem:[#allocation10 + $0xdc] sm:$0xf]  ;;  %v3263_v17 = vld [vmem:[#allocation10] sm:$0xf]  ;;  %v3372_v19 = vor.u32 %v3765_v11, %v3371_v9 }
  0x53   : > { %1090 = vmatpush.bf16.msra.mxu0 %v3300_v56  ;;  %v3373_v15 = vld [vmem:[#allocation10 + $0xe4] sm:$0xf0]  ;;  %v3738_v18 = vld [vmem:[#allocation10 + $0x8] sm:$0xf0]  ;;  %v3280_v20 = vor.u32 %v3740_v12, %v3277_v13  ;;  %v3359_v21 = vld [vmem:[#allocation10 + $0xc0] sm:$0xf] }
  0x54   : > { %1139 = vmatpush.bf16.msra.mxu1 %v3396_v57  ;;  %v3762_v22 = vld [vmem:[#allocation10 + $0xc8] sm:$0xf0]  ;;  %v3737_v23 = vld [vmem:[#allocation10 + $0x4] sm:$0xf]  ;;  %v3376_v24 = vor.u32 %v3764_v14, %v3373_v15  ;;  %v3265_v25 = vld [vmem:[#allocation10 + $0xc] sm:$0xf0]  ;;  %v3264_v31 = vor.u32 %v3738_v18, %v3263_v17 }
  0x55   : > { %1188 = vmatpush.bf16.msra.mxu2 %v3304_v58  ;;  %v3761_v26 = vld [vmem:[#allocation10 + $0xc4] sm:$0xf]  ;;  %v3361_v27 = vld [vmem:[#allocation10 + $0xcc] sm:$0xf0]  ;;  %v3199_v28 = vld [vmem:[%s4363_s5] sm:$0xf]  ;;  %v3360_v35 = vor.u32 %v3762_v22, %v3359_v21  ;;  %v3268_v36 = vor.u32 %v3737_v23, %v3265_v25 }
  0x56   : > { %1237 = vmatpush.bf16.msra.mxu3 %v3400_v62  ;;  %v3603_v29 = vld [vmem:[#allocation11 + $0xa8] sm:$0xf]  ;;  %v3823_v30 = vld [vmem:[#allocation11 + $0xb0] sm:$0xf0]  ;;  %v3721_v37 = vld [vmem:[%s4363_s5 + $0x4] sm:$0xf]  ;;  %v3364_v39 = vor.u32 %v3761_v26, %v3361_v27 }
  0x57   : > { %1091 = vmatpush.bf16.msra.mxu0 %v3288_v4  ;;  %v3722_v32 = vld [vmem:[%s4363_s5 + $0x4] sm:$0xf0]  ;;  %v3847_v34 = vld [vmem:[#allocation11 + $0x170] sm:$0xf0]  ;;  %v3201_v38 = vld [vmem:[%s4363_s5 + $0x8] sm:$0xf0]  ;;  %v3604_v40 = vor.u32 %v3823_v30, %v3603_v29 }
  0x58   : > { %1140 = vmatpush.bf16.msra.mxu1 %v3384_v5  ;;  %v3699_v33 = vld [vmem:[#allocation11 + $0x168] sm:$0xf]  ;;  %v3355_v41 = vld [vmem:[#allocation10 + $0xb0] sm:$0xf]  ;;  %v3760_v42 = vld [vmem:[#allocation10 + $0xb8] sm:$0xf0]  ;;  %v4388_v44 = vor.u32 %v3722_v32, %v3199_v28  ;;  %v4390_v49 = vor.u32 %v3721_v37, %v3201_v38 }
  0x59   : > { %1189 = vmatpush.bf16.msra.mxu2 %v3292_v6  ;;  %v3451_v43 = vld [vmem:[#allocation10 + $0x170] sm:$0xf]  ;;  %v3700_v45 = vor.u32 %v3847_v34, %v3699_v33  ;;  %v3784_v46 = vld [vmem:[#allocation10 + $0x178] sm:$0xf0]  ;;  %v3356_v52 = vor.u32 %v3760_v42, %v3355_v41  ;;  %v3343_v55 = vld [vmem:[#allocation10 + $0x98] sm:$0xf] }
  0x5a   : > { %1238 = vmatpush.bf16.msra.mxu3 %v3388_v10  ;;  %v3591_v47 = vld [vmem:[#allocation11 + $0x90] sm:$0xf]  ;;  %v3820_v48 = vld [vmem:[#allocation11 + $0x98] sm:$0xf0]  ;;  %v3452_v53 = vor.u32 %v3784_v46, %v3451_v43  ;;  %v3757_v56 = vld [vmem:[#allocation10 + $0xa0] sm:$0xf0] }
  0x5b   : > { %1092 = vmatpush.bf16.msra.mxu0 %v3276_v16  ;;  %v3687_v50 = vld [vmem:[#allocation11 + $0x150] sm:$0xf]  ;;  %v3844_v51 = vld [vmem:[#allocation11 + $0x158] sm:$0xf0]  ;;  %v3592_v54 = vor.u32 %v3820_v48, %v3591_v47  ;;  %v3439_v58 = vld [vmem:[#allocation10 + $0x158] sm:$0xf]  ;;  %v3344_v60 = vor.u32 %v3757_v56, %v3343_v55 }
  0x5c   : > { %1141 = vmatpush.bf16.msra.mxu1 %v3372_v19  ;;  %v3688_v57 = vor.u32 %v3844_v51, %v3687_v50  ;;  %v3781_v59 = vld [vmem:[#allocation10 + $0x160] sm:$0xf0]  ;;  %v3579_v61 = vld [vmem:[#allocation11 + $0x78] sm:$0xf]  ;;  %v3331_v3 = vld [vmem:[#allocation10 + $0x80] sm:$0xf] }
  0x5d   : > { %1190 = vmatpush.bf16.msra.mxu2 %v3280_v20  ;;  %v3817_v62 = vld [vmem:[#allocation11 + $0x80] sm:$0xf0]  ;;  %v3675_v63 = vld [vmem:[#allocation11 + $0x138] sm:$0xf]  ;;  %v3440_v0 = vor.u32 %v3781_v59, %v3439_v58  ;;  %v3754_v4 = vld [vmem:[#allocation10 + $0x88] sm:$0xf0] }
  0x5e   : > { %1239 = vmatpush.bf16.msra.mxu3 %v3376_v24  ;;  %v3580_v1 = vor.u32 %v3817_v62, %v3579_v61  ;;  %v3841_v2 = vld [vmem:[#allocation11 + $0x140] sm:$0xf0]  ;;  %v3427_v6 = vld [vmem:[#allocation10 + $0x140] sm:$0xf]  ;;  %v3778_v7 = vld [vmem:[#allocation10 + $0x148] sm:$0xf0]  ;;  %v3332_v8 = vor.u32 %v3754_v4, %v3331_v3 }
  0x5f   : > { %1093 = vmatpush.bf16.msra.mxu0 %v3264_v31  ;;  %v3676_v5 = vor.u32 %v3841_v2, %v3675_v63  ;;  %v3428_v9 = vor.u32 %v3778_v7, %v3427_v6  ;;  %v3207_v10 = vld [vmem:[%s4363_s5 + $0x10] sm:$0xf]  ;;  %v3724_v11 = vld [vmem:[%s4363_s5 + $0x14] sm:$0xf0]  ;;  %v3723_v12 = vld [vmem:[%s4363_s5 + $0x14] sm:$0xf] }
  0x60   : > { %1142 = vmatpush.bf16.msra.mxu1 %v3360_v35  ;;  %v3209_v13 = vld [vmem:[%s4363_s5 + $0x18] sm:$0xf0]  ;;  %v4400_v14 = vor.u32 %v3724_v11, %v3207_v10  ;;  %v3567_v16 = vld [vmem:[#allocation11 + $0x60] sm:$0xf]  ;;  %v3814_v17 = vld [vmem:[#allocation11 + $0x68] sm:$0xf0] }
  0x61   : > { %1191 = vmatpush.bf16.msra.mxu2 %v3268_v36  ;;  %v4402_v15 = vor.u32 %v3723_v12, %v3209_v13  ;;  %v3663_v18 = vld [vmem:[#allocation11 + $0x120] sm:$0xf]  ;;  %v3568_v19 = vor.u32 %v3814_v17, %v3567_v16  ;;  %v3838_v20 = vld [vmem:[#allocation11 + $0x128] sm:$0xf0]  ;;  %v3319_v21 = vld [vmem:[#allocation10 + $0x68] sm:$0xf] }
  0x62   : > { %1240 = vmatpush.bf16.msra.mxu3 %v3364_v39  ;;  %1094 = vmatmul.bf16.vlgmr.msra.gmra.mxu0 %v4388_v44  ;;  %v3751_v22 = vld [vmem:[#allocation10 + $0x70] sm:$0xf0]  ;;  %v3664_v23 = vor.u32 %v3838_v20, %v3663_v18  ;;  %v3415_v25 = vld [vmem:[#allocation10 + $0x128] sm:$0xf]  ;;  %v3215_v28 = vld [vmem:[%s4363_s5 + $0x20] sm:$0xf] }
  0x63   : > { %1143 = vmatmul.bf16.vlgmr.msra.gmra.mxu1 %v4390_v49  ;;  %1282 = vmatpush.bf16.msrb.mxu0 %v3356_v52  ;;  %v3320_v24 = vor.u32 %v3751_v22, %v3319_v21  ;;  %v3775_v26 = vld [vmem:[#allocation10 + $0x130] sm:$0xf0]  ;;  %v3726_v29 = vld [vmem:[%s4363_s5 + $0x24] sm:$0xf0]  ;;  %v3725_v30 = vld [vmem:[%s4363_s5 + $0x24] sm:$0xf] }
  0x64   : > { %1192 = vmatmul.bf16.vlgmr.msra.gmra.mxu2 %v4388_v44  ;;  %1331 = vmatpush.bf16.msrb.mxu1 %v3452_v53  ;;  %v3416_v27 = vor.u32 %v3775_v26, %v3415_v25  ;;  %v3217_v31 = vld [vmem:[%s4363_s5 + $0x28] sm:$0xf0]  ;;  %v4412_v32 = vor.u32 %v3726_v29, %v3215_v28  ;;  %v3555_v34 = vld [vmem:[#allocation11 + $0x48] sm:$0xf]  ;;  %v3811_v35 = vld [vmem:[#allocation11 + $0x50] sm:$0xf0] }
  0x65   : > { %1940 = vmatpush.bf16.msrb.mxu2 %v3604_v40  ;;  %1241 = vmatmul.bf16.vlgmr.msra.gmra.mxu3 %v4390_v49  ;;  %v4414_v33 = vor.u32 %v3725_v30, %v3217_v31  ;;  %v3651_v36 = vld [vmem:[#allocation11 + $0x108] sm:$0xf]  ;;  %v3556_v37 = vor.u32 %v3811_v35, %v3555_v34  ;;  %v3835_v38 = vld [vmem:[#allocation11 + $0x110] sm:$0xf0]  ;;  %v3307_v39 = vld [vmem:[#allocation10 + $0x50] sm:$0xf] }
  0x66   : > { %1989 = vmatpush.bf16.msrb.mxu3 %v3700_v45  ;;  %v3748_v40 = vld [vmem:[#allocation10 + $0x58] sm:$0xf0]  ;;  %v3652_v41 = vor.u32 %v3835_v38, %v3651_v36  ;;  %v3403_v43 = vld [vmem:[#allocation10 + $0x110] sm:$0xf]  ;;  %v3728_v48 = vld [vmem:[%s4363_s5 + $0x34] sm:$0xf0] }
  0x67   : > { %1283 = vmatpush.bf16.msrb.mxu0 %v3344_v60  ;;  %v3308_v42 = vor.u32 %v3748_v40, %v3307_v39  ;;  %v3772_v45 = vld [vmem:[#allocation10 + $0x118] sm:$0xf0]  ;;  %v3223_v47 = vld [vmem:[%s4363_s5 + $0x30] sm:$0xf]  ;;  %v3727_v50 = vld [vmem:[%s4363_s5 + $0x34] sm:$0xf] }
  0x68   : > { %1332 = vmatpush.bf16.msrb.mxu1 %v3440_v0  ;;  %v3404_v46 = vor.u32 %v3772_v45, %v3403_v43  ;;  %v3225_v51 = vld [vmem:[%s4363_s5 + $0x38] sm:$0xf0]  ;;  %v4424_v52 = vor.u32 %v3728_v48, %v3223_v47  ;;  %v3639_v56 = vld [vmem:[#allocation11 + $0xf0] sm:$0xf]  ;;  %v3295_v59 = vld [vmem:[#allocation10 + $0x38] sm:$0xf] }
  0x69   : > { %1941 = vmatpush.bf16.msrb.mxu2 %v3592_v54  ;;  %v4426_v53 = vor.u32 %v3727_v50, %v3225_v51  ;;  %v3543_v54 = vld [vmem:[#allocation11 + $0x30] sm:$0xf]  ;;  %v3808_v55 = vld [vmem:[#allocation11 + $0x38] sm:$0xf0]  ;;  %v3745_v60 = vld [vmem:[#allocation10 + $0x40] sm:$0xf0] }
  0x6a   : > { %1990 = vmatpush.bf16.msrb.mxu3 %v3688_v57  ;;  %v3544_v57 = vor.u32 %v3808_v55, %v3543_v54  ;;  %v3832_v58 = vld [vmem:[#allocation11 + $0xf8] sm:$0xf0]  ;;  %v3296_v62 = vor.u32 %v3745_v60, %v3295_v59  ;;  %v3391_v63 = vld [vmem:[#allocation10 + $0xf8] sm:$0xf]  ;;  %v3769_v0 = vld [vmem:[#allocation10 + $0x100] sm:$0xf0] }
  0x6b   : > { %1284 = vmatpush.bf16.msrb.mxu0 %v3332_v8  ;;  %v3640_v61 = vor.u32 %v3832_v58, %v3639_v56  ;;  %v3231_v2 = vld [vmem:[%s4363_s5 + $0x40] sm:$0xf]  ;;  %v3730_v3 = vld [vmem:[%s4363_s5 + $0x44] sm:$0xf0]  ;;  %v3729_v4 = vld [vmem:[%s4363_s5 + $0x44] sm:$0xf] }
  0x6c   : > { %1333 = vmatpush.bf16.msrb.mxu1 %v3428_v9  ;;  %v4436_v6 = vor.u32 %v3730_v3, %v3231_v2  ;;  %v3531_v8 = vld [vmem:[#allocation11 + $0x18] sm:$0xf]  ;;  %v3805_v9 = vld [vmem:[#allocation11 + $0x20] sm:$0xf0]  ;;  %v3283_v13 = vld [vmem:[#allocation10 + $0x20] sm:$0xf] }
  0x6d   : > { %1942 = vmatpush.bf16.msrb.mxu2 %v3580_v1  ;;  %v3392_v1 = vor.u32 %v3769_v0, %v3391_v63  ;;  %v3627_v10 = vld [vmem:[#allocation11 + $0xd8] sm:$0xf]  ;;  %v3532_v11 = vor.u32 %v3805_v9, %v3531_v8  ;;  %v3829_v12 = vld [vmem:[#allocation11 + $0xe0] sm:$0xf0]  ;;  %v3742_v16 = vld [vmem:[#allocation10 + $0x28] sm:$0xf0] }
  0x6e   : > { %1991 = vmatpush.bf16.msrb.mxu3 %v3676_v5  ;;  %v3233_v5 = vld [vmem:[%s4363_s5 + $0x48] sm:$0xf0]  ;;  %v3628_v17 = vor.u32 %v3829_v12, %v3627_v10  ;;  %v3284_v18 = vor.u32 %v3742_v16, %v3283_v13  ;;  %v3239_v22 = vld [vmem:[%s4363_s5 + $0x50] sm:$0xf]  ;;  %v3241_v25 = vld [vmem:[%s4363_s5 + $0x58] sm:$0xf0] }
  0x6f   : > { %1285 = vmatpush.bf16.msrb.mxu0 %v3320_v24  ;;  %v4438_v7 = vor.u32 %v3729_v4, %v3233_v5  ;;  %v3766_v20 = vld [vmem:[#allocation10 + $0xe8] sm:$0xf0]  ;;  %v3731_v24 = vld [vmem:[%s4363_s5 + $0x54] sm:$0xf]  ;;  %v3519_v28 = vld [vmem:[#allocation11] sm:$0xf] }
  0x70   : > { %1334 = vmatpush.bf16.msrb.mxu1 %v3416_v27  ;;  %v4450_v27 = vor.u32 %v3731_v24, %v3241_v25  ;;  %v3802_v29 = vld [vmem:[#allocation11 + $0x8] sm:$0xf0]  ;;  %v3615_v30 = vld [vmem:[#allocation11 + $0xc0] sm:$0xf]  ;;  %v3271_v35 = vld [vmem:[#allocation10 + $0x8] sm:$0xf] }
  0x71   : > { %1943 = vmatpush.bf16.msrb.mxu2 %v3568_v19  ;;  %v3379_v19 = vld [vmem:[#allocation10 + $0xe0] sm:$0xf]  ;;  %v3520_v31 = vor.u32 %v3802_v29, %v3519_v28  ;;  %v3826_v34 = vld [vmem:[#allocation11 + $0xc8] sm:$0xf0]  ;;  %v3739_v36 = vld [vmem:[#allocation10 + $0x10] sm:$0xf0] }
  0x72   : > { %1099 = vmatmul.bf16.gmra.mxu0 %v4400_v14  ;;  %1992 = vmatpush.bf16.msrb.mxu3 %v3664_v23  ;;  %v3380_v21 = vor.u32 %v3766_v20, %v3379_v19  ;;  %v3732_v23 = vld [vmem:[%s4363_s5 + $0x54] sm:$0xf0]  ;;  %v3272_v38 = vor.u32 %v3739_v36, %v3271_v35  ;;  %v3367_v39 = vld [vmem:[#allocation10 + $0xc8] sm:$0xf]  ;;  %v3763_v40 = vld [vmem:[#allocation10 + $0xd0] sm:$0xf0] }
  0x73   : > { %1148 = vmatmul.bf16.gmra.mxu1 %v4402_v15  ;;  %1286 = vmatpush.bf16.msrb.mxu0 %v3308_v42  ;;  %v4448_v26 = vor.u32 %v3732_v23, %v3239_v22  ;;  %v3247_v42 = vld [vmem:[%s4363_s5 + $0x60] sm:$0xf]  ;;  %v3734_v43 = vld [vmem:[%s4363_s5 + $0x64] sm:$0xf0]  ;;  %v3733_v45 = vld [vmem:[%s4363_s5 + $0x64] sm:$0xf] }
  0x74   : > { %1197 = vmatmul.bf16.gmra.mxu2 %v4400_v14  ;;  %1335 = vmatpush.bf16.msrb.mxu1 %v3404_v46  ;;  %v3249_v46 = vld [vmem:[%s4363_s5 + $0x68] sm:$0xf0]  ;;  %v4460_v47 = vor.u32 %v3734_v43, %v3247_v42  ;;  %v3611_v50 = vld [vmem:[#allocation11 + $0xb0] sm:$0xf]  ;;  %v3824_v51 = vld [vmem:[#allocation11 + $0xb8] sm:$0xf0] }
  0x75   : > { %1246 = vmatmul.bf16.gmra.mxu3 %v4402_v15  ;;  %1944 = vmatpush.bf16.msrb.mxu2 %v3556_v37  ;;  %v3616_v37 = vor.u32 %v3826_v34, %v3615_v30  ;;  %v4462_v48 = vor.u32 %v3733_v45, %v3249_v46  ;;  %v3707_v54 = vld [vmem:[#allocation11 + $0x170] sm:$0xf]  ;;  %v3612_v55 = vor.u32 %v3824_v51, %v3611_v50  ;;  %v3848_v56 = vld [vmem:[#allocation11 + $0x178] sm:$0xf0]  ;;  %v3736_v59 = vld [vmem:[%s4363_s5 + $0x74] sm:$0xf0] }
  0x76   : > { %1993 = vmatpush.bf16.msrb.mxu3 %v3652_v41  ;;  %v3368_v41 = vor.u32 %v3763_v40, %v3367_v39  ;;  %v3255_v58 = vld [vmem:[%s4363_s5 + $0x70] sm:$0xf]  ;;  %v3735_v60 = vld [vmem:[%s4363_s5 + $0x74] sm:$0xf]  ;;  %v3822_v0 = vld [vmem:[#allocation11 + $0xac] sm:$0xf] }
  0x77   : > { %1287 = vmatpush.bf16.msrb.mxu0 %v3296_v62  ;;  %v4472_v62 = vor.u32 %v3736_v59, %v3255_v58  ;;  %v3846_v2 = vld [vmem:[#allocation11 + $0x16c] sm:$0xf]  ;;  %v3701_v4 = vld [vmem:[#allocation11 + $0x174] sm:$0xf0]  ;;  %v3821_v9 = vld [vmem:[#allocation11 + $0xa0] sm:$0xf0] }
  0x78   : > { %1336 = vmatpush.bf16.msrb.mxu1 %v3392_v1  ;;  %v3605_v1 = vld [vmem:[#allocation11 + $0xb4] sm:$0xf0]  ;;  %v3704_v5 = vor.u32 %v3846_v2, %v3701_v4  ;;  %v3845_v12 = vld [vmem:[#allocation11 + $0x160] sm:$0xf0]  ;;  %v3455_v16 = vld [vmem:[%s4370_s19] sm:$0xf] }
  0x79   : > { %1945 = vmatpush.bf16.msrb.mxu2 %v3544_v57  ;;  %v3708_v57 = vor.u32 %v3848_v56, %v3707_v54  ;;  %v3608_v3 = vor.u32 %v3822_v0, %v3605_v1  ;;  %v3599_v8 = vld [vmem:[#allocation11 + $0x98] sm:$0xf]  ;;  %v3457_v19 = vld [vmem:[%s4370_s19 + $0x8] sm:$0xf0]  ;;  %v3819_v22 = vld [vmem:[#allocation11 + $0x94] sm:$0xf] }
  0x7a   : > { %1994 = vmatpush.bf16.msrb.mxu3 %v3640_v61  ;;  %v3257_v61 = vld [vmem:[%s4363_s5 + $0x78] sm:$0xf0]  ;;  %v3695_v10 = vld [vmem:[#allocation11 + $0x158] sm:$0xf]  ;;  %v3593_v23 = vld [vmem:[#allocation11 + $0x9c] sm:$0xf0] }
  0x7b   : > { %1288 = vmatpush.bf16.msrb.mxu0 %v3284_v18  ;;  %v4474_v63 = vor.u32 %v3735_v60, %v3257_v61  ;;  %v3696_v13 = vor.u32 %v3845_v12, %v3695_v10  ;;  %v3785_v18 = vld [vmem:[%s4370_s19 + $0x4] sm:$0xf]  ;;  %v3843_v24 = vld [vmem:[#allocation11 + $0x154] sm:$0xf]  ;;  %v3596_v29 = vor.u32 %v3819_v22, %v3593_v23  ;;  %v3689_v30 = vld [vmem:[#allocation11 + $0x15c] sm:$0xf0] }
  0x7c   : > { %1337 = vmatpush.bf16.msrb.mxu1 %v3380_v21  ;;  %v4486_v28 = vor.u32 %v3785_v18, %v3457_v19  ;;  %v3692_v34 = vor.u32 %v3843_v24, %v3689_v30  ;;  %v3818_v39 = vld [vmem:[#allocation11 + $0x88] sm:$0xf0]  ;;  %v3683_v40 = vld [vmem:[#allocation11 + $0x140] sm:$0xf]  ;;  %v3463_v46 = vld [vmem:[%s4370_s19 + $0x10] sm:$0xf] }
  0x7d   : > { %1946 = vmatpush.bf16.msrb.mxu2 %v3532_v11  ;;  %v3600_v11 = vor.u32 %v3821_v9, %v3599_v8  ;;  %v3842_v42 = vld [vmem:[#allocation11 + $0x148] sm:$0xf0]  ;;  %v3788_v50 = vld [vmem:[%s4370_s19 + $0x14] sm:$0xf0]  ;;  %v3787_v51 = vld [vmem:[%s4370_s19 + $0x14] sm:$0xf] }
  0x7e   : > { %1995 = vmatpush.bf16.msrb.mxu3 %v3628_v17  ;;  %v3786_v17 = vld [vmem:[%s4370_s19 + $0x4] sm:$0xf0]  ;;  %v3684_v45 = vor.u32 %v3842_v42, %v3683_v40  ;;  %v3465_v54 = vld [vmem:[%s4370_s19 + $0x18] sm:$0xf0]  ;;  %v4502_v58 = vor.u32 %v3788_v50, %v3463_v46  ;;  %v3839_v18 = vld [vmem:[#allocation11 + $0x130] sm:$0xf0] }
  0x7f   : > { %1289 = vmatpush.bf16.msrb.mxu0 %v3272_v38  ;;  %v4484_v21 = vor.u32 %v3786_v17, %v3455_v16  ;;  %v3587_v38 = vld [vmem:[#allocation11 + $0x80] sm:$0xf]  ;;  %v3816_v59 = vld [vmem:[#allocation11 + $0x7c] sm:$0xf]  ;;  %v3581_v60 = vld [vmem:[#allocation11 + $0x84] sm:$0xf0]  ;;  %v4506_v2 = vor.u32 %v3787_v51, %v3465_v54 }
  0x80   : > { %1338 = vmatpush.bf16.msrb.mxu1 %v3368_v41  ;;  %v3840_v61 = vld [vmem:[#allocation11 + $0x13c] sm:$0xf]  ;;  %v3677_v4 = vld [vmem:[#allocation11 + $0x144] sm:$0xf0]  ;;  %v3471_v22 = vld [vmem:[%s4370_s19 + $0x20] sm:$0xf] }
  0x81   : > { %1947 = vmatpush.bf16.msrb.mxu2 %v3520_v31  ;;  %v3680_v8 = vor.u32 %v3840_v61, %v3677_v4  ;;  %v3575_v12 = vld [vmem:[#allocation11 + $0x68] sm:$0xf]  ;;  %v3789_v24 = vld [vmem:[%s4370_s19 + $0x24] sm:$0xf]  ;;  %v3665_v42 = vld [vmem:[#allocation11 + $0x12c] sm:$0xf0] }
  0x82   : > { %1104 = vmatmul.bf16.gmra.mxu0 %v4412_v32  ;;  %1996 = vmatpush.bf16.msrb.mxu3 %v3616_v37  ;;  %v3671_v16 = vld [vmem:[#allocation11 + $0x128] sm:$0xf]  ;;  %v3792_v4 = vld [vmem:[%s4370_s19 + $0x34] sm:$0xf0]  ;;  %s2333_s21 = sld [smem:[#allocation4]]  ;;  %s3849_s24 = smul.u32 384, %s4359_s17 }
  0x83   : > { %1153 = vmatmul.bf16.gmra.mxu1 %v4414_v33  ;;  %2038 = vmatpush.bf16.msra.mxu0 %v3608_v3  ;;  %v3584_v3 = vor.u32 %v3816_v59, %v3581_v60  ;;  %v3790_v23 = vld [vmem:[%s4370_s19 + $0x24] sm:$0xf0]  ;;  %v3836_v60 = vld [vmem:[#allocation11 + $0x118] sm:$0xf0]  ;;  %s3850_s16 = smul.u32 384, %s4189_s10  ;;  %s4091_s23 = scalar_lea.hbm %s5092_s8, 768 }
  0x84   : > { %1202 = vmatmul.bf16.gmra.mxu2 %v4412_v32  ;;  %2087 = vmatpush.bf16.msra.mxu1 %v3704_v5  ;;  %s4672_s28 = scalar_lea.vmem [#allocation14], %s3849_s24  ;;  %s4678_s20 = scalar_lea.vmem [#allocation13], %s3849_s24 }
  0x85   : > { %1251 = vmatmul.bf16.gmra.mxu3 %v4414_v33  ;;  %2136 = vmatpush.bf16.msra.mxu2 %v3612_v55  ;;  %s2967_s10 = scalar_lea.hbm %s5092_s8, %s3850_s16  ;;  %s2968_s27 = sshll.u32 %s4672_s28, 4  ;;  %s2969_s27 = int_to_ptr.vmem [resolvable:$true] %s2968_s27 }
  0x86   : > { %2185 = vmatpush.bf16.msra.mxu3 %v3708_v57  ;;  %s2970_s3 = sshll.u32 %s2967_s10, 4  ;;  %s5029_s5 = scalar_lea.hbm %s5091_s7, %s3850_s16  ;;  %s2971_s3 = int_to_ptr.hbm [resolvable:$true] %s2970_s3 }
  0x87   : > { %2039 = vmatpush.bf16.msra.mxu0 %v3596_v29  ;;  %s2948_s9 = sshll.u32 %s4678_s20, 4  ;;  %s2950_s11 = sshll.u32 %s5029_s5, 4  ;;  %s2949_s9 = int_to_ptr.vmem [resolvable:$true] %s2948_s9  ;;  %s2951_s11 = int_to_ptr.hbm [resolvable:$true] %s2950_s11 }
  0x88   : > { %2088 = vmatpush.bf16.msra.mxu1 %v3692_v34  ;;  %s4085_s12 = sshra.s32 %s2971_s3, 4  ;;  %s4086_s12 = int_to_ptr.hbm [resolvable:$true] %s4085_s12 }
  0x89   : > { %2137 = vmatpush.bf16.msra.mxu2 %v3600_v11  ;;  %s4087_s14 = scalar_lea.hbm %s4086_s12, 384  ;;  %p4092_p10 = scmp.lt.s32.totalorder %s4086_s12, %s5092_s8 }
  0x8a   : > { %2186 = vmatpush.bf16.msra.mxu3 %v3696_v13  ;;  %v3815_v13 = vld [vmem:[#allocation11 + $0x70] sm:$0xf0]  ;;  %p4088_p1 = scmp.ne.s32.totalorder %s4086_s12, %s4087_s14  ;;  %p4093_p12 = scmp.lt.s32.totalorder %s4091_s23, %s4087_s14 }
  0x8b   : > { %2040 = vmatpush.bf16.msra.mxu0 %v3584_v3  ;;  %v3479_v3 = vld [vmem:[%s4370_s19 + $0x30] sm:$0xf] }
  0x8c   : > { %2089 = vmatpush.bf16.msra.mxu1 %v3680_v8  ;;  %v3791_v8 = vld [vmem:[%s4370_s19 + $0x34] sm:$0xf]  ;;  %p4089_p4 = pnand %p4088_p1, %p4334_p7  ;;  %p4094_p13 = por %p4093_p12, %p4092_p10 }
  0x8e   : > { %2187 = vmatpush.bf16.msra.mxu3 %v3684_v45  ;;  %p4090_p8 = pneg %p4089_p4 }
  0x90   : > { %p4095_p0 = pnand %p4094_p13, %p4090_p8 }
  0x92   : > { %1109 = vmatmul.bf16.gmra.mxu0 %v4424_v52 }
  0x93   : > { %1158 = vmatmul.bf16.gmra.mxu1 %v4426_v53 }
  0x94   : > { %1207 = vmatmul.bf16.gmra.mxu2 %v4424_v52 }
  0x95   : > { %1256 = vmatmul.bf16.gmra.mxu3 %v4426_v53 }
  0xa2   : > { %1114 = vmatmul.bf16.gmra.mxu0 %v4436_v6 }
  0xa3   : > { %1163 = vmatmul.bf16.gmra.mxu1 %v4438_v7 }
  0xa4   : > { %1212 = vmatmul.bf16.gmra.mxu2 %v4436_v6 }
  0xa5   : > { %1261 = vmatmul.bf16.gmra.mxu3 %v4438_v7 }
  0xb2   : > { %1119 = vmatmul.bf16.gmra.mxu0 %v4448_v26 }
  0xb3   : > { %1168 = vmatmul.bf16.gmra.mxu1 %v4450_v27 }
  0xb4   : > { %1217 = vmatmul.bf16.gmra.mxu2 %v4448_v26 }
  0xb5   : > { %1266 = vmatmul.bf16.gmra.mxu3 %v4450_v27 }
  0xc2   : > { %1124 = vmatmul.bf16.gmra.mxu0 %v4460_v47 }
  0xc3   : > { %1173 = vmatmul.bf16.gmra.mxu1 %v4462_v48 }
  0xc4   : > { %1222 = vmatmul.bf16.gmra.mxu2 %v4460_v47 }
  0xc5   : > { %1271 = vmatmul.bf16.gmra.mxu3 %v4462_v48 }
  0xd2   : > { %1129 = vmatmul.bf16.gmra.mxu0 %v4472_v62 }
  0xd3   : > { %1178 = vmatmul.bf16.gmra.mxu1 %v4474_v63 }
  0xd4   : > { %1227 = vmatmul.bf16.gmra.mxu2 %v4472_v62 }
  0xd5   : > { %1276 = vmatmul.bf16.gmra.mxu3 %v4474_v63 }
  0xdf   : > { %v1095_v20 = vpop.f32.mrf.mxu0 }
  0xe0   : > { %v1144_v25 = vpop.f32.mrf.mxu1 }
  0xe1   : > { %v4488_v31 = vadd.f32 %v1144_v25, %v1095_v20  ;;  %v3672_v20 = vor.u32 %v3839_v18, %v3671_v16  ;;  %v3473_v25 = vld [vmem:[%s4370_s19 + $0x28] sm:$0xf0] }
  0xe2   : > { %1290 = vmatmul.bf16.vlgmr.msrb.gmra.mxu0 %v4388_v44 }
  0xe3   : > { %1339 = vmatmul.bf16.vlgmr.msrb.gmra.mxu1 %v4390_v49  ;;  %v3588_v49 = vor.u32 %v3818_v39, %v3587_v38  ;;  %2188 = vmatpush.bf16.msra.mxu3 %v3672_v20  ;;  %v3837_v38 = vld [vmem:[#allocation11 + $0x124] sm:$0xf]  ;;  %v3653_v20 = vld [vmem:[#allocation11 + $0x114] sm:$0xf0] }
  0xe4   : > { %1948 = vmatmul.bf16.vlgmr.msrb.gmra.mxu2 %v4484_v21  ;;  %v3668_v46 = vor.u32 %v3837_v38, %v3665_v42  ;;  %v3809_v38 = vld [vmem:[#allocation11 + $0x40] sm:$0xf0] }
  0xe5   : > { %1997 = vmatmul.bf16.vlgmr.msrb.gmra.mxu3 %v4486_v28  ;;  %2138 = vmatpush.bf16.msra.mxu2 %v3588_v49 }
  0xe6   : > { %2090 = vmatpush.bf16.msra.mxu1 %v3668_v46  ;;  %v3833_v46 = vld [vmem:[#allocation11 + $0x100] sm:$0xf0] }
  0xe7   : > { %v1193_v35 = vpop.f32.mrf.mxu2  ;;  %v1097_v37 = vpop.f32.mrf.mxu0 }
  0xe8   : > { %v1242_v36 = vpop.f32.mrf.mxu3  ;;  %v1146_v44 = vpop.f32.mrf.mxu1 }
  0xe9   : > { %v4494_v41 = vadd.f32 %v1242_v36, %v1193_v35  ;;  %v4496_v43 = vadd.f32 %v1146_v44, %v1097_v37  ;;  %v4522_v35 = vor.u32 %v3790_v23, %v3471_v22  ;;  %v3813_v36 = vld [vmem:[#allocation11 + $0x64] sm:$0xf]  ;;  %v3569_v37 = vld [vmem:[#allocation11 + $0x6c] sm:$0xf0]  ;;  %v4526_v44 = vor.u32 %v3789_v24, %v3473_v25 }
  0xea   : > { %v3572_v49 = vor.u32 %v3813_v36, %v3569_v37  ;;  %v3551_v37 = vld [vmem:[#allocation11 + $0x38] sm:$0xf] }
  0xeb   : > { %v3552_v42 = vor.u32 %v3809_v38, %v3551_v37  ;;  %v3830_v37 = vld [vmem:[#allocation11 + $0xe8] sm:$0xf0] }
  0xec   : > { %2041 = vmatpush.bf16.msra.mxu0 %v3572_v49 }
  0xef   : > { %v1195_v55 = vpop.f32.mrf.mxu2  ;;  %v1100_v57 = vpop.f32.mrf.mxu0 }
  0xf0   : > { %v1244_v56 = vpop.f32.mrf.mxu3  ;;  %v1149_v1 = vpop.f32.mrf.mxu1 }
  0xf1   : > { %v4504_v0 = vadd.f32 %v1244_v56, %v1195_v55  ;;  %v4508_v5 = vadd.f32 %v1149_v1, %v1100_v57  ;;  %v3563_v55 = vld [vmem:[#allocation11 + $0x50] sm:$0xf]  ;;  %v3812_v56 = vld [vmem:[#allocation11 + $0x58] sm:$0xf0] }
  0xf2   : > { %1295 = vmatmul.bf16.gmra.mxu0 %v4400_v14  ;;  %v3659_v57 = vld [vmem:[#allocation11 + $0x110] sm:$0xf] }
  0xf3   : > { %1344 = vmatmul.bf16.gmra.mxu1 %v4402_v15  ;;  %v3576_v15 = vor.u32 %v3815_v13, %v3575_v12  ;;  %v3660_v1 = vor.u32 %v3836_v60, %v3659_v57  ;;  %v3557_v12 = vld [vmem:[#allocation11 + $0x54] sm:$0xf0]  ;;  %v3834_v13 = vld [vmem:[#allocation11 + $0x10c] sm:$0xf]  ;;  %v3831_v60 = vld [vmem:[#allocation11 + $0xf4] sm:$0xf] }
  0xf4   : > { %1953 = vmatmul.bf16.gmra.mxu2 %v4502_v58  ;;  %v3656_v25 = vor.u32 %v3834_v13, %v3653_v20 }
  0xf5   : > { %2002 = vmatmul.bf16.gmra.mxu3 %v4506_v2  ;;  %2139 = vmatpush.bf16.msra.mxu2 %v3576_v15  ;;  %v4542_v15 = vor.u32 %v3792_v4, %v3479_v3 }
  0xf6   : > { %2189 = vmatpush.bf16.msra.mxu3 %v3660_v1  ;;  %2091 = vmatpush.bf16.msra.mxu1 %v3656_v25  ;;  %v3806_v25 = vld [vmem:[#allocation11 + $0x28] sm:$0xf0] }
  0xf7   : > { %v1198_v9 = vpop.f32.mrf.mxu2  ;;  %v1102_v11 = vpop.f32.mrf.mxu0 }
  0xf8   : > { %v1247_v10 = vpop.f32.mrf.mxu3  ;;  %v1151_v14 = vpop.f32.mrf.mxu1 }
  0xf9   : > { %v4514_v17 = vadd.f32 %v1247_v10, %v1198_v9  ;;  %v4516_v19 = vadd.f32 %v1151_v14, %v1102_v11  ;;  %v3481_v9 = vld [vmem:[%s4370_s19 + $0x38] sm:$0xf0]  ;;  %v3810_v11 = vld [vmem:[#allocation11 + $0x4c] sm:$0xf] }
  0xfa   : > { %v3560_v18 = vor.u32 %v3810_v11, %v3557_v12  ;;  %v4546_v24 = vor.u32 %v3791_v8, %v3481_v9  ;;  %v3641_v9 = vld [vmem:[#allocation11 + $0xfc] sm:$0xf0] }
  0xfb   : > { %v3644_v13 = vor.u32 %v3831_v60, %v3641_v9  ;;  %v3629_v60 = vld [vmem:[#allocation11 + $0xe4] sm:$0xf0] }
  0xfc   : > { %2042 = vmatpush.bf16.msra.mxu0 %v3560_v18 }
  0xfd   : > { %2092 = vmatpush.bf16.msra.mxu1 %v3644_v13 }
  0xff   : > { %v1200_v29 = vpop.f32.mrf.mxu2  ;;  %v1105_v34 = vpop.f32.mrf.mxu0 }
 0x100   : > { %v1249_v30 = vpop.f32.mrf.mxu3  ;;  %v1154_v40 = vpop.f32.mrf.mxu1 }
 0x101   : > { %v4524_v39 = vadd.f32 %v1249_v30, %v1200_v29  ;;  %v4528_v45 = vadd.f32 %v1154_v40, %v1105_v34  ;;  %v3647_v40 = vld [vmem:[#allocation11 + $0xf8] sm:$0xf] }
 0x102   : > { %1300 = vmatmul.bf16.gmra.mxu0 %v4412_v32 }
 0x103   : > { %1349 = vmatmul.bf16.gmra.mxu1 %v4414_v33  ;;  %v3564_v33 = vor.u32 %v3812_v56, %v3563_v55  ;;  %v3793_v55 = vld [vmem:[%s4370_s19 + $0x44] sm:$0xf]  ;;  %v3489_v56 = vld [vmem:[%s4370_s19 + $0x48] sm:$0xf0] }
 0x104   : > { %1958 = vmatmul.bf16.gmra.mxu2 %v4522_v35  ;;  %v4566_v12 = vor.u32 %v3793_v55, %v3489_v56  ;;  %v3828_v55 = vld [vmem:[#allocation11 + $0xdc] sm:$0xf] }
 0x105   : > { %2007 = vmatmul.bf16.gmra.mxu3 %v4526_v44  ;;  %2140 = vmatpush.bf16.msra.mxu2 %v3564_v33  ;;  %v3545_v33 = vld [vmem:[#allocation11 + $0x3c] sm:$0xf0]  ;;  %v3632_v9 = vor.u32 %v3828_v55, %v3629_v60  ;;  %v3617_v60 = vld [vmem:[#allocation11 + $0xcc] sm:$0xf0] }
 0x107   : > { %v1203_v50 = vpop.f32.mrf.mxu2  ;;  %v1107_v54 = vpop.f32.mrf.mxu0  ;;  %2093 = vmatpush.bf16.msra.mxu1 %v3632_v9 }
 0x108   : > { %v1252_v51 = vpop.f32.mrf.mxu3  ;;  %v1156_v32 = vpop.f32.mrf.mxu1 }
 0x109   : > { %v4534_v59 = vadd.f32 %v1252_v51, %v1203_v50  ;;  %v4536_v61 = vadd.f32 %v1156_v32, %v1107_v54  ;;  %v3648_v50 = vor.u32 %v3833_v46, %v3647_v40  ;;  %2141 = vmatpush.bf16.msra.mxu2 %v3552_v42  ;;  %v3487_v51 = vld [vmem:[%s4370_s19 + $0x40] sm:$0xf]  ;;  %v3794_v54 = vld [vmem:[%s4370_s19 + $0x44] sm:$0xf0]  ;;  %v3807_v32 = vld [vmem:[#allocation11 + $0x34] sm:$0xf] }
 0x10a   : > { %v4562_v4 = vor.u32 %v3794_v54, %v3487_v51  ;;  %v3548_v8 = vor.u32 %v3807_v32, %v3545_v33  ;;  %v3495_v40 = vld [vmem:[%s4370_s19 + $0x50] sm:$0xf]  ;;  %v3795_v42 = vld [vmem:[%s4370_s19 + $0x54] sm:$0xf]  ;;  %v3497_v46 = vld [vmem:[%s4370_s19 + $0x58] sm:$0xf0] }
 0x10b   : > { %2190 = vmatpush.bf16.msra.mxu3 %v3648_v50  ;;  %v3804_v51 = vld [vmem:[#allocation11 + $0x1c] sm:$0xf]  ;;  %v3533_v54 = vld [vmem:[#allocation11 + $0x24] sm:$0xf0] }
 0x10c   : > { %2043 = vmatpush.bf16.msra.mxu0 %v3548_v8  ;;  %v3536_v33 = vor.u32 %v3804_v51, %v3533_v54  ;;  %v4586_v8 = vor.u32 %v3795_v42, %v3497_v46  ;;  %v3505_v42 = vld [vmem:[%s4370_s19 + $0x68] sm:$0xf0]  ;;  %v3521_v51 = vld [vmem:[#allocation11 + $0xc] sm:$0xf0]  ;;  %v3825_v54 = vld [vmem:[#allocation11 + $0xc4] sm:$0xf] }
 0x10f   : > { %v1205_v10 = vpop.f32.mrf.mxu2  ;;  %v1110_v14 = vpop.f32.mrf.mxu0 }
 0x110   : > { %v1254_v16 = vpop.f32.mrf.mxu3  ;;  %v1159_v23 = vpop.f32.mrf.mxu1  ;;  %2044 = vmatpush.bf16.msra.mxu0 %v3536_v33 }
 0x111   : > { %v4544_v22 = vadd.f32 %v1254_v16, %v1205_v10  ;;  %v4548_v29 = vadd.f32 %v1159_v23, %v1110_v14  ;;  %v3539_v23 = vld [vmem:[#allocation11 + $0x20] sm:$0xf] }
 0x112   : > { %1305 = vmatmul.bf16.gmra.mxu0 %v4424_v52 }
 0x113   : > { %1354 = vmatmul.bf16.gmra.mxu1 %v4426_v53 }
 0x114   : > { %1963 = vmatmul.bf16.gmra.mxu2 %v4542_v15 }
 0x115   : > { %2012 = vmatmul.bf16.gmra.mxu3 %v4546_v24 }
 0x117   : > { %v1208_v30 = vpop.f32.mrf.mxu2  ;;  %v1112_v36 = vpop.f32.mrf.mxu0 }
 0x118   : > { %v1257_v34 = vpop.f32.mrf.mxu3  ;;  %v1161_v52 = vpop.f32.mrf.mxu1 }
 0x119   : > { %v4554_v49 = vadd.f32 %v1257_v34, %v1208_v30  ;;  %v4556_v53 = vadd.f32 %v1161_v52, %v1112_v36  ;;  %v3635_v30 = vld [vmem:[#allocation11 + $0xe0] sm:$0xf]  ;;  %v3540_v36 = vor.u32 %v3806_v25, %v3539_v23  ;;  %v3796_v52 = vld [vmem:[%s4370_s19 + $0x54] sm:$0xf0]  ;;  %v3803_v23 = vld [vmem:[#allocation11 + $0x10] sm:$0xf0] }
 0x11a   : > { %v3636_v38 = vor.u32 %v3830_v37, %v3635_v30  ;;  %v4582_v32 = vor.u32 %v3796_v52, %v3495_v40  ;;  %v3623_v25 = vld [vmem:[#allocation11 + $0xc8] sm:$0xf]  ;;  %v3797_v52 = vld [vmem:[%s4370_s19 + $0x64] sm:$0xf] }
 0x11b   : > { %2142 = vmatpush.bf16.msra.mxu2 %v3540_v36  ;;  %v3827_v36 = vld [vmem:[#allocation11 + $0xd0] sm:$0xf0]  ;;  %v3798_v40 = vld [vmem:[%s4370_s19 + $0x64] sm:$0xf0] }
 0x11c   : > { %2191 = vmatpush.bf16.msra.mxu3 %v3636_v38  ;;  %v3624_v37 = vor.u32 %v3827_v36, %v3623_v25  ;;  %v3503_v38 = vld [vmem:[%s4370_s19 + $0x60] sm:$0xf] }
 0x11f   : > { %v1210_v57 = vpop.f32.mrf.mxu2  ;;  %v1115_v3 = vpop.f32.mrf.mxu0 }
 0x120   : > { %v1259_v1 = vpop.f32.mrf.mxu3  ;;  %v1164_v11 = vpop.f32.mrf.mxu1  ;;  %2192 = vmatpush.bf16.msra.mxu3 %v3624_v37  ;;  %v3511_v37 = vld [vmem:[%s4370_s19 + $0x70] sm:$0xf] }
 0x121   : > { %v4564_v10 = vadd.f32 %v1259_v1, %v1210_v57  ;;  %v4568_v16 = vadd.f32 %v1164_v11, %v1115_v3 }
 0x122   : > { %1310 = vmatmul.bf16.gmra.mxu0 %v4436_v6 }
 0x123   : > { %1359 = vmatmul.bf16.gmra.mxu1 %v4438_v7 }
 0x124   : > { %1968 = vmatmul.bf16.gmra.mxu2 %v4562_v4 }
 0x125   : > { %2017 = vmatmul.bf16.gmra.mxu3 %v4566_v12 }
 0x127   : > { %v1213_v14 = vpop.f32.mrf.mxu2  ;;  %v1117_v20 = vpop.f32.mrf.mxu0 }
 0x128   : > { %v1262_v18 = vpop.f32.mrf.mxu3  ;;  %v1166_v6 = vpop.f32.mrf.mxu1 }
 0x129   : > { %v4574_v34 = vadd.f32 %v1262_v18, %v1213_v14  ;;  %v4576_v7 = vadd.f32 %v1166_v6, %v1117_v20  ;;  %v3527_v20 = vld [vmem:[#allocation11 + $0x8] sm:$0xf] }
 0x12a   : > { %v3528_v6 = vor.u32 %v3803_v23, %v3527_v20 }
 0x12c   : > { %2143 = vmatpush.bf16.msra.mxu2 %v3528_v6 }
 0x12f   : > { %v1215_v50 = vpop.f32.mrf.mxu2  ;;  %v1120_v57 = vpop.f32.mrf.mxu0 }
 0x130   : > { %v1264_v56 = vpop.f32.mrf.mxu3  ;;  %v1169_v3 = vpop.f32.mrf.mxu1 }
 0x131   : > { %v4584_v1 = vadd.f32 %v1264_v56, %v1215_v50  ;;  %v4588_v11 = vadd.f32 %v1169_v3, %v1120_v57  ;;  %v3801_v50 = vld [vmem:[#allocation11 + $0x4] sm:$0xf]  ;;  %v4602_v57 = vor.u32 %v3798_v40, %v3503_v38  ;;  %v3800_v38 = vld [vmem:[%s4370_s19 + $0x74] sm:$0xf0]  ;;  %v3799_v40 = vld [vmem:[%s4370_s19 + $0x74] sm:$0xf] }
 0x132   : > { %1315 = vmatmul.bf16.gmra.mxu0 %v4448_v26  ;;  %v3524_v33 = vor.u32 %v3801_v50, %v3521_v51 }
 0x133   : > { %1364 = vmatmul.bf16.gmra.mxu1 %v4450_v27 }
 0x134   : > { %1973 = vmatmul.bf16.gmra.mxu2 %v4582_v32  ;;  %2045 = vmatpush.bf16.msra.mxu0 %v3524_v33 }
 0x135   : > { %2022 = vmatmul.bf16.gmra.mxu3 %v4586_v8 }
 0x137   : > { %v1218_v13 = vpop.f32.mrf.mxu2  ;;  %v1122_v18 = vpop.f32.mrf.mxu0 }
 0x138   : > { %v1267_v14 = vpop.f32.mrf.mxu3  ;;  %v1171_v26 = vpop.f32.mrf.mxu1 }
 0x139   : > { %v4594_v30 = vadd.f32 %v1267_v14, %v1218_v13  ;;  %v4596_v27 = vadd.f32 %v1171_v26, %v1122_v18  ;;  %v4606_v13 = vor.u32 %v3797_v52, %v3505_v42  ;;  %v3620_v14 = vor.u32 %v3825_v54, %v3617_v60  ;;  %v3513_v52 = vld [vmem:[%s4370_s19 + $0x78] sm:$0xf0]  ;;  %s2933_s19 = scalar_lea.sflag [#allocation15], %s4359_s17 }
 0x13a   : > { %v4626_v54 = vor.u32 %v3799_v40, %v3513_v52 }
 0x13b   : > { %2094 = vmatpush.bf16.msra.mxu1 %v3620_v14 }
 0x13f   : > { %v1220_v46 = vpop.f32.mrf.mxu2  ;;  %v1125_v56 = vpop.f32.mrf.mxu0 }
 0x140   : > { %v1269_v55 = vpop.f32.mrf.mxu3  ;;  %v1174_v9 = vpop.f32.mrf.mxu1 }
 0x141   : > { %v4604_v3 = vadd.f32 %v1269_v55, %v1220_v46  ;;  %v4608_v18 = vadd.f32 %v1174_v9, %v1125_v56 }
 0x142   : > { %1320 = vmatmul.bf16.gmra.mxu0 %v4460_v47 }
 0x143   : > { %1369 = vmatmul.bf16.gmra.mxu1 %v4462_v48  ;;  %v4622_v48 = vor.u32 %v3800_v38, %v3511_v37 }
 0x144   : > { %1978 = vmatmul.bf16.gmra.mxu2 %v4602_v57 }
 0x145   : > { %2027 = vmatmul.bf16.gmra.mxu3 %v4606_v13 }
 0x147   : > { %v1223_v20 = vpop.f32.mrf.mxu2  ;;  %v1127_v25 = vpop.f32.mrf.mxu0 }
 0x148   : > { %v1272_v23 = vpop.f32.mrf.mxu3  ;;  %v1176_v6 = vpop.f32.mrf.mxu1 }
 0x149   : > { %v4614_v26 = vadd.f32 %v1272_v23, %v1223_v20  ;;  %v4616_v36 = vadd.f32 %v1176_v6, %v1127_v25  ;;  %v4641_v23 = vld [vmem:[%s5088_s4] sm:$0x7] }
 0x14f   : > { %v1225_v47 = vpop.f32.mrf.mxu2  ;;  %v1130_v46 = vpop.f32.mrf.mxu0 }
 0x150   : > { %v1274_v42 = vpop.f32.mrf.mxu3  ;;  %v1179_v51 = vpop.f32.mrf.mxu1 }
 0x151   : > { %v4624_v50 = vadd.f32 %v1274_v42, %v1225_v47  ;;  %v4628_v55 = vadd.f32 %v1179_v51, %v1130_v46  ;;  %v4658_v47 = vld [vmem:[%s5090_s6] sm:$0x7] }
 0x152   : > { %1325 = vmatmul.bf16.gmra.mxu0 %v4472_v62  ;;  %v4663_v46 = vperm.slane %v4658_v47, 0 }
 0x153   : > { %5111 = vst [vmem:[#allocation27_spill] sm:$0xff] %v4624_v50  ;;  %1374 = vmatmul.bf16.gmra.mxu1 %v4474_v63  ;;  %v4644_v63 = vperm.slane %v4641_v23, 0 }
 0x154   : > { %1983 = vmatmul.bf16.gmra.mxu2 %v4622_v48 }
 0x155   : > { %2032 = vmatmul.bf16.gmra.mxu3 %v4626_v54  ;;  %v2390_v52 = vadd.f32 %v4644_v63, %v4488_v31 }
 0x157   : > { %v1228_v56 = vpop.f32.mrf.mxu2  ;;  %v1132_v60 = vpop.f32.mrf.mxu0  ;;  %v2486_v51 = vmul.f32 0.01, %v2390_v52  ;;  %vm2438_vm0 = vcmp.ge.f32.partialorder %v2390_v52, 0.0 }
 0x158   : > { %v1277_v33 = vpop.f32.mrf.mxu3  ;;  %v1181_v14 = vpop.f32.mrf.mxu1 }
 0x159   : > { %v4634_v9 = vadd.f32 %v1277_v33, %v1228_v56  ;;  %v4636_v20 = vadd.f32 %v1181_v14, %v1132_v60 }
 0x15b   : > { %5112 = vst [vmem:[#allocation28_spill] sm:$0xff] %v4634_v9 }
 0x15f   : > { %v1230_v62 = vpop.f32.mrf.mxu2  ;;  %v1291_v6 = vpop.f32.mrf.mxu0 }
 0x160   : > { %v1279_v25 = vpop.f32.mrf.mxu3  ;;  %v1340_v38 = vpop.f32.mrf.mxu1 }
 0x161   : > { %v4646_v37 = vadd.f32 %v1279_v25, %v1230_v62  ;;  %v4648_v40 = vadd.f32 %v1340_v38, %v1291_v6  ;;  %v2534_v62 = vsel %vm2438_vm0, %v2390_v52, %v2486_v51  ;;  %v2393_v25 = vadd.f32 %v4644_v63, %v4496_v43 }
 0x162   : > { %2046 = vmatmul.bf16.vlgmr.msra.gmra.mxu0 %v4484_v21 }
 0x163   : > { %5113 = vst [vmem:[#allocation29_spill] sm:$0xff] %v4646_v37  ;;  %2095 = vmatmul.bf16.vlgmr.msra.gmra.mxu1 %v4486_v28  ;;  %vm2441_vm1 = vcmp.ge.f32.partialorder %v2393_v25, 0.0 }
 0x164   : > { %2144 = vmatmul.bf16.vlgmr.msra.gmra.mxu2 %v4484_v21 }
 0x165   : > { %2193 = vmatmul.bf16.vlgmr.msra.gmra.mxu3 %v4486_v28  ;;  %v4670_v28 = vstv %s2333_s21 }
 0x167   : > { %v1949_v42 = vpop.f32.mrf.mxu2  ;;  %v1293_v31 = vpop.f32.mrf.mxu0 }
 0x168   : > { %v1998_v56 = vpop.f32.mrf.mxu3  ;;  %v1342_v60 = vpop.f32.mrf.mxu1 }
 0x169   : > { %v1999_v33 = vadd.f32 %v1998_v56, %v1949_v42  ;;  %v4665_v21 = vadd.f32 %v1342_v60, %v1293_v31  ;;  %v2489_v42 = vmul.f32 0.01, %v2393_v25 }
 0x16b   : > { %v2638_v14 = vadd.f32 %v4663_v46, %v1999_v33 }
 0x16d   : > { %2686 = vst [vmem:[%s4672_s28] sm:$0xff] %v2638_v14  ;;  %v2734_v6 = vsub.f32 %v2534_v62, %v2638_v14  ;;  %v2537_v62 = vsel %vm2441_vm1, %v2393_v25, %v2489_v42 }
 0x16f   : > { %v2783_v38 = vmul.f32 %v4670_v28, %v2734_v6  ;;  %v1951_v37 = vpop.f32.mrf.mxu2  ;;  %v1296_v31 = vpop.f32.mrf.mxu0  ;;  %v2396_v6 = vadd.f32 %v4644_v63, %v4508_v5 }
 0x170   : > { %v2000_v56 = vpop.f32.mrf.mxu3  ;;  %v1345_v51 = vpop.f32.mrf.mxu1 }
 0x171   : > { %v2831_v33 = vadd.f32 %v2783_v38, %v2638_v14  ;;  %v2001_v52 = vadd.f32 %v2000_v56, %v1951_v37  ;;  %v4676_v60 = vadd.f32 %v1345_v51, %v1296_v31  ;;  %v2492_v56 = vmul.f32 0.01, %v2396_v6 }
 0x172   : > { %2051 = vmatmul.bf16.gmra.mxu0 %v4502_v58  ;;  %vm2444_vm2 = vcmp.ge.f32.partialorder %v2396_v6, 0.0 }
 0x173   : > { %2879 = vst [vmem:[%s4678_s20] sm:$0xff] %v2831_v33  ;;  %v2641_v43 = vadd.f32 %v4663_v46, %v2001_v52  ;;  %2100 = vmatmul.bf16.gmra.mxu1 %v4506_v2  ;;  %v2540_v51 = vsel %vm2444_vm2, %v2396_v6, %v2492_v56  ;;  %v2402_v56 = vadd.f32 %v4644_v63, %v4528_v45 }
 0x174   : > { %2149 = vmatmul.bf16.gmra.mxu2 %v4502_v58 }
 0x175   : > { %2689 = vst [vmem:[%s4672_s28 + $0x18] sm:$0xff] %v2641_v43  ;;  %v2737_v37 = vsub.f32 %v2537_v62, %v2641_v43  ;;  %2198 = vmatmul.bf16.gmra.mxu3 %v4506_v2  ;;  %v2399_v2 = vadd.f32 %v4644_v63, %v4516_v19  ;;  %vm2450_vm4 = vcmp.ge.f32.partialorder %v2402_v56, 0.0 }
 0x177   : > { %v2786_v14 = vmul.f32 %v4670_v28, %v2737_v37  ;;  %v1954_v38 = vpop.f32.mrf.mxu2  ;;  %v1298_v33 = vpop.f32.mrf.mxu0  ;;  %v2495_v50 = vmul.f32 0.01, %v2399_v2  ;;  %vm2447_vm3 = vcmp.ge.f32.partialorder %v2399_v2, 0.0 }
 0x178   : > { %v2003_v31 = vpop.f32.mrf.mxu3  ;;  %v1347_v5 = vpop.f32.mrf.mxu1 }
 0x179   : > { %v2834_v25 = vadd.f32 %v2786_v14, %v2641_v43  ;;  %v2004_v42 = vadd.f32 %v2003_v31, %v1954_v38  ;;  %v4690_v52 = vadd.f32 %v1347_v5, %v1298_v33  ;;  %v2543_v19 = vsel %vm2447_vm3, %v2399_v2, %v2495_v50 }
 0x17b   : > { %2882 = vst [vmem:[%s4678_s20 + $0x18] sm:$0xff] %v2834_v25  ;;  %v2644_v58 = vadd.f32 %v4663_v46, %v2004_v42 }
 0x17d   : > { %2692 = vst [vmem:[%s4672_s28 + $0x30] sm:$0xff] %v2644_v58  ;;  %v2740_v62 = vsub.f32 %v2540_v51, %v2644_v58 }
 0x17f   : > { %v2789_v37 = vmul.f32 %v4670_v28, %v2740_v62  ;;  %v1956_v9 = vpop.f32.mrf.mxu2  ;;  %v1301_v14 = vpop.f32.mrf.mxu0 }
 0x180   : > { %v2005_v43 = vpop.f32.mrf.mxu3  ;;  %v1350_v33 = vpop.f32.mrf.mxu1 }
 0x181   : > { %v2837_v38 = vadd.f32 %v2789_v37, %v2644_v58  ;;  %v2006_v31 = vadd.f32 %v2005_v43, %v1956_v9  ;;  %v4698_v25 = vadd.f32 %v1350_v33, %v1301_v14  ;;  %v2498_v58 = vmul.f32 0.01, %v2402_v56 }
 0x182   : > { %2056 = vmatmul.bf16.gmra.mxu0 %v4522_v35 }
 0x183   : > { %2885 = vst [vmem:[%s4678_s20 + $0x30] sm:$0xff] %v2837_v38  ;;  %v2647_v6 = vadd.f32 %v4663_v46, %v2006_v31  ;;  %2105 = vmatmul.bf16.gmra.mxu1 %v4526_v44  ;;  %v2546_v43 = vsel %vm2450_vm4, %v2402_v56, %v2498_v58  ;;  %v2408_v58 = vadd.f32 %v4644_v63, %v4548_v29 }
 0x184   : > { %2154 = vmatmul.bf16.gmra.mxu2 %v4522_v35 }
 0x185   : > { %2695 = vst [vmem:[%s4672_s28 + $0x48] sm:$0xff] %v2647_v6  ;;  %v2743_v42 = vsub.f32 %v2543_v19, %v2647_v6  ;;  %2203 = vmatmul.bf16.gmra.mxu3 %v4526_v44  ;;  %v2405_v44 = vadd.f32 %v4644_v63, %v4536_v61  ;;  %vm2456_vm6 = vcmp.ge.f32.partialorder %v2408_v58, 0.0 }
 0x187   : > { %v2792_v9 = vmul.f32 %v4670_v28, %v2743_v42  ;;  %v1959_v5 = vpop.f32.mrf.mxu2  ;;  %v1303_v62 = vpop.f32.mrf.mxu0  ;;  %v2501_v33 = vmul.f32 0.01, %v2405_v44  ;;  %vm2453_vm5 = vcmp.ge.f32.partialorder %v2405_v44, 0.0 }
 0x188   : > { %v2008_v51 = vpop.f32.mrf.mxu3  ;;  %v1352_v45 = vpop.f32.mrf.mxu1 }
 0x189   : > { %v2840_v50 = vadd.f32 %v2792_v9, %v2647_v6  ;;  %v2009_v2 = vadd.f32 %v2008_v51, %v1959_v5  ;;  %v4710_v37 = vadd.f32 %v1352_v45, %v1303_v62  ;;  %v2549_v61 = vsel %vm2453_vm5, %v2405_v44, %v2501_v33 }
 0x18a   : > { %v2504_v45 = vmul.f32 0.01, %v2408_v58 }
 0x18b   : > { %2888 = vst [vmem:[%s4678_s20 + $0x48] sm:$0xff] %v2840_v50  ;;  %v2650_v35 = vadd.f32 %v4663_v46, %v2009_v2 }
 0x18d   : > { %2698 = vst [vmem:[%s4672_s28 + $0x60] sm:$0xff] %v2650_v35  ;;  %v2746_v14 = vsub.f32 %v2546_v43, %v2650_v35 }
 0x18f   : > { %v2795_v38 = vmul.f32 %v4670_v28, %v2746_v14  ;;  %v1961_v31 = vpop.f32.mrf.mxu2  ;;  %v1306_v19 = vpop.f32.mrf.mxu0 }
 0x190   : > { %v2010_v6 = vpop.f32.mrf.mxu3  ;;  %v1355_v5 = vpop.f32.mrf.mxu1 }
 0x191   : > { %v2843_v42 = vadd.f32 %v2795_v38, %v2650_v35  ;;  %v2011_v9 = vadd.f32 %v2010_v6, %v1961_v31  ;;  %v4718_v51 = vadd.f32 %v1355_v5, %v1306_v19  ;;  %v2552_v31 = vsel %vm2456_vm6, %v2408_v58, %v2504_v45 }
 0x192   : > { %2061 = vmatmul.bf16.gmra.mxu0 %v4542_v15 }
 0x193   : > { %2891 = vst [vmem:[%s4678_s20 + $0x60] sm:$0xff] %v2843_v42  ;;  %v2653_v56 = vadd.f32 %v4663_v46, %v2011_v9  ;;  %2110 = vmatmul.bf16.gmra.mxu1 %v4546_v24 }
 0x194   : > { %2159 = vmatmul.bf16.gmra.mxu2 %v4542_v15 }
 0x195   : > { %2701 = vst [vmem:[%s4672_s28 + $0x78] sm:$0xff] %v2653_v56  ;;  %v2749_v62 = vsub.f32 %v2549_v61, %v2653_v56  ;;  %2208 = vmatmul.bf16.gmra.mxu3 %v4546_v24  ;;  %v2411_v24 = vadd.f32 %v4644_v63, %v4556_v53 }
 0x197   : > { %v2798_v50 = vmul.f32 %v4670_v28, %v2749_v62  ;;  %v1964_v2 = vpop.f32.mrf.mxu2  ;;  %v1308_v43 = vpop.f32.mrf.mxu0  ;;  %v2507_v42 = vmul.f32 0.01, %v2411_v24  ;;  %vm2459_vm7 = vcmp.ge.f32.partialorder %v2411_v24, 0.0 }
 0x198   : > { %v2013_v35 = vpop.f32.mrf.mxu3  ;;  %v1357_v29 = vpop.f32.mrf.mxu1 }
 0x199   : > { %v2846_v44 = vadd.f32 %v2798_v50, %v2653_v56  ;;  %v2014_v14 = vadd.f32 %v2013_v35, %v1964_v2  ;;  %v4730_v38 = vadd.f32 %v1357_v29, %v1308_v43  ;;  %v2555_v53 = vsel %vm2459_vm7, %v2411_v24, %v2507_v42 }
 0x19a   : > { %v2414_v2 = vadd.f32 %v4644_v63, %v4568_v16 }
 0x19b   : > { %2894 = vst [vmem:[%s4678_s20 + $0x78] sm:$0xff] %v2846_v44  ;;  %v2656_v15 = vadd.f32 %v4663_v46, %v2014_v14 }
 0x19c   : > { %v2510_v44 = vmul.f32 0.01, %v2414_v2  ;;  %vm2462_vm8 = vcmp.ge.f32.partialorder %v2414_v2, 0.0 }
 0x19d   : > { %2704 = vst [vmem:[%s4672_s28 + $0x90] sm:$0xff] %v2656_v15  ;;  %v2752_v33 = vsub.f32 %v2552_v31, %v2656_v15 }
 0x19f   : > { %v2801_v6 = vmul.f32 %v4670_v28, %v2752_v33  ;;  %v1966_v19 = vpop.f32.mrf.mxu2  ;;  %v1311_v5 = vpop.f32.mrf.mxu0  ;;  %v2558_v33 = vsel %vm2462_vm8, %v2414_v2, %v2510_v44 }
 0x1a0   : > { %v2015_v9 = vpop.f32.mrf.mxu3  ;;  %v1360_v62 = vpop.f32.mrf.mxu1 }
 0x1a1   : > { %v2849_v56 = vadd.f32 %v2801_v6, %v2656_v15  ;;  %v2016_v61 = vadd.f32 %v2015_v9, %v1966_v19  ;;  %v4738_v50 = vadd.f32 %v1360_v62, %v1311_v5 }
 0x1a2   : > { %2066 = vmatmul.bf16.gmra.mxu0 %v4562_v4 }
 0x1a3   : > { %2897 = vst [vmem:[%s4678_s20 + $0x90] sm:$0xff] %v2849_v56  ;;  %v2659_v58 = vadd.f32 %v4663_v46, %v2016_v61  ;;  %2115 = vmatmul.bf16.gmra.mxu1 %v4566_v12 }
 0x1a4   : > { %2164 = vmatmul.bf16.gmra.mxu2 %v4562_v4 }
 0x1a5   : > { %2707 = vst [vmem:[%s4672_s28 + $0xa8] sm:$0xff] %v2659_v58  ;;  %v2755_v45 = vsub.f32 %v2555_v53, %v2659_v58  ;;  %2213 = vmatmul.bf16.gmra.mxu3 %v4566_v12  ;;  %v2417_v12 = vadd.f32 %v4644_v63, %v4576_v7  ;;  %v2420_v7 = vadd.f32 %v4644_v63, %v4588_v11 }
 0x1a7   : > { %v2804_v35 = vmul.f32 %v4670_v28, %v2755_v45  ;;  %v1969_v43 = vpop.f32.mrf.mxu2  ;;  %v1313_v29 = vpop.f32.mrf.mxu0  ;;  %v2513_v9 = vmul.f32 0.01, %v2417_v12  ;;  %vm2465_vm9 = vcmp.ge.f32.partialorder %v2417_v12, 0.0  ;;  %vm2468_vm10 = vcmp.ge.f32.partialorder %v2420_v7, 0.0 }
 0x1a8   : > { %v2018_v14 = vpop.f32.mrf.mxu3  ;;  %v1362_v16 = vpop.f32.mrf.mxu1 }
 0x1a9   : > { %v2852_v15 = vadd.f32 %v2804_v35, %v2659_v58  ;;  %v2019_v31 = vadd.f32 %v2018_v14, %v1969_v43  ;;  %v4750_v24 = vadd.f32 %v1362_v16, %v1313_v29  ;;  %v2561_v45 = vsel %vm2465_vm9, %v2417_v12, %v2513_v9 }
 0x1aa   : > { %v2516_v14 = vmul.f32 0.01, %v2420_v7 }
 0x1ab   : > { %2900 = vst [vmem:[%s4678_s20 + $0xa8] sm:$0xff] %v2852_v15  ;;  %v2662_v4 = vadd.f32 %v4663_v46, %v2019_v31 }
 0x1ad   : > { %2710 = vst [vmem:[%s4672_s28 + $0xc0] sm:$0xff] %v2662_v4  ;;  %v2758_v6 = vsub.f32 %v2558_v33, %v2662_v4  ;;  %v2564_v33 = vsel %vm2468_vm10, %v2420_v7, %v2516_v14 }
 0x1af   : > { %v2807_v19 = vmul.f32 %v4670_v28, %v2758_v6  ;;  %v1971_v42 = vpop.f32.mrf.mxu2  ;;  %v1316_v56 = vpop.f32.mrf.mxu0 }
 0x1b0   : > { %v2020_v5 = vpop.f32.mrf.mxu3  ;;  %v1365_v58 = vpop.f32.mrf.mxu1 }
 0x1b1   : > { %v2855_v61 = vadd.f32 %v2807_v19, %v2662_v4  ;;  %v2021_v62 = vadd.f32 %v2020_v5, %v1971_v42  ;;  %v4758_v53 = vadd.f32 %v1365_v58, %v1316_v56 }
 0x1b2   : > { %2071 = vmatmul.bf16.gmra.mxu0 %v4582_v32 }
 0x1b3   : > { %2903 = vst [vmem:[%s4678_s20 + $0xc0] sm:$0xff] %v2855_v61  ;;  %v2665_v2 = vadd.f32 %v4663_v46, %v2021_v62  ;;  %2120 = vmatmul.bf16.gmra.mxu1 %v4586_v8 }
 0x1b4   : > { %2169 = vmatmul.bf16.gmra.mxu2 %v4582_v32 }
 0x1b5   : > { %2713 = vst [vmem:[%s4672_s28 + $0xd8] sm:$0xff] %v2665_v2  ;;  %v2761_v35 = vsub.f32 %v2561_v45, %v2665_v2  ;;  %2218 = vmatmul.bf16.gmra.mxu3 %v4586_v8  ;;  %v2423_v8 = vadd.f32 %v4644_v63, %v4596_v27  ;;  %v2426_v27 = vadd.f32 %v4644_v63, %v4608_v18 }
 0x1b7   : > { %v2810_v43 = vmul.f32 %v4670_v28, %v2761_v35  ;;  %v1974_v44 = vpop.f32.mrf.mxu2  ;;  %v1318_v15 = vpop.f32.mrf.mxu0  ;;  %v2519_v42 = vmul.f32 0.01, %v2423_v8  ;;  %vm2471_vm11 = vcmp.ge.f32.partialorder %v2423_v8, 0.0  ;;  %vm2474_vm12 = vcmp.ge.f32.partialorder %v2426_v27, 0.0 }
 0x1b8   : > { %v2023_v29 = vpop.f32.mrf.mxu3  ;;  %v1367_v16 = vpop.f32.mrf.mxu1 }
 0x1b9   : > { %v2858_v31 = vadd.f32 %v2810_v43, %v2665_v2  ;;  %v2024_v11 = vadd.f32 %v2023_v29, %v1974_v44  ;;  %v4770_v4 = vadd.f32 %v1367_v16, %v1318_v15  ;;  %v2567_v7 = vsel %vm2471_vm11, %v2423_v8, %v2519_v42 }
 0x1ba   : > { %v2522_v44 = vmul.f32 0.01, %v2426_v27 }
 0x1bb   : > { %2906 = vst [vmem:[%s4678_s20 + $0xd8] sm:$0xff] %v2858_v31  ;;  %v2668_v32 = vadd.f32 %v4663_v46, %v2024_v11 }
 0x1bc   : > { %v2570_v16 = vsel %vm2474_vm12, %v2426_v27, %v2522_v44  ;;  %v4811_v44 = vperm.slane %v4641_v23, 1 }
 0x1bd   : > { %2716 = vst [vmem:[%s4672_s28 + $0xf0] sm:$0xff] %v2668_v32  ;;  %v2764_v12 = vsub.f32 %v2564_v33, %v2668_v32 }
 0x1bf   : > { %v2813_v6 = vmul.f32 %v4670_v28, %v2764_v12  ;;  %v1976_v19 = vpop.f32.mrf.mxu2  ;;  %v1321_v5 = vpop.f32.mrf.mxu0 }
 0x1c0   : > { %v2025_v9 = vpop.f32.mrf.mxu3  ;;  %v1370_v62 = vpop.f32.mrf.mxu1 }
 0x1c1   : > { %v2861_v56 = vadd.f32 %v2813_v6, %v2668_v32  ;;  %v2026_v61 = vadd.f32 %v2025_v9, %v1976_v19  ;;  %v4778_v58 = vadd.f32 %v1370_v62, %v1321_v5 }
 0x1c2   : > { %2076 = vmatmul.bf16.gmra.mxu0 %v4602_v57 }
 0x1c3   : > { %2909 = vst [vmem:[%s4678_s20 + $0xf0] sm:$0xff] %v2861_v56  ;;  %v2671_v2 = vadd.f32 %v4663_v46, %v2026_v61  ;;  %2125 = vmatmul.bf16.gmra.mxu1 %v4606_v13 }
 0x1c4   : > { %2174 = vmatmul.bf16.gmra.mxu2 %v4602_v57 }
 0x1c5   : > { %2719 = vst [vmem:[%s4672_s28 + $0x108] sm:$0xff] %v2671_v2  ;;  %v2767_v45 = vsub.f32 %v2567_v7, %v2671_v2  ;;  %2223 = vmatmul.bf16.gmra.mxu3 %v4606_v13  ;;  %v2429_v13 = vadd.f32 %v4644_v63, %v4616_v36  ;;  %v2432_v36 = vadd.f32 %v4644_v63, %v4628_v55 }
 0x1c7   : > { %v2816_v35 = vmul.f32 %v4670_v28, %v2767_v45  ;;  %v1979_v43 = vpop.f32.mrf.mxu2  ;;  %v1323_v29 = vpop.f32.mrf.mxu0  ;;  %v2525_v12 = vmul.f32 0.01, %v2429_v13  ;;  %vm2477_vm13 = vcmp.ge.f32.partialorder %v2429_v13, 0.0  ;;  %v2528_v45 = vmul.f32 0.01, %v2432_v36 }
 0x1c8   : > { %v2028_v14 = vpop.f32.mrf.mxu3  ;;  %v1372_v31 = vpop.f32.mrf.mxu1  ;;  %vm2480_vm14 = vcmp.ge.f32.partialorder %v2432_v36, 0.0 }
 0x1c9   : > { %v2864_v15 = vadd.f32 %v2816_v35, %v2671_v2  ;;  %v2029_v18 = vadd.f32 %v2028_v14, %v1979_v43  ;;  %v4790_v11 = vadd.f32 %v1372_v31, %v1323_v29  ;;  %v2573_v62 = vsel %vm2477_vm13, %v2429_v13, %v2525_v12 }
 0x1ca   : > { %v2391_v31 = vadd.f32 %v4811_v44, %v4494_v41 }
 0x1cb   : > { %2912 = vst [vmem:[%s4678_s20 + $0x108] sm:$0xff] %v2864_v15  ;;  %v2674_v57 = vadd.f32 %v4663_v46, %v2029_v18  ;;  %v2435_v18 = vadd.f32 %v4644_v63, %v4636_v20 }
 0x1cc   : > { %v2487_v20 = vmul.f32 0.01, %v2391_v31  ;;  %vm2439_vm0 = vcmp.ge.f32.partialorder %v2391_v31, 0.0 }
 0x1cd   : > { %2722 = vst [vmem:[%s4672_s28 + $0x120] sm:$0xff] %v2674_v57  ;;  %v2770_v32 = vsub.f32 %v2570_v16, %v2674_v57  ;;  %vm2483_vm15 = vcmp.ge.f32.partialorder %v2435_v18, 0.0 }
 0x1cf   : > { %v2819_v33 = vmul.f32 %v4670_v28, %v2770_v32  ;;  %v1981_v8 = vpop.f32.mrf.mxu2  ;;  %v1326_v19 = vpop.f32.mrf.mxu0  ;;  %v2531_v32 = vmul.f32 0.01, %v2435_v18 }
 0x1d0   : > { %v2030_v6 = vpop.f32.mrf.mxu3  ;;  %v1375_v5 = vpop.f32.mrf.mxu1 }
 0x1d1   : > { %v2867_v42 = vadd.f32 %v2819_v33, %v2674_v57  ;;  %v2031_v9 = vadd.f32 %v2030_v6, %v1981_v8  ;;  %v4798_v56 = vadd.f32 %v1375_v5, %v1326_v19  ;;  %v4824_v33 = vperm.slane %v4641_v23, 2 }
 0x1d2   : > { %2081 = vmatmul.bf16.gmra.mxu0 %v4622_v48  ;;  %v4827_v6 = vperm.slane %v4658_v47, 1  ;;  %v2579_v5 = vsel %vm2483_vm15, %v2435_v18, %v2531_v32 }
 0x1d3   : > { %2915 = vst [vmem:[%s4678_s20 + $0x120] sm:$0xff] %v2867_v42  ;;  %v2677_v61 = vadd.f32 %v4663_v46, %v2031_v9  ;;  %2130 = vmatmul.bf16.gmra.mxu1 %v4626_v54  ;;  %v2392_v23 = vadd.f32 %v4824_v33, %v4648_v40 }
 0x1d4   : > { %2179 = vmatmul.bf16.gmra.mxu2 %v4622_v48 }
 0x1d5   : > { %2725 = vst [vmem:[%s4672_s28 + $0x138] sm:$0xff] %v2677_v61  ;;  %v2773_v2 = vsub.f32 %v2573_v62, %v2677_v61  ;;  %2228 = vmatmul.bf16.gmra.mxu3 %v4626_v54  ;;  %v2576_v54 = vsel %vm2480_vm14, %v2432_v36, %v2528_v45  ;;  %v2535_v36 = vsel %vm2439_vm0, %v2391_v31, %v2487_v20  ;;  %vm2440_vm1 = vcmp.ge.f32.partialorder %v2392_v23, 0.0 }
 0x1d6   : > { %v2394_v62 = vadd.f32 %v4811_v44, %v4504_v0 }
 0x1d7   : > { %v2822_v27 = vmul.f32 %v4670_v28, %v2773_v2  ;;  %v1984_v7 = vpop.f32.mrf.mxu2  ;;  %v1328_v43 = vpop.f32.mrf.mxu0 }
 0x1d8   : > { %v2033_v35 = vpop.f32.mrf.mxu3  ;;  %v1377_v29 = vpop.f32.mrf.mxu1  ;;  %vm2442_vm2 = vcmp.ge.f32.partialorder %v2394_v62, 0.0 }
 0x1d9   : > { %v2870_v55 = vadd.f32 %v2822_v27, %v2677_v61  ;;  %v2034_v14 = vadd.f32 %v2033_v35, %v1984_v7  ;;  %v4813_v15 = vadd.f32 %v1377_v29, %v1328_v43  ;;  %v2488_v35 = vmul.f32 0.01, %v2392_v23 }
 0x1db   : > { %2918 = vst [vmem:[%s4678_s20 + $0x138] sm:$0xff] %v2870_v55  ;;  %v2680_v48 = vadd.f32 %v4663_v46, %v2034_v14  ;;  %v2490_v14 = vmul.f32 0.01, %v2394_v62  ;;  %v2536_v31 = vsel %vm2440_vm1, %v2392_v23, %v2488_v35  ;;  %v2400_v35 = vadd.f32 %v4811_v44, %v4524_v39 }
 0x1dd   : > { %2728 = vst [vmem:[%s4672_s28 + $0x150] sm:$0xff] %v2680_v48  ;;  %v2776_v57 = vsub.f32 %v2576_v54, %v2680_v48  ;;  %vm2448_vm6 = vcmp.ge.f32.partialorder %v2400_v35, 0.0 }
 0x1df   : > { %v2825_v16 = vmul.f32 %v4670_v28, %v2776_v57  ;;  %v1986_v13 = vpop.f32.mrf.mxu2  ;;  %v2047_v12 = vpop.f32.mrf.mxu0  ;;  %v2395_v57 = vadd.f32 %v4824_v33, %v4665_v21 }
 0x1e0   : > { %v2035_v8 = vpop.f32.mrf.mxu3  ;;  %v2096_v19 = vpop.f32.mrf.mxu1 }
 0x1e1   : > { %v2873_v41 = vadd.f32 %v2825_v16, %v2680_v48  ;;  %v2036_v63 = vadd.f32 %v2035_v8, %v1986_v13  ;;  %v2097_v42 = vadd.f32 %v2096_v19, %v2047_v12  ;;  %v2397_v13 = vadd.f32 %v4811_v44, %v4514_v17 }
 0x1e2   : > { %v2538_v8 = vsel %vm2442_vm2, %v2394_v62, %v2490_v14  ;;  %vm2443_vm3 = vcmp.ge.f32.partialorder %v2395_v57, 0.0 }
 0x1e3   : > { %2921 = vst [vmem:[%s4678_s20 + $0x150] sm:$0xff] %v2873_v41  ;;  %v2683_v9 = vadd.f32 %v4663_v46, %v2036_v63  ;;  %v2639_v61 = vadd.f32 %v4827_v6, %v2097_v42  ;;  %v4840_v46 = vperm.slane %v4658_v47, 2  ;;  %v2491_v63 = vmul.f32 0.01, %v2395_v57 }
 0x1e4   : > { %vm2445_vm4 = vcmp.ge.f32.partialorder %v2397_v13, 0.0 }
 0x1e5   : > { %2731 = vst [vmem:[%s4672_s28 + $0x168] sm:$0xff] %v2683_v9  ;;  %v2779_v2 = vsub.f32 %v2579_v5, %v2683_v9  ;;  %v2735_v27 = vsub.f32 %v2535_v36, %v2639_v61 }
 0x1e6   : > { %2687 = vst [vmem:[%s4672_s28 + $0x8] sm:$0xff] %v2639_v61 }
 0x1e7   : > { %v2828_v7 = vmul.f32 %v4670_v28, %v2779_v2  ;;  %v2145_v45 = vpop.f32.mrf.mxu2  ;;  %v2784_v40 = vmul.f32 %v4670_v28, %v2735_v27  ;;  %v2049_v55 = vpop.f32.mrf.mxu0  ;;  %v2398_v2 = vadd.f32 %v4824_v33, %v4676_v60  ;;  %v2539_v27 = vsel %vm2443_vm3, %v2395_v57, %v2491_v63 }
 0x1e8   : > { %v2194_v43 = vpop.f32.mrf.mxu3  ;;  %v2098_v48 = vpop.f32.mrf.mxu1 }
 0x1e9   : > { %v2876_v0 = vadd.f32 %v2828_v7, %v2683_v9  ;;  %v2195_v29 = vadd.f32 %v2194_v43, %v2145_v45  ;;  %v2832_v54 = vadd.f32 %v2784_v40, %v2639_v61  ;;  %v2099_v18 = vadd.f32 %v2098_v48, %v2049_v55 }
 0x1ea   : > { %v2493_v9 = vmul.f32 0.01, %v2397_v13  ;;  %vm2446_vm5 = vcmp.ge.f32.partialorder %v2398_v2, 0.0 }
 0x1eb   : > { %2924 = vst [vmem:[%s4678_s20 + $0x168] sm:$0xff] %v2876_v0  ;;  %v2640_v47 = vadd.f32 %v4840_v46, %v2195_v29  ;;  %v2642_v16 = vadd.f32 %v4827_v6, %v2099_v18  ;;  %v2494_v0 = vmul.f32 0.01, %v2398_v2 }
 0x1ec   : > { %2880 = vst [vmem:[%s4678_s20 + $0x8] sm:$0xff] %v2832_v54  ;;  %v2541_v45 = vsel %vm2445_vm4, %v2397_v13, %v2493_v9  ;;  %v2496_v54 = vmul.f32 0.01, %v2400_v35 }
 0x1ed   : > { %2688 = vst [vmem:[%s4672_s28 + $0x10] sm:$0xff] %v2640_v47  ;;  %v2736_v32 = vsub.f32 %v2536_v31, %v2640_v47  ;;  %v2738_v12 = vsub.f32 %v2538_v8, %v2642_v16  ;;  %v2542_v13 = vsel %vm2446_vm5, %v2398_v2, %v2494_v0 }
 0x1ee   : > { %2690 = vst [vmem:[%s4672_s28 + $0x20] sm:$0xff] %v2642_v16 }
 0x1ef   : > { %v2785_v20 = vmul.f32 %v4670_v28, %v2736_v32  ;;  %v2147_v41 = vpop.f32.mrf.mxu2  ;;  %v2787_v19 = vmul.f32 %v4670_v28, %v2738_v12  ;;  %v2052_v42 = vpop.f32.mrf.mxu0  ;;  %v2401_v32 = vadd.f32 %v4824_v33, %v4690_v52  ;;  %v2403_v12 = vadd.f32 %v4811_v44, %v4534_v59 }
 0x1f0   : > { %v2196_v21 = vpop.f32.mrf.mxu3  ;;  %v2101_v5 = vpop.f32.mrf.mxu1 }
 0x1f1   : > { %v2833_v23 = vadd.f32 %v2785_v20, %v2640_v47  ;;  %v2197_v17 = vadd.f32 %v2196_v21, %v2147_v41  ;;  %v2835_v61 = vadd.f32 %v2787_v19, %v2642_v16  ;;  %v2102_v36 = vadd.f32 %v2101_v5, %v2052_v42 }
 0x1f2   : > { %v2544_v41 = vsel %vm2448_vm6, %v2400_v35, %v2496_v54  ;;  %v2497_v42 = vmul.f32 0.01, %v2401_v32  ;;  %vm2449_vm7 = vcmp.ge.f32.partialorder %v2401_v32, 0.0  ;;  %vm2451_vm8 = vcmp.ge.f32.partialorder %v2403_v12, 0.0 }
 0x1f3   : > { %2881 = vst [vmem:[%s4678_s20 + $0x10] sm:$0xff] %v2833_v23  ;;  %v2643_v62 = vadd.f32 %v4840_v46, %v2197_v17  ;;  %v2645_v7 = vadd.f32 %v4827_v6, %v2102_v36  ;;  %v2499_v17 = vmul.f32 0.01, %v2403_v12 }
 0x1f4   : > { %2883 = vst [vmem:[%s4678_s20 + $0x20] sm:$0xff] %v2835_v61 }
 0x1f5   : > { %2691 = vst [vmem:[%s4672_s28 + $0x28] sm:$0xff] %v2643_v62  ;;  %v2739_v40 = vsub.f32 %v2539_v27, %v2643_v62  ;;  %v2741_v43 = vsub.f32 %v2541_v45, %v2645_v7  ;;  %v2404_v27 = vadd.f32 %v4824_v33, %v4698_v25  ;;  %v2547_v35 = vsel %vm2451_vm8, %v2403_v12, %v2499_v17 }
 0x1f6   : > { %2693 = vst [vmem:[%s4672_s28 + $0x38] sm:$0xff] %v2645_v7 }
 0x1f7   : > { %v2788_v55 = vmul.f32 %v4670_v28, %v2739_v40  ;;  %v2150_v14 = vpop.f32.mrf.mxu2  ;;  %v2790_v60 = vmul.f32 %v4670_v28, %v2741_v43  ;;  %v2054_v48 = vpop.f32.mrf.mxu0  ;;  %v2406_v40 = vadd.f32 %v4811_v44, %v4544_v22  ;;  %vm2452_vm9 = vcmp.ge.f32.partialorder %v2404_v27, 0.0 }
 0x1f8   : > { %v2199_v29 = vpop.f32.mrf.mxu3  ;;  %v2103_v47 = vpop.f32.mrf.mxu1 }
 0x1f9   : > { %v2836_v18 = vadd.f32 %v2788_v55, %v2643_v62  ;;  %v2200_v39 = vadd.f32 %v2199_v29, %v2150_v14  ;;  %v2838_v31 = vadd.f32 %v2790_v60, %v2645_v7  ;;  %v2104_v57 = vadd.f32 %v2103_v47, %v2054_v48 }
 0x1fa   : > { %v2545_v7 = vsel %vm2449_vm7, %v2401_v32, %v2497_v42  ;;  %v2500_v60 = vmul.f32 0.01, %v2404_v27  ;;  %v2502_v54 = vmul.f32 0.01, %v2406_v40  ;;  %vm2454_vm10 = vcmp.ge.f32.partialorder %v2406_v40, 0.0 }
 0x1fb   : > { %2884 = vst [vmem:[%s4678_s20 + $0x28] sm:$0xff] %v2836_v18  ;;  %v2646_v16 = vadd.f32 %v4840_v46, %v2200_v39  ;;  %v2648_v8 = vadd.f32 %v4827_v6, %v2104_v57 }
 0x1fc   : > { %2886 = vst [vmem:[%s4678_s20 + $0x38] sm:$0xff] %v2838_v31 }
 0x1fd   : > { %2694 = vst [vmem:[%s4672_s28 + $0x40] sm:$0xff] %v2646_v16  ;;  %v2742_v20 = vsub.f32 %v2542_v13, %v2646_v16  ;;  %v2744_v63 = vsub.f32 %v2544_v41, %v2648_v8  ;;  %v2407_v13 = vadd.f32 %v4824_v33, %v4710_v37 }
 0x1fe   : > { %2696 = vst [vmem:[%s4672_s28 + $0x50] sm:$0xff] %v2648_v8 }
 0x1ff   : > { %v2791_v19 = vmul.f32 %v4670_v28, %v2742_v20  ;;  %v2152_v21 = vpop.f32.mrf.mxu2  ;;  %v2793_v9 = vmul.f32 %v4670_v28, %v2744_v63  ;;  %v2057_v23 = vpop.f32.mrf.mxu0  ;;  %v2550_v20 = vsel %vm2454_vm10, %v2406_v40, %v2502_v54  ;;  %vm2455_vm11 = vcmp.ge.f32.partialorder %v2407_v13, 0.0 }
 0x200   : > { %v2201_v52 = vpop.f32.mrf.mxu3  ;;  %v2106_v61 = vpop.f32.mrf.mxu1 }
 0x201   : > { %v2839_v5 = vadd.f32 %v2791_v19, %v2646_v16  ;;  %v2202_v59 = vadd.f32 %v2201_v52, %v2152_v21  ;;  %v2841_v36 = vadd.f32 %v2793_v9, %v2648_v8  ;;  %v2107_v62 = vadd.f32 %v2106_v61, %v2057_v23 }
 0x202   : > { %v2548_v16 = vsel %vm2452_vm9, %v2404_v27, %v2500_v60  ;;  %v2409_v8 = vadd.f32 %v4811_v44, %v4554_v49  ;;  %v2503_v21 = vmul.f32 0.01, %v2407_v13 }
 0x203   : > { %2887 = vst [vmem:[%s4678_s20 + $0x40] sm:$0xff] %v2839_v5  ;;  %v2649_v2 = vadd.f32 %v4840_v46, %v2202_v59  ;;  %v2651_v45 = vadd.f32 %v4827_v6, %v2107_v62 }
 0x204   : > { %2889 = vst [vmem:[%s4678_s20 + $0x50] sm:$0xff] %v2841_v36  ;;  %v2505_v52 = vmul.f32 0.01, %v2409_v8  ;;  %vm2457_vm12 = vcmp.ge.f32.partialorder %v2409_v8, 0.0  ;;  %v2410_v36 = vadd.f32 %v4824_v33, %v4718_v51  ;;  %v2551_v62 = vsel %vm2455_vm11, %v2407_v13, %v2503_v21 }
 0x205   : > { %2697 = vst [vmem:[%s4672_s28 + $0x58] sm:$0xff] %v2649_v2  ;;  %v2745_v43 = vsub.f32 %v2545_v7, %v2649_v2  ;;  %v2747_v55 = vsub.f32 %v2547_v35, %v2651_v45  ;;  %v2412_v7 = vadd.f32 %v4811_v44, %v4564_v10 }
 0x206   : > { %2699 = vst [vmem:[%s4672_s28 + $0x68] sm:$0xff] %v2651_v45  ;;  %v2553_v27 = vsel %vm2457_vm12, %v2409_v8, %v2505_v52  ;;  %vm2458_vm13 = vcmp.ge.f32.partialorder %v2410_v36, 0.0  ;;  %v2416_v52 = vadd.f32 %v4824_v33, %v4738_v50 }
 0x207   : > { %v2794_v14 = vmul.f32 %v4670_v28, %v2745_v43  ;;  %v2155_v0 = vpop.f32.mrf.mxu2  ;;  %v2796_v25 = vmul.f32 %v4670_v28, %v2747_v55  ;;  %v2059_v48 = vpop.f32.mrf.mxu0  ;;  %v2506_v55 = vmul.f32 0.01, %v2410_v36  ;;  %v2508_v60 = vmul.f32 0.01, %v2412_v7 }
 0x208   : > { %v2204_v29 = vpop.f32.mrf.mxu3  ;;  %v2108_v39 = vpop.f32.mrf.mxu1  ;;  %vm2460_vm14 = vcmp.ge.f32.partialorder %v2412_v7, 0.0  ;;  %vm2464_vm1 = vcmp.ge.f32.partialorder %v2416_v52, 0.0 }
 0x209   : > { %v2842_v18 = vadd.f32 %v2794_v14, %v2649_v2  ;;  %v2205_v22 = vadd.f32 %v2204_v29, %v2155_v0  ;;  %v2844_v47 = vadd.f32 %v2796_v25, %v2651_v45  ;;  %v2109_v31 = vadd.f32 %v2108_v39, %v2059_v48 }
 0x20a   : > { %v2413_v39 = vadd.f32 %v4824_v33, %v4730_v38 }
 0x20b   : > { %2890 = vst [vmem:[%s4678_s20 + $0x58] sm:$0xff] %v2842_v18  ;;  %v2652_v57 = vadd.f32 %v4840_v46, %v2205_v22  ;;  %v2654_v32 = vadd.f32 %v4827_v6, %v2109_v31  ;;  %v2554_v22 = vsel %vm2458_vm13, %v2410_v36, %v2506_v55  ;;  %v2415_v31 = vadd.f32 %v4811_v44, %v4574_v34 }
 0x20c   : > { %2892 = vst [vmem:[%s4678_s20 + $0x68] sm:$0xff] %v2844_v47  ;;  %vm2461_vm15 = vcmp.ge.f32.partialorder %v2413_v39, 0.0 }
 0x20d   : > { %2700 = vst [vmem:[%s4672_s28 + $0x70] sm:$0xff] %v2652_v57  ;;  %v2748_v12 = vsub.f32 %v2548_v16, %v2652_v57  ;;  %v2750_v41 = vsub.f32 %v2550_v20, %v2654_v32  ;;  %v2556_v16 = vsel %vm2460_vm14, %v2412_v7, %v2508_v60  ;;  %vm2463_vm0 = vcmp.ge.f32.partialorder %v2415_v31, 0.0 }
 0x20e   : > { %2702 = vst [vmem:[%s4672_s28 + $0x80] sm:$0xff] %v2654_v32 }
 0x20f   : > { %v2797_v63 = vmul.f32 %v4670_v28, %v2748_v12  ;;  %v2157_v19 = vpop.f32.mrf.mxu2  ;;  %v2799_v42 = vmul.f32 %v4670_v28, %v2750_v41  ;;  %v2062_v9 = vpop.f32.mrf.mxu0  ;;  %v2509_v12 = vmul.f32 0.01, %v2413_v39 }
 0x210   : > { %v2206_v37 = vpop.f32.mrf.mxu3  ;;  %v2111_v17 = vpop.f32.mrf.mxu1 }
 0x211   : > { %v2845_v23 = vadd.f32 %v2797_v63, %v2652_v57  ;;  %v2207_v49 = vadd.f32 %v2206_v37, %v2157_v19  ;;  %v2847_v5 = vadd.f32 %v2799_v42, %v2654_v32  ;;  %v2112_v59 = vadd.f32 %v2111_v17, %v2062_v9 }
 0x212   : > { %v2511_v63 = vmul.f32 0.01, %v2415_v31 }
 0x213   : > { %2893 = vst [vmem:[%s4678_s20 + $0x70] sm:$0xff] %v2845_v23  ;;  %v2655_v61 = vadd.f32 %v4840_v46, %v2207_v49  ;;  %v2657_v2 = vadd.f32 %v4827_v6, %v2112_v59  ;;  %v2557_v23 = vsel %vm2461_vm15, %v2413_v39, %v2509_v12 }
 0x214   : > { %2895 = vst [vmem:[%s4678_s20 + $0x80] sm:$0xff] %v2847_v5  ;;  %v2559_v17 = vsel %vm2463_vm0, %v2415_v31, %v2511_v63  ;;  %v2418_v5 = vadd.f32 %v4811_v44, %v4584_v1  ;;  %v2424_v63 = vadd.f32 %v4811_v44, %v4604_v3 }
 0x215   : > { %2703 = vst [vmem:[%s4672_s28 + $0x88] sm:$0xff] %v2655_v61  ;;  %v2751_v45 = vsub.f32 %v2551_v62, %v2655_v61  ;;  %v2753_v35 = vsub.f32 %v2553_v27, %v2657_v2 }
 0x216   : > { %2705 = vst [vmem:[%s4672_s28 + $0x98] sm:$0xff] %v2657_v2  ;;  %vm2466_vm2 = vcmp.ge.f32.partialorder %v2418_v5, 0.0  ;;  %vm2472_vm6 = vcmp.ge.f32.partialorder %v2424_v63, 0.0 }
 0x217   : > { %v2800_v40 = vmul.f32 %v4670_v28, %v2751_v45  ;;  %v2160_v43 = vpop.f32.mrf.mxu2  ;;  %v2802_v51 = vmul.f32 %v4670_v28, %v2753_v35  ;;  %v2064_v0 = vpop.f32.mrf.mxu0  ;;  %v2514_v45 = vmul.f32 0.01, %v2418_v5 }
 0x218   : > { %v2209_v14 = vpop.f32.mrf.mxu3  ;;  %v2113_v29 = vpop.f32.mrf.mxu1 }
 0x219   : > { %v2848_v25 = vadd.f32 %v2800_v40, %v2655_v61  ;;  %v2210_v10 = vadd.f32 %v2209_v14, %v2160_v43  ;;  %v2850_v48 = vadd.f32 %v2802_v51, %v2657_v2  ;;  %v2114_v54 = vadd.f32 %v2113_v29, %v2064_v0 }
 0x21a   : > { %v2512_v2 = vmul.f32 0.01, %v2416_v52  ;;  %v2419_v0 = vadd.f32 %v4824_v33, %v4750_v24  ;;  %v2562_v29 = vsel %vm2466_vm2, %v2418_v5, %v2514_v45 }
 0x21b   : > { %2896 = vst [vmem:[%s4678_s20 + $0x88] sm:$0xff] %v2848_v25  ;;  %v2658_v18 = vadd.f32 %v4840_v46, %v2210_v10  ;;  %v2660_v47 = vadd.f32 %v4827_v6, %v2114_v54  ;;  %v2421_v25 = vadd.f32 %v4811_v44, %v4594_v30 }
 0x21c   : > { %2898 = vst [vmem:[%s4678_s20 + $0x98] sm:$0xff] %v2850_v48  ;;  %v2560_v14 = vsel %vm2464_vm1, %v2416_v52, %v2512_v2  ;;  %vm2467_vm3 = vcmp.ge.f32.partialorder %v2419_v0, 0.0 }
 0x21d   : > { %2706 = vst [vmem:[%s4672_s28 + $0xa0] sm:$0xff] %v2658_v18  ;;  %v2754_v57 = vsub.f32 %v2554_v22, %v2658_v18  ;;  %v2756_v13 = vsub.f32 %v2556_v16, %v2660_v47  ;;  %v2515_v22 = vmul.f32 0.01, %v2419_v0  ;;  %v2517_v31 = vmul.f32 0.01, %v2421_v25 }
 0x21e   : > { %2708 = vst [vmem:[%s4672_s28 + $0xb0] sm:$0xff] %v2660_v47  ;;  %vm2469_vm4 = vcmp.ge.f32.partialorder %v2421_v25, 0.0 }
 0x21f   : > { %v2803_v32 = vmul.f32 %v4670_v28, %v2754_v57  ;;  %v2162_v8 = vpop.f32.mrf.mxu2  ;;  %v2805_v20 = vmul.f32 %v4670_v28, %v2756_v13  ;;  %v2067_v41 = vpop.f32.mrf.mxu0  ;;  %v2563_v12 = vsel %vm2467_vm3, %v2419_v0, %v2515_v22  ;;  %v5114_v22 = vld [vmem:[#allocation27_spill] sm:$0xff] }
 0x220   : > { %v2211_v38 = vpop.f32.mrf.mxu3  ;;  %v2116_v21 = vpop.f32.mrf.mxu1 }
 0x221   : > { %v2851_v19 = vadd.f32 %v2803_v32, %v2658_v18  ;;  %v2212_v34 = vadd.f32 %v2211_v38, %v2162_v8  ;;  %v2853_v42 = vadd.f32 %v2805_v20, %v2660_v47  ;;  %v2117_v37 = vadd.f32 %v2116_v21, %v2067_v41 }
 0x222   : > { %v2422_v20 = vadd.f32 %v4824_v33, %v4758_v53  ;;  %v2565_v41 = vsel %vm2469_vm4, %v2421_v25, %v2517_v31 }
 0x223   : > { %2899 = vst [vmem:[%s4678_s20 + $0xa0] sm:$0xff] %v2851_v19  ;;  %v2661_v9 = vadd.f32 %v4840_v46, %v2212_v34  ;;  %v2663_v49 = vadd.f32 %v4827_v6, %v2117_v37 }
 0x224   : > { %2901 = vst [vmem:[%s4678_s20 + $0xb0] sm:$0xff] %v2853_v42  ;;  %v2518_v37 = vmul.f32 0.01, %v2422_v20  ;;  %vm2470_vm5 = vcmp.ge.f32.partialorder %v2422_v20, 0.0 }
 0x225   : > { %2709 = vst [vmem:[%s4672_s28 + $0xb8] sm:$0xff] %v2661_v9  ;;  %v2757_v59 = vsub.f32 %v2557_v23, %v2661_v9  ;;  %v2759_v61 = vsub.f32 %v2559_v17, %v2663_v49  ;;  %v2520_v23 = vmul.f32 0.01, %v2424_v63 }
 0x226   : > { %2711 = vst [vmem:[%s4672_s28 + $0xc8] sm:$0xff] %v2663_v49 }
 0x227   : > { %v2806_v36 = vmul.f32 %v4670_v28, %v2757_v59  ;;  %v2165_v62 = vpop.f32.mrf.mxu2  ;;  %v2808_v50 = vmul.f32 %v4670_v28, %v2759_v61  ;;  %v2069_v7 = vpop.f32.mrf.mxu0 }
 0x228   : > { %v2214_v27 = vpop.f32.mrf.mxu3  ;;  %v2118_v40 = vpop.f32.mrf.mxu1 }
 0x229   : > { %v2854_v35 = vadd.f32 %v2806_v36, %v2661_v9  ;;  %v2215_v1 = vadd.f32 %v2214_v27, %v2165_v62  ;;  %v2856_v43 = vadd.f32 %v2808_v50, %v2663_v49  ;;  %v2119_v55 = vadd.f32 %v2118_v40, %v2069_v7 }
 0x22a   : > { %v2566_v36 = vsel %vm2470_vm5, %v2422_v20, %v2518_v37  ;;  %v2425_v62 = vadd.f32 %v4824_v33, %v4770_v4  ;;  %v2427_v50 = vadd.f32 %v4811_v44, %v4614_v26  ;;  %v2568_v7 = vsel %vm2472_vm6, %v2424_v63, %v2520_v23 }
 0x22b   : > { %2902 = vst [vmem:[%s4678_s20 + $0xb8] sm:$0xff] %v2854_v35  ;;  %v2664_v51 = vadd.f32 %v4840_v46, %v2215_v1  ;;  %v2666_v60 = vadd.f32 %v4827_v6, %v2119_v55 }
 0x22c   : > { %2904 = vst [vmem:[%s4678_s20 + $0xc8] sm:$0xff] %v2856_v43  ;;  %v2521_v40 = vmul.f32 0.01, %v2425_v62  ;;  %vm2473_vm7 = vcmp.ge.f32.partialorder %v2425_v62, 0.0  ;;  %vm2475_vm8 = vcmp.ge.f32.partialorder %v2427_v50, 0.0 }
 0x22d   : > { %2712 = vst [vmem:[%s4672_s28 + $0xd0] sm:$0xff] %v2664_v51  ;;  %v2760_v10 = vsub.f32 %v2560_v14, %v2664_v51  ;;  %v2762_v48 = vsub.f32 %v2562_v29, %v2666_v60 }
 0x22e   : > { %2714 = vst [vmem:[%s4672_s28 + $0xe0] sm:$0xff] %v2666_v60  ;;  %v2569_v29 = vsel %vm2473_vm7, %v2425_v62, %v2521_v40  ;;  %v5116_v40 = vld [vmem:[#allocation29_spill] sm:$0xff] }
 0x22f   : > { %v2809_v54 = vmul.f32 %v4670_v28, %v2760_v10  ;;  %v2167_v18 = vpop.f32.mrf.mxu2  ;;  %v2811_v39 = vmul.f32 %v4670_v28, %v2762_v48  ;;  %v2072_v47 = vpop.f32.mrf.mxu0  ;;  %v2428_v48 = vadd.f32 %v4824_v33, %v4778_v58 }
 0x230   : > { %v2216_v24 = vpop.f32.mrf.mxu3  ;;  %v2121_v16 = vpop.f32.mrf.mxu1 }
 0x231   : > { %v2857_v57 = vadd.f32 %v2809_v54, %v2664_v51  ;;  %v2217_v30 = vadd.f32 %v2216_v24, %v2167_v18  ;;  %v2859_v13 = vadd.f32 %v2811_v39, %v2666_v60  ;;  %v2122_v32 = vadd.f32 %v2121_v16, %v2072_v47 }
 0x232   : > { %v2523_v51 = vmul.f32 0.01, %v2427_v50  ;;  %v2430_v39 = vadd.f32 %v4811_v44, %v5114_v22  ;;  %vm2476_vm9 = vcmp.ge.f32.partialorder %v2428_v48, 0.0 }
 0x233   : > { %2905 = vst [vmem:[%s4678_s20 + $0xd0] sm:$0xff] %v2857_v57  ;;  %v2667_v8 = vadd.f32 %v4840_v46, %v2217_v30  ;;  %v2669_v38 = vadd.f32 %v4827_v6, %v2122_v32  ;;  %v2524_v30 = vmul.f32 0.01, %v2428_v48 }
 0x234   : > { %2907 = vst [vmem:[%s4678_s20 + $0xe0] sm:$0xff] %v2859_v13  ;;  %v2571_v18 = vsel %vm2475_vm8, %v2427_v50, %v2523_v51  ;;  %v2526_v32 = vmul.f32 0.01, %v2430_v39  ;;  %vm2478_vm10 = vcmp.ge.f32.partialorder %v2430_v39, 0.0 }
 0x235   : > { %2715 = vst [vmem:[%s4672_s28 + $0xe8] sm:$0xff] %v2667_v8  ;;  %v2763_v19 = vsub.f32 %v2563_v12, %v2667_v8  ;;  %v2765_v34 = vsub.f32 %v2565_v41, %v2669_v38 }
 0x236   : > { %2717 = vst [vmem:[%s4672_s28 + $0xf8] sm:$0xff] %v2669_v38 }
 0x237   : > { %v2812_v21 = vmul.f32 %v4670_v28, %v2763_v19  ;;  %v2170_v42 = vpop.f32.mrf.mxu2  ;;  %v2814_v9 = vmul.f32 %v4670_v28, %v2765_v34  ;;  %v2074_v52 = vpop.f32.mrf.mxu0  ;;  %v2572_v19 = vsel %vm2476_vm9, %v2428_v48, %v2524_v30  ;;  %v2431_v34 = vadd.f32 %v4824_v33, %v4790_v11 }
 0x238   : > { %v2219_v53 = vpop.f32.mrf.mxu3  ;;  %v2123_v17 = vpop.f32.mrf.mxu1 }
 0x239   : > { %v2860_v49 = vadd.f32 %v2812_v21, %v2667_v8  ;;  %v2220_v3 = vadd.f32 %v2219_v53, %v2170_v42  ;;  %v2862_v5 = vadd.f32 %v2814_v9, %v2669_v38  ;;  %v2124_v59 = vadd.f32 %v2123_v17, %v2074_v52  ;;  %v5115_v42 = vld [vmem:[#allocation28_spill] sm:$0xff] }
 0x23a   : > { %v2433_v37 = vadd.f32 %v4811_v44, %v5115_v42  ;;  %v2574_v53 = vsel %vm2478_vm10, %v2430_v39, %v2526_v32  ;;  %vm2479_vm11 = vcmp.ge.f32.partialorder %v2431_v34, 0.0  ;;  %v2437_v39 = vadd.f32 %v4824_v33, %v4813_v15 }
 0x23b   : > { %2908 = vst [vmem:[%s4678_s20 + $0xe8] sm:$0xff] %v2860_v49  ;;  %v2670_v61 = vadd.f32 %v4840_v46, %v2220_v3  ;;  %v2672_v2 = vadd.f32 %v4827_v6, %v2124_v59  ;;  %v2527_v3 = vmul.f32 0.01, %v2431_v34 }
 0x23c   : > { %2910 = vst [vmem:[%s4678_s20 + $0xf8] sm:$0xff] %v2862_v5  ;;  %v2529_v59 = vmul.f32 0.01, %v2433_v37  ;;  %vm2481_vm12 = vcmp.ge.f32.partialorder %v2433_v37, 0.0  ;;  %vm2485_vm15 = vcmp.ge.f32.partialorder %v2437_v39, 0.0 }
 0x23d   : > { %2718 = vst [vmem:[%s4672_s28 + $0x100] sm:$0xff] %v2670_v61  ;;  %v2766_v27 = vsub.f32 %v2566_v36, %v2670_v61  ;;  %v2768_v45 = vsub.f32 %v2568_v7, %v2672_v2  ;;  %v2575_v7 = vsel %vm2479_vm11, %v2431_v34, %v2527_v3 }
 0x23e   : > { %2720 = vst [vmem:[%s4672_s28 + $0x110] sm:$0xff] %v2672_v2 }
 0x23f   : > { %v2815_v35 = vmul.f32 %v4670_v28, %v2766_v27  ;;  %v2172_v1 = vpop.f32.mrf.mxu2  ;;  %v2817_v43 = vmul.f32 %v4670_v28, %v2768_v45  ;;  %v2077_v55 = vpop.f32.mrf.mxu0  ;;  %v2434_v45 = vadd.f32 %v4824_v33, %v4798_v56 }
 0x240   : > { %v2221_v4 = vpop.f32.mrf.mxu3  ;;  %v2126_v0 = vpop.f32.mrf.mxu1 }
 0x241   : > { %v2863_v14 = vadd.f32 %v2815_v35, %v2670_v61  ;;  %v2222_v26 = vadd.f32 %v2221_v4, %v2172_v1  ;;  %v2865_v60 = vadd.f32 %v2817_v43, %v2672_v2  ;;  %v2127_v25 = vadd.f32 %v2126_v0, %v2077_v55 }
 0x242   : > { %v2577_v1 = vsel %vm2481_vm12, %v2433_v37, %v2529_v59  ;;  %v2436_v43 = vadd.f32 %v4811_v44, %v5116_v40  ;;  %vm2482_vm13 = vcmp.ge.f32.partialorder %v2434_v45, 0.0 }
 0x243   : > { %2911 = vst [vmem:[%s4678_s20 + $0x100] sm:$0xff] %v2863_v14  ;;  %v2673_v10 = vadd.f32 %v4840_v46, %v2222_v26  ;;  %v2675_v54 = vadd.f32 %v4827_v6, %v2127_v25  ;;  %v2530_v26 = vmul.f32 0.01, %v2434_v45 }
 0x244   : > { %2913 = vst [vmem:[%s4678_s20 + $0x110] sm:$0xff] %v2865_v60  ;;  %v2532_v25 = vmul.f32 0.01, %v2436_v43  ;;  %vm2484_vm14 = vcmp.ge.f32.partialorder %v2436_v43, 0.0 }
 0x245   : > { %2721 = vst [vmem:[%s4672_s28 + $0x118] sm:$0xff] %v2673_v10  ;;  %v2769_v24 = vsub.f32 %v2569_v29, %v2673_v10  ;;  %v2771_v47 = vsub.f32 %v2571_v18, %v2675_v54  ;;  %v2578_v22 = vsel %vm2482_vm13, %v2434_v45, %v2530_v26 }
 0x246   : > { %2723 = vst [vmem:[%s4672_s28 + $0x128] sm:$0xff] %v2675_v54 }
 0x247   : > { %v2818_v31 = vmul.f32 %v4670_v28, %v2769_v24  ;;  %v2175_v57 = vpop.f32.mrf.mxu2  ;;  %v2820_v16 = vmul.f32 %v4670_v28, %v2771_v47  ;;  %v2079_v13 = vpop.f32.mrf.mxu0 }
 0x248   : > { %v2224_v58 = vpop.f32.mrf.mxu3  ;;  %v2128_v20 = vpop.f32.mrf.mxu1 }
 0x249   : > { %v2866_v8 = vadd.f32 %v2818_v31, %v2673_v10  ;;  %v2225_v12 = vadd.f32 %v2224_v58, %v2175_v57  ;;  %v2868_v38 = vadd.f32 %v2820_v16, %v2675_v54  ;;  %v2129_v41 = vadd.f32 %v2128_v20, %v2079_v13 }
 0x24a   : > { %v2580_v31 = vsel %vm2484_vm14, %v2436_v43, %v2532_v25  ;;  %v2533_v58 = vmul.f32 0.01, %v2437_v39 }
 0x24b   : > { %2914 = vst [vmem:[%s4678_s20 + $0x118] sm:$0xff] %v2866_v8  ;;  %v2676_v63 = vadd.f32 %v4840_v46, %v2225_v12  ;;  %v2678_v21 = vadd.f32 %v4827_v6, %v2129_v41 }
 0x24c   : > { %2916 = vst [vmem:[%s4678_s20 + $0x128] sm:$0xff] %v2868_v38  ;;  %v2581_v12 = vsel %vm2485_vm15, %v2437_v39, %v2533_v58 }
 0x24d   : > { %2724 = vst [vmem:[%s4672_s28 + $0x130] sm:$0xff] %v2676_v63  ;;  %v2772_v9 = vsub.f32 %v2572_v19, %v2676_v63  ;;  %v2774_v52 = vsub.f32 %v2574_v53, %v2678_v21 }
 0x24e   : > { %2726 = vst [vmem:[%s4672_s28 + $0x140] sm:$0xff] %v2678_v21 }
 0x24f   : > { %v2821_v23 = vmul.f32 %v4670_v28, %v2772_v9  ;;  %v2177_v49 = vpop.f32.mrf.mxu2  ;;  %v2823_v17 = vmul.f32 %v4670_v28, %v2774_v52  ;;  %v2082_v5 = vpop.f32.mrf.mxu0 }
 0x250   : > { %v2226_v11 = vpop.f32.mrf.mxu3  ;;  %v2131_v62 = vpop.f32.mrf.mxu1 }
 0x251   : > { %v2869_v61 = vadd.f32 %v2821_v23, %v2676_v63  ;;  %v2227_v36 = vadd.f32 %v2226_v11, %v2177_v49  ;;  %v2871_v2 = vadd.f32 %v2823_v17, %v2678_v21  ;;  %v2132_v50 = vadd.f32 %v2131_v62, %v2082_v5 }
 0x253   : > { %2917 = vst [vmem:[%s4678_s20 + $0x130] sm:$0xff] %v2869_v61  ;;  %v2679_v27 = vadd.f32 %v4840_v46, %v2227_v36  ;;  %v2681_v35 = vadd.f32 %v4827_v6, %v2132_v50 }
 0x254   : > { %2919 = vst [vmem:[%s4678_s20 + $0x140] sm:$0xff] %v2871_v2 }
 0x255   : > { %2727 = vst [vmem:[%s4672_s28 + $0x148] sm:$0xff] %v2679_v27  ;;  %v2775_v4 = vsub.f32 %v2575_v7, %v2679_v27  ;;  %v2777_v55 = vsub.f32 %v2577_v1, %v2681_v35 }
 0x256   : > { %2729 = vst [vmem:[%s4672_s28 + $0x158] sm:$0xff] %v2681_v35 }
 0x257   : > { %v2824_v51 = vmul.f32 %v4670_v28, %v2775_v4  ;;  %v2180_v14 = vpop.f32.mrf.mxu2  ;;  %v2826_v0 = vmul.f32 %v4670_v28, %v2777_v55  ;;  %v2084_v60 = vpop.f32.mrf.mxu0 }
 0x258   : > { %v2229_v56 = vpop.f32.mrf.mxu3  ;;  %v2133_v29 = vpop.f32.mrf.mxu1 }
 0x259   : > { %v2872_v10 = vadd.f32 %v2824_v51, %v2679_v27  ;;  %v2230_v44 = vadd.f32 %v2229_v56, %v2180_v14  ;;  %v2874_v48 = vadd.f32 %v2826_v0, %v2681_v35  ;;  %v2134_v54 = vadd.f32 %v2133_v29, %v2084_v60 }
 0x25b   : > { %2920 = vst [vmem:[%s4678_s20 + $0x148] sm:$0xff] %v2872_v10  ;;  %v2682_v18 = vadd.f32 %v4840_v46, %v2230_v44  ;;  %v2684_v24 = vadd.f32 %v4827_v6, %v2134_v54 }
 0x25c   : > { %2922 = vst [vmem:[%s4678_s20 + $0x158] sm:$0xff] %v2874_v48 }
 0x25d   : > { %2730 = vst [vmem:[%s4672_s28 + $0x160] sm:$0xff] %v2682_v18  ;;  %v2778_v47 = vsub.f32 %v2578_v22, %v2682_v18  ;;  %v2780_v57 = vsub.f32 %v2580_v31, %v2684_v24 }
 0x25e   : > { %2732 = vst [vmem:[%s4672_s28 + $0x170] sm:$0xff] %v2684_v24 }
 0x25f   : > { %v2827_v30 = vmul.f32 %v4670_v28, %v2778_v47  ;;  %v2182_v16 = vpop.f32.mrf.mxu2  ;;  %v2829_v15 = vmul.f32 %v4670_v28, %v2780_v57 }
 0x260   : > { %v2231_v33 = vpop.f32.mrf.mxu3 }
 0x261   : > { %v2875_v6 = vadd.f32 %v2827_v30, %v2682_v18  ;;  %v2232_v13 = vadd.f32 %v2231_v33, %v2182_v16  ;;  %v2877_v32 = vadd.f32 %v2829_v15, %v2684_v24 }
 0x263   : > { %2923 = vst [vmem:[%s4678_s20 + $0x160] sm:$0xff] %v2875_v6  ;;  %v2685_v8 = vadd.f32 %v4840_v46, %v2232_v13 }
 0x264   : > { %2925 = vst [vmem:[%s4678_s20 + $0x170] sm:$0xff] %v2877_v32 }
 0x265   : > { %2733 = vst [vmem:[%s4672_s28 + $0x178] sm:$0xff] %v2685_v8  ;;  %v2781_v20 = vsub.f32 %v2581_v12, %v2685_v8 }
 0x266   : > { %4098 = shalt.err (!%p4095_p0)
}
 0x267   : > { %s4205_s28 = smov 384   ;;  %s4206_s25 = smov 24   ;;  %v2830_v46 = vmul.f32 %v4670_v28, %v2781_v20 }
 0x268   : > { %3865 = dma.vmem_to_hbm [thread:$0]  (%p4334_p7), %s2969_s27, 6144, %s2971_s3, %s2933_s19, %s4205_s28, %s4205_s28, %s4206_s25  }
 0x269   : > { %v2878_v38 = vadd.f32 %v2830_v46, %v2685_v8  ;;  %s2928_s26 = scalar_lea.sflag [#allocation7], %s4359_s17  ;;  %s4113_s10 = sshra.s32 %s2951_s11, 4  ;;  %s4114_s10 = int_to_ptr.hbm [resolvable:$true] %s4113_s10 }
 0x26a   : > { %s4115_s15 = scalar_lea.hbm %s4114_s10, 384  ;;  %s4119_s12 = scalar_lea.hbm %s5091_s7, 768 }
 0x26b   : > { %2926 = vst [vmem:[%s4678_s20 + $0x178] sm:$0xff] %v2878_v38  ;;  %p4116_p3 = scmp.ne.s32.totalorder %s4114_s10, %s4115_s15  ;;  %p4120_p2 = scmp.lt.s32.totalorder %s4114_s10, %s5091_s7 }
 0x26c   : > { %p4121_p1 = scmp.lt.s32.totalorder %s4119_s12, %s4115_s15 }
 0x26d   : > { %p4117_p5 = pnand %p4116_p3, %p4334_p7 }
 0x26e   : > { %p4122_p4 = por %p4121_p1, %p4120_p2 }
 0x26f   : > { %p4118_p9 = pneg %p4117_p5 }
 0x271   : > { %p4123_p8 = pnand %p4122_p4, %p4118_p9 }
 0x273   : > { %4126 = shalt.err (!%p4123_p8)
}
 0x274   : > { %3864 = dma.vmem_to_hbm [thread:$0]  (%p4334_p7), %s2949_s9, 6144, %s2951_s11, %s2928_s26, %s4205_s28, %s4205_s28, %s4206_s25  }
 0x275 PF: > { %s2985_s20 = sand.u32 1, %s4177_s29   ;;  %p3883_p10 = pnand %p3183_p11, %p4300_p6 }
 0x276   : > { %s2986_s3 = scalar_lea.sflag [#allocation7], %s2985_s20 }
 0x277   : > { %p3884_p12 = pneg %p3883_p10 }
 0x279   : > { %4168 = dma.done.wait (%p3884_p12), %s2986_s3, 6144  }
 0x27a   : > { %4170 = vsyncadd (%p3884_p12), %s2986_s3, 4294961152  ;;  %s2996_s19 = scalar_lea.sflag [#allocation15], %s2985_s20 }
 0x27b   : > { %4172 = dma.done.wait (%p3884_p12), %s2996_s19, 6144  }
 0x27c   : > { %4174 = vsyncadd (%p3884_p12), %s2996_s19, 4294961152  ;;  %s33_s0 = sadd.s32 1, %s4197_s0   ;;  %s5118_s18 = sld [smem:[#allocation22_spill]] }
 0x27d   : > { %p30_p13 = scmp.ge.s32.totalorder %s33_s0, 4   ;;  %s5119_s9 = sld [smem:[#allocation26_spill]] }
 0x27e   : > { %s5120_s10 = sld [smem:[#allocation23_spill]]  ;;  %s5122_s29 = smov %s4181_s30 }
 0x27f   : > { %s5121_s11 = sld [smem:[#allocation25_spill]]  ;;  %32 = sbr.rel (!%p30_p13) target bundleno = 15 (0xf), region = 147 }
 0x282   : > { %s5123_s30 = smov %s5118_s18 }
 0x284   :  { %3002 = vsyncpa [#allocation6], 1 }
 0x285   :  { %3004 = vsyncpa [#allocation6 + $0x1], 1 }
 0x286   :  { %3005 = vsyncpa [#allocation9], 1 }
 0x287   :  { %3007 = vsyncpa [#allocation9 + $0x1], 1 }
 0x288   :  { %3008 = vsyncpa [#allocation12], 1 }
 0x289   :  { %3009 = vsyncpa [#allocation7], 1 }
 0x28a   :  { %3011 = vsyncpa [#allocation7 + $0x1], 1 }
 0x28b   :  { %3012 = vsyncpa [#allocation15], 1 }
 0x28c   :  { %3014 = vsyncpa [#allocation15 + $0x1], 1 }

</bundles_post_ra>
